<compile_context>
chip_gen: v5e
topology: v5e:2x2
jax: 0.10.0
libtpu: 0.0.40
codegen_flags: <defaults>
</compile_context>

<pallas_src>
import functools

import jax
import jax.numpy as jnp
from jax.experimental import pallas as pl
from jax.experimental.pallas import tpu as pltpu

# ---------------- small synthetic config (stand-in for mamba-130m) ----------
B = 2            # batch
T = 8            # sequence length (max_length analogue)
D = 32           # hidden size
E = 64           # intermediate (expanded) size
N = 8            # SSM state size
DT_RANK = 2      # time-step rank
K = 4            # depthwise conv kernel size
V = 128          # vocab size (128 -> lane-dense logits)
NUM_LAYERS = 4   # encoder layers (stand-in for 24)
SPLIT = 2        # layers [0, SPLIT) ~ layer_range(21); [SPLIT, NUM_LAYERS) ~ range(21, 24)
L2 = NUM_LAYERS - SPLIT          # VAE-state / decoder layers
L_TOT = NUM_LAYERS + L2          # total distinct layer weight slots (enc + dec)
P = E + 2 * N                    # fused x_proj width: [dt | B | C]
PPAD = 128                       # x_proj output padded to full lanes
EPS = 1e-5


def _silu(x):
    return x * (1.0 / (1.0 + jnp.exp(-x)))


def _softplus(x):
    return jnp.maximum(x, 0.0) + jnp.log(1.0 + jnp.exp(-jnp.abs(x)))


# ------------------------- fully fused forward kernel ------------------------
def mamba_vae_kernel(tgt_ref,       # (B*T, 1) int32 shifted CE targets, -1 = ignore
                     hid_ref,       # (B*T, D) f32 token embeddings (flattened)
                     inproj_ref,    # (L_TOT, D, 2E) bf16, RMSNorm weight folded in
                     small_ref,     # (L_TOT, K+3+N, E) f32: conv_w | conv_b | dt_b | D | -exp(A_log).T
                     xproj_ref,     # (L_TOT, E, PPAD) bf16, dt_proj folded, zero padded
                     outproj_ref,   # (L_TOT, E, D) bf16
                     lmhead_ref,    # (D, V) bf16, norm_f folded in
                     noise_ref,     # (L2, B, N, E) f32 VAE sampling noise (0 in eval)
                     logits_ref,    # out (B, T, V) f32
                     states_ref,    # out (L2, N, B*E) f32 packed post-noise states
                     loss_ref):     # out (1, 128) f32 summed NLL (broadcast)
    R = B * T
    h = hid_ref[...].astype(jnp.float32)                         # (R, D) residual stream

    def rms_norm(x):
        var = jnp.mean(x * x, axis=-1, keepdims=True)
        return x * jax.lax.rsqrt(var + EPS)

    def layer(h, l, init_states):
        """One Mamba block (norm folded into in_proj, dt_proj folded into x_proj)."""
        xn = rms_norm(h)
        proj = jnp.dot(xn.astype(jnp.bfloat16), inproj_ref[l],
                       preferred_element_type=jnp.float32)       # (R, 2E)
        x_in = proj[:, :E]
        z = proj[:, E:]

        small = small_ref[l]                                     # (K+3+N, E) f32
        conv_w = small[0:K, :]
        conv_b = small[K:K + 1, :]
        dt_b = small[K + 1:K + 2, :]
        d_prm = small[K + 2:K + 3, :]
        A = small[K + 3:K + 3 + N, :]                            # == (-exp(A_log)).T

        # causal depthwise conv along T (per batch), K whole-tile FMAs
        x_conv_parts = []
        for b in range(B):
            xb = x_in[b * T:(b + 1) * T, :]                      # (T, E)
            x_pad = jnp.concatenate(
                [jnp.zeros((K - 1, E), jnp.float32), xb], axis=0)
            xc = conv_b + conv_w[0:1, :] * x_pad[0:T, :]
            for k in range(1, K):
                xc = xc + conv_w[k:k + 1, :] * x_pad[k:k + T, :]
            x_conv_parts.append(_silu(xc))
        x_conv = jnp.concatenate(x_conv_parts, axis=0)           # (R, E)

        # SSM parameterization (dt_proj folded into x_proj; output padded to 128)
        ssm_in = jnp.dot(x_conv.astype(jnp.bfloat16), xproj_ref[l],
                         preferred_element_type=jnp.float32)     # (R, PPAD)
        dt = _softplus(ssm_in[:, :E] + dt_b)                     # (R, E)
        Bm = ssm_in[:, E:E + N]                                  # (R, N)
        Cm = ssm_in[:, E + N:E + 2 * N]                          # (R, N)

        # hoist time-invariant SSM math out of the recurrence (one big EUP exp)
        dA = jnp.exp(dt[:, None, :] * A[None, :, :])             # (R, N, E)
        dBx = (dt * x_conv)[:, None, :] * Bm[:, :, None]         # (R, N, E)

        y_parts, last_states = [], []
        for b in range(B):
            dA_b = dA[b * T:(b + 1) * T]
            dBx_b = dBx[b * T:(b + 1) * T]
            Cm_b = Cm[b * T:(b + 1) * T]                         # (T, N)
            state = (init_states[b] if init_states is not None
                     else jnp.zeros((N, E), jnp.float32))
            hs = []
            for t in range(T):                                   # only this is serial
                state = dA_b[t] * state + dBx_b[t]
                hs.append(state)
            hs_all = jnp.stack(hs, axis=0)                       # (T, N, E)
            # TODO(synk): at large T fold this C-reduction into the scan to avoid
            # the (T, N, E) intermediate; at T=8 it is 16 KB and irrelevant.
            y_parts.append(jnp.sum(hs_all * Cm_b[:, :, None], axis=1))   # (T, E)
            last_states.append(state)
        y = jnp.concatenate(y_parts, axis=0)                     # (R, E)
        y = y + d_prm * x_conv                                   # skip connection
        y = y * _silu(z)                                         # gate

        out = jnp.dot(y.astype(jnp.bfloat16), outproj_ref[l],
                      preferred_element_type=jnp.float32)        # (R, D)
        return h + out, last_states

    # ---------------- encoder first pass: layers [0, SPLIT) -------------------
    for l in range(SPLIT):
        h, _ = layer(h, l, None)
    h_save = h     # hidden_states fed to both the VAE pass and the decoder

    # -------- encoder VAE pass: layers [SPLIT, NUM_LAYERS), collect mu --------
    noise = noise_ref[...].astype(jnp.float32)                   # (L2, B, N, E)
    post_states = []                                             # mu + noise
    for j in range(L2):
        h, last = layer(h, SPLIT + j, None)
        post_states.append([last[b] + noise[j, b] for b in range(B)])

    # ------------- decoder: fresh layer weights on h_save + VAE states --------
    h = h_save
    for j in range(L2):
        h, _ = layer(h, NUM_LAYERS + j, post_states[j])

    # ------------------- final norm (folded) + LM head + CE -------------------
    xn = rms_norm(h)
    logits = jnp.dot(xn.astype(jnp.bfloat16), lmhead_ref[...],
                     preferred_element_type=jnp.float32)         # (R, V)
    logits_ref[...] = logits.reshape(B, T, V)

    # lane-dense VAE-state output: (L2, N, B*E) = (2, 8, 128)
    for j in range(L2):
        states_ref[j] = jnp.concatenate(post_states[j], axis=1)  # (N, B*E)

    # shifted cross entropy: predict token t+1 from position t (vectorized)
    m = jnp.max(logits, axis=-1, keepdims=True)
    lse = m + jnp.log(jnp.sum(jnp.exp(logits - m), axis=-1, keepdims=True))   # (R, 1)
    tgt = tgt_ref[...]                                           # (R, 1)
    vio = jax.lax.broadcasted_iota(jnp.int32, (R, V), 1)
    picked = jnp.sum(jnp.where(vio == tgt, logits, 0.0), axis=-1, keepdims=True)
    nll = jnp.sum(jnp.where(tgt >= 0, lse - picked, 0.0))
    loss_ref[...] = jnp.full((1, 128), nll, dtype=jnp.float32)


def fused_forward(tgt_flat, hidden_flat, w, noise):
    cost = pl.CostEstimate(flops=3_300_000, transcendentals=80_000,
                           bytes_accessed=250_000)
    return pl.pallas_call(
        mamba_vae_kernel,
        out_shape=(
            jax.ShapeDtypeStruct((B, T, V), jnp.float32),        # logits
            jax.ShapeDtypeStruct((L2, N, B * E), jnp.float32),   # packed VAE states
            jax.ShapeDtypeStruct((1, 128), jnp.float32),         # summed NLL
        ),
        compiler_params=pltpu.CompilerParams(
            vmem_limit_bytes=32 * 1024 * 1024),
        cost_estimate=cost,
    )(tgt_flat, hidden_flat, w['in_proj'], w['small'], w['x_proj'],
      w['out_proj'], w['lm_head'], noise)


# ------------------------------ parameters -----------------------------------
def init_layer_params(key):
    ks = jax.random.split(key, 5)
    s = 0.02
    return {
        'norm_w': jnp.ones((1, D), jnp.float32),
        'in_proj': jax.random.normal(ks[0], (D, 2 * E), jnp.float32) * s,
        'conv_w': jax.random.normal(ks[1], (K, E), jnp.float32) * s,
        'conv_b': jnp.zeros((1, E), jnp.float32),
        'x_proj': jax.random.normal(ks[2], (E, DT_RANK + 2 * N), jnp.float32) * s,
        'dt_w': jax.random.normal(ks[3], (DT_RANK, E), jnp.float32) * s,
        'dt_b': jnp.full((1, E), 0.5, jnp.float32),
        'a_log': jnp.tile(jnp.log(jnp.arange(1, N + 1, dtype=jnp.float32))[None, :], (E, 1)),
        'd': jnp.ones((1, E), jnp.float32),
        'out_proj': jax.random.normal(ks[4], (E, D), jnp.float32) * s,
    }


def init_params(key):
    keys = jax.random.split(key, NUM_LAYERS + L2 + 1)
    enc_layers = [init_layer_params(keys[i]) for i in range(NUM_LAYERS)]
    dec_layers = [init_layer_params(keys[NUM_LAYERS + j]) for j in range(L2)]
    emb = jax.random.normal(keys[-1], (V, D), jnp.float32) * 0.02
    return {
        'encoder': {'embedding': emb, 'layers': enc_layers},
        'decoder': {'layers': dec_layers,
                    'norm_f': jnp.ones((1, D), jnp.float32),
                    'lm_head': emb.T},   # tied, like MambaForCausalLM
    }


def pack_params(params):
    """Fold norms / dt_proj into adjacent matmuls, fuse small slabs, stack layers."""
    layers = list(params['encoder']['layers']) + list(params['decoder']['layers'])
    in_proj, small, x_proj, out_proj = [], [], [], []
    for p in layers:
        in_proj.append((p['norm_w'].reshape(D, 1) * p['in_proj']).astype(jnp.bfloat16))
        a_neg = -jnp.exp(p['a_log']).T                                          # (N, E)
        small.append(jnp.concatenate(
            [p['conv_w'], p['conv_b'], p['dt_b'], p['d'], a_neg], axis=0))      # (K+3+N, E)
        xp = jnp.concatenate(
            [jnp.dot(p['x_proj'][:, :DT_RANK], p['dt_w']),
             p['x_proj'][:, DT_RANK:]], axis=1)                                 # (E, E+2N)
        xp = jnp.pad(xp, ((0, 0), (0, PPAD - P)))                               # (E, 128)
        x_proj.append(xp.astype(jnp.bfloat16))
        out_proj.append(p['out_proj'].astype(jnp.bfloat16))
    return {
        'in_proj': jnp.stack(in_proj),
        'small': jnp.stack(small),
        'x_proj': jnp.stack(x_proj),
        'out_proj': jnp.stack(out_proj),
        'lm_head': (params['decoder']['norm_f'].reshape(D, 1)
                    * params['decoder']['lm_head']).astype(jnp.bfloat16),
    }


# ------------------------------- forward -------------------------------------
def mamba_vae_forward(params, input_ids, do_sample=False, key=None):
    w = pack_params(params)
    hidden = params['encoder']['embedding'][input_ids]           # (B, T, D) gather glue
    hidden_flat = hidden.reshape(B * T, D).astype(jnp.float32)

    # shifted CE targets; -1 marks the ignored last position of each sequence
    tgt = jnp.concatenate(
        [input_ids[:, 1:], jnp.full((B, 1), -1, dtype=jnp.int32)], axis=1)
    tgt_flat = tgt.reshape(B * T, 1).astype(jnp.int32)

    if do_sample:
        noise = jax.random.normal(key, (L2, B, N, E), jnp.float32) * 0.1
    else:
        noise = jnp.zeros((L2, B, N, E), jnp.float32)

    logits, states_packed, loss_part = fused_forward(tgt_flat, hidden_flat, w, noise)

    loss = loss_part[0, 0] / float(B * (T - 1))
    states_nbe = states_packed.reshape(L2, N, B, E).transpose(0, 2, 1, 3)  # (L2, B, N, E)
    states = jnp.swapaxes(states_nbe, -1, -2)                    # (L2, B, E, N)
    if do_sample:
        mu = states_nbe - noise                                  # pre-noise mu
        kl_loss = 0.5 * jnp.sum(mu ** 2) / states.shape[0]
    else:
        kl_loss = jnp.float32(0.0)
    # TODO(synk): with a partial layer_range the custom MambaModel's application of
    # norm_f to the intermediate encoder output is ambiguous; we skip it here.
    return loss, kl_loss, logits, states


# --------------------------------- main ---------------------------------------
if __name__ == "__main__":
    root = jax.random.PRNGKey(0)
    pkey, dkey = jax.random.split(root)
    params = init_params(pkey)
    input_ids = jax.random.randint(dkey, (B, T), 0, V, dtype=jnp.int32)

    fwd = jax.jit(functools.partial(mamba_vae_forward, do_sample=False))
    loss, kl, logits, states = fwd(params, input_ids)
    jax.block_until_ready((loss, kl, logits, states))

    assert logits.shape == (B, T, V)
    assert states.shape == (L2, B, E, N)
    assert bool(jnp.isfinite(loss)) and bool(jnp.all(jnp.isfinite(logits)))
    assert bool(jnp.all(jnp.isfinite(states)))
    print("KERNEL_OK")
</pallas_src>

<mosaic_0001>
module attributes {stable_mosaic.version = 11 : i64} {
  func.func @mamba_vae_kernel(%arg0: memref<16x1xi32, #tpu.memory_space<vmem>>, %arg1: memref<16x32xf32, #tpu.memory_space<vmem>>, %arg2: memref<6x32x128xbf16, #tpu.memory_space<vmem>>, %arg3: memref<6x15x64xf32, #tpu.memory_space<vmem>>, %arg4: memref<6x64x128xbf16, #tpu.memory_space<vmem>>, %arg5: memref<6x64x32xbf16, #tpu.memory_space<vmem>>, %arg6: memref<32x128xbf16, #tpu.memory_space<vmem>>, %arg7: memref<2x2x8x64xf32, #tpu.memory_space<vmem>>, %arg8: memref<2x8x128xf32, #tpu.memory_space<vmem>>, %arg9: memref<2x8x128xf32, #tpu.memory_space<vmem>>, %arg10: memref<1x128xf32, #tpu.memory_space<vmem>>) attributes {dimension_semantics = [], scalar_prefetch = 0 : i64, scratch_operands = 0 : i64, tpu.core_type = #tpu.core_type<tc>} {
    %c0 = arith.constant 0 : index
    %c0_0 = arith.constant 0 : index
    %0 = vector.load %arg1[%c0, %c0_0] : memref<16x32xf32, #tpu.memory_space<vmem>>, vector<16x32xf32>
    %1 = arith.mulf %0, %0 : vector<16x32xf32>
    %cst = arith.constant dense<0.000000e+00> : vector<16xf32>
    %2 = vector.multi_reduction <add>, %1, %cst [1] : vector<16x32xf32> to vector<16xf32>
    %3 = vector.shape_cast %2 : vector<16xf32> to vector<16x1xf32>
    %cst_1 = arith.constant 3.200000e+01 : f32
    %4 = vector.broadcast %cst_1 : f32 to vector<16x1xf32>
    %5 = arith.divf %3, %4 : vector<16x1xf32>
    %cst_2 = arith.constant 9.99999974E-6 : f32
    %6 = vector.broadcast %cst_2 : f32 to vector<16x1xf32>
    %7 = arith.addf %5, %6 : vector<16x1xf32>
    %8 = math.rsqrt %7 : vector<16x1xf32>
    %9 = vector.broadcast %8 : vector<16x1xf32> to vector<16x32xf32>
    %10 = arith.mulf %0, %9 : vector<16x32xf32>
    %11 = arith.truncf %10 : vector<16x32xf32> to vector<16x32xbf16>
    %c0_3 = arith.constant 0 : index
    %c0_4 = arith.constant 0 : index
    %c0_5 = arith.constant 0 : index
    %12 = vector.load %arg2[%c0_3, %c0_4, %c0_5] : memref<6x32x128xbf16, #tpu.memory_space<vmem>>, vector<1x32x128xbf16>
    %13 = vector.shape_cast %12 : vector<1x32x128xbf16> to vector<32x128xbf16>
    %cst_6 = arith.constant dense<0.000000e+00> : vector<16x128xf32>
    %14 = tpu.matmul %11, %13, %cst_6 {dimension_numbers = #tpu.dot_dimension_numbers<[1], [0], [0], [1], [0, 0, 1, 1], [], []>} : vector<16x32xbf16>, vector<32x128xbf16>, vector<16x128xf32> -> vector<16x128xf32>
    %15 = vector.extract_strided_slice %14 {offsets = [0, 0], sizes = [16, 64], strides = [1, 1]} : vector<16x128xf32> to vector<16x64xf32>
    %16 = vector.extract_strided_slice %14 {offsets = [0, 64], sizes = [16, 64], strides = [1, 1]} : vector<16x128xf32> to vector<16x64xf32>
    %c0_7 = arith.constant 0 : index
    %c0_8 = arith.constant 0 : index
    %c0_9 = arith.constant 0 : index
    %17 = vector.load %arg3[%c0_7, %c0_8, %c0_9] : memref<6x15x64xf32, #tpu.memory_space<vmem>>, vector<1x15x64xf32>
    %18 = vector.shape_cast %17 : vector<1x15x64xf32> to vector<15x64xf32>
    %19 = vector.extract_strided_slice %18 {offsets = [0, 0], sizes = [4, 64], strides = [1, 1]} : vector<15x64xf32> to vector<4x64xf32>
    %20 = vector.extract_strided_slice %18 {offsets = [4, 0], sizes = [1, 64], strides = [1, 1]} : vector<15x64xf32> to vector<1x64xf32>
    %21 = vector.extract_strided_slice %18 {offsets = [5, 0], sizes = [1, 64], strides = [1, 1]} : vector<15x64xf32> to vector<1x64xf32>
    %22 = vector.extract_strided_slice %18 {offsets = [6, 0], sizes = [1, 64], strides = [1, 1]} : vector<15x64xf32> to vector<1x64xf32>
    %23 = vector.extract_strided_slice %18 {offsets = [7, 0], sizes = [8, 64], strides = [1, 1]} : vector<15x64xf32> to vector<8x64xf32>
    %24 = vector.extract_strided_slice %15 {offsets = [0, 0], sizes = [8, 64], strides = [1, 1]} : vector<16x64xf32> to vector<8x64xf32>
    %cst_10 = arith.constant 0.000000e+00 : f32
    %25 = vector.broadcast %cst_10 : f32 to vector<3x64xf32>
    %26 = tpu.concatenate %25, %24 in 0 : vector<3x64xf32>, vector<8x64xf32> -> vector<11x64xf32>
    %27 = vector.extract_strided_slice %19 {offsets = [0, 0], sizes = [1, 64], strides = [1, 1]} : vector<4x64xf32> to vector<1x64xf32>
    %28 = vector.extract_strided_slice %26 {offsets = [0, 0], sizes = [8, 64], strides = [1, 1]} : vector<11x64xf32> to vector<8x64xf32>
    %29 = vector.broadcast %27 : vector<1x64xf32> to vector<8x64xf32>
    %30 = arith.mulf %29, %28 : vector<8x64xf32>
    %31 = vector.broadcast %20 : vector<1x64xf32> to vector<8x64xf32>
    %32 = arith.addf %31, %30 : vector<8x64xf32>
    %33 = vector.extract_strided_slice %19 {offsets = [1, 0], sizes = [1, 64], strides = [1, 1]} : vector<4x64xf32> to vector<1x64xf32>
    %34 = vector.extract_strided_slice %26 {offsets = [1, 0], sizes = [8, 64], strides = [1, 1]} : vector<11x64xf32> to vector<8x64xf32>
    %35 = vector.broadcast %33 : vector<1x64xf32> to vector<8x64xf32>
    %36 = arith.mulf %35, %34 : vector<8x64xf32>
    %37 = arith.addf %32, %36 : vector<8x64xf32>
    %38 = vector.extract_strided_slice %19 {offsets = [2, 0], sizes = [1, 64], strides = [1, 1]} : vector<4x64xf32> to vector<1x64xf32>
    %39 = vector.extract_strided_slice %26 {offsets = [2, 0], sizes = [8, 64], strides = [1, 1]} : vector<11x64xf32> to vector<8x64xf32>
    %40 = vector.broadcast %38 : vector<1x64xf32> to vector<8x64xf32>
    %41 = arith.mulf %40, %39 : vector<8x64xf32>
    %42 = arith.addf %37, %41 : vector<8x64xf32>
    %43 = vector.extract_strided_slice %19 {offsets = [3, 0], sizes = [1, 64], strides = [1, 1]} : vector<4x64xf32> to vector<1x64xf32>
    %44 = vector.extract_strided_slice %26 {offsets = [3, 0], sizes = [8, 64], strides = [1, 1]} : vector<11x64xf32> to vector<8x64xf32>
    %45 = vector.broadcast %43 : vector<1x64xf32> to vector<8x64xf32>
    %46 = arith.mulf %45, %44 : vector<8x64xf32>
    %47 = arith.addf %42, %46 : vector<8x64xf32>
    %cst_11 = arith.constant 0.000000e+00 : f32
    %48 = vector.broadcast %cst_11 : f32 to vector<8x64xf32>
    %49 = arith.subf %48, %47 : vector<8x64xf32>
    %50 = math.exp %49 : vector<8x64xf32>
    %cst_12 = arith.constant 1.000000e+00 : f32
    %51 = vector.broadcast %cst_12 : f32 to vector<8x64xf32>
    %52 = arith.addf %51, %50 : vector<8x64xf32>
    %cst_13 = arith.constant 1.000000e+00 : f32
    %53 = vector.broadcast %cst_13 : f32 to vector<8x64xf32>
    %54 = arith.divf %53, %52 : vector<8x64xf32>
    %55 = arith.mulf %47, %54 : vector<8x64xf32>
    %56 = vector.extract_strided_slice %15 {offsets = [8, 0], sizes = [8, 64], strides = [1, 1]} : vector<16x64xf32> to vector<8x64xf32>
    %cst_14 = arith.constant 0.000000e+00 : f32
    %57 = vector.broadcast %cst_14 : f32 to vector<3x64xf32>
    %58 = tpu.concatenate %57, %56 in 0 : vector<3x64xf32>, vector<8x64xf32> -> vector<11x64xf32>
    %59 = vector.extract_strided_slice %19 {offsets = [0, 0], sizes = [1, 64], strides = [1, 1]} : vector<4x64xf32> to vector<1x64xf32>
    %60 = vector.extract_strided_slice %58 {offsets = [0, 0], sizes = [8, 64], strides = [1, 1]} : vector<11x64xf32> to vector<8x64xf32>
    %61 = vector.broadcast %59 : vector<1x64xf32> to vector<8x64xf32>
    %62 = arith.mulf %61, %60 : vector<8x64xf32>
    %63 = vector.broadcast %20 : vector<1x64xf32> to vector<8x64xf32>
    %64 = arith.addf %63, %62 : vector<8x64xf32>
    %65 = vector.extract_strided_slice %19 {offsets = [1, 0], sizes = [1, 64], strides = [1, 1]} : vector<4x64xf32> to vector<1x64xf32>
    %66 = vector.extract_strided_slice %58 {offsets = [1, 0], sizes = [8, 64], strides = [1, 1]} : vector<11x64xf32> to vector<8x64xf32>
    %67 = vector.broadcast %65 : vector<1x64xf32> to vector<8x64xf32>
    %68 = arith.mulf %67, %66 : vector<8x64xf32>
    %69 = arith.addf %64, %68 : vector<8x64xf32>
    %70 = vector.extract_strided_slice %19 {offsets = [2, 0], sizes = [1, 64], strides = [1, 1]} : vector<4x64xf32> to vector<1x64xf32>
    %71 = vector.extract_strided_slice %58 {offsets = [2, 0], sizes = [8, 64], strides = [1, 1]} : vector<11x64xf32> to vector<8x64xf32>
    %72 = vector.broadcast %70 : vector<1x64xf32> to vector<8x64xf32>
    %73 = arith.mulf %72, %71 : vector<8x64xf32>
    %74 = arith.addf %69, %73 : vector<8x64xf32>
    %75 = vector.extract_strided_slice %19 {offsets = [3, 0], sizes = [1, 64], strides = [1, 1]} : vector<4x64xf32> to vector<1x64xf32>
    %76 = vector.extract_strided_slice %58 {offsets = [3, 0], sizes = [8, 64], strides = [1, 1]} : vector<11x64xf32> to vector<8x64xf32>
    %77 = vector.broadcast %75 : vector<1x64xf32> to vector<8x64xf32>
    %78 = arith.mulf %77, %76 : vector<8x64xf32>
    %79 = arith.addf %74, %78 : vector<8x64xf32>
    %cst_15 = arith.constant 0.000000e+00 : f32
    %80 = vector.broadcast %cst_15 : f32 to vector<8x64xf32>
    %81 = arith.subf %80, %79 : vector<8x64xf32>
    %82 = math.exp %81 : vector<8x64xf32>
    %cst_16 = arith.constant 1.000000e+00 : f32
    %83 = vector.broadcast %cst_16 : f32 to vector<8x64xf32>
    %84 = arith.addf %83, %82 : vector<8x64xf32>
    %cst_17 = arith.constant 1.000000e+00 : f32
    %85 = vector.broadcast %cst_17 : f32 to vector<8x64xf32>
    %86 = arith.divf %85, %84 : vector<8x64xf32>
    %87 = arith.mulf %79, %86 : vector<8x64xf32>
    %88 = tpu.concatenate %55, %87 in 0 : vector<8x64xf32>, vector<8x64xf32> -> vector<16x64xf32>
    %89 = arith.truncf %88 : vector<16x64xf32> to vector<16x64xbf16>
    %c0_18 = arith.constant 0 : index
    %c0_19 = arith.constant 0 : index
    %c0_20 = arith.constant 0 : index
    %90 = vector.load %arg4[%c0_18, %c0_19, %c0_20] : memref<6x64x128xbf16, #tpu.memory_space<vmem>>, vector<1x64x128xbf16>
    %91 = vector.shape_cast %90 : vector<1x64x128xbf16> to vector<64x128xbf16>
    %cst_21 = arith.constant dense<0.000000e+00> : vector<16x128xf32>
    %92 = tpu.matmul %89, %91, %cst_21 {dimension_numbers = #tpu.dot_dimension_numbers<[1], [0], [0], [1], [0, 0, 1, 1], [], []>} : vector<16x64xbf16>, vector<64x128xbf16>, vector<16x128xf32> -> vector<16x128xf32>
    %93 = vector.extract_strided_slice %92 {offsets = [0, 0], sizes = [16, 64], strides = [1, 1]} : vector<16x128xf32> to vector<16x64xf32>
    %94 = vector.broadcast %21 : vector<1x64xf32> to vector<16x64xf32>
    %95 = arith.addf %93, %94 : vector<16x64xf32>
    %cst_22 = arith.constant 0.000000e+00 : f32
    %96 = vector.broadcast %cst_22 : f32 to vector<16x64xf32>
    %97 = arith.maximumf %95, %96 : vector<16x64xf32>
    %98 = math.absf %95 : vector<16x64xf32>
    %cst_23 = arith.constant 0.000000e+00 : f32
    %99 = vector.broadcast %cst_23 : f32 to vector<16x64xf32>
    %100 = arith.subf %99, %98 : vector<16x64xf32>
    %101 = math.exp %100 : vector<16x64xf32>
    %cst_24 = arith.constant 1.000000e+00 : f32
    %102 = vector.broadcast %cst_24 : f32 to vector<16x64xf32>
    %103 = arith.addf %102, %101 : vector<16x64xf32>
    %104 = math.log %103 : vector<16x64xf32>
    %105 = arith.addf %97, %104 : vector<16x64xf32>
    %106 = vector.extract_strided_slice %92 {offsets = [0, 64], sizes = [16, 8], strides = [1, 1]} : vector<16x128xf32> to vector<16x8xf32>
    %107 = vector.extract_strided_slice %92 {offsets = [0, 72], sizes = [16, 8], strides = [1, 1]} : vector<16x128xf32> to vector<16x8xf32>
    %108 = vector.shape_cast %105 : vector<16x64xf32> to vector<16x1x64xf32>
    %109 = vector.shape_cast %23 : vector<8x64xf32> to vector<1x8x64xf32>
    %110 = vector.broadcast %108 : vector<16x1x64xf32> to vector<16x8x64xf32>
    %111 = vector.broadcast %109 : vector<1x8x64xf32> to vector<16x8x64xf32>
    %112 = arith.mulf %110, %111 : vector<16x8x64xf32>
    %113 = math.exp %112 : vector<16x8x64xf32>
    %114 = arith.mulf %105, %88 : vector<16x64xf32>
    %115 = vector.shape_cast %114 : vector<16x64xf32> to vector<16x1x64xf32>
    %116 = vector.shape_cast %106 : vector<16x8xf32> to vector<16x8x1xf32>
    %117 = vector.broadcast %115 : vector<16x1x64xf32> to vector<16x8x64xf32>
    %118 = vector.broadcast %116 : vector<16x8x1xf32> to vector<16x8x64xf32>
    %119 = arith.mulf %117, %118 : vector<16x8x64xf32>
    %120 = vector.extract_strided_slice %113 {offsets = [0, 0, 0], sizes = [8, 8, 64], strides = [1, 1, 1]} : vector<16x8x64xf32> to vector<8x8x64xf32>
    %121 = vector.extract_strided_slice %119 {offsets = [0, 0, 0], sizes = [8, 8, 64], strides = [1, 1, 1]} : vector<16x8x64xf32> to vector<8x8x64xf32>
    %122 = vector.extract_strided_slice %107 {offsets = [0, 0], sizes = [8, 8], strides = [1, 1]} : vector<16x8xf32> to vector<8x8xf32>
    %cst_25 = arith.constant 0.000000e+00 : f32
    %123 = vector.broadcast %cst_25 : f32 to vector<8x64xf32>
    %124 = vector.extract_strided_slice %120 {offsets = [0, 0, 0], sizes = [1, 8, 64], strides = [1, 1, 1]} : vector<8x8x64xf32> to vector<1x8x64xf32>
    %125 = vector.shape_cast %124 : vector<1x8x64xf32> to vector<8x64xf32>
    %126 = arith.mulf %125, %123 : vector<8x64xf32>
    %127 = vector.extract_strided_slice %121 {offsets = [0, 0, 0], sizes = [1, 8, 64], strides = [1, 1, 1]} : vector<8x8x64xf32> to vector<1x8x64xf32>
    %128 = vector.shape_cast %127 : vector<1x8x64xf32> to vector<8x64xf32>
    %129 = arith.addf %126, %128 : vector<8x64xf32>
    %130 = vector.extract_strided_slice %120 {offsets = [1, 0, 0], sizes = [1, 8, 64], strides = [1, 1, 1]} : vector<8x8x64xf32> to vector<1x8x64xf32>
    %131 = vector.shape_cast %130 : vector<1x8x64xf32> to vector<8x64xf32>
    %132 = arith.mulf %131, %129 : vector<8x64xf32>
    %133 = vector.extract_strided_slice %121 {offsets = [1, 0, 0], sizes = [1, 8, 64], strides = [1, 1, 1]} : vector<8x8x64xf32> to vector<1x8x64xf32>
    %134 = vector.shape_cast %133 : vector<1x8x64xf32> to vector<8x64xf32>
    %135 = arith.addf %132, %134 : vector<8x64xf32>
    %136 = vector.extract_strided_slice %120 {offsets = [2, 0, 0], sizes = [1, 8, 64], strides = [1, 1, 1]} : vector<8x8x64xf32> to vector<1x8x64xf32>
    %137 = vector.shape_cast %136 : vector<1x8x64xf32> to vector<8x64xf32>
    %138 = arith.mulf %137, %135 : vector<8x64xf32>
    %139 = vector.extract_strided_slice %121 {offsets = [2, 0, 0], sizes = [1, 8, 64], strides = [1, 1, 1]} : vector<8x8x64xf32> to vector<1x8x64xf32>
    %140 = vector.shape_cast %139 : vector<1x8x64xf32> to vector<8x64xf32>
    %141 = arith.addf %138, %140 : vector<8x64xf32>
    %142 = vector.extract_strided_slice %120 {offsets = [3, 0, 0], sizes = [1, 8, 64], strides = [1, 1, 1]} : vector<8x8x64xf32> to vector<1x8x64xf32>
    %143 = vector.shape_cast %142 : vector<1x8x64xf32> to vector<8x64xf32>
    %144 = arith.mulf %143, %141 : vector<8x64xf32>
    %145 = vector.extract_strided_slice %121 {offsets = [3, 0, 0], sizes = [1, 8, 64], strides = [1, 1, 1]} : vector<8x8x64xf32> to vector<1x8x64xf32>
    %146 = vector.shape_cast %145 : vector<1x8x64xf32> to vector<8x64xf32>
    %147 = arith.addf %144, %146 : vector<8x64xf32>
    %148 = vector.extract_strided_slice %120 {offsets = [4, 0, 0], sizes = [1, 8, 64], strides = [1, 1, 1]} : vector<8x8x64xf32> to vector<1x8x64xf32>
    %149 = vector.shape_cast %148 : vector<1x8x64xf32> to vector<8x64xf32>
    %150 = arith.mulf %149, %147 : vector<8x64xf32>
    %151 = vector.extract_strided_slice %121 {offsets = [4, 0, 0], sizes = [1, 8, 64], strides = [1, 1, 1]} : vector<8x8x64xf32> to vector<1x8x64xf32>
    %152 = vector.shape_cast %151 : vector<1x8x64xf32> to vector<8x64xf32>
    %153 = arith.addf %150, %152 : vector<8x64xf32>
    %154 = vector.extract_strided_slice %120 {offsets = [5, 0, 0], sizes = [1, 8, 64], strides = [1, 1, 1]} : vector<8x8x64xf32> to vector<1x8x64xf32>
    %155 = vector.shape_cast %154 : vector<1x8x64xf32> to vector<8x64xf32>
    %156 = arith.mulf %155, %153 : vector<8x64xf32>
    %157 = vector.extract_strided_slice %121 {offsets = [5, 0, 0], sizes = [1, 8, 64], strides = [1, 1, 1]} : vector<8x8x64xf32> to vector<1x8x64xf32>
    %158 = vector.shape_cast %157 : vector<1x8x64xf32> to vector<8x64xf32>
    %159 = arith.addf %156, %158 : vector<8x64xf32>
    %160 = vector.extract_strided_slice %120 {offsets = [6, 0, 0], sizes = [1, 8, 64], strides = [1, 1, 1]} : vector<8x8x64xf32> to vector<1x8x64xf32>
    %161 = vector.shape_cast %160 : vector<1x8x64xf32> to vector<8x64xf32>
    %162 = arith.mulf %161, %159 : vector<8x64xf32>
    %163 = vector.extract_strided_slice %121 {offsets = [6, 0, 0], sizes = [1, 8, 64], strides = [1, 1, 1]} : vector<8x8x64xf32> to vector<1x8x64xf32>
    %164 = vector.shape_cast %163 : vector<1x8x64xf32> to vector<8x64xf32>
    %165 = arith.addf %162, %164 : vector<8x64xf32>
    %166 = vector.extract_strided_slice %120 {offsets = [7, 0, 0], sizes = [1, 8, 64], strides = [1, 1, 1]} : vector<8x8x64xf32> to vector<1x8x64xf32>
    %167 = vector.shape_cast %166 : vector<1x8x64xf32> to vector<8x64xf32>
    %168 = arith.mulf %167, %165 : vector<8x64xf32>
    %169 = vector.extract_strided_slice %121 {offsets = [7, 0, 0], sizes = [1, 8, 64], strides = [1, 1, 1]} : vector<8x8x64xf32> to vector<1x8x64xf32>
    %170 = vector.shape_cast %169 : vector<1x8x64xf32> to vector<8x64xf32>
    %171 = arith.addf %168, %170 : vector<8x64xf32>
    %172 = vector.shape_cast %129 : vector<8x64xf32> to vector<1x8x64xf32>
    %173 = vector.shape_cast %135 : vector<8x64xf32> to vector<1x8x64xf32>
    %174 = vector.shape_cast %141 : vector<8x64xf32> to vector<1x8x64xf32>
    %175 = vector.shape_cast %147 : vector<8x64xf32> to vector<1x8x64xf32>
    %176 = vector.shape_cast %153 : vector<8x64xf32> to vector<1x8x64xf32>
    %177 = vector.shape_cast %159 : vector<8x64xf32> to vector<1x8x64xf32>
    %178 = vector.shape_cast %165 : vector<8x64xf32> to vector<1x8x64xf32>
    %179 = vector.shape_cast %171 : vector<8x64xf32> to vector<1x8x64xf32>
    %180 = tpu.concatenate %172, %173, %174, %175, %176, %177, %178, %179 in 0 : vector<1x8x64xf32>, vector<1x8x64xf32>, vector<1x8x64xf32>, vector<1x8x64xf32>, vector<1x8x64xf32>, vector<1x8x64xf32>, vector<1x8x64xf32>, vector<1x8x64xf32> -> vector<8x8x64xf32>
    %181 = vector.shape_cast %122 : vector<8x8xf32> to vector<8x8x1xf32>
    %182 = vector.broadcast %181 : vector<8x8x1xf32> to vector<8x8x64xf32>
    %183 = arith.mulf %180, %182 : vector<8x8x64xf32>
    %cst_26 = arith.constant dense<0.000000e+00> : vector<8x64xf32>
    %184 = vector.multi_reduction <add>, %183, %cst_26 [1] : vector<8x8x64xf32> to vector<8x64xf32>
    %185 = vector.extract_strided_slice %113 {offsets = [8, 0, 0], sizes = [8, 8, 64], strides = [1, 1, 1]} : vector<16x8x64xf32> to vector<8x8x64xf32>
    %186 = vector.extract_strided_slice %119 {offsets = [8, 0, 0], sizes = [8, 8, 64], strides = [1, 1, 1]} : vector<16x8x64xf32> to vector<8x8x64xf32>
    %187 = vector.extract_strided_slice %107 {offsets = [8, 0], sizes = [8, 8], strides = [1, 1]} : vector<16x8xf32> to vector<8x8xf32>
    %cst_27 = arith.constant 0.000000e+00 : f32
    %188 = vector.broadcast %cst_27 : f32 to vector<8x64xf32>
    %189 = vector.extract_strided_slice %185 {offsets = [0, 0, 0], sizes = [1, 8, 64], strides = [1, 1, 1]} : vector<8x8x64xf32> to vector<1x8x64xf32>
    %190 = vector.shape_cast %189 : vector<1x8x64xf32> to vector<8x64xf32>
    %191 = arith.mulf %190, %188 : vector<8x64xf32>
    %192 = vector.extract_strided_slice %186 {offsets = [0, 0, 0], sizes = [1, 8, 64], strides = [1, 1, 1]} : vector<8x8x64xf32> to vector<1x8x64xf32>
    %193 = vector.shape_cast %192 : vector<1x8x64xf32> to vector<8x64xf32>
    %194 = arith.addf %191, %193 : vector<8x64xf32>
    %195 = vector.extract_strided_slice %185 {offsets = [1, 0, 0], sizes = [1, 8, 64], strides = [1, 1, 1]} : vector<8x8x64xf32> to vector<1x8x64xf32>
    %196 = vector.shape_cast %195 : vector<1x8x64xf32> to vector<8x64xf32>
    %197 = arith.mulf %196, %194 : vector<8x64xf32>
    %198 = vector.extract_strided_slice %186 {offsets = [1, 0, 0], sizes = [1, 8, 64], strides = [1, 1, 1]} : vector<8x8x64xf32> to vector<1x8x64xf32>
    %199 = vector.shape_cast %198 : vector<1x8x64xf32> to vector<8x64xf32>
    %200 = arith.addf %197, %199 : vector<8x64xf32>
    %201 = vector.extract_strided_slice %185 {offsets = [2, 0, 0], sizes = [1, 8, 64], strides = [1, 1, 1]} : vector<8x8x64xf32> to vector<1x8x64xf32>
    %202 = vector.shape_cast %201 : vector<1x8x64xf32> to vector<8x64xf32>
    %203 = arith.mulf %202, %200 : vector<8x64xf32>
    %204 = vector.extract_strided_slice %186 {offsets = [2, 0, 0], sizes = [1, 8, 64], strides = [1, 1, 1]} : vector<8x8x64xf32> to vector<1x8x64xf32>
    %205 = vector.shape_cast %204 : vector<1x8x64xf32> to vector<8x64xf32>
    %206 = arith.addf %203, %205 : vector<8x64xf32>
    %207 = vector.extract_strided_slice %185 {offsets = [3, 0, 0], sizes = [1, 8, 64], strides = [1, 1, 1]} : vector<8x8x64xf32> to vector<1x8x64xf32>
    %208 = vector.shape_cast %207 : vector<1x8x64xf32> to vector<8x64xf32>
    %209 = arith.mulf %208, %206 : vector<8x64xf32>
    %210 = vector.extract_strided_slice %186 {offsets = [3, 0, 0], sizes = [1, 8, 64], strides = [1, 1, 1]} : vector<8x8x64xf32> to vector<1x8x64xf32>
    %211 = vector.shape_cast %210 : vector<1x8x64xf32> to vector<8x64xf32>
    %212 = arith.addf %209, %211 : vector<8x64xf32>
    %213 = vector.extract_strided_slice %185 {offsets = [4, 0, 0], sizes = [1, 8, 64], strides = [1, 1, 1]} : vector<8x8x64xf32> to vector<1x8x64xf32>
    %214 = vector.shape_cast %213 : vector<1x8x64xf32> to vector<8x64xf32>
    %215 = arith.mulf %214, %212 : vector<8x64xf32>
    %216 = vector.extract_strided_slice %186 {offsets = [4, 0, 0], sizes = [1, 8, 64], strides = [1, 1, 1]} : vector<8x8x64xf32> to vector<1x8x64xf32>
    %217 = vector.shape_cast %216 : vector<1x8x64xf32> to vector<8x64xf32>
    %218 = arith.addf %215, %217 : vector<8x64xf32>
    %219 = vector.extract_strided_slice %185 {offsets = [5, 0, 0], sizes = [1, 8, 64], strides = [1, 1, 1]} : vector<8x8x64xf32> to vector<1x8x64xf32>
    %220 = vector.shape_cast %219 : vector<1x8x64xf32> to vector<8x64xf32>
    %221 = arith.mulf %220, %218 : vector<8x64xf32>
    %222 = vector.extract_strided_slice %186 {offsets = [5, 0, 0], sizes = [1, 8, 64], strides = [1, 1, 1]} : vector<8x8x64xf32> to vector<1x8x64xf32>
    %223 = vector.shape_cast %222 : vector<1x8x64xf32> to vector<8x64xf32>
    %224 = arith.addf %221, %223 : vector<8x64xf32>
    %225 = vector.extract_strided_slice %185 {offsets = [6, 0, 0], sizes = [1, 8, 64], strides = [1, 1, 1]} : vector<8x8x64xf32> to vector<1x8x64xf32>
    %226 = vector.shape_cast %225 : vector<1x8x64xf32> to vector<8x64xf32>
    %227 = arith.mulf %226, %224 : vector<8x64xf32>
    %228 = vector.extract_strided_slice %186 {offsets = [6, 0, 0], sizes = [1, 8, 64], strides = [1, 1, 1]} : vector<8x8x64xf32> to vector<1x8x64xf32>
    %229 = vector.shape_cast %228 : vector<1x8x64xf32> to vector<8x64xf32>
    %230 = arith.addf %227, %229 : vector<8x64xf32>
    %231 = vector.extract_strided_slice %185 {offsets = [7, 0, 0], sizes = [1, 8, 64], strides = [1, 1, 1]} : vector<8x8x64xf32> to vector<1x8x64xf32>
    %232 = vector.shape_cast %231 : vector<1x8x64xf32> to vector<8x64xf32>
    %233 = arith.mulf %232, %230 : vector<8x64xf32>
    %234 = vector.extract_strided_slice %186 {offsets = [7, 0, 0], sizes = [1, 8, 64], strides = [1, 1, 1]} : vector<8x8x64xf32> to vector<1x8x64xf32>
    %235 = vector.shape_cast %234 : vector<1x8x64xf32> to vector<8x64xf32>
    %236 = arith.addf %233, %235 : vector<8x64xf32>
    %237 = vector.shape_cast %194 : vector<8x64xf32> to vector<1x8x64xf32>
    %238 = vector.shape_cast %200 : vector<8x64xf32> to vector<1x8x64xf32>
    %239 = vector.shape_cast %206 : vector<8x64xf32> to vector<1x8x64xf32>
    %240 = vector.shape_cast %212 : vector<8x64xf32> to vector<1x8x64xf32>
    %241 = vector.shape_cast %218 : vector<8x64xf32> to vector<1x8x64xf32>
    %242 = vector.shape_cast %224 : vector<8x64xf32> to vector<1x8x64xf32>
    %243 = vector.shape_cast %230 : vector<8x64xf32> to vector<1x8x64xf32>
    %244 = vector.shape_cast %236 : vector<8x64xf32> to vector<1x8x64xf32>
    %245 = tpu.concatenate %237, %238, %239, %240, %241, %242, %243, %244 in 0 : vector<1x8x64xf32>, vector<1x8x64xf32>, vector<1x8x64xf32>, vector<1x8x64xf32>, vector<1x8x64xf32>, vector<1x8x64xf32>, vector<1x8x64xf32>, vector<1x8x64xf32> -> vector<8x8x64xf32>
    %246 = vector.shape_cast %187 : vector<8x8xf32> to vector<8x8x1xf32>
    %247 = vector.broadcast %246 : vector<8x8x1xf32> to vector<8x8x64xf32>
    %248 = arith.mulf %245, %247 : vector<8x8x64xf32>
    %cst_28 = arith.constant dense<0.000000e+00> : vector<8x64xf32>
    %249 = vector.multi_reduction <add>, %248, %cst_28 [1] : vector<8x8x64xf32> to vector<8x64xf32>
    %250 = tpu.concatenate %184, %249 in 0 : vector<8x64xf32>, vector<8x64xf32> -> vector<16x64xf32>
    %251 = vector.broadcast %22 : vector<1x64xf32> to vector<16x64xf32>
    %252 = arith.mulf %251, %88 : vector<16x64xf32>
    %253 = arith.addf %250, %252 : vector<16x64xf32>
    %cst_29 = arith.constant 0.000000e+00 : f32
    %254 = vector.broadcast %cst_29 : f32 to vector<16x64xf32>
    %255 = arith.subf %254, %16 : vector<16x64xf32>
    %256 = math.exp %255 : vector<16x64xf32>
    %cst_30 = arith.constant 1.000000e+00 : f32
    %257 = vector.broadcast %cst_30 : f32 to vector<16x64xf32>
    %258 = arith.addf %257, %256 : vector<16x64xf32>
    %cst_31 = arith.constant 1.000000e+00 : f32
    %259 = vector.broadcast %cst_31 : f32 to vector<16x64xf32>
    %260 = arith.divf %259, %258 : vector<16x64xf32>
    %261 = arith.mulf %16, %260 : vector<16x64xf32>
    %262 = arith.mulf %253, %261 : vector<16x64xf32>
    %263 = arith.truncf %262 : vector<16x64xf32> to vector<16x64xbf16>
    %c0_32 = arith.constant 0 : index
    %c0_33 = arith.constant 0 : index
    %c0_34 = arith.constant 0 : index
    %264 = vector.load %arg5[%c0_32, %c0_33, %c0_34] : memref<6x64x32xbf16, #tpu.memory_space<vmem>>, vector<1x64x32xbf16>
    %265 = vector.shape_cast %264 : vector<1x64x32xbf16> to vector<64x32xbf16>
    %cst_35 = arith.constant dense<0.000000e+00> : vector<16x32xf32>
    %266 = tpu.matmul %263, %265, %cst_35 {dimension_numbers = #tpu.dot_dimension_numbers<[1], [0], [0], [1], [0, 0, 1, 1], [], []>} : vector<16x64xbf16>, vector<64x32xbf16>, vector<16x32xf32> -> vector<16x32xf32>
    %267 = arith.addf %0, %266 : vector<16x32xf32>
    %268 = arith.mulf %267, %267 : vector<16x32xf32>
    %cst_36 = arith.constant dense<0.000000e+00> : vector<16xf32>
    %269 = vector.multi_reduction <add>, %268, %cst_36 [1] : vector<16x32xf32> to vector<16xf32>
    %270 = vector.shape_cast %269 : vector<16xf32> to vector<16x1xf32>
    %cst_37 = arith.constant 3.200000e+01 : f32
    %271 = vector.broadcast %cst_37 : f32 to vector<16x1xf32>
    %272 = arith.divf %270, %271 : vector<16x1xf32>
    %cst_38 = arith.constant 9.99999974E-6 : f32
    %273 = vector.broadcast %cst_38 : f32 to vector<16x1xf32>
    %274 = arith.addf %272, %273 : vector<16x1xf32>
    %275 = math.rsqrt %274 : vector<16x1xf32>
    %276 = vector.broadcast %275 : vector<16x1xf32> to vector<16x32xf32>
    %277 = arith.mulf %267, %276 : vector<16x32xf32>
    %278 = arith.truncf %277 : vector<16x32xf32> to vector<16x32xbf16>
    %c1 = arith.constant 1 : index
    %c0_39 = arith.constant 0 : index
    %c0_40 = arith.constant 0 : index
    %279 = vector.load %arg2[%c1, %c0_39, %c0_40] : memref<6x32x128xbf16, #tpu.memory_space<vmem>>, vector<1x32x128xbf16>
    %280 = vector.shape_cast %279 : vector<1x32x128xbf16> to vector<32x128xbf16>
    %cst_41 = arith.constant dense<0.000000e+00> : vector<16x128xf32>
    %281 = tpu.matmul %278, %280, %cst_41 {dimension_numbers = #tpu.dot_dimension_numbers<[1], [0], [0], [1], [0, 0, 1, 1], [], []>} : vector<16x32xbf16>, vector<32x128xbf16>, vector<16x128xf32> -> vector<16x128xf32>
    %282 = vector.extract_strided_slice %281 {offsets = [0, 0], sizes = [16, 64], strides = [1, 1]} : vector<16x128xf32> to vector<16x64xf32>
    %283 = vector.extract_strided_slice %281 {offsets = [0, 64], sizes = [16, 64], strides = [1, 1]} : vector<16x128xf32> to vector<16x64xf32>
    %c1_42 = arith.constant 1 : index
    %c0_43 = arith.constant 0 : index
    %c0_44 = arith.constant 0 : index
    %284 = vector.load %arg3[%c1_42, %c0_43, %c0_44] : memref<6x15x64xf32, #tpu.memory_space<vmem>>, vector<1x15x64xf32>
    %285 = vector.shape_cast %284 : vector<1x15x64xf32> to vector<15x64xf32>
    %286 = vector.extract_strided_slice %285 {offsets = [0, 0], sizes = [4, 64], strides = [1, 1]} : vector<15x64xf32> to vector<4x64xf32>
    %287 = vector.extract_strided_slice %285 {offsets = [4, 0], sizes = [1, 64], strides = [1, 1]} : vector<15x64xf32> to vector<1x64xf32>
    %288 = vector.extract_strided_slice %285 {offsets = [5, 0], sizes = [1, 64], strides = [1, 1]} : vector<15x64xf32> to vector<1x64xf32>
    %289 = vector.extract_strided_slice %285 {offsets = [6, 0], sizes = [1, 64], strides = [1, 1]} : vector<15x64xf32> to vector<1x64xf32>
    %290 = vector.extract_strided_slice %285 {offsets = [7, 0], sizes = [8, 64], strides = [1, 1]} : vector<15x64xf32> to vector<8x64xf32>
    %291 = vector.extract_strided_slice %282 {offsets = [0, 0], sizes = [8, 64], strides = [1, 1]} : vector<16x64xf32> to vector<8x64xf32>
    %cst_45 = arith.constant 0.000000e+00 : f32
    %292 = vector.broadcast %cst_45 : f32 to vector<3x64xf32>
    %293 = tpu.concatenate %292, %291 in 0 : vector<3x64xf32>, vector<8x64xf32> -> vector<11x64xf32>
    %294 = vector.extract_strided_slice %286 {offsets = [0, 0], sizes = [1, 64], strides = [1, 1]} : vector<4x64xf32> to vector<1x64xf32>
    %295 = vector.extract_strided_slice %293 {offsets = [0, 0], sizes = [8, 64], strides = [1, 1]} : vector<11x64xf32> to vector<8x64xf32>
    %296 = vector.broadcast %294 : vector<1x64xf32> to vector<8x64xf32>
    %297 = arith.mulf %296, %295 : vector<8x64xf32>
    %298 = vector.broadcast %287 : vector<1x64xf32> to vector<8x64xf32>
    %299 = arith.addf %298, %297 : vector<8x64xf32>
    %300 = vector.extract_strided_slice %286 {offsets = [1, 0], sizes = [1, 64], strides = [1, 1]} : vector<4x64xf32> to vector<1x64xf32>
    %301 = vector.extract_strided_slice %293 {offsets = [1, 0], sizes = [8, 64], strides = [1, 1]} : vector<11x64xf32> to vector<8x64xf32>
    %302 = vector.broadcast %300 : vector<1x64xf32> to vector<8x64xf32>
    %303 = arith.mulf %302, %301 : vector<8x64xf32>
    %304 = arith.addf %299, %303 : vector<8x64xf32>
    %305 = vector.extract_strided_slice %286 {offsets = [2, 0], sizes = [1, 64], strides = [1, 1]} : vector<4x64xf32> to vector<1x64xf32>
    %306 = vector.extract_strided_slice %293 {offsets = [2, 0], sizes = [8, 64], strides = [1, 1]} : vector<11x64xf32> to vector<8x64xf32>
    %307 = vector.broadcast %305 : vector<1x64xf32> to vector<8x64xf32>
    %308 = arith.mulf %307, %306 : vector<8x64xf32>
    %309 = arith.addf %304, %308 : vector<8x64xf32>
    %310 = vector.extract_strided_slice %286 {offsets = [3, 0], sizes = [1, 64], strides = [1, 1]} : vector<4x64xf32> to vector<1x64xf32>
    %311 = vector.extract_strided_slice %293 {offsets = [3, 0], sizes = [8, 64], strides = [1, 1]} : vector<11x64xf32> to vector<8x64xf32>
    %312 = vector.broadcast %310 : vector<1x64xf32> to vector<8x64xf32>
    %313 = arith.mulf %312, %311 : vector<8x64xf32>
    %314 = arith.addf %309, %313 : vector<8x64xf32>
    %cst_46 = arith.constant 0.000000e+00 : f32
    %315 = vector.broadcast %cst_46 : f32 to vector<8x64xf32>
    %316 = arith.subf %315, %314 : vector<8x64xf32>
    %317 = math.exp %316 : vector<8x64xf32>
    %cst_47 = arith.constant 1.000000e+00 : f32
    %318 = vector.broadcast %cst_47 : f32 to vector<8x64xf32>
    %319 = arith.addf %318, %317 : vector<8x64xf32>
    %cst_48 = arith.constant 1.000000e+00 : f32
    %320 = vector.broadcast %cst_48 : f32 to vector<8x64xf32>
    %321 = arith.divf %320, %319 : vector<8x64xf32>
    %322 = arith.mulf %314, %321 : vector<8x64xf32>
    %323 = vector.extract_strided_slice %282 {offsets = [8, 0], sizes = [8, 64], strides = [1, 1]} : vector<16x64xf32> to vector<8x64xf32>
    %cst_49 = arith.constant 0.000000e+00 : f32
    %324 = vector.broadcast %cst_49 : f32 to vector<3x64xf32>
    %325 = tpu.concatenate %324, %323 in 0 : vector<3x64xf32>, vector<8x64xf32> -> vector<11x64xf32>
    %326 = vector.extract_strided_slice %286 {offsets = [0, 0], sizes = [1, 64], strides = [1, 1]} : vector<4x64xf32> to vector<1x64xf32>
    %327 = vector.extract_strided_slice %325 {offsets = [0, 0], sizes = [8, 64], strides = [1, 1]} : vector<11x64xf32> to vector<8x64xf32>
    %328 = vector.broadcast %326 : vector<1x64xf32> to vector<8x64xf32>
    %329 = arith.mulf %328, %327 : vector<8x64xf32>
    %330 = vector.broadcast %287 : vector<1x64xf32> to vector<8x64xf32>
    %331 = arith.addf %330, %329 : vector<8x64xf32>
    %332 = vector.extract_strided_slice %286 {offsets = [1, 0], sizes = [1, 64], strides = [1, 1]} : vector<4x64xf32> to vector<1x64xf32>
    %333 = vector.extract_strided_slice %325 {offsets = [1, 0], sizes = [8, 64], strides = [1, 1]} : vector<11x64xf32> to vector<8x64xf32>
    %334 = vector.broadcast %332 : vector<1x64xf32> to vector<8x64xf32>
    %335 = arith.mulf %334, %333 : vector<8x64xf32>
    %336 = arith.addf %331, %335 : vector<8x64xf32>
    %337 = vector.extract_strided_slice %286 {offsets = [2, 0], sizes = [1, 64], strides = [1, 1]} : vector<4x64xf32> to vector<1x64xf32>
    %338 = vector.extract_strided_slice %325 {offsets = [2, 0], sizes = [8, 64], strides = [1, 1]} : vector<11x64xf32> to vector<8x64xf32>
    %339 = vector.broadcast %337 : vector<1x64xf32> to vector<8x64xf32>
    %340 = arith.mulf %339, %338 : vector<8x64xf32>
    %341 = arith.addf %336, %340 : vector<8x64xf32>
    %342 = vector.extract_strided_slice %286 {offsets = [3, 0], sizes = [1, 64], strides = [1, 1]} : vector<4x64xf32> to vector<1x64xf32>
    %343 = vector.extract_strided_slice %325 {offsets = [3, 0], sizes = [8, 64], strides = [1, 1]} : vector<11x64xf32> to vector<8x64xf32>
    %344 = vector.broadcast %342 : vector<1x64xf32> to vector<8x64xf32>
    %345 = arith.mulf %344, %343 : vector<8x64xf32>
    %346 = arith.addf %341, %345 : vector<8x64xf32>
    %cst_50 = arith.constant 0.000000e+00 : f32
    %347 = vector.broadcast %cst_50 : f32 to vector<8x64xf32>
    %348 = arith.subf %347, %346 : vector<8x64xf32>
    %349 = math.exp %348 : vector<8x64xf32>
    %cst_51 = arith.constant 1.000000e+00 : f32
    %350 = vector.broadcast %cst_51 : f32 to vector<8x64xf32>
    %351 = arith.addf %350, %349 : vector<8x64xf32>
    %cst_52 = arith.constant 1.000000e+00 : f32
    %352 = vector.broadcast %cst_52 : f32 to vector<8x64xf32>
    %353 = arith.divf %352, %351 : vector<8x64xf32>
    %354 = arith.mulf %346, %353 : vector<8x64xf32>
    %355 = tpu.concatenate %322, %354 in 0 : vector<8x64xf32>, vector<8x64xf32> -> vector<16x64xf32>
    %356 = arith.truncf %355 : vector<16x64xf32> to vector<16x64xbf16>
    %c1_53 = arith.constant 1 : index
    %c0_54 = arith.constant 0 : index
    %c0_55 = arith.constant 0 : index
    %357 = vector.load %arg4[%c1_53, %c0_54, %c0_55] : memref<6x64x128xbf16, #tpu.memory_space<vmem>>, vector<1x64x128xbf16>
    %358 = vector.shape_cast %357 : vector<1x64x128xbf16> to vector<64x128xbf16>
    %cst_56 = arith.constant dense<0.000000e+00> : vector<16x128xf32>
    %359 = tpu.matmul %356, %358, %cst_56 {dimension_numbers = #tpu.dot_dimension_numbers<[1], [0], [0], [1], [0, 0, 1, 1], [], []>} : vector<16x64xbf16>, vector<64x128xbf16>, vector<16x128xf32> -> vector<16x128xf32>
    %360 = vector.extract_strided_slice %359 {offsets = [0, 0], sizes = [16, 64], strides = [1, 1]} : vector<16x128xf32> to vector<16x64xf32>
    %361 = vector.broadcast %288 : vector<1x64xf32> to vector<16x64xf32>
    %362 = arith.addf %360, %361 : vector<16x64xf32>
    %cst_57 = arith.constant 0.000000e+00 : f32
    %363 = vector.broadcast %cst_57 : f32 to vector<16x64xf32>
    %364 = arith.maximumf %362, %363 : vector<16x64xf32>
    %365 = math.absf %362 : vector<16x64xf32>
    %cst_58 = arith.constant 0.000000e+00 : f32
    %366 = vector.broadcast %cst_58 : f32 to vector<16x64xf32>
    %367 = arith.subf %366, %365 : vector<16x64xf32>
    %368 = math.exp %367 : vector<16x64xf32>
    %cst_59 = arith.constant 1.000000e+00 : f32
    %369 = vector.broadcast %cst_59 : f32 to vector<16x64xf32>
    %370 = arith.addf %369, %368 : vector<16x64xf32>
    %371 = math.log %370 : vector<16x64xf32>
    %372 = arith.addf %364, %371 : vector<16x64xf32>
    %373 = vector.extract_strided_slice %359 {offsets = [0, 64], sizes = [16, 8], strides = [1, 1]} : vector<16x128xf32> to vector<16x8xf32>
    %374 = vector.extract_strided_slice %359 {offsets = [0, 72], sizes = [16, 8], strides = [1, 1]} : vector<16x128xf32> to vector<16x8xf32>
    %375 = vector.shape_cast %372 : vector<16x64xf32> to vector<16x1x64xf32>
    %376 = vector.shape_cast %290 : vector<8x64xf32> to vector<1x8x64xf32>
    %377 = vector.broadcast %375 : vector<16x1x64xf32> to vector<16x8x64xf32>
    %378 = vector.broadcast %376 : vector<1x8x64xf32> to vector<16x8x64xf32>
    %379 = arith.mulf %377, %378 : vector<16x8x64xf32>
    %380 = math.exp %379 : vector<16x8x64xf32>
    %381 = arith.mulf %372, %355 : vector<16x64xf32>
    %382 = vector.shape_cast %381 : vector<16x64xf32> to vector<16x1x64xf32>
    %383 = vector.shape_cast %373 : vector<16x8xf32> to vector<16x8x1xf32>
    %384 = vector.broadcast %382 : vector<16x1x64xf32> to vector<16x8x64xf32>
    %385 = vector.broadcast %383 : vector<16x8x1xf32> to vector<16x8x64xf32>
    %386 = arith.mulf %384, %385 : vector<16x8x64xf32>
    %387 = vector.extract_strided_slice %380 {offsets = [0, 0, 0], sizes = [8, 8, 64], strides = [1, 1, 1]} : vector<16x8x64xf32> to vector<8x8x64xf32>
    %388 = vector.extract_strided_slice %386 {offsets = [0, 0, 0], sizes = [8, 8, 64], strides = [1, 1, 1]} : vector<16x8x64xf32> to vector<8x8x64xf32>
    %389 = vector.extract_strided_slice %374 {offsets = [0, 0], sizes = [8, 8], strides = [1, 1]} : vector<16x8xf32> to vector<8x8xf32>
    %cst_60 = arith.constant 0.000000e+00 : f32
    %390 = vector.broadcast %cst_60 : f32 to vector<8x64xf32>
    %391 = vector.extract_strided_slice %387 {offsets = [0, 0, 0], sizes = [1, 8, 64], strides = [1, 1, 1]} : vector<8x8x64xf32> to vector<1x8x64xf32>
    %392 = vector.shape_cast %391 : vector<1x8x64xf32> to vector<8x64xf32>
    %393 = arith.mulf %392, %390 : vector<8x64xf32>
    %394 = vector.extract_strided_slice %388 {offsets = [0, 0, 0], sizes = [1, 8, 64], strides = [1, 1, 1]} : vector<8x8x64xf32> to vector<1x8x64xf32>
    %395 = vector.shape_cast %394 : vector<1x8x64xf32> to vector<8x64xf32>
    %396 = arith.addf %393, %395 : vector<8x64xf32>
    %397 = vector.extract_strided_slice %387 {offsets = [1, 0, 0], sizes = [1, 8, 64], strides = [1, 1, 1]} : vector<8x8x64xf32> to vector<1x8x64xf32>
    %398 = vector.shape_cast %397 : vector<1x8x64xf32> to vector<8x64xf32>
    %399 = arith.mulf %398, %396 : vector<8x64xf32>
    %400 = vector.extract_strided_slice %388 {offsets = [1, 0, 0], sizes = [1, 8, 64], strides = [1, 1, 1]} : vector<8x8x64xf32> to vector<1x8x64xf32>
    %401 = vector.shape_cast %400 : vector<1x8x64xf32> to vector<8x64xf32>
    %402 = arith.addf %399, %401 : vector<8x64xf32>
    %403 = vector.extract_strided_slice %387 {offsets = [2, 0, 0], sizes = [1, 8, 64], strides = [1, 1, 1]} : vector<8x8x64xf32> to vector<1x8x64xf32>
    %404 = vector.shape_cast %403 : vector<1x8x64xf32> to vector<8x64xf32>
    %405 = arith.mulf %404, %402 : vector<8x64xf32>
    %406 = vector.extract_strided_slice %388 {offsets = [2, 0, 0], sizes = [1, 8, 64], strides = [1, 1, 1]} : vector<8x8x64xf32> to vector<1x8x64xf32>
    %407 = vector.shape_cast %406 : vector<1x8x64xf32> to vector<8x64xf32>
    %408 = arith.addf %405, %407 : vector<8x64xf32>
    %409 = vector.extract_strided_slice %387 {offsets = [3, 0, 0], sizes = [1, 8, 64], strides = [1, 1, 1]} : vector<8x8x64xf32> to vector<1x8x64xf32>
    %410 = vector.shape_cast %409 : vector<1x8x64xf32> to vector<8x64xf32>
    %411 = arith.mulf %410, %408 : vector<8x64xf32>
    %412 = vector.extract_strided_slice %388 {offsets = [3, 0, 0], sizes = [1, 8, 64], strides = [1, 1, 1]} : vector<8x8x64xf32> to vector<1x8x64xf32>
    %413 = vector.shape_cast %412 : vector<1x8x64xf32> to vector<8x64xf32>
    %414 = arith.addf %411, %413 : vector<8x64xf32>
    %415 = vector.extract_strided_slice %387 {offsets = [4, 0, 0], sizes = [1, 8, 64], strides = [1, 1, 1]} : vector<8x8x64xf32> to vector<1x8x64xf32>
    %416 = vector.shape_cast %415 : vector<1x8x64xf32> to vector<8x64xf32>
    %417 = arith.mulf %416, %414 : vector<8x64xf32>
    %418 = vector.extract_strided_slice %388 {offsets = [4, 0, 0], sizes = [1, 8, 64], strides = [1, 1, 1]} : vector<8x8x64xf32> to vector<1x8x64xf32>
    %419 = vector.shape_cast %418 : vector<1x8x64xf32> to vector<8x64xf32>
    %420 = arith.addf %417, %419 : vector<8x64xf32>
    %421 = vector.extract_strided_slice %387 {offsets = [5, 0, 0], sizes = [1, 8, 64], strides = [1, 1, 1]} : vector<8x8x64xf32> to vector<1x8x64xf32>
    %422 = vector.shape_cast %421 : vector<1x8x64xf32> to vector<8x64xf32>
    %423 = arith.mulf %422, %420 : vector<8x64xf32>
    %424 = vector.extract_strided_slice %388 {offsets = [5, 0, 0], sizes = [1, 8, 64], strides = [1, 1, 1]} : vector<8x8x64xf32> to vector<1x8x64xf32>
    %425 = vector.shape_cast %424 : vector<1x8x64xf32> to vector<8x64xf32>
    %426 = arith.addf %423, %425 : vector<8x64xf32>
    %427 = vector.extract_strided_slice %387 {offsets = [6, 0, 0], sizes = [1, 8, 64], strides = [1, 1, 1]} : vector<8x8x64xf32> to vector<1x8x64xf32>
    %428 = vector.shape_cast %427 : vector<1x8x64xf32> to vector<8x64xf32>
    %429 = arith.mulf %428, %426 : vector<8x64xf32>
    %430 = vector.extract_strided_slice %388 {offsets = [6, 0, 0], sizes = [1, 8, 64], strides = [1, 1, 1]} : vector<8x8x64xf32> to vector<1x8x64xf32>
    %431 = vector.shape_cast %430 : vector<1x8x64xf32> to vector<8x64xf32>
    %432 = arith.addf %429, %431 : vector<8x64xf32>
    %433 = vector.extract_strided_slice %387 {offsets = [7, 0, 0], sizes = [1, 8, 64], strides = [1, 1, 1]} : vector<8x8x64xf32> to vector<1x8x64xf32>
    %434 = vector.shape_cast %433 : vector<1x8x64xf32> to vector<8x64xf32>
    %435 = arith.mulf %434, %432 : vector<8x64xf32>
    %436 = vector.extract_strided_slice %388 {offsets = [7, 0, 0], sizes = [1, 8, 64], strides = [1, 1, 1]} : vector<8x8x64xf32> to vector<1x8x64xf32>
    %437 = vector.shape_cast %436 : vector<1x8x64xf32> to vector<8x64xf32>
    %438 = arith.addf %435, %437 : vector<8x64xf32>
    %439 = vector.shape_cast %396 : vector<8x64xf32> to vector<1x8x64xf32>
    %440 = vector.shape_cast %402 : vector<8x64xf32> to vector<1x8x64xf32>
    %441 = vector.shape_cast %408 : vector<8x64xf32> to vector<1x8x64xf32>
    %442 = vector.shape_cast %414 : vector<8x64xf32> to vector<1x8x64xf32>
    %443 = vector.shape_cast %420 : vector<8x64xf32> to vector<1x8x64xf32>
    %444 = vector.shape_cast %426 : vector<8x64xf32> to vector<1x8x64xf32>
    %445 = vector.shape_cast %432 : vector<8x64xf32> to vector<1x8x64xf32>
    %446 = vector.shape_cast %438 : vector<8x64xf32> to vector<1x8x64xf32>
    %447 = tpu.concatenate %439, %440, %441, %442, %443, %444, %445, %446 in 0 : vector<1x8x64xf32>, vector<1x8x64xf32>, vector<1x8x64xf32>, vector<1x8x64xf32>, vector<1x8x64xf32>, vector<1x8x64xf32>, vector<1x8x64xf32>, vector<1x8x64xf32> -> vector<8x8x64xf32>
    %448 = vector.shape_cast %389 : vector<8x8xf32> to vector<8x8x1xf32>
    %449 = vector.broadcast %448 : vector<8x8x1xf32> to vector<8x8x64xf32>
    %450 = arith.mulf %447, %449 : vector<8x8x64xf32>
    %cst_61 = arith.constant dense<0.000000e+00> : vector<8x64xf32>
    %451 = vector.multi_reduction <add>, %450, %cst_61 [1] : vector<8x8x64xf32> to vector<8x64xf32>
    %452 = vector.extract_strided_slice %380 {offsets = [8, 0, 0], sizes = [8, 8, 64], strides = [1, 1, 1]} : vector<16x8x64xf32> to vector<8x8x64xf32>
    %453 = vector.extract_strided_slice %386 {offsets = [8, 0, 0], sizes = [8, 8, 64], strides = [1, 1, 1]} : vector<16x8x64xf32> to vector<8x8x64xf32>
    %454 = vector.extract_strided_slice %374 {offsets = [8, 0], sizes = [8, 8], strides = [1, 1]} : vector<16x8xf32> to vector<8x8xf32>
    %cst_62 = arith.constant 0.000000e+00 : f32
    %455 = vector.broadcast %cst_62 : f32 to vector<8x64xf32>
    %456 = vector.extract_strided_slice %452 {offsets = [0, 0, 0], sizes = [1, 8, 64], strides = [1, 1, 1]} : vector<8x8x64xf32> to vector<1x8x64xf32>
    %457 = vector.shape_cast %456 : vector<1x8x64xf32> to vector<8x64xf32>
    %458 = arith.mulf %457, %455 : vector<8x64xf32>
    %459 = vector.extract_strided_slice %453 {offsets = [0, 0, 0], sizes = [1, 8, 64], strides = [1, 1, 1]} : vector<8x8x64xf32> to vector<1x8x64xf32>
    %460 = vector.shape_cast %459 : vector<1x8x64xf32> to vector<8x64xf32>
    %461 = arith.addf %458, %460 : vector<8x64xf32>
    %462 = vector.extract_strided_slice %452 {offsets = [1, 0, 0], sizes = [1, 8, 64], strides = [1, 1, 1]} : vector<8x8x64xf32> to vector<1x8x64xf32>
    %463 = vector.shape_cast %462 : vector<1x8x64xf32> to vector<8x64xf32>
    %464 = arith.mulf %463, %461 : vector<8x64xf32>
    %465 = vector.extract_strided_slice %453 {offsets = [1, 0, 0], sizes = [1, 8, 64], strides = [1, 1, 1]} : vector<8x8x64xf32> to vector<1x8x64xf32>
    %466 = vector.shape_cast %465 : vector<1x8x64xf32> to vector<8x64xf32>
    %467 = arith.addf %464, %466 : vector<8x64xf32>
    %468 = vector.extract_strided_slice %452 {offsets = [2, 0, 0], sizes = [1, 8, 64], strides = [1, 1, 1]} : vector<8x8x64xf32> to vector<1x8x64xf32>
    %469 = vector.shape_cast %468 : vector<1x8x64xf32> to vector<8x64xf32>
    %470 = arith.mulf %469, %467 : vector<8x64xf32>
    %471 = vector.extract_strided_slice %453 {offsets = [2, 0, 0], sizes = [1, 8, 64], strides = [1, 1, 1]} : vector<8x8x64xf32> to vector<1x8x64xf32>
    %472 = vector.shape_cast %471 : vector<1x8x64xf32> to vector<8x64xf32>
    %473 = arith.addf %470, %472 : vector<8x64xf32>
    %474 = vector.extract_strided_slice %452 {offsets = [3, 0, 0], sizes = [1, 8, 64], strides = [1, 1, 1]} : vector<8x8x64xf32> to vector<1x8x64xf32>
    %475 = vector.shape_cast %474 : vector<1x8x64xf32> to vector<8x64xf32>
    %476 = arith.mulf %475, %473 : vector<8x64xf32>
    %477 = vector.extract_strided_slice %453 {offsets = [3, 0, 0], sizes = [1, 8, 64], strides = [1, 1, 1]} : vector<8x8x64xf32> to vector<1x8x64xf32>
    %478 = vector.shape_cast %477 : vector<1x8x64xf32> to vector<8x64xf32>
    %479 = arith.addf %476, %478 : vector<8x64xf32>
    %480 = vector.extract_strided_slice %452 {offsets = [4, 0, 0], sizes = [1, 8, 64], strides = [1, 1, 1]} : vector<8x8x64xf32> to vector<1x8x64xf32>
    %481 = vector.shape_cast %480 : vector<1x8x64xf32> to vector<8x64xf32>
    %482 = arith.mulf %481, %479 : vector<8x64xf32>
    %483 = vector.extract_strided_slice %453 {offsets = [4, 0, 0], sizes = [1, 8, 64], strides = [1, 1, 1]} : vector<8x8x64xf32> to vector<1x8x64xf32>
    %484 = vector.shape_cast %483 : vector<1x8x64xf32> to vector<8x64xf32>
    %485 = arith.addf %482, %484 : vector<8x64xf32>
    %486 = vector.extract_strided_slice %452 {offsets = [5, 0, 0], sizes = [1, 8, 64], strides = [1, 1, 1]} : vector<8x8x64xf32> to vector<1x8x64xf32>
    %487 = vector.shape_cast %486 : vector<1x8x64xf32> to vector<8x64xf32>
    %488 = arith.mulf %487, %485 : vector<8x64xf32>
    %489 = vector.extract_strided_slice %453 {offsets = [5, 0, 0], sizes = [1, 8, 64], strides = [1, 1, 1]} : vector<8x8x64xf32> to vector<1x8x64xf32>
    %490 = vector.shape_cast %489 : vector<1x8x64xf32> to vector<8x64xf32>
    %491 = arith.addf %488, %490 : vector<8x64xf32>
    %492 = vector.extract_strided_slice %452 {offsets = [6, 0, 0], sizes = [1, 8, 64], strides = [1, 1, 1]} : vector<8x8x64xf32> to vector<1x8x64xf32>
    %493 = vector.shape_cast %492 : vector<1x8x64xf32> to vector<8x64xf32>
    %494 = arith.mulf %493, %491 : vector<8x64xf32>
    %495 = vector.extract_strided_slice %453 {offsets = [6, 0, 0], sizes = [1, 8, 64], strides = [1, 1, 1]} : vector<8x8x64xf32> to vector<1x8x64xf32>
    %496 = vector.shape_cast %495 : vector<1x8x64xf32> to vector<8x64xf32>
    %497 = arith.addf %494, %496 : vector<8x64xf32>
    %498 = vector.extract_strided_slice %452 {offsets = [7, 0, 0], sizes = [1, 8, 64], strides = [1, 1, 1]} : vector<8x8x64xf32> to vector<1x8x64xf32>
    %499 = vector.shape_cast %498 : vector<1x8x64xf32> to vector<8x64xf32>
    %500 = arith.mulf %499, %497 : vector<8x64xf32>
    %501 = vector.extract_strided_slice %453 {offsets = [7, 0, 0], sizes = [1, 8, 64], strides = [1, 1, 1]} : vector<8x8x64xf32> to vector<1x8x64xf32>
    %502 = vector.shape_cast %501 : vector<1x8x64xf32> to vector<8x64xf32>
    %503 = arith.addf %500, %502 : vector<8x64xf32>
    %504 = vector.shape_cast %461 : vector<8x64xf32> to vector<1x8x64xf32>
    %505 = vector.shape_cast %467 : vector<8x64xf32> to vector<1x8x64xf32>
    %506 = vector.shape_cast %473 : vector<8x64xf32> to vector<1x8x64xf32>
    %507 = vector.shape_cast %479 : vector<8x64xf32> to vector<1x8x64xf32>
    %508 = vector.shape_cast %485 : vector<8x64xf32> to vector<1x8x64xf32>
    %509 = vector.shape_cast %491 : vector<8x64xf32> to vector<1x8x64xf32>
    %510 = vector.shape_cast %497 : vector<8x64xf32> to vector<1x8x64xf32>
    %511 = vector.shape_cast %503 : vector<8x64xf32> to vector<1x8x64xf32>
    %512 = tpu.concatenate %504, %505, %506, %507, %508, %509, %510, %511 in 0 : vector<1x8x64xf32>, vector<1x8x64xf32>, vector<1x8x64xf32>, vector<1x8x64xf32>, vector<1x8x64xf32>, vector<1x8x64xf32>, vector<1x8x64xf32>, vector<1x8x64xf32> -> vector<8x8x64xf32>
    %513 = vector.shape_cast %454 : vector<8x8xf32> to vector<8x8x1xf32>
    %514 = vector.broadcast %513 : vector<8x8x1xf32> to vector<8x8x64xf32>
    %515 = arith.mulf %512, %514 : vector<8x8x64xf32>
    %cst_63 = arith.constant dense<0.000000e+00> : vector<8x64xf32>
    %516 = vector.multi_reduction <add>, %515, %cst_63 [1] : vector<8x8x64xf32> to vector<8x64xf32>
    %517 = tpu.concatenate %451, %516 in 0 : vector<8x64xf32>, vector<8x64xf32> -> vector<16x64xf32>
    %518 = vector.broadcast %289 : vector<1x64xf32> to vector<16x64xf32>
    %519 = arith.mulf %518, %355 : vector<16x64xf32>
    %520 = arith.addf %517, %519 : vector<16x64xf32>
    %cst_64 = arith.constant 0.000000e+00 : f32
    %521 = vector.broadcast %cst_64 : f32 to vector<16x64xf32>
    %522 = arith.subf %521, %283 : vector<16x64xf32>
    %523 = math.exp %522 : vector<16x64xf32>
    %cst_65 = arith.constant 1.000000e+00 : f32
    %524 = vector.broadcast %cst_65 : f32 to vector<16x64xf32>
    %525 = arith.addf %524, %523 : vector<16x64xf32>
    %cst_66 = arith.constant 1.000000e+00 : f32
    %526 = vector.broadcast %cst_66 : f32 to vector<16x64xf32>
    %527 = arith.divf %526, %525 : vector<16x64xf32>
    %528 = arith.mulf %283, %527 : vector<16x64xf32>
    %529 = arith.mulf %520, %528 : vector<16x64xf32>
    %530 = arith.truncf %529 : vector<16x64xf32> to vector<16x64xbf16>
    %c1_67 = arith.constant 1 : index
    %c0_68 = arith.constant 0 : index
    %c0_69 = arith.constant 0 : index
    %531 = vector.load %arg5[%c1_67, %c0_68, %c0_69] : memref<6x64x32xbf16, #tpu.memory_space<vmem>>, vector<1x64x32xbf16>
    %532 = vector.shape_cast %531 : vector<1x64x32xbf16> to vector<64x32xbf16>
    %cst_70 = arith.constant dense<0.000000e+00> : vector<16x32xf32>
    %533 = tpu.matmul %530, %532, %cst_70 {dimension_numbers = #tpu.dot_dimension_numbers<[1], [0], [0], [1], [0, 0, 1, 1], [], []>} : vector<16x64xbf16>, vector<64x32xbf16>, vector<16x32xf32> -> vector<16x32xf32>
    %534 = arith.addf %267, %533 : vector<16x32xf32>
    %c0_71 = arith.constant 0 : index
    %c0_72 = arith.constant 0 : index
    %c0_73 = arith.constant 0 : index
    %c0_74 = arith.constant 0 : index
    %535 = vector.load %arg7[%c0_71, %c0_72, %c0_73, %c0_74] : memref<2x2x8x64xf32, #tpu.memory_space<vmem>>, vector<2x2x8x64xf32>
    %536 = arith.mulf %534, %534 : vector<16x32xf32>
    %cst_75 = arith.constant dense<0.000000e+00> : vector<16xf32>
    %537 = vector.multi_reduction <add>, %536, %cst_75 [1] : vector<16x32xf32> to vector<16xf32>
    %538 = vector.shape_cast %537 : vector<16xf32> to vector<16x1xf32>
    %cst_76 = arith.constant 3.200000e+01 : f32
    %539 = vector.broadcast %cst_76 : f32 to vector<16x1xf32>
    %540 = arith.divf %538, %539 : vector<16x1xf32>
    %cst_77 = arith.constant 9.99999974E-6 : f32
    %541 = vector.broadcast %cst_77 : f32 to vector<16x1xf32>
    %542 = arith.addf %540, %541 : vector<16x1xf32>
    %543 = math.rsqrt %542 : vector<16x1xf32>
    %544 = vector.broadcast %543 : vector<16x1xf32> to vector<16x32xf32>
    %545 = arith.mulf %534, %544 : vector<16x32xf32>
    %546 = arith.truncf %545 : vector<16x32xf32> to vector<16x32xbf16>
    %c2 = arith.constant 2 : index
    %c0_78 = arith.constant 0 : index
    %c0_79 = arith.constant 0 : index
    %547 = vector.load %arg2[%c2, %c0_78, %c0_79] : memref<6x32x128xbf16, #tpu.memory_space<vmem>>, vector<1x32x128xbf16>
    %548 = vector.shape_cast %547 : vector<1x32x128xbf16> to vector<32x128xbf16>
    %cst_80 = arith.constant dense<0.000000e+00> : vector<16x128xf32>
    %549 = tpu.matmul %546, %548, %cst_80 {dimension_numbers = #tpu.dot_dimension_numbers<[1], [0], [0], [1], [0, 0, 1, 1], [], []>} : vector<16x32xbf16>, vector<32x128xbf16>, vector<16x128xf32> -> vector<16x128xf32>
    %550 = vector.extract_strided_slice %549 {offsets = [0, 0], sizes = [16, 64], strides = [1, 1]} : vector<16x128xf32> to vector<16x64xf32>
    %551 = vector.extract_strided_slice %549 {offsets = [0, 64], sizes = [16, 64], strides = [1, 1]} : vector<16x128xf32> to vector<16x64xf32>
    %c2_81 = arith.constant 2 : index
    %c0_82 = arith.constant 0 : index
    %c0_83 = arith.constant 0 : index
    %552 = vector.load %arg3[%c2_81, %c0_82, %c0_83] : memref<6x15x64xf32, #tpu.memory_space<vmem>>, vector<1x15x64xf32>
    %553 = vector.shape_cast %552 : vector<1x15x64xf32> to vector<15x64xf32>
    %554 = vector.extract_strided_slice %553 {offsets = [0, 0], sizes = [4, 64], strides = [1, 1]} : vector<15x64xf32> to vector<4x64xf32>
    %555 = vector.extract_strided_slice %553 {offsets = [4, 0], sizes = [1, 64], strides = [1, 1]} : vector<15x64xf32> to vector<1x64xf32>
    %556 = vector.extract_strided_slice %553 {offsets = [5, 0], sizes = [1, 64], strides = [1, 1]} : vector<15x64xf32> to vector<1x64xf32>
    %557 = vector.extract_strided_slice %553 {offsets = [6, 0], sizes = [1, 64], strides = [1, 1]} : vector<15x64xf32> to vector<1x64xf32>
    %558 = vector.extract_strided_slice %553 {offsets = [7, 0], sizes = [8, 64], strides = [1, 1]} : vector<15x64xf32> to vector<8x64xf32>
    %559 = vector.extract_strided_slice %550 {offsets = [0, 0], sizes = [8, 64], strides = [1, 1]} : vector<16x64xf32> to vector<8x64xf32>
    %cst_84 = arith.constant 0.000000e+00 : f32
    %560 = vector.broadcast %cst_84 : f32 to vector<3x64xf32>
    %561 = tpu.concatenate %560, %559 in 0 : vector<3x64xf32>, vector<8x64xf32> -> vector<11x64xf32>
    %562 = vector.extract_strided_slice %554 {offsets = [0, 0], sizes = [1, 64], strides = [1, 1]} : vector<4x64xf32> to vector<1x64xf32>
    %563 = vector.extract_strided_slice %561 {offsets = [0, 0], sizes = [8, 64], strides = [1, 1]} : vector<11x64xf32> to vector<8x64xf32>
    %564 = vector.broadcast %562 : vector<1x64xf32> to vector<8x64xf32>
    %565 = arith.mulf %564, %563 : vector<8x64xf32>
    %566 = vector.broadcast %555 : vector<1x64xf32> to vector<8x64xf32>
    %567 = arith.addf %566, %565 : vector<8x64xf32>
    %568 = vector.extract_strided_slice %554 {offsets = [1, 0], sizes = [1, 64], strides = [1, 1]} : vector<4x64xf32> to vector<1x64xf32>
    %569 = vector.extract_strided_slice %561 {offsets = [1, 0], sizes = [8, 64], strides = [1, 1]} : vector<11x64xf32> to vector<8x64xf32>
    %570 = vector.broadcast %568 : vector<1x64xf32> to vector<8x64xf32>
    %571 = arith.mulf %570, %569 : vector<8x64xf32>
    %572 = arith.addf %567, %571 : vector<8x64xf32>
    %573 = vector.extract_strided_slice %554 {offsets = [2, 0], sizes = [1, 64], strides = [1, 1]} : vector<4x64xf32> to vector<1x64xf32>
    %574 = vector.extract_strided_slice %561 {offsets = [2, 0], sizes = [8, 64], strides = [1, 1]} : vector<11x64xf32> to vector<8x64xf32>
    %575 = vector.broadcast %573 : vector<1x64xf32> to vector<8x64xf32>
    %576 = arith.mulf %575, %574 : vector<8x64xf32>
    %577 = arith.addf %572, %576 : vector<8x64xf32>
    %578 = vector.extract_strided_slice %554 {offsets = [3, 0], sizes = [1, 64], strides = [1, 1]} : vector<4x64xf32> to vector<1x64xf32>
    %579 = vector.extract_strided_slice %561 {offsets = [3, 0], sizes = [8, 64], strides = [1, 1]} : vector<11x64xf32> to vector<8x64xf32>
    %580 = vector.broadcast %578 : vector<1x64xf32> to vector<8x64xf32>
    %581 = arith.mulf %580, %579 : vector<8x64xf32>
    %582 = arith.addf %577, %581 : vector<8x64xf32>
    %cst_85 = arith.constant 0.000000e+00 : f32
    %583 = vector.broadcast %cst_85 : f32 to vector<8x64xf32>
    %584 = arith.subf %583, %582 : vector<8x64xf32>
    %585 = math.exp %584 : vector<8x64xf32>
    %cst_86 = arith.constant 1.000000e+00 : f32
    %586 = vector.broadcast %cst_86 : f32 to vector<8x64xf32>
    %587 = arith.addf %586, %585 : vector<8x64xf32>
    %cst_87 = arith.constant 1.000000e+00 : f32
    %588 = vector.broadcast %cst_87 : f32 to vector<8x64xf32>
    %589 = arith.divf %588, %587 : vector<8x64xf32>
    %590 = arith.mulf %582, %589 : vector<8x64xf32>
    %591 = vector.extract_strided_slice %550 {offsets = [8, 0], sizes = [8, 64], strides = [1, 1]} : vector<16x64xf32> to vector<8x64xf32>
    %cst_88 = arith.constant 0.000000e+00 : f32
    %592 = vector.broadcast %cst_88 : f32 to vector<3x64xf32>
    %593 = tpu.concatenate %592, %591 in 0 : vector<3x64xf32>, vector<8x64xf32> -> vector<11x64xf32>
    %594 = vector.extract_strided_slice %554 {offsets = [0, 0], sizes = [1, 64], strides = [1, 1]} : vector<4x64xf32> to vector<1x64xf32>
    %595 = vector.extract_strided_slice %593 {offsets = [0, 0], sizes = [8, 64], strides = [1, 1]} : vector<11x64xf32> to vector<8x64xf32>
    %596 = vector.broadcast %594 : vector<1x64xf32> to vector<8x64xf32>
    %597 = arith.mulf %596, %595 : vector<8x64xf32>
    %598 = vector.broadcast %555 : vector<1x64xf32> to vector<8x64xf32>
    %599 = arith.addf %598, %597 : vector<8x64xf32>
    %600 = vector.extract_strided_slice %554 {offsets = [1, 0], sizes = [1, 64], strides = [1, 1]} : vector<4x64xf32> to vector<1x64xf32>
    %601 = vector.extract_strided_slice %593 {offsets = [1, 0], sizes = [8, 64], strides = [1, 1]} : vector<11x64xf32> to vector<8x64xf32>
    %602 = vector.broadcast %600 : vector<1x64xf32> to vector<8x64xf32>
    %603 = arith.mulf %602, %601 : vector<8x64xf32>
    %604 = arith.addf %599, %603 : vector<8x64xf32>
    %605 = vector.extract_strided_slice %554 {offsets = [2, 0], sizes = [1, 64], strides = [1, 1]} : vector<4x64xf32> to vector<1x64xf32>
    %606 = vector.extract_strided_slice %593 {offsets = [2, 0], sizes = [8, 64], strides = [1, 1]} : vector<11x64xf32> to vector<8x64xf32>
    %607 = vector.broadcast %605 : vector<1x64xf32> to vector<8x64xf32>
    %608 = arith.mulf %607, %606 : vector<8x64xf32>
    %609 = arith.addf %604, %608 : vector<8x64xf32>
    %610 = vector.extract_strided_slice %554 {offsets = [3, 0], sizes = [1, 64], strides = [1, 1]} : vector<4x64xf32> to vector<1x64xf32>
    %611 = vector.extract_strided_slice %593 {offsets = [3, 0], sizes = [8, 64], strides = [1, 1]} : vector<11x64xf32> to vector<8x64xf32>
    %612 = vector.broadcast %610 : vector<1x64xf32> to vector<8x64xf32>
    %613 = arith.mulf %612, %611 : vector<8x64xf32>
    %614 = arith.addf %609, %613 : vector<8x64xf32>
    %cst_89 = arith.constant 0.000000e+00 : f32
    %615 = vector.broadcast %cst_89 : f32 to vector<8x64xf32>
    %616 = arith.subf %615, %614 : vector<8x64xf32>
    %617 = math.exp %616 : vector<8x64xf32>
    %cst_90 = arith.constant 1.000000e+00 : f32
    %618 = vector.broadcast %cst_90 : f32 to vector<8x64xf32>
    %619 = arith.addf %618, %617 : vector<8x64xf32>
    %cst_91 = arith.constant 1.000000e+00 : f32
    %620 = vector.broadcast %cst_91 : f32 to vector<8x64xf32>
    %621 = arith.divf %620, %619 : vector<8x64xf32>
    %622 = arith.mulf %614, %621 : vector<8x64xf32>
    %623 = tpu.concatenate %590, %622 in 0 : vector<8x64xf32>, vector<8x64xf32> -> vector<16x64xf32>
    %624 = arith.truncf %623 : vector<16x64xf32> to vector<16x64xbf16>
    %c2_92 = arith.constant 2 : index
    %c0_93 = arith.constant 0 : index
    %c0_94 = arith.constant 0 : index
    %625 = vector.load %arg4[%c2_92, %c0_93, %c0_94] : memref<6x64x128xbf16, #tpu.memory_space<vmem>>, vector<1x64x128xbf16>
    %626 = vector.shape_cast %625 : vector<1x64x128xbf16> to vector<64x128xbf16>
    %cst_95 = arith.constant dense<0.000000e+00> : vector<16x128xf32>
    %627 = tpu.matmul %624, %626, %cst_95 {dimension_numbers = #tpu.dot_dimension_numbers<[1], [0], [0], [1], [0, 0, 1, 1], [], []>} : vector<16x64xbf16>, vector<64x128xbf16>, vector<16x128xf32> -> vector<16x128xf32>
    %628 = vector.extract_strided_slice %627 {offsets = [0, 0], sizes = [16, 64], strides = [1, 1]} : vector<16x128xf32> to vector<16x64xf32>
    %629 = vector.broadcast %556 : vector<1x64xf32> to vector<16x64xf32>
    %630 = arith.addf %628, %629 : vector<16x64xf32>
    %cst_96 = arith.constant 0.000000e+00 : f32
    %631 = vector.broadcast %cst_96 : f32 to vector<16x64xf32>
    %632 = arith.maximumf %630, %631 : vector<16x64xf32>
    %633 = math.absf %630 : vector<16x64xf32>
    %cst_97 = arith.constant 0.000000e+00 : f32
    %634 = vector.broadcast %cst_97 : f32 to vector<16x64xf32>
    %635 = arith.subf %634, %633 : vector<16x64xf32>
    %636 = math.exp %635 : vector<16x64xf32>
    %cst_98 = arith.constant 1.000000e+00 : f32
    %637 = vector.broadcast %cst_98 : f32 to vector<16x64xf32>
    %638 = arith.addf %637, %636 : vector<16x64xf32>
    %639 = math.log %638 : vector<16x64xf32>
    %640 = arith.addf %632, %639 : vector<16x64xf32>
    %641 = vector.extract_strided_slice %627 {offsets = [0, 64], sizes = [16, 8], strides = [1, 1]} : vector<16x128xf32> to vector<16x8xf32>
    %642 = vector.extract_strided_slice %627 {offsets = [0, 72], sizes = [16, 8], strides = [1, 1]} : vector<16x128xf32> to vector<16x8xf32>
    %643 = vector.shape_cast %640 : vector<16x64xf32> to vector<16x1x64xf32>
    %644 = vector.shape_cast %558 : vector<8x64xf32> to vector<1x8x64xf32>
    %645 = vector.broadcast %643 : vector<16x1x64xf32> to vector<16x8x64xf32>
    %646 = vector.broadcast %644 : vector<1x8x64xf32> to vector<16x8x64xf32>
    %647 = arith.mulf %645, %646 : vector<16x8x64xf32>
    %648 = math.exp %647 : vector<16x8x64xf32>
    %649 = arith.mulf %640, %623 : vector<16x64xf32>
    %650 = vector.shape_cast %649 : vector<16x64xf32> to vector<16x1x64xf32>
    %651 = vector.shape_cast %641 : vector<16x8xf32> to vector<16x8x1xf32>
    %652 = vector.broadcast %650 : vector<16x1x64xf32> to vector<16x8x64xf32>
    %653 = vector.broadcast %651 : vector<16x8x1xf32> to vector<16x8x64xf32>
    %654 = arith.mulf %652, %653 : vector<16x8x64xf32>
    %655 = vector.extract_strided_slice %648 {offsets = [0, 0, 0], sizes = [8, 8, 64], strides = [1, 1, 1]} : vector<16x8x64xf32> to vector<8x8x64xf32>
    %656 = vector.extract_strided_slice %654 {offsets = [0, 0, 0], sizes = [8, 8, 64], strides = [1, 1, 1]} : vector<16x8x64xf32> to vector<8x8x64xf32>
    %657 = vector.extract_strided_slice %642 {offsets = [0, 0], sizes = [8, 8], strides = [1, 1]} : vector<16x8xf32> to vector<8x8xf32>
    %cst_99 = arith.constant 0.000000e+00 : f32
    %658 = vector.broadcast %cst_99 : f32 to vector<8x64xf32>
    %659 = vector.extract_strided_slice %655 {offsets = [0, 0, 0], sizes = [1, 8, 64], strides = [1, 1, 1]} : vector<8x8x64xf32> to vector<1x8x64xf32>
    %660 = vector.shape_cast %659 : vector<1x8x64xf32> to vector<8x64xf32>
    %661 = arith.mulf %660, %658 : vector<8x64xf32>
    %662 = vector.extract_strided_slice %656 {offsets = [0, 0, 0], sizes = [1, 8, 64], strides = [1, 1, 1]} : vector<8x8x64xf32> to vector<1x8x64xf32>
    %663 = vector.shape_cast %662 : vector<1x8x64xf32> to vector<8x64xf32>
    %664 = arith.addf %661, %663 : vector<8x64xf32>
    %665 = vector.extract_strided_slice %655 {offsets = [1, 0, 0], sizes = [1, 8, 64], strides = [1, 1, 1]} : vector<8x8x64xf32> to vector<1x8x64xf32>
    %666 = vector.shape_cast %665 : vector<1x8x64xf32> to vector<8x64xf32>
    %667 = arith.mulf %666, %664 : vector<8x64xf32>
    %668 = vector.extract_strided_slice %656 {offsets = [1, 0, 0], sizes = [1, 8, 64], strides = [1, 1, 1]} : vector<8x8x64xf32> to vector<1x8x64xf32>
    %669 = vector.shape_cast %668 : vector<1x8x64xf32> to vector<8x64xf32>
    %670 = arith.addf %667, %669 : vector<8x64xf32>
    %671 = vector.extract_strided_slice %655 {offsets = [2, 0, 0], sizes = [1, 8, 64], strides = [1, 1, 1]} : vector<8x8x64xf32> to vector<1x8x64xf32>
    %672 = vector.shape_cast %671 : vector<1x8x64xf32> to vector<8x64xf32>
    %673 = arith.mulf %672, %670 : vector<8x64xf32>
    %674 = vector.extract_strided_slice %656 {offsets = [2, 0, 0], sizes = [1, 8, 64], strides = [1, 1, 1]} : vector<8x8x64xf32> to vector<1x8x64xf32>
    %675 = vector.shape_cast %674 : vector<1x8x64xf32> to vector<8x64xf32>
    %676 = arith.addf %673, %675 : vector<8x64xf32>
    %677 = vector.extract_strided_slice %655 {offsets = [3, 0, 0], sizes = [1, 8, 64], strides = [1, 1, 1]} : vector<8x8x64xf32> to vector<1x8x64xf32>
    %678 = vector.shape_cast %677 : vector<1x8x64xf32> to vector<8x64xf32>
    %679 = arith.mulf %678, %676 : vector<8x64xf32>
    %680 = vector.extract_strided_slice %656 {offsets = [3, 0, 0], sizes = [1, 8, 64], strides = [1, 1, 1]} : vector<8x8x64xf32> to vector<1x8x64xf32>
    %681 = vector.shape_cast %680 : vector<1x8x64xf32> to vector<8x64xf32>
    %682 = arith.addf %679, %681 : vector<8x64xf32>
    %683 = vector.extract_strided_slice %655 {offsets = [4, 0, 0], sizes = [1, 8, 64], strides = [1, 1, 1]} : vector<8x8x64xf32> to vector<1x8x64xf32>
    %684 = vector.shape_cast %683 : vector<1x8x64xf32> to vector<8x64xf32>
    %685 = arith.mulf %684, %682 : vector<8x64xf32>
    %686 = vector.extract_strided_slice %656 {offsets = [4, 0, 0], sizes = [1, 8, 64], strides = [1, 1, 1]} : vector<8x8x64xf32> to vector<1x8x64xf32>
    %687 = vector.shape_cast %686 : vector<1x8x64xf32> to vector<8x64xf32>
    %688 = arith.addf %685, %687 : vector<8x64xf32>
    %689 = vector.extract_strided_slice %655 {offsets = [5, 0, 0], sizes = [1, 8, 64], strides = [1, 1, 1]} : vector<8x8x64xf32> to vector<1x8x64xf32>
    %690 = vector.shape_cast %689 : vector<1x8x64xf32> to vector<8x64xf32>
    %691 = arith.mulf %690, %688 : vector<8x64xf32>
    %692 = vector.extract_strided_slice %656 {offsets = [5, 0, 0], sizes = [1, 8, 64], strides = [1, 1, 1]} : vector<8x8x64xf32> to vector<1x8x64xf32>
    %693 = vector.shape_cast %692 : vector<1x8x64xf32> to vector<8x64xf32>
    %694 = arith.addf %691, %693 : vector<8x64xf32>
    %695 = vector.extract_strided_slice %655 {offsets = [6, 0, 0], sizes = [1, 8, 64], strides = [1, 1, 1]} : vector<8x8x64xf32> to vector<1x8x64xf32>
    %696 = vector.shape_cast %695 : vector<1x8x64xf32> to vector<8x64xf32>
    %697 = arith.mulf %696, %694 : vector<8x64xf32>
    %698 = vector.extract_strided_slice %656 {offsets = [6, 0, 0], sizes = [1, 8, 64], strides = [1, 1, 1]} : vector<8x8x64xf32> to vector<1x8x64xf32>
    %699 = vector.shape_cast %698 : vector<1x8x64xf32> to vector<8x64xf32>
    %700 = arith.addf %697, %699 : vector<8x64xf32>
    %701 = vector.extract_strided_slice %655 {offsets = [7, 0, 0], sizes = [1, 8, 64], strides = [1, 1, 1]} : vector<8x8x64xf32> to vector<1x8x64xf32>
    %702 = vector.shape_cast %701 : vector<1x8x64xf32> to vector<8x64xf32>
    %703 = arith.mulf %702, %700 : vector<8x64xf32>
    %704 = vector.extract_strided_slice %656 {offsets = [7, 0, 0], sizes = [1, 8, 64], strides = [1, 1, 1]} : vector<8x8x64xf32> to vector<1x8x64xf32>
    %705 = vector.shape_cast %704 : vector<1x8x64xf32> to vector<8x64xf32>
    %706 = arith.addf %703, %705 : vector<8x64xf32>
    %707 = vector.shape_cast %664 : vector<8x64xf32> to vector<1x8x64xf32>
    %708 = vector.shape_cast %670 : vector<8x64xf32> to vector<1x8x64xf32>
    %709 = vector.shape_cast %676 : vector<8x64xf32> to vector<1x8x64xf32>
    %710 = vector.shape_cast %682 : vector<8x64xf32> to vector<1x8x64xf32>
    %711 = vector.shape_cast %688 : vector<8x64xf32> to vector<1x8x64xf32>
    %712 = vector.shape_cast %694 : vector<8x64xf32> to vector<1x8x64xf32>
    %713 = vector.shape_cast %700 : vector<8x64xf32> to vector<1x8x64xf32>
    %714 = vector.shape_cast %706 : vector<8x64xf32> to vector<1x8x64xf32>
    %715 = tpu.concatenate %707, %708, %709, %710, %711, %712, %713, %714 in 0 : vector<1x8x64xf32>, vector<1x8x64xf32>, vector<1x8x64xf32>, vector<1x8x64xf32>, vector<1x8x64xf32>, vector<1x8x64xf32>, vector<1x8x64xf32>, vector<1x8x64xf32> -> vector<8x8x64xf32>
    %716 = vector.shape_cast %657 : vector<8x8xf32> to vector<8x8x1xf32>
    %717 = vector.broadcast %716 : vector<8x8x1xf32> to vector<8x8x64xf32>
    %718 = arith.mulf %715, %717 : vector<8x8x64xf32>
    %cst_100 = arith.constant dense<0.000000e+00> : vector<8x64xf32>
    %719 = vector.multi_reduction <add>, %718, %cst_100 [1] : vector<8x8x64xf32> to vector<8x64xf32>
    %720 = vector.extract_strided_slice %648 {offsets = [8, 0, 0], sizes = [8, 8, 64], strides = [1, 1, 1]} : vector<16x8x64xf32> to vector<8x8x64xf32>
    %721 = vector.extract_strided_slice %654 {offsets = [8, 0, 0], sizes = [8, 8, 64], strides = [1, 1, 1]} : vector<16x8x64xf32> to vector<8x8x64xf32>
    %722 = vector.extract_strided_slice %642 {offsets = [8, 0], sizes = [8, 8], strides = [1, 1]} : vector<16x8xf32> to vector<8x8xf32>
    %cst_101 = arith.constant 0.000000e+00 : f32
    %723 = vector.broadcast %cst_101 : f32 to vector<8x64xf32>
    %724 = vector.extract_strided_slice %720 {offsets = [0, 0, 0], sizes = [1, 8, 64], strides = [1, 1, 1]} : vector<8x8x64xf32> to vector<1x8x64xf32>
    %725 = vector.shape_cast %724 : vector<1x8x64xf32> to vector<8x64xf32>
    %726 = arith.mulf %725, %723 : vector<8x64xf32>
    %727 = vector.extract_strided_slice %721 {offsets = [0, 0, 0], sizes = [1, 8, 64], strides = [1, 1, 1]} : vector<8x8x64xf32> to vector<1x8x64xf32>
    %728 = vector.shape_cast %727 : vector<1x8x64xf32> to vector<8x64xf32>
    %729 = arith.addf %726, %728 : vector<8x64xf32>
    %730 = vector.extract_strided_slice %720 {offsets = [1, 0, 0], sizes = [1, 8, 64], strides = [1, 1, 1]} : vector<8x8x64xf32> to vector<1x8x64xf32>
    %731 = vector.shape_cast %730 : vector<1x8x64xf32> to vector<8x64xf32>
    %732 = arith.mulf %731, %729 : vector<8x64xf32>
    %733 = vector.extract_strided_slice %721 {offsets = [1, 0, 0], sizes = [1, 8, 64], strides = [1, 1, 1]} : vector<8x8x64xf32> to vector<1x8x64xf32>
    %734 = vector.shape_cast %733 : vector<1x8x64xf32> to vector<8x64xf32>
    %735 = arith.addf %732, %734 : vector<8x64xf32>
    %736 = vector.extract_strided_slice %720 {offsets = [2, 0, 0], sizes = [1, 8, 64], strides = [1, 1, 1]} : vector<8x8x64xf32> to vector<1x8x64xf32>
    %737 = vector.shape_cast %736 : vector<1x8x64xf32> to vector<8x64xf32>
    %738 = arith.mulf %737, %735 : vector<8x64xf32>
    %739 = vector.extract_strided_slice %721 {offsets = [2, 0, 0], sizes = [1, 8, 64], strides = [1, 1, 1]} : vector<8x8x64xf32> to vector<1x8x64xf32>
    %740 = vector.shape_cast %739 : vector<1x8x64xf32> to vector<8x64xf32>
    %741 = arith.addf %738, %740 : vector<8x64xf32>
    %742 = vector.extract_strided_slice %720 {offsets = [3, 0, 0], sizes = [1, 8, 64], strides = [1, 1, 1]} : vector<8x8x64xf32> to vector<1x8x64xf32>
    %743 = vector.shape_cast %742 : vector<1x8x64xf32> to vector<8x64xf32>
    %744 = arith.mulf %743, %741 : vector<8x64xf32>
    %745 = vector.extract_strided_slice %721 {offsets = [3, 0, 0], sizes = [1, 8, 64], strides = [1, 1, 1]} : vector<8x8x64xf32> to vector<1x8x64xf32>
    %746 = vector.shape_cast %745 : vector<1x8x64xf32> to vector<8x64xf32>
    %747 = arith.addf %744, %746 : vector<8x64xf32>
    %748 = vector.extract_strided_slice %720 {offsets = [4, 0, 0], sizes = [1, 8, 64], strides = [1, 1, 1]} : vector<8x8x64xf32> to vector<1x8x64xf32>
    %749 = vector.shape_cast %748 : vector<1x8x64xf32> to vector<8x64xf32>
    %750 = arith.mulf %749, %747 : vector<8x64xf32>
    %751 = vector.extract_strided_slice %721 {offsets = [4, 0, 0], sizes = [1, 8, 64], strides = [1, 1, 1]} : vector<8x8x64xf32> to vector<1x8x64xf32>
    %752 = vector.shape_cast %751 : vector<1x8x64xf32> to vector<8x64xf32>
    %753 = arith.addf %750, %752 : vector<8x64xf32>
    %754 = vector.extract_strided_slice %720 {offsets = [5, 0, 0], sizes = [1, 8, 64], strides = [1, 1, 1]} : vector<8x8x64xf32> to vector<1x8x64xf32>
    %755 = vector.shape_cast %754 : vector<1x8x64xf32> to vector<8x64xf32>
    %756 = arith.mulf %755, %753 : vector<8x64xf32>
    %757 = vector.extract_strided_slice %721 {offsets = [5, 0, 0], sizes = [1, 8, 64], strides = [1, 1, 1]} : vector<8x8x64xf32> to vector<1x8x64xf32>
    %758 = vector.shape_cast %757 : vector<1x8x64xf32> to vector<8x64xf32>
    %759 = arith.addf %756, %758 : vector<8x64xf32>
    %760 = vector.extract_strided_slice %720 {offsets = [6, 0, 0], sizes = [1, 8, 64], strides = [1, 1, 1]} : vector<8x8x64xf32> to vector<1x8x64xf32>
    %761 = vector.shape_cast %760 : vector<1x8x64xf32> to vector<8x64xf32>
    %762 = arith.mulf %761, %759 : vector<8x64xf32>
    %763 = vector.extract_strided_slice %721 {offsets = [6, 0, 0], sizes = [1, 8, 64], strides = [1, 1, 1]} : vector<8x8x64xf32> to vector<1x8x64xf32>
    %764 = vector.shape_cast %763 : vector<1x8x64xf32> to vector<8x64xf32>
    %765 = arith.addf %762, %764 : vector<8x64xf32>
    %766 = vector.extract_strided_slice %720 {offsets = [7, 0, 0], sizes = [1, 8, 64], strides = [1, 1, 1]} : vector<8x8x64xf32> to vector<1x8x64xf32>
    %767 = vector.shape_cast %766 : vector<1x8x64xf32> to vector<8x64xf32>
    %768 = arith.mulf %767, %765 : vector<8x64xf32>
    %769 = vector.extract_strided_slice %721 {offsets = [7, 0, 0], sizes = [1, 8, 64], strides = [1, 1, 1]} : vector<8x8x64xf32> to vector<1x8x64xf32>
    %770 = vector.shape_cast %769 : vector<1x8x64xf32> to vector<8x64xf32>
    %771 = arith.addf %768, %770 : vector<8x64xf32>
    %772 = vector.shape_cast %729 : vector<8x64xf32> to vector<1x8x64xf32>
    %773 = vector.shape_cast %735 : vector<8x64xf32> to vector<1x8x64xf32>
    %774 = vector.shape_cast %741 : vector<8x64xf32> to vector<1x8x64xf32>
    %775 = vector.shape_cast %747 : vector<8x64xf32> to vector<1x8x64xf32>
    %776 = vector.shape_cast %753 : vector<8x64xf32> to vector<1x8x64xf32>
    %777 = vector.shape_cast %759 : vector<8x64xf32> to vector<1x8x64xf32>
    %778 = vector.shape_cast %765 : vector<8x64xf32> to vector<1x8x64xf32>
    %779 = vector.shape_cast %771 : vector<8x64xf32> to vector<1x8x64xf32>
    %780 = tpu.concatenate %772, %773, %774, %775, %776, %777, %778, %779 in 0 : vector<1x8x64xf32>, vector<1x8x64xf32>, vector<1x8x64xf32>, vector<1x8x64xf32>, vector<1x8x64xf32>, vector<1x8x64xf32>, vector<1x8x64xf32>, vector<1x8x64xf32> -> vector<8x8x64xf32>
    %781 = vector.shape_cast %722 : vector<8x8xf32> to vector<8x8x1xf32>
    %782 = vector.broadcast %781 : vector<8x8x1xf32> to vector<8x8x64xf32>
    %783 = arith.mulf %780, %782 : vector<8x8x64xf32>
    %cst_102 = arith.constant dense<0.000000e+00> : vector<8x64xf32>
    %784 = vector.multi_reduction <add>, %783, %cst_102 [1] : vector<8x8x64xf32> to vector<8x64xf32>
    %785 = tpu.concatenate %719, %784 in 0 : vector<8x64xf32>, vector<8x64xf32> -> vector<16x64xf32>
    %786 = vector.broadcast %557 : vector<1x64xf32> to vector<16x64xf32>
    %787 = arith.mulf %786, %623 : vector<16x64xf32>
    %788 = arith.addf %785, %787 : vector<16x64xf32>
    %cst_103 = arith.constant 0.000000e+00 : f32
    %789 = vector.broadcast %cst_103 : f32 to vector<16x64xf32>
    %790 = arith.subf %789, %551 : vector<16x64xf32>
    %791 = math.exp %790 : vector<16x64xf32>
    %cst_104 = arith.constant 1.000000e+00 : f32
    %792 = vector.broadcast %cst_104 : f32 to vector<16x64xf32>
    %793 = arith.addf %792, %791 : vector<16x64xf32>
    %cst_105 = arith.constant 1.000000e+00 : f32
    %794 = vector.broadcast %cst_105 : f32 to vector<16x64xf32>
    %795 = arith.divf %794, %793 : vector<16x64xf32>
    %796 = arith.mulf %551, %795 : vector<16x64xf32>
    %797 = arith.mulf %788, %796 : vector<16x64xf32>
    %798 = arith.truncf %797 : vector<16x64xf32> to vector<16x64xbf16>
    %c2_106 = arith.constant 2 : index
    %c0_107 = arith.constant 0 : index
    %c0_108 = arith.constant 0 : index
    %799 = vector.load %arg5[%c2_106, %c0_107, %c0_108] : memref<6x64x32xbf16, #tpu.memory_space<vmem>>, vector<1x64x32xbf16>
    %800 = vector.shape_cast %799 : vector<1x64x32xbf16> to vector<64x32xbf16>
    %cst_109 = arith.constant dense<0.000000e+00> : vector<16x32xf32>
    %801 = tpu.matmul %798, %800, %cst_109 {dimension_numbers = #tpu.dot_dimension_numbers<[1], [0], [0], [1], [0, 0, 1, 1], [], []>} : vector<16x64xbf16>, vector<64x32xbf16>, vector<16x32xf32> -> vector<16x32xf32>
    %802 = arith.addf %534, %801 : vector<16x32xf32>
    %803 = vector.extract_strided_slice %535 {offsets = [0, 0, 0, 0], sizes = [1, 1, 8, 64], strides = [1, 1, 1, 1]} : vector<2x2x8x64xf32> to vector<1x1x8x64xf32>
    %804 = vector.shape_cast %803 : vector<1x1x8x64xf32> to vector<8x64xf32>
    %805 = arith.addf %706, %804 : vector<8x64xf32>
    %806 = vector.extract_strided_slice %535 {offsets = [0, 1, 0, 0], sizes = [1, 1, 8, 64], strides = [1, 1, 1, 1]} : vector<2x2x8x64xf32> to vector<1x1x8x64xf32>
    %807 = vector.shape_cast %806 : vector<1x1x8x64xf32> to vector<8x64xf32>
    %808 = arith.addf %771, %807 : vector<8x64xf32>
    %809 = arith.mulf %802, %802 : vector<16x32xf32>
    %cst_110 = arith.constant dense<0.000000e+00> : vector<16xf32>
    %810 = vector.multi_reduction <add>, %809, %cst_110 [1] : vector<16x32xf32> to vector<16xf32>
    %811 = vector.shape_cast %810 : vector<16xf32> to vector<16x1xf32>
    %cst_111 = arith.constant 3.200000e+01 : f32
    %812 = vector.broadcast %cst_111 : f32 to vector<16x1xf32>
    %813 = arith.divf %811, %812 : vector<16x1xf32>
    %cst_112 = arith.constant 9.99999974E-6 : f32
    %814 = vector.broadcast %cst_112 : f32 to vector<16x1xf32>
    %815 = arith.addf %813, %814 : vector<16x1xf32>
    %816 = math.rsqrt %815 : vector<16x1xf32>
    %817 = vector.broadcast %816 : vector<16x1xf32> to vector<16x32xf32>
    %818 = arith.mulf %802, %817 : vector<16x32xf32>
    %819 = arith.truncf %818 : vector<16x32xf32> to vector<16x32xbf16>
    %c3 = arith.constant 3 : index
    %c0_113 = arith.constant 0 : index
    %c0_114 = arith.constant 0 : index
    %820 = vector.load %arg2[%c3, %c0_113, %c0_114] : memref<6x32x128xbf16, #tpu.memory_space<vmem>>, vector<1x32x128xbf16>
    %821 = vector.shape_cast %820 : vector<1x32x128xbf16> to vector<32x128xbf16>
    %cst_115 = arith.constant dense<0.000000e+00> : vector<16x128xf32>
    %822 = tpu.matmul %819, %821, %cst_115 {dimension_numbers = #tpu.dot_dimension_numbers<[1], [0], [0], [1], [0, 0, 1, 1], [], []>} : vector<16x32xbf16>, vector<32x128xbf16>, vector<16x128xf32> -> vector<16x128xf32>
    %823 = vector.extract_strided_slice %822 {offsets = [0, 0], sizes = [16, 64], strides = [1, 1]} : vector<16x128xf32> to vector<16x64xf32>
    %c3_116 = arith.constant 3 : index
    %c0_117 = arith.constant 0 : index
    %c0_118 = arith.constant 0 : index
    %824 = vector.load %arg3[%c3_116, %c0_117, %c0_118] : memref<6x15x64xf32, #tpu.memory_space<vmem>>, vector<1x15x64xf32>
    %825 = vector.shape_cast %824 : vector<1x15x64xf32> to vector<15x64xf32>
    %826 = vector.extract_strided_slice %825 {offsets = [0, 0], sizes = [4, 64], strides = [1, 1]} : vector<15x64xf32> to vector<4x64xf32>
    %827 = vector.extract_strided_slice %825 {offsets = [4, 0], sizes = [1, 64], strides = [1, 1]} : vector<15x64xf32> to vector<1x64xf32>
    %828 = vector.extract_strided_slice %825 {offsets = [5, 0], sizes = [1, 64], strides = [1, 1]} : vector<15x64xf32> to vector<1x64xf32>
    %829 = vector.extract_strided_slice %825 {offsets = [7, 0], sizes = [8, 64], strides = [1, 1]} : vector<15x64xf32> to vector<8x64xf32>
    %830 = vector.extract_strided_slice %823 {offsets = [0, 0], sizes = [8, 64], strides = [1, 1]} : vector<16x64xf32> to vector<8x64xf32>
    %cst_119 = arith.constant 0.000000e+00 : f32
    %831 = vector.broadcast %cst_119 : f32 to vector<3x64xf32>
    %832 = tpu.concatenate %831, %830 in 0 : vector<3x64xf32>, vector<8x64xf32> -> vector<11x64xf32>
    %833 = vector.extract_strided_slice %826 {offsets = [0, 0], sizes = [1, 64], strides = [1, 1]} : vector<4x64xf32> to vector<1x64xf32>
    %834 = vector.extract_strided_slice %832 {offsets = [0, 0], sizes = [8, 64], strides = [1, 1]} : vector<11x64xf32> to vector<8x64xf32>
    %835 = vector.broadcast %833 : vector<1x64xf32> to vector<8x64xf32>
    %836 = arith.mulf %835, %834 : vector<8x64xf32>
    %837 = vector.broadcast %827 : vector<1x64xf32> to vector<8x64xf32>
    %838 = arith.addf %837, %836 : vector<8x64xf32>
    %839 = vector.extract_strided_slice %826 {offsets = [1, 0], sizes = [1, 64], strides = [1, 1]} : vector<4x64xf32> to vector<1x64xf32>
    %840 = vector.extract_strided_slice %832 {offsets = [1, 0], sizes = [8, 64], strides = [1, 1]} : vector<11x64xf32> to vector<8x64xf32>
    %841 = vector.broadcast %839 : vector<1x64xf32> to vector<8x64xf32>
    %842 = arith.mulf %841, %840 : vector<8x64xf32>
    %843 = arith.addf %838, %842 : vector<8x64xf32>
    %844 = vector.extract_strided_slice %826 {offsets = [2, 0], sizes = [1, 64], strides = [1, 1]} : vector<4x64xf32> to vector<1x64xf32>
    %845 = vector.extract_strided_slice %832 {offsets = [2, 0], sizes = [8, 64], strides = [1, 1]} : vector<11x64xf32> to vector<8x64xf32>
    %846 = vector.broadcast %844 : vector<1x64xf32> to vector<8x64xf32>
    %847 = arith.mulf %846, %845 : vector<8x64xf32>
    %848 = arith.addf %843, %847 : vector<8x64xf32>
    %849 = vector.extract_strided_slice %826 {offsets = [3, 0], sizes = [1, 64], strides = [1, 1]} : vector<4x64xf32> to vector<1x64xf32>
    %850 = vector.extract_strided_slice %832 {offsets = [3, 0], sizes = [8, 64], strides = [1, 1]} : vector<11x64xf32> to vector<8x64xf32>
    %851 = vector.broadcast %849 : vector<1x64xf32> to vector<8x64xf32>
    %852 = arith.mulf %851, %850 : vector<8x64xf32>
    %853 = arith.addf %848, %852 : vector<8x64xf32>
    %cst_120 = arith.constant 0.000000e+00 : f32
    %854 = vector.broadcast %cst_120 : f32 to vector<8x64xf32>
    %855 = arith.subf %854, %853 : vector<8x64xf32>
    %856 = math.exp %855 : vector<8x64xf32>
    %cst_121 = arith.constant 1.000000e+00 : f32
    %857 = vector.broadcast %cst_121 : f32 to vector<8x64xf32>
    %858 = arith.addf %857, %856 : vector<8x64xf32>
    %cst_122 = arith.constant 1.000000e+00 : f32
    %859 = vector.broadcast %cst_122 : f32 to vector<8x64xf32>
    %860 = arith.divf %859, %858 : vector<8x64xf32>
    %861 = arith.mulf %853, %860 : vector<8x64xf32>
    %862 = vector.extract_strided_slice %823 {offsets = [8, 0], sizes = [8, 64], strides = [1, 1]} : vector<16x64xf32> to vector<8x64xf32>
    %cst_123 = arith.constant 0.000000e+00 : f32
    %863 = vector.broadcast %cst_123 : f32 to vector<3x64xf32>
    %864 = tpu.concatenate %863, %862 in 0 : vector<3x64xf32>, vector<8x64xf32> -> vector<11x64xf32>
    %865 = vector.extract_strided_slice %826 {offsets = [0, 0], sizes = [1, 64], strides = [1, 1]} : vector<4x64xf32> to vector<1x64xf32>
    %866 = vector.extract_strided_slice %864 {offsets = [0, 0], sizes = [8, 64], strides = [1, 1]} : vector<11x64xf32> to vector<8x64xf32>
    %867 = vector.broadcast %865 : vector<1x64xf32> to vector<8x64xf32>
    %868 = arith.mulf %867, %866 : vector<8x64xf32>
    %869 = vector.broadcast %827 : vector<1x64xf32> to vector<8x64xf32>
    %870 = arith.addf %869, %868 : vector<8x64xf32>
    %871 = vector.extract_strided_slice %826 {offsets = [1, 0], sizes = [1, 64], strides = [1, 1]} : vector<4x64xf32> to vector<1x64xf32>
    %872 = vector.extract_strided_slice %864 {offsets = [1, 0], sizes = [8, 64], strides = [1, 1]} : vector<11x64xf32> to vector<8x64xf32>
    %873 = vector.broadcast %871 : vector<1x64xf32> to vector<8x64xf32>
    %874 = arith.mulf %873, %872 : vector<8x64xf32>
    %875 = arith.addf %870, %874 : vector<8x64xf32>
    %876 = vector.extract_strided_slice %826 {offsets = [2, 0], sizes = [1, 64], strides = [1, 1]} : vector<4x64xf32> to vector<1x64xf32>
    %877 = vector.extract_strided_slice %864 {offsets = [2, 0], sizes = [8, 64], strides = [1, 1]} : vector<11x64xf32> to vector<8x64xf32>
    %878 = vector.broadcast %876 : vector<1x64xf32> to vector<8x64xf32>
    %879 = arith.mulf %878, %877 : vector<8x64xf32>
    %880 = arith.addf %875, %879 : vector<8x64xf32>
    %881 = vector.extract_strided_slice %826 {offsets = [3, 0], sizes = [1, 64], strides = [1, 1]} : vector<4x64xf32> to vector<1x64xf32>
    %882 = vector.extract_strided_slice %864 {offsets = [3, 0], sizes = [8, 64], strides = [1, 1]} : vector<11x64xf32> to vector<8x64xf32>
    %883 = vector.broadcast %881 : vector<1x64xf32> to vector<8x64xf32>
    %884 = arith.mulf %883, %882 : vector<8x64xf32>
    %885 = arith.addf %880, %884 : vector<8x64xf32>
    %cst_124 = arith.constant 0.000000e+00 : f32
    %886 = vector.broadcast %cst_124 : f32 to vector<8x64xf32>
    %887 = arith.subf %886, %885 : vector<8x64xf32>
    %888 = math.exp %887 : vector<8x64xf32>
    %cst_125 = arith.constant 1.000000e+00 : f32
    %889 = vector.broadcast %cst_125 : f32 to vector<8x64xf32>
    %890 = arith.addf %889, %888 : vector<8x64xf32>
    %cst_126 = arith.constant 1.000000e+00 : f32
    %891 = vector.broadcast %cst_126 : f32 to vector<8x64xf32>
    %892 = arith.divf %891, %890 : vector<8x64xf32>
    %893 = arith.mulf %885, %892 : vector<8x64xf32>
    %894 = tpu.concatenate %861, %893 in 0 : vector<8x64xf32>, vector<8x64xf32> -> vector<16x64xf32>
    %895 = arith.truncf %894 : vector<16x64xf32> to vector<16x64xbf16>
    %c3_127 = arith.constant 3 : index
    %c0_128 = arith.constant 0 : index
    %c0_129 = arith.constant 0 : index
    %896 = vector.load %arg4[%c3_127, %c0_128, %c0_129] : memref<6x64x128xbf16, #tpu.memory_space<vmem>>, vector<1x64x128xbf16>
    %897 = vector.shape_cast %896 : vector<1x64x128xbf16> to vector<64x128xbf16>
    %cst_130 = arith.constant dense<0.000000e+00> : vector<16x128xf32>
    %898 = tpu.matmul %895, %897, %cst_130 {dimension_numbers = #tpu.dot_dimension_numbers<[1], [0], [0], [1], [0, 0, 1, 1], [], []>} : vector<16x64xbf16>, vector<64x128xbf16>, vector<16x128xf32> -> vector<16x128xf32>
    %899 = vector.extract_strided_slice %898 {offsets = [0, 0], sizes = [16, 64], strides = [1, 1]} : vector<16x128xf32> to vector<16x64xf32>
    %900 = vector.broadcast %828 : vector<1x64xf32> to vector<16x64xf32>
    %901 = arith.addf %899, %900 : vector<16x64xf32>
    %cst_131 = arith.constant 0.000000e+00 : f32
    %902 = vector.broadcast %cst_131 : f32 to vector<16x64xf32>
    %903 = arith.maximumf %901, %902 : vector<16x64xf32>
    %904 = math.absf %901 : vector<16x64xf32>
    %cst_132 = arith.constant 0.000000e+00 : f32
    %905 = vector.broadcast %cst_132 : f32 to vector<16x64xf32>
    %906 = arith.subf %905, %904 : vector<16x64xf32>
    %907 = math.exp %906 : vector<16x64xf32>
    %cst_133 = arith.constant 1.000000e+00 : f32
    %908 = vector.broadcast %cst_133 : f32 to vector<16x64xf32>
    %909 = arith.addf %908, %907 : vector<16x64xf32>
    %910 = math.log %909 : vector<16x64xf32>
    %911 = arith.addf %903, %910 : vector<16x64xf32>
    %912 = vector.extract_strided_slice %898 {offsets = [0, 64], sizes = [16, 8], strides = [1, 1]} : vector<16x128xf32> to vector<16x8xf32>
    %913 = vector.shape_cast %911 : vector<16x64xf32> to vector<16x1x64xf32>
    %914 = vector.shape_cast %829 : vector<8x64xf32> to vector<1x8x64xf32>
    %915 = vector.broadcast %913 : vector<16x1x64xf32> to vector<16x8x64xf32>
    %916 = vector.broadcast %914 : vector<1x8x64xf32> to vector<16x8x64xf32>
    %917 = arith.mulf %915, %916 : vector<16x8x64xf32>
    %918 = math.exp %917 : vector<16x8x64xf32>
    %919 = arith.mulf %911, %894 : vector<16x64xf32>
    %920 = vector.shape_cast %919 : vector<16x64xf32> to vector<16x1x64xf32>
    %921 = vector.shape_cast %912 : vector<16x8xf32> to vector<16x8x1xf32>
    %922 = vector.broadcast %920 : vector<16x1x64xf32> to vector<16x8x64xf32>
    %923 = vector.broadcast %921 : vector<16x8x1xf32> to vector<16x8x64xf32>
    %924 = arith.mulf %922, %923 : vector<16x8x64xf32>
    %925 = vector.extract_strided_slice %918 {offsets = [0, 0, 0], sizes = [8, 8, 64], strides = [1, 1, 1]} : vector<16x8x64xf32> to vector<8x8x64xf32>
    %926 = vector.extract_strided_slice %924 {offsets = [0, 0, 0], sizes = [8, 8, 64], strides = [1, 1, 1]} : vector<16x8x64xf32> to vector<8x8x64xf32>
    %cst_134 = arith.constant 0.000000e+00 : f32
    %927 = vector.broadcast %cst_134 : f32 to vector<8x64xf32>
    %928 = vector.extract_strided_slice %925 {offsets = [0, 0, 0], sizes = [1, 8, 64], strides = [1, 1, 1]} : vector<8x8x64xf32> to vector<1x8x64xf32>
    %929 = vector.shape_cast %928 : vector<1x8x64xf32> to vector<8x64xf32>
    %930 = arith.mulf %929, %927 : vector<8x64xf32>
    %931 = vector.extract_strided_slice %926 {offsets = [0, 0, 0], sizes = [1, 8, 64], strides = [1, 1, 1]} : vector<8x8x64xf32> to vector<1x8x64xf32>
    %932 = vector.shape_cast %931 : vector<1x8x64xf32> to vector<8x64xf32>
    %933 = arith.addf %930, %932 : vector<8x64xf32>
    %934 = vector.extract_strided_slice %925 {offsets = [1, 0, 0], sizes = [1, 8, 64], strides = [1, 1, 1]} : vector<8x8x64xf32> to vector<1x8x64xf32>
    %935 = vector.shape_cast %934 : vector<1x8x64xf32> to vector<8x64xf32>
    %936 = arith.mulf %935, %933 : vector<8x64xf32>
    %937 = vector.extract_strided_slice %926 {offsets = [1, 0, 0], sizes = [1, 8, 64], strides = [1, 1, 1]} : vector<8x8x64xf32> to vector<1x8x64xf32>
    %938 = vector.shape_cast %937 : vector<1x8x64xf32> to vector<8x64xf32>
    %939 = arith.addf %936, %938 : vector<8x64xf32>
    %940 = vector.extract_strided_slice %925 {offsets = [2, 0, 0], sizes = [1, 8, 64], strides = [1, 1, 1]} : vector<8x8x64xf32> to vector<1x8x64xf32>
    %941 = vector.shape_cast %940 : vector<1x8x64xf32> to vector<8x64xf32>
    %942 = arith.mulf %941, %939 : vector<8x64xf32>
    %943 = vector.extract_strided_slice %926 {offsets = [2, 0, 0], sizes = [1, 8, 64], strides = [1, 1, 1]} : vector<8x8x64xf32> to vector<1x8x64xf32>
    %944 = vector.shape_cast %943 : vector<1x8x64xf32> to vector<8x64xf32>
    %945 = arith.addf %942, %944 : vector<8x64xf32>
    %946 = vector.extract_strided_slice %925 {offsets = [3, 0, 0], sizes = [1, 8, 64], strides = [1, 1, 1]} : vector<8x8x64xf32> to vector<1x8x64xf32>
    %947 = vector.shape_cast %946 : vector<1x8x64xf32> to vector<8x64xf32>
    %948 = arith.mulf %947, %945 : vector<8x64xf32>
    %949 = vector.extract_strided_slice %926 {offsets = [3, 0, 0], sizes = [1, 8, 64], strides = [1, 1, 1]} : vector<8x8x64xf32> to vector<1x8x64xf32>
    %950 = vector.shape_cast %949 : vector<1x8x64xf32> to vector<8x64xf32>
    %951 = arith.addf %948, %950 : vector<8x64xf32>
    %952 = vector.extract_strided_slice %925 {offsets = [4, 0, 0], sizes = [1, 8, 64], strides = [1, 1, 1]} : vector<8x8x64xf32> to vector<1x8x64xf32>
    %953 = vector.shape_cast %952 : vector<1x8x64xf32> to vector<8x64xf32>
    %954 = arith.mulf %953, %951 : vector<8x64xf32>
    %955 = vector.extract_strided_slice %926 {offsets = [4, 0, 0], sizes = [1, 8, 64], strides = [1, 1, 1]} : vector<8x8x64xf32> to vector<1x8x64xf32>
    %956 = vector.shape_cast %955 : vector<1x8x64xf32> to vector<8x64xf32>
    %957 = arith.addf %954, %956 : vector<8x64xf32>
    %958 = vector.extract_strided_slice %925 {offsets = [5, 0, 0], sizes = [1, 8, 64], strides = [1, 1, 1]} : vector<8x8x64xf32> to vector<1x8x64xf32>
    %959 = vector.shape_cast %958 : vector<1x8x64xf32> to vector<8x64xf32>
    %960 = arith.mulf %959, %957 : vector<8x64xf32>
    %961 = vector.extract_strided_slice %926 {offsets = [5, 0, 0], sizes = [1, 8, 64], strides = [1, 1, 1]} : vector<8x8x64xf32> to vector<1x8x64xf32>
    %962 = vector.shape_cast %961 : vector<1x8x64xf32> to vector<8x64xf32>
    %963 = arith.addf %960, %962 : vector<8x64xf32>
    %964 = vector.extract_strided_slice %925 {offsets = [6, 0, 0], sizes = [1, 8, 64], strides = [1, 1, 1]} : vector<8x8x64xf32> to vector<1x8x64xf32>
    %965 = vector.shape_cast %964 : vector<1x8x64xf32> to vector<8x64xf32>
    %966 = arith.mulf %965, %963 : vector<8x64xf32>
    %967 = vector.extract_strided_slice %926 {offsets = [6, 0, 0], sizes = [1, 8, 64], strides = [1, 1, 1]} : vector<8x8x64xf32> to vector<1x8x64xf32>
    %968 = vector.shape_cast %967 : vector<1x8x64xf32> to vector<8x64xf32>
    %969 = arith.addf %966, %968 : vector<8x64xf32>
    %970 = vector.extract_strided_slice %925 {offsets = [7, 0, 0], sizes = [1, 8, 64], strides = [1, 1, 1]} : vector<8x8x64xf32> to vector<1x8x64xf32>
    %971 = vector.shape_cast %970 : vector<1x8x64xf32> to vector<8x64xf32>
    %972 = arith.mulf %971, %969 : vector<8x64xf32>
    %973 = vector.extract_strided_slice %926 {offsets = [7, 0, 0], sizes = [1, 8, 64], strides = [1, 1, 1]} : vector<8x8x64xf32> to vector<1x8x64xf32>
    %974 = vector.shape_cast %973 : vector<1x8x64xf32> to vector<8x64xf32>
    %975 = arith.addf %972, %974 : vector<8x64xf32>
    %976 = vector.extract_strided_slice %918 {offsets = [8, 0, 0], sizes = [8, 8, 64], strides = [1, 1, 1]} : vector<16x8x64xf32> to vector<8x8x64xf32>
    %977 = vector.extract_strided_slice %924 {offsets = [8, 0, 0], sizes = [8, 8, 64], strides = [1, 1, 1]} : vector<16x8x64xf32> to vector<8x8x64xf32>
    %cst_135 = arith.constant 0.000000e+00 : f32
    %978 = vector.broadcast %cst_135 : f32 to vector<8x64xf32>
    %979 = vector.extract_strided_slice %976 {offsets = [0, 0, 0], sizes = [1, 8, 64], strides = [1, 1, 1]} : vector<8x8x64xf32> to vector<1x8x64xf32>
    %980 = vector.shape_cast %979 : vector<1x8x64xf32> to vector<8x64xf32>
    %981 = arith.mulf %980, %978 : vector<8x64xf32>
    %982 = vector.extract_strided_slice %977 {offsets = [0, 0, 0], sizes = [1, 8, 64], strides = [1, 1, 1]} : vector<8x8x64xf32> to vector<1x8x64xf32>
    %983 = vector.shape_cast %982 : vector<1x8x64xf32> to vector<8x64xf32>
    %984 = arith.addf %981, %983 : vector<8x64xf32>
    %985 = vector.extract_strided_slice %976 {offsets = [1, 0, 0], sizes = [1, 8, 64], strides = [1, 1, 1]} : vector<8x8x64xf32> to vector<1x8x64xf32>
    %986 = vector.shape_cast %985 : vector<1x8x64xf32> to vector<8x64xf32>
    %987 = arith.mulf %986, %984 : vector<8x64xf32>
    %988 = vector.extract_strided_slice %977 {offsets = [1, 0, 0], sizes = [1, 8, 64], strides = [1, 1, 1]} : vector<8x8x64xf32> to vector<1x8x64xf32>
    %989 = vector.shape_cast %988 : vector<1x8x64xf32> to vector<8x64xf32>
    %990 = arith.addf %987, %989 : vector<8x64xf32>
    %991 = vector.extract_strided_slice %976 {offsets = [2, 0, 0], sizes = [1, 8, 64], strides = [1, 1, 1]} : vector<8x8x64xf32> to vector<1x8x64xf32>
    %992 = vector.shape_cast %991 : vector<1x8x64xf32> to vector<8x64xf32>
    %993 = arith.mulf %992, %990 : vector<8x64xf32>
    %994 = vector.extract_strided_slice %977 {offsets = [2, 0, 0], sizes = [1, 8, 64], strides = [1, 1, 1]} : vector<8x8x64xf32> to vector<1x8x64xf32>
    %995 = vector.shape_cast %994 : vector<1x8x64xf32> to vector<8x64xf32>
    %996 = arith.addf %993, %995 : vector<8x64xf32>
    %997 = vector.extract_strided_slice %976 {offsets = [3, 0, 0], sizes = [1, 8, 64], strides = [1, 1, 1]} : vector<8x8x64xf32> to vector<1x8x64xf32>
    %998 = vector.shape_cast %997 : vector<1x8x64xf32> to vector<8x64xf32>
    %999 = arith.mulf %998, %996 : vector<8x64xf32>
    %1000 = vector.extract_strided_slice %977 {offsets = [3, 0, 0], sizes = [1, 8, 64], strides = [1, 1, 1]} : vector<8x8x64xf32> to vector<1x8x64xf32>
    %1001 = vector.shape_cast %1000 : vector<1x8x64xf32> to vector<8x64xf32>
    %1002 = arith.addf %999, %1001 : vector<8x64xf32>
    %1003 = vector.extract_strided_slice %976 {offsets = [4, 0, 0], sizes = [1, 8, 64], strides = [1, 1, 1]} : vector<8x8x64xf32> to vector<1x8x64xf32>
    %1004 = vector.shape_cast %1003 : vector<1x8x64xf32> to vector<8x64xf32>
    %1005 = arith.mulf %1004, %1002 : vector<8x64xf32>
    %1006 = vector.extract_strided_slice %977 {offsets = [4, 0, 0], sizes = [1, 8, 64], strides = [1, 1, 1]} : vector<8x8x64xf32> to vector<1x8x64xf32>
    %1007 = vector.shape_cast %1006 : vector<1x8x64xf32> to vector<8x64xf32>
    %1008 = arith.addf %1005, %1007 : vector<8x64xf32>
    %1009 = vector.extract_strided_slice %976 {offsets = [5, 0, 0], sizes = [1, 8, 64], strides = [1, 1, 1]} : vector<8x8x64xf32> to vector<1x8x64xf32>
    %1010 = vector.shape_cast %1009 : vector<1x8x64xf32> to vector<8x64xf32>
    %1011 = arith.mulf %1010, %1008 : vector<8x64xf32>
    %1012 = vector.extract_strided_slice %977 {offsets = [5, 0, 0], sizes = [1, 8, 64], strides = [1, 1, 1]} : vector<8x8x64xf32> to vector<1x8x64xf32>
    %1013 = vector.shape_cast %1012 : vector<1x8x64xf32> to vector<8x64xf32>
    %1014 = arith.addf %1011, %1013 : vector<8x64xf32>
    %1015 = vector.extract_strided_slice %976 {offsets = [6, 0, 0], sizes = [1, 8, 64], strides = [1, 1, 1]} : vector<8x8x64xf32> to vector<1x8x64xf32>
    %1016 = vector.shape_cast %1015 : vector<1x8x64xf32> to vector<8x64xf32>
    %1017 = arith.mulf %1016, %1014 : vector<8x64xf32>
    %1018 = vector.extract_strided_slice %977 {offsets = [6, 0, 0], sizes = [1, 8, 64], strides = [1, 1, 1]} : vector<8x8x64xf32> to vector<1x8x64xf32>
    %1019 = vector.shape_cast %1018 : vector<1x8x64xf32> to vector<8x64xf32>
    %1020 = arith.addf %1017, %1019 : vector<8x64xf32>
    %1021 = vector.extract_strided_slice %976 {offsets = [7, 0, 0], sizes = [1, 8, 64], strides = [1, 1, 1]} : vector<8x8x64xf32> to vector<1x8x64xf32>
    %1022 = vector.shape_cast %1021 : vector<1x8x64xf32> to vector<8x64xf32>
    %1023 = arith.mulf %1022, %1020 : vector<8x64xf32>
    %1024 = vector.extract_strided_slice %977 {offsets = [7, 0, 0], sizes = [1, 8, 64], strides = [1, 1, 1]} : vector<8x8x64xf32> to vector<1x8x64xf32>
    %1025 = vector.shape_cast %1024 : vector<1x8x64xf32> to vector<8x64xf32>
    %1026 = arith.addf %1023, %1025 : vector<8x64xf32>
    %1027 = vector.extract_strided_slice %535 {offsets = [1, 0, 0, 0], sizes = [1, 1, 8, 64], strides = [1, 1, 1, 1]} : vector<2x2x8x64xf32> to vector<1x1x8x64xf32>
    %1028 = vector.shape_cast %1027 : vector<1x1x8x64xf32> to vector<8x64xf32>
    %1029 = arith.addf %975, %1028 : vector<8x64xf32>
    %1030 = vector.extract_strided_slice %535 {offsets = [1, 1, 0, 0], sizes = [1, 1, 8, 64], strides = [1, 1, 1, 1]} : vector<2x2x8x64xf32> to vector<1x1x8x64xf32>
    %1031 = vector.shape_cast %1030 : vector<1x1x8x64xf32> to vector<8x64xf32>
    %1032 = arith.addf %1026, %1031 : vector<8x64xf32>
    %1033 = arith.mulf %534, %534 : vector<16x32xf32>
    %cst_136 = arith.constant dense<0.000000e+00> : vector<16xf32>
    %1034 = vector.multi_reduction <add>, %1033, %cst_136 [1] : vector<16x32xf32> to vector<16xf32>
    %1035 = vector.shape_cast %1034 : vector<16xf32> to vector<16x1xf32>
    %cst_137 = arith.constant 3.200000e+01 : f32
    %1036 = vector.broadcast %cst_137 : f32 to vector<16x1xf32>
    %1037 = arith.divf %1035, %1036 : vector<16x1xf32>
    %cst_138 = arith.constant 9.99999974E-6 : f32
    %1038 = vector.broadcast %cst_138 : f32 to vector<16x1xf32>
    %1039 = arith.addf %1037, %1038 : vector<16x1xf32>
    %1040 = math.rsqrt %1039 : vector<16x1xf32>
    %1041 = vector.broadcast %1040 : vector<16x1xf32> to vector<16x32xf32>
    %1042 = arith.mulf %534, %1041 : vector<16x32xf32>
    %1043 = arith.truncf %1042 : vector<16x32xf32> to vector<16x32xbf16>
    %c4 = arith.constant 4 : index
    %c0_139 = arith.constant 0 : index
    %c0_140 = arith.constant 0 : index
    %1044 = vector.load %arg2[%c4, %c0_139, %c0_140] : memref<6x32x128xbf16, #tpu.memory_space<vmem>>, vector<1x32x128xbf16>
    %1045 = vector.shape_cast %1044 : vector<1x32x128xbf16> to vector<32x128xbf16>
    %cst_141 = arith.constant dense<0.000000e+00> : vector<16x128xf32>
    %1046 = tpu.matmul %1043, %1045, %cst_141 {dimension_numbers = #tpu.dot_dimension_numbers<[1], [0], [0], [1], [0, 0, 1, 1], [], []>} : vector<16x32xbf16>, vector<32x128xbf16>, vector<16x128xf32> -> vector<16x128xf32>
    %1047 = vector.extract_strided_slice %1046 {offsets = [0, 0], sizes = [16, 64], strides = [1, 1]} : vector<16x128xf32> to vector<16x64xf32>
    %1048 = vector.extract_strided_slice %1046 {offsets = [0, 64], sizes = [16, 64], strides = [1, 1]} : vector<16x128xf32> to vector<16x64xf32>
    %c4_142 = arith.constant 4 : index
    %c0_143 = arith.constant 0 : index
    %c0_144 = arith.constant 0 : index
    %1049 = vector.load %arg3[%c4_142, %c0_143, %c0_144] : memref<6x15x64xf32, #tpu.memory_space<vmem>>, vector<1x15x64xf32>
    %1050 = vector.shape_cast %1049 : vector<1x15x64xf32> to vector<15x64xf32>
    %1051 = vector.extract_strided_slice %1050 {offsets = [0, 0], sizes = [4, 64], strides = [1, 1]} : vector<15x64xf32> to vector<4x64xf32>
    %1052 = vector.extract_strided_slice %1050 {offsets = [4, 0], sizes = [1, 64], strides = [1, 1]} : vector<15x64xf32> to vector<1x64xf32>
    %1053 = vector.extract_strided_slice %1050 {offsets = [5, 0], sizes = [1, 64], strides = [1, 1]} : vector<15x64xf32> to vector<1x64xf32>
    %1054 = vector.extract_strided_slice %1050 {offsets = [6, 0], sizes = [1, 64], strides = [1, 1]} : vector<15x64xf32> to vector<1x64xf32>
    %1055 = vector.extract_strided_slice %1050 {offsets = [7, 0], sizes = [8, 64], strides = [1, 1]} : vector<15x64xf32> to vector<8x64xf32>
    %1056 = vector.extract_strided_slice %1047 {offsets = [0, 0], sizes = [8, 64], strides = [1, 1]} : vector<16x64xf32> to vector<8x64xf32>
    %cst_145 = arith.constant 0.000000e+00 : f32
    %1057 = vector.broadcast %cst_145 : f32 to vector<3x64xf32>
    %1058 = tpu.concatenate %1057, %1056 in 0 : vector<3x64xf32>, vector<8x64xf32> -> vector<11x64xf32>
    %1059 = vector.extract_strided_slice %1051 {offsets = [0, 0], sizes = [1, 64], strides = [1, 1]} : vector<4x64xf32> to vector<1x64xf32>
    %1060 = vector.extract_strided_slice %1058 {offsets = [0, 0], sizes = [8, 64], strides = [1, 1]} : vector<11x64xf32> to vector<8x64xf32>
    %1061 = vector.broadcast %1059 : vector<1x64xf32> to vector<8x64xf32>
    %1062 = arith.mulf %1061, %1060 : vector<8x64xf32>
    %1063 = vector.broadcast %1052 : vector<1x64xf32> to vector<8x64xf32>
    %1064 = arith.addf %1063, %1062 : vector<8x64xf32>
    %1065 = vector.extract_strided_slice %1051 {offsets = [1, 0], sizes = [1, 64], strides = [1, 1]} : vector<4x64xf32> to vector<1x64xf32>
    %1066 = vector.extract_strided_slice %1058 {offsets = [1, 0], sizes = [8, 64], strides = [1, 1]} : vector<11x64xf32> to vector<8x64xf32>
    %1067 = vector.broadcast %1065 : vector<1x64xf32> to vector<8x64xf32>
    %1068 = arith.mulf %1067, %1066 : vector<8x64xf32>
    %1069 = arith.addf %1064, %1068 : vector<8x64xf32>
    %1070 = vector.extract_strided_slice %1051 {offsets = [2, 0], sizes = [1, 64], strides = [1, 1]} : vector<4x64xf32> to vector<1x64xf32>
    %1071 = vector.extract_strided_slice %1058 {offsets = [2, 0], sizes = [8, 64], strides = [1, 1]} : vector<11x64xf32> to vector<8x64xf32>
    %1072 = vector.broadcast %1070 : vector<1x64xf32> to vector<8x64xf32>
    %1073 = arith.mulf %1072, %1071 : vector<8x64xf32>
    %1074 = arith.addf %1069, %1073 : vector<8x64xf32>
    %1075 = vector.extract_strided_slice %1051 {offsets = [3, 0], sizes = [1, 64], strides = [1, 1]} : vector<4x64xf32> to vector<1x64xf32>
    %1076 = vector.extract_strided_slice %1058 {offsets = [3, 0], sizes = [8, 64], strides = [1, 1]} : vector<11x64xf32> to vector<8x64xf32>
    %1077 = vector.broadcast %1075 : vector<1x64xf32> to vector<8x64xf32>
    %1078 = arith.mulf %1077, %1076 : vector<8x64xf32>
    %1079 = arith.addf %1074, %1078 : vector<8x64xf32>
    %cst_146 = arith.constant 0.000000e+00 : f32
    %1080 = vector.broadcast %cst_146 : f32 to vector<8x64xf32>
    %1081 = arith.subf %1080, %1079 : vector<8x64xf32>
    %1082 = math.exp %1081 : vector<8x64xf32>
    %cst_147 = arith.constant 1.000000e+00 : f32
    %1083 = vector.broadcast %cst_147 : f32 to vector<8x64xf32>
    %1084 = arith.addf %1083, %1082 : vector<8x64xf32>
    %cst_148 = arith.constant 1.000000e+00 : f32
    %1085 = vector.broadcast %cst_148 : f32 to vector<8x64xf32>
    %1086 = arith.divf %1085, %1084 : vector<8x64xf32>
    %1087 = arith.mulf %1079, %1086 : vector<8x64xf32>
    %1088 = vector.extract_strided_slice %1047 {offsets = [8, 0], sizes = [8, 64], strides = [1, 1]} : vector<16x64xf32> to vector<8x64xf32>
    %cst_149 = arith.constant 0.000000e+00 : f32
    %1089 = vector.broadcast %cst_149 : f32 to vector<3x64xf32>
    %1090 = tpu.concatenate %1089, %1088 in 0 : vector<3x64xf32>, vector<8x64xf32> -> vector<11x64xf32>
    %1091 = vector.extract_strided_slice %1051 {offsets = [0, 0], sizes = [1, 64], strides = [1, 1]} : vector<4x64xf32> to vector<1x64xf32>
    %1092 = vector.extract_strided_slice %1090 {offsets = [0, 0], sizes = [8, 64], strides = [1, 1]} : vector<11x64xf32> to vector<8x64xf32>
    %1093 = vector.broadcast %1091 : vector<1x64xf32> to vector<8x64xf32>
    %1094 = arith.mulf %1093, %1092 : vector<8x64xf32>
    %1095 = vector.broadcast %1052 : vector<1x64xf32> to vector<8x64xf32>
    %1096 = arith.addf %1095, %1094 : vector<8x64xf32>
    %1097 = vector.extract_strided_slice %1051 {offsets = [1, 0], sizes = [1, 64], strides = [1, 1]} : vector<4x64xf32> to vector<1x64xf32>
    %1098 = vector.extract_strided_slice %1090 {offsets = [1, 0], sizes = [8, 64], strides = [1, 1]} : vector<11x64xf32> to vector<8x64xf32>
    %1099 = vector.broadcast %1097 : vector<1x64xf32> to vector<8x64xf32>
    %1100 = arith.mulf %1099, %1098 : vector<8x64xf32>
    %1101 = arith.addf %1096, %1100 : vector<8x64xf32>
    %1102 = vector.extract_strided_slice %1051 {offsets = [2, 0], sizes = [1, 64], strides = [1, 1]} : vector<4x64xf32> to vector<1x64xf32>
    %1103 = vector.extract_strided_slice %1090 {offsets = [2, 0], sizes = [8, 64], strides = [1, 1]} : vector<11x64xf32> to vector<8x64xf32>
    %1104 = vector.broadcast %1102 : vector<1x64xf32> to vector<8x64xf32>
    %1105 = arith.mulf %1104, %1103 : vector<8x64xf32>
    %1106 = arith.addf %1101, %1105 : vector<8x64xf32>
    %1107 = vector.extract_strided_slice %1051 {offsets = [3, 0], sizes = [1, 64], strides = [1, 1]} : vector<4x64xf32> to vector<1x64xf32>
    %1108 = vector.extract_strided_slice %1090 {offsets = [3, 0], sizes = [8, 64], strides = [1, 1]} : vector<11x64xf32> to vector<8x64xf32>
    %1109 = vector.broadcast %1107 : vector<1x64xf32> to vector<8x64xf32>
    %1110 = arith.mulf %1109, %1108 : vector<8x64xf32>
    %1111 = arith.addf %1106, %1110 : vector<8x64xf32>
    %cst_150 = arith.constant 0.000000e+00 : f32
    %1112 = vector.broadcast %cst_150 : f32 to vector<8x64xf32>
    %1113 = arith.subf %1112, %1111 : vector<8x64xf32>
    %1114 = math.exp %1113 : vector<8x64xf32>
    %cst_151 = arith.constant 1.000000e+00 : f32
    %1115 = vector.broadcast %cst_151 : f32 to vector<8x64xf32>
    %1116 = arith.addf %1115, %1114 : vector<8x64xf32>
    %cst_152 = arith.constant 1.000000e+00 : f32
    %1117 = vector.broadcast %cst_152 : f32 to vector<8x64xf32>
    %1118 = arith.divf %1117, %1116 : vector<8x64xf32>
    %1119 = arith.mulf %1111, %1118 : vector<8x64xf32>
    %1120 = tpu.concatenate %1087, %1119 in 0 : vector<8x64xf32>, vector<8x64xf32> -> vector<16x64xf32>
    %1121 = arith.truncf %1120 : vector<16x64xf32> to vector<16x64xbf16>
    %c4_153 = arith.constant 4 : index
    %c0_154 = arith.constant 0 : index
    %c0_155 = arith.constant 0 : index
    %1122 = vector.load %arg4[%c4_153, %c0_154, %c0_155] : memref<6x64x128xbf16, #tpu.memory_space<vmem>>, vector<1x64x128xbf16>
    %1123 = vector.shape_cast %1122 : vector<1x64x128xbf16> to vector<64x128xbf16>
    %cst_156 = arith.constant dense<0.000000e+00> : vector<16x128xf32>
    %1124 = tpu.matmul %1121, %1123, %cst_156 {dimension_numbers = #tpu.dot_dimension_numbers<[1], [0], [0], [1], [0, 0, 1, 1], [], []>} : vector<16x64xbf16>, vector<64x128xbf16>, vector<16x128xf32> -> vector<16x128xf32>
    %1125 = vector.extract_strided_slice %1124 {offsets = [0, 0], sizes = [16, 64], strides = [1, 1]} : vector<16x128xf32> to vector<16x64xf32>
    %1126 = vector.broadcast %1053 : vector<1x64xf32> to vector<16x64xf32>
    %1127 = arith.addf %1125, %1126 : vector<16x64xf32>
    %cst_157 = arith.constant 0.000000e+00 : f32
    %1128 = vector.broadcast %cst_157 : f32 to vector<16x64xf32>
    %1129 = arith.maximumf %1127, %1128 : vector<16x64xf32>
    %1130 = math.absf %1127 : vector<16x64xf32>
    %cst_158 = arith.constant 0.000000e+00 : f32
    %1131 = vector.broadcast %cst_158 : f32 to vector<16x64xf32>
    %1132 = arith.subf %1131, %1130 : vector<16x64xf32>
    %1133 = math.exp %1132 : vector<16x64xf32>
    %cst_159 = arith.constant 1.000000e+00 : f32
    %1134 = vector.broadcast %cst_159 : f32 to vector<16x64xf32>
    %1135 = arith.addf %1134, %1133 : vector<16x64xf32>
    %1136 = math.log %1135 : vector<16x64xf32>
    %1137 = arith.addf %1129, %1136 : vector<16x64xf32>
    %1138 = vector.extract_strided_slice %1124 {offsets = [0, 64], sizes = [16, 8], strides = [1, 1]} : vector<16x128xf32> to vector<16x8xf32>
    %1139 = vector.extract_strided_slice %1124 {offsets = [0, 72], sizes = [16, 8], strides = [1, 1]} : vector<16x128xf32> to vector<16x8xf32>
    %1140 = vector.shape_cast %1137 : vector<16x64xf32> to vector<16x1x64xf32>
    %1141 = vector.shape_cast %1055 : vector<8x64xf32> to vector<1x8x64xf32>
    %1142 = vector.broadcast %1140 : vector<16x1x64xf32> to vector<16x8x64xf32>
    %1143 = vector.broadcast %1141 : vector<1x8x64xf32> to vector<16x8x64xf32>
    %1144 = arith.mulf %1142, %1143 : vector<16x8x64xf32>
    %1145 = math.exp %1144 : vector<16x8x64xf32>
    %1146 = arith.mulf %1137, %1120 : vector<16x64xf32>
    %1147 = vector.shape_cast %1146 : vector<16x64xf32> to vector<16x1x64xf32>
    %1148 = vector.shape_cast %1138 : vector<16x8xf32> to vector<16x8x1xf32>
    %1149 = vector.broadcast %1147 : vector<16x1x64xf32> to vector<16x8x64xf32>
    %1150 = vector.broadcast %1148 : vector<16x8x1xf32> to vector<16x8x64xf32>
    %1151 = arith.mulf %1149, %1150 : vector<16x8x64xf32>
    %1152 = vector.extract_strided_slice %1145 {offsets = [0, 0, 0], sizes = [8, 8, 64], strides = [1, 1, 1]} : vector<16x8x64xf32> to vector<8x8x64xf32>
    %1153 = vector.extract_strided_slice %1151 {offsets = [0, 0, 0], sizes = [8, 8, 64], strides = [1, 1, 1]} : vector<16x8x64xf32> to vector<8x8x64xf32>
    %1154 = vector.extract_strided_slice %1139 {offsets = [0, 0], sizes = [8, 8], strides = [1, 1]} : vector<16x8xf32> to vector<8x8xf32>
    %1155 = vector.extract_strided_slice %1152 {offsets = [0, 0, 0], sizes = [1, 8, 64], strides = [1, 1, 1]} : vector<8x8x64xf32> to vector<1x8x64xf32>
    %1156 = vector.shape_cast %1155 : vector<1x8x64xf32> to vector<8x64xf32>
    %1157 = arith.mulf %1156, %805 : vector<8x64xf32>
    %1158 = vector.extract_strided_slice %1153 {offsets = [0, 0, 0], sizes = [1, 8, 64], strides = [1, 1, 1]} : vector<8x8x64xf32> to vector<1x8x64xf32>
    %1159 = vector.shape_cast %1158 : vector<1x8x64xf32> to vector<8x64xf32>
    %1160 = arith.addf %1157, %1159 : vector<8x64xf32>
    %1161 = vector.extract_strided_slice %1152 {offsets = [1, 0, 0], sizes = [1, 8, 64], strides = [1, 1, 1]} : vector<8x8x64xf32> to vector<1x8x64xf32>
    %1162 = vector.shape_cast %1161 : vector<1x8x64xf32> to vector<8x64xf32>
    %1163 = arith.mulf %1162, %1160 : vector<8x64xf32>
    %1164 = vector.extract_strided_slice %1153 {offsets = [1, 0, 0], sizes = [1, 8, 64], strides = [1, 1, 1]} : vector<8x8x64xf32> to vector<1x8x64xf32>
    %1165 = vector.shape_cast %1164 : vector<1x8x64xf32> to vector<8x64xf32>
    %1166 = arith.addf %1163, %1165 : vector<8x64xf32>
    %1167 = vector.extract_strided_slice %1152 {offsets = [2, 0, 0], sizes = [1, 8, 64], strides = [1, 1, 1]} : vector<8x8x64xf32> to vector<1x8x64xf32>
    %1168 = vector.shape_cast %1167 : vector<1x8x64xf32> to vector<8x64xf32>
    %1169 = arith.mulf %1168, %1166 : vector<8x64xf32>
    %1170 = vector.extract_strided_slice %1153 {offsets = [2, 0, 0], sizes = [1, 8, 64], strides = [1, 1, 1]} : vector<8x8x64xf32> to vector<1x8x64xf32>
    %1171 = vector.shape_cast %1170 : vector<1x8x64xf32> to vector<8x64xf32>
    %1172 = arith.addf %1169, %1171 : vector<8x64xf32>
    %1173 = vector.extract_strided_slice %1152 {offsets = [3, 0, 0], sizes = [1, 8, 64], strides = [1, 1, 1]} : vector<8x8x64xf32> to vector<1x8x64xf32>
    %1174 = vector.shape_cast %1173 : vector<1x8x64xf32> to vector<8x64xf32>
    %1175 = arith.mulf %1174, %1172 : vector<8x64xf32>
    %1176 = vector.extract_strided_slice %1153 {offsets = [3, 0, 0], sizes = [1, 8, 64], strides = [1, 1, 1]} : vector<8x8x64xf32> to vector<1x8x64xf32>
    %1177 = vector.shape_cast %1176 : vector<1x8x64xf32> to vector<8x64xf32>
    %1178 = arith.addf %1175, %1177 : vector<8x64xf32>
    %1179 = vector.extract_strided_slice %1152 {offsets = [4, 0, 0], sizes = [1, 8, 64], strides = [1, 1, 1]} : vector<8x8x64xf32> to vector<1x8x64xf32>
    %1180 = vector.shape_cast %1179 : vector<1x8x64xf32> to vector<8x64xf32>
    %1181 = arith.mulf %1180, %1178 : vector<8x64xf32>
    %1182 = vector.extract_strided_slice %1153 {offsets = [4, 0, 0], sizes = [1, 8, 64], strides = [1, 1, 1]} : vector<8x8x64xf32> to vector<1x8x64xf32>
    %1183 = vector.shape_cast %1182 : vector<1x8x64xf32> to vector<8x64xf32>
    %1184 = arith.addf %1181, %1183 : vector<8x64xf32>
    %1185 = vector.extract_strided_slice %1152 {offsets = [5, 0, 0], sizes = [1, 8, 64], strides = [1, 1, 1]} : vector<8x8x64xf32> to vector<1x8x64xf32>
    %1186 = vector.shape_cast %1185 : vector<1x8x64xf32> to vector<8x64xf32>
    %1187 = arith.mulf %1186, %1184 : vector<8x64xf32>
    %1188 = vector.extract_strided_slice %1153 {offsets = [5, 0, 0], sizes = [1, 8, 64], strides = [1, 1, 1]} : vector<8x8x64xf32> to vector<1x8x64xf32>
    %1189 = vector.shape_cast %1188 : vector<1x8x64xf32> to vector<8x64xf32>
    %1190 = arith.addf %1187, %1189 : vector<8x64xf32>
    %1191 = vector.extract_strided_slice %1152 {offsets = [6, 0, 0], sizes = [1, 8, 64], strides = [1, 1, 1]} : vector<8x8x64xf32> to vector<1x8x64xf32>
    %1192 = vector.shape_cast %1191 : vector<1x8x64xf32> to vector<8x64xf32>
    %1193 = arith.mulf %1192, %1190 : vector<8x64xf32>
    %1194 = vector.extract_strided_slice %1153 {offsets = [6, 0, 0], sizes = [1, 8, 64], strides = [1, 1, 1]} : vector<8x8x64xf32> to vector<1x8x64xf32>
    %1195 = vector.shape_cast %1194 : vector<1x8x64xf32> to vector<8x64xf32>
    %1196 = arith.addf %1193, %1195 : vector<8x64xf32>
    %1197 = vector.extract_strided_slice %1152 {offsets = [7, 0, 0], sizes = [1, 8, 64], strides = [1, 1, 1]} : vector<8x8x64xf32> to vector<1x8x64xf32>
    %1198 = vector.shape_cast %1197 : vector<1x8x64xf32> to vector<8x64xf32>
    %1199 = arith.mulf %1198, %1196 : vector<8x64xf32>
    %1200 = vector.extract_strided_slice %1153 {offsets = [7, 0, 0], sizes = [1, 8, 64], strides = [1, 1, 1]} : vector<8x8x64xf32> to vector<1x8x64xf32>
    %1201 = vector.shape_cast %1200 : vector<1x8x64xf32> to vector<8x64xf32>
    %1202 = arith.addf %1199, %1201 : vector<8x64xf32>
    %1203 = vector.shape_cast %1160 : vector<8x64xf32> to vector<1x8x64xf32>
    %1204 = vector.shape_cast %1166 : vector<8x64xf32> to vector<1x8x64xf32>
    %1205 = vector.shape_cast %1172 : vector<8x64xf32> to vector<1x8x64xf32>
    %1206 = vector.shape_cast %1178 : vector<8x64xf32> to vector<1x8x64xf32>
    %1207 = vector.shape_cast %1184 : vector<8x64xf32> to vector<1x8x64xf32>
    %1208 = vector.shape_cast %1190 : vector<8x64xf32> to vector<1x8x64xf32>
    %1209 = vector.shape_cast %1196 : vector<8x64xf32> to vector<1x8x64xf32>
    %1210 = vector.shape_cast %1202 : vector<8x64xf32> to vector<1x8x64xf32>
    %1211 = tpu.concatenate %1203, %1204, %1205, %1206, %1207, %1208, %1209, %1210 in 0 : vector<1x8x64xf32>, vector<1x8x64xf32>, vector<1x8x64xf32>, vector<1x8x64xf32>, vector<1x8x64xf32>, vector<1x8x64xf32>, vector<1x8x64xf32>, vector<1x8x64xf32> -> vector<8x8x64xf32>
    %1212 = vector.shape_cast %1154 : vector<8x8xf32> to vector<8x8x1xf32>
    %1213 = vector.broadcast %1212 : vector<8x8x1xf32> to vector<8x8x64xf32>
    %1214 = arith.mulf %1211, %1213 : vector<8x8x64xf32>
    %cst_160 = arith.constant dense<0.000000e+00> : vector<8x64xf32>
    %1215 = vector.multi_reduction <add>, %1214, %cst_160 [1] : vector<8x8x64xf32> to vector<8x64xf32>
    %1216 = vector.extract_strided_slice %1145 {offsets = [8, 0, 0], sizes = [8, 8, 64], strides = [1, 1, 1]} : vector<16x8x64xf32> to vector<8x8x64xf32>
    %1217 = vector.extract_strided_slice %1151 {offsets = [8, 0, 0], sizes = [8, 8, 64], strides = [1, 1, 1]} : vector<16x8x64xf32> to vector<8x8x64xf32>
    %1218 = vector.extract_strided_slice %1139 {offsets = [8, 0], sizes = [8, 8], strides = [1, 1]} : vector<16x8xf32> to vector<8x8xf32>
    %1219 = vector.extract_strided_slice %1216 {offsets = [0, 0, 0], sizes = [1, 8, 64], strides = [1, 1, 1]} : vector<8x8x64xf32> to vector<1x8x64xf32>
    %1220 = vector.shape_cast %1219 : vector<1x8x64xf32> to vector<8x64xf32>
    %1221 = arith.mulf %1220, %808 : vector<8x64xf32>
    %1222 = vector.extract_strided_slice %1217 {offsets = [0, 0, 0], sizes = [1, 8, 64], strides = [1, 1, 1]} : vector<8x8x64xf32> to vector<1x8x64xf32>
    %1223 = vector.shape_cast %1222 : vector<1x8x64xf32> to vector<8x64xf32>
    %1224 = arith.addf %1221, %1223 : vector<8x64xf32>
    %1225 = vector.extract_strided_slice %1216 {offsets = [1, 0, 0], sizes = [1, 8, 64], strides = [1, 1, 1]} : vector<8x8x64xf32> to vector<1x8x64xf32>
    %1226 = vector.shape_cast %1225 : vector<1x8x64xf32> to vector<8x64xf32>
    %1227 = arith.mulf %1226, %1224 : vector<8x64xf32>
    %1228 = vector.extract_strided_slice %1217 {offsets = [1, 0, 0], sizes = [1, 8, 64], strides = [1, 1, 1]} : vector<8x8x64xf32> to vector<1x8x64xf32>
    %1229 = vector.shape_cast %1228 : vector<1x8x64xf32> to vector<8x64xf32>
    %1230 = arith.addf %1227, %1229 : vector<8x64xf32>
    %1231 = vector.extract_strided_slice %1216 {offsets = [2, 0, 0], sizes = [1, 8, 64], strides = [1, 1, 1]} : vector<8x8x64xf32> to vector<1x8x64xf32>
    %1232 = vector.shape_cast %1231 : vector<1x8x64xf32> to vector<8x64xf32>
    %1233 = arith.mulf %1232, %1230 : vector<8x64xf32>
    %1234 = vector.extract_strided_slice %1217 {offsets = [2, 0, 0], sizes = [1, 8, 64], strides = [1, 1, 1]} : vector<8x8x64xf32> to vector<1x8x64xf32>
    %1235 = vector.shape_cast %1234 : vector<1x8x64xf32> to vector<8x64xf32>
    %1236 = arith.addf %1233, %1235 : vector<8x64xf32>
    %1237 = vector.extract_strided_slice %1216 {offsets = [3, 0, 0], sizes = [1, 8, 64], strides = [1, 1, 1]} : vector<8x8x64xf32> to vector<1x8x64xf32>
    %1238 = vector.shape_cast %1237 : vector<1x8x64xf32> to vector<8x64xf32>
    %1239 = arith.mulf %1238, %1236 : vector<8x64xf32>
    %1240 = vector.extract_strided_slice %1217 {offsets = [3, 0, 0], sizes = [1, 8, 64], strides = [1, 1, 1]} : vector<8x8x64xf32> to vector<1x8x64xf32>
    %1241 = vector.shape_cast %1240 : vector<1x8x64xf32> to vector<8x64xf32>
    %1242 = arith.addf %1239, %1241 : vector<8x64xf32>
    %1243 = vector.extract_strided_slice %1216 {offsets = [4, 0, 0], sizes = [1, 8, 64], strides = [1, 1, 1]} : vector<8x8x64xf32> to vector<1x8x64xf32>
    %1244 = vector.shape_cast %1243 : vector<1x8x64xf32> to vector<8x64xf32>
    %1245 = arith.mulf %1244, %1242 : vector<8x64xf32>
    %1246 = vector.extract_strided_slice %1217 {offsets = [4, 0, 0], sizes = [1, 8, 64], strides = [1, 1, 1]} : vector<8x8x64xf32> to vector<1x8x64xf32>
    %1247 = vector.shape_cast %1246 : vector<1x8x64xf32> to vector<8x64xf32>
    %1248 = arith.addf %1245, %1247 : vector<8x64xf32>
    %1249 = vector.extract_strided_slice %1216 {offsets = [5, 0, 0], sizes = [1, 8, 64], strides = [1, 1, 1]} : vector<8x8x64xf32> to vector<1x8x64xf32>
    %1250 = vector.shape_cast %1249 : vector<1x8x64xf32> to vector<8x64xf32>
    %1251 = arith.mulf %1250, %1248 : vector<8x64xf32>
    %1252 = vector.extract_strided_slice %1217 {offsets = [5, 0, 0], sizes = [1, 8, 64], strides = [1, 1, 1]} : vector<8x8x64xf32> to vector<1x8x64xf32>
    %1253 = vector.shape_cast %1252 : vector<1x8x64xf32> to vector<8x64xf32>
    %1254 = arith.addf %1251, %1253 : vector<8x64xf32>
    %1255 = vector.extract_strided_slice %1216 {offsets = [6, 0, 0], sizes = [1, 8, 64], strides = [1, 1, 1]} : vector<8x8x64xf32> to vector<1x8x64xf32>
    %1256 = vector.shape_cast %1255 : vector<1x8x64xf32> to vector<8x64xf32>
    %1257 = arith.mulf %1256, %1254 : vector<8x64xf32>
    %1258 = vector.extract_strided_slice %1217 {offsets = [6, 0, 0], sizes = [1, 8, 64], strides = [1, 1, 1]} : vector<8x8x64xf32> to vector<1x8x64xf32>
    %1259 = vector.shape_cast %1258 : vector<1x8x64xf32> to vector<8x64xf32>
    %1260 = arith.addf %1257, %1259 : vector<8x64xf32>
    %1261 = vector.extract_strided_slice %1216 {offsets = [7, 0, 0], sizes = [1, 8, 64], strides = [1, 1, 1]} : vector<8x8x64xf32> to vector<1x8x64xf32>
    %1262 = vector.shape_cast %1261 : vector<1x8x64xf32> to vector<8x64xf32>
    %1263 = arith.mulf %1262, %1260 : vector<8x64xf32>
    %1264 = vector.extract_strided_slice %1217 {offsets = [7, 0, 0], sizes = [1, 8, 64], strides = [1, 1, 1]} : vector<8x8x64xf32> to vector<1x8x64xf32>
    %1265 = vector.shape_cast %1264 : vector<1x8x64xf32> to vector<8x64xf32>
    %1266 = arith.addf %1263, %1265 : vector<8x64xf32>
    %1267 = vector.shape_cast %1224 : vector<8x64xf32> to vector<1x8x64xf32>
    %1268 = vector.shape_cast %1230 : vector<8x64xf32> to vector<1x8x64xf32>
    %1269 = vector.shape_cast %1236 : vector<8x64xf32> to vector<1x8x64xf32>
    %1270 = vector.shape_cast %1242 : vector<8x64xf32> to vector<1x8x64xf32>
    %1271 = vector.shape_cast %1248 : vector<8x64xf32> to vector<1x8x64xf32>
    %1272 = vector.shape_cast %1254 : vector<8x64xf32> to vector<1x8x64xf32>
    %1273 = vector.shape_cast %1260 : vector<8x64xf32> to vector<1x8x64xf32>
    %1274 = vector.shape_cast %1266 : vector<8x64xf32> to vector<1x8x64xf32>
    %1275 = tpu.concatenate %1267, %1268, %1269, %1270, %1271, %1272, %1273, %1274 in 0 : vector<1x8x64xf32>, vector<1x8x64xf32>, vector<1x8x64xf32>, vector<1x8x64xf32>, vector<1x8x64xf32>, vector<1x8x64xf32>, vector<1x8x64xf32>, vector<1x8x64xf32> -> vector<8x8x64xf32>
    %1276 = vector.shape_cast %1218 : vector<8x8xf32> to vector<8x8x1xf32>
    %1277 = vector.broadcast %1276 : vector<8x8x1xf32> to vector<8x8x64xf32>
    %1278 = arith.mulf %1275, %1277 : vector<8x8x64xf32>
    %cst_161 = arith.constant dense<0.000000e+00> : vector<8x64xf32>
    %1279 = vector.multi_reduction <add>, %1278, %cst_161 [1] : vector<8x8x64xf32> to vector<8x64xf32>
    %1280 = tpu.concatenate %1215, %1279 in 0 : vector<8x64xf32>, vector<8x64xf32> -> vector<16x64xf32>
    %1281 = vector.broadcast %1054 : vector<1x64xf32> to vector<16x64xf32>
    %1282 = arith.mulf %1281, %1120 : vector<16x64xf32>
    %1283 = arith.addf %1280, %1282 : vector<16x64xf32>
    %cst_162 = arith.constant 0.000000e+00 : f32
    %1284 = vector.broadcast %cst_162 : f32 to vector<16x64xf32>
    %1285 = arith.subf %1284, %1048 : vector<16x64xf32>
    %1286 = math.exp %1285 : vector<16x64xf32>
    %cst_163 = arith.constant 1.000000e+00 : f32
    %1287 = vector.broadcast %cst_163 : f32 to vector<16x64xf32>
    %1288 = arith.addf %1287, %1286 : vector<16x64xf32>
    %cst_164 = arith.constant 1.000000e+00 : f32
    %1289 = vector.broadcast %cst_164 : f32 to vector<16x64xf32>
    %1290 = arith.divf %1289, %1288 : vector<16x64xf32>
    %1291 = arith.mulf %1048, %1290 : vector<16x64xf32>
    %1292 = arith.mulf %1283, %1291 : vector<16x64xf32>
    %1293 = arith.truncf %1292 : vector<16x64xf32> to vector<16x64xbf16>
    %c4_165 = arith.constant 4 : index
    %c0_166 = arith.constant 0 : index
    %c0_167 = arith.constant 0 : index
    %1294 = vector.load %arg5[%c4_165, %c0_166, %c0_167] : memref<6x64x32xbf16, #tpu.memory_space<vmem>>, vector<1x64x32xbf16>
    %1295 = vector.shape_cast %1294 : vector<1x64x32xbf16> to vector<64x32xbf16>
    %cst_168 = arith.constant dense<0.000000e+00> : vector<16x32xf32>
    %1296 = tpu.matmul %1293, %1295, %cst_168 {dimension_numbers = #tpu.dot_dimension_numbers<[1], [0], [0], [1], [0, 0, 1, 1], [], []>} : vector<16x64xbf16>, vector<64x32xbf16>, vector<16x32xf32> -> vector<16x32xf32>
    %1297 = arith.addf %534, %1296 : vector<16x32xf32>
    %1298 = arith.mulf %1297, %1297 : vector<16x32xf32>
    %cst_169 = arith.constant dense<0.000000e+00> : vector<16xf32>
    %1299 = vector.multi_reduction <add>, %1298, %cst_169 [1] : vector<16x32xf32> to vector<16xf32>
    %1300 = vector.shape_cast %1299 : vector<16xf32> to vector<16x1xf32>
    %cst_170 = arith.constant 3.200000e+01 : f32
    %1301 = vector.broadcast %cst_170 : f32 to vector<16x1xf32>
    %1302 = arith.divf %1300, %1301 : vector<16x1xf32>
    %cst_171 = arith.constant 9.99999974E-6 : f32
    %1303 = vector.broadcast %cst_171 : f32 to vector<16x1xf32>
    %1304 = arith.addf %1302, %1303 : vector<16x1xf32>
    %1305 = math.rsqrt %1304 : vector<16x1xf32>
    %1306 = vector.broadcast %1305 : vector<16x1xf32> to vector<16x32xf32>
    %1307 = arith.mulf %1297, %1306 : vector<16x32xf32>
    %1308 = arith.truncf %1307 : vector<16x32xf32> to vector<16x32xbf16>
    %c5 = arith.constant 5 : index
    %c0_172 = arith.constant 0 : index
    %c0_173 = arith.constant 0 : index
    %1309 = vector.load %arg2[%c5, %c0_172, %c0_173] : memref<6x32x128xbf16, #tpu.memory_space<vmem>>, vector<1x32x128xbf16>
    %1310 = vector.shape_cast %1309 : vector<1x32x128xbf16> to vector<32x128xbf16>
    %cst_174 = arith.constant dense<0.000000e+00> : vector<16x128xf32>
    %1311 = tpu.matmul %1308, %1310, %cst_174 {dimension_numbers = #tpu.dot_dimension_numbers<[1], [0], [0], [1], [0, 0, 1, 1], [], []>} : vector<16x32xbf16>, vector<32x128xbf16>, vector<16x128xf32> -> vector<16x128xf32>
    %1312 = vector.extract_strided_slice %1311 {offsets = [0, 0], sizes = [16, 64], strides = [1, 1]} : vector<16x128xf32> to vector<16x64xf32>
    %1313 = vector.extract_strided_slice %1311 {offsets = [0, 64], sizes = [16, 64], strides = [1, 1]} : vector<16x128xf32> to vector<16x64xf32>
    %c5_175 = arith.constant 5 : index
    %c0_176 = arith.constant 0 : index
    %c0_177 = arith.constant 0 : index
    %1314 = vector.load %arg3[%c5_175, %c0_176, %c0_177] : memref<6x15x64xf32, #tpu.memory_space<vmem>>, vector<1x15x64xf32>
    %1315 = vector.shape_cast %1314 : vector<1x15x64xf32> to vector<15x64xf32>
    %1316 = vector.extract_strided_slice %1315 {offsets = [0, 0], sizes = [4, 64], strides = [1, 1]} : vector<15x64xf32> to vector<4x64xf32>
    %1317 = vector.extract_strided_slice %1315 {offsets = [4, 0], sizes = [1, 64], strides = [1, 1]} : vector<15x64xf32> to vector<1x64xf32>
    %1318 = vector.extract_strided_slice %1315 {offsets = [5, 0], sizes = [1, 64], strides = [1, 1]} : vector<15x64xf32> to vector<1x64xf32>
    %1319 = vector.extract_strided_slice %1315 {offsets = [6, 0], sizes = [1, 64], strides = [1, 1]} : vector<15x64xf32> to vector<1x64xf32>
    %1320 = vector.extract_strided_slice %1315 {offsets = [7, 0], sizes = [8, 64], strides = [1, 1]} : vector<15x64xf32> to vector<8x64xf32>
    %1321 = vector.extract_strided_slice %1312 {offsets = [0, 0], sizes = [8, 64], strides = [1, 1]} : vector<16x64xf32> to vector<8x64xf32>
    %cst_178 = arith.constant 0.000000e+00 : f32
    %1322 = vector.broadcast %cst_178 : f32 to vector<3x64xf32>
    %1323 = tpu.concatenate %1322, %1321 in 0 : vector<3x64xf32>, vector<8x64xf32> -> vector<11x64xf32>
    %1324 = vector.extract_strided_slice %1316 {offsets = [0, 0], sizes = [1, 64], strides = [1, 1]} : vector<4x64xf32> to vector<1x64xf32>
    %1325 = vector.extract_strided_slice %1323 {offsets = [0, 0], sizes = [8, 64], strides = [1, 1]} : vector<11x64xf32> to vector<8x64xf32>
    %1326 = vector.broadcast %1324 : vector<1x64xf32> to vector<8x64xf32>
    %1327 = arith.mulf %1326, %1325 : vector<8x64xf32>
    %1328 = vector.broadcast %1317 : vector<1x64xf32> to vector<8x64xf32>
    %1329 = arith.addf %1328, %1327 : vector<8x64xf32>
    %1330 = vector.extract_strided_slice %1316 {offsets = [1, 0], sizes = [1, 64], strides = [1, 1]} : vector<4x64xf32> to vector<1x64xf32>
    %1331 = vector.extract_strided_slice %1323 {offsets = [1, 0], sizes = [8, 64], strides = [1, 1]} : vector<11x64xf32> to vector<8x64xf32>
    %1332 = vector.broadcast %1330 : vector<1x64xf32> to vector<8x64xf32>
    %1333 = arith.mulf %1332, %1331 : vector<8x64xf32>
    %1334 = arith.addf %1329, %1333 : vector<8x64xf32>
    %1335 = vector.extract_strided_slice %1316 {offsets = [2, 0], sizes = [1, 64], strides = [1, 1]} : vector<4x64xf32> to vector<1x64xf32>
    %1336 = vector.extract_strided_slice %1323 {offsets = [2, 0], sizes = [8, 64], strides = [1, 1]} : vector<11x64xf32> to vector<8x64xf32>
    %1337 = vector.broadcast %1335 : vector<1x64xf32> to vector<8x64xf32>
    %1338 = arith.mulf %1337, %1336 : vector<8x64xf32>
    %1339 = arith.addf %1334, %1338 : vector<8x64xf32>
    %1340 = vector.extract_strided_slice %1316 {offsets = [3, 0], sizes = [1, 64], strides = [1, 1]} : vector<4x64xf32> to vector<1x64xf32>
    %1341 = vector.extract_strided_slice %1323 {offsets = [3, 0], sizes = [8, 64], strides = [1, 1]} : vector<11x64xf32> to vector<8x64xf32>
    %1342 = vector.broadcast %1340 : vector<1x64xf32> to vector<8x64xf32>
    %1343 = arith.mulf %1342, %1341 : vector<8x64xf32>
    %1344 = arith.addf %1339, %1343 : vector<8x64xf32>
    %cst_179 = arith.constant 0.000000e+00 : f32
    %1345 = vector.broadcast %cst_179 : f32 to vector<8x64xf32>
    %1346 = arith.subf %1345, %1344 : vector<8x64xf32>
    %1347 = math.exp %1346 : vector<8x64xf32>
    %cst_180 = arith.constant 1.000000e+00 : f32
    %1348 = vector.broadcast %cst_180 : f32 to vector<8x64xf32>
    %1349 = arith.addf %1348, %1347 : vector<8x64xf32>
    %cst_181 = arith.constant 1.000000e+00 : f32
    %1350 = vector.broadcast %cst_181 : f32 to vector<8x64xf32>
    %1351 = arith.divf %1350, %1349 : vector<8x64xf32>
    %1352 = arith.mulf %1344, %1351 : vector<8x64xf32>
    %1353 = vector.extract_strided_slice %1312 {offsets = [8, 0], sizes = [8, 64], strides = [1, 1]} : vector<16x64xf32> to vector<8x64xf32>
    %cst_182 = arith.constant 0.000000e+00 : f32
    %1354 = vector.broadcast %cst_182 : f32 to vector<3x64xf32>
    %1355 = tpu.concatenate %1354, %1353 in 0 : vector<3x64xf32>, vector<8x64xf32> -> vector<11x64xf32>
    %1356 = vector.extract_strided_slice %1316 {offsets = [0, 0], sizes = [1, 64], strides = [1, 1]} : vector<4x64xf32> to vector<1x64xf32>
    %1357 = vector.extract_strided_slice %1355 {offsets = [0, 0], sizes = [8, 64], strides = [1, 1]} : vector<11x64xf32> to vector<8x64xf32>
    %1358 = vector.broadcast %1356 : vector<1x64xf32> to vector<8x64xf32>
    %1359 = arith.mulf %1358, %1357 : vector<8x64xf32>
    %1360 = vector.broadcast %1317 : vector<1x64xf32> to vector<8x64xf32>
    %1361 = arith.addf %1360, %1359 : vector<8x64xf32>
    %1362 = vector.extract_strided_slice %1316 {offsets = [1, 0], sizes = [1, 64], strides = [1, 1]} : vector<4x64xf32> to vector<1x64xf32>
    %1363 = vector.extract_strided_slice %1355 {offsets = [1, 0], sizes = [8, 64], strides = [1, 1]} : vector<11x64xf32> to vector<8x64xf32>
    %1364 = vector.broadcast %1362 : vector<1x64xf32> to vector<8x64xf32>
    %1365 = arith.mulf %1364, %1363 : vector<8x64xf32>
    %1366 = arith.addf %1361, %1365 : vector<8x64xf32>
    %1367 = vector.extract_strided_slice %1316 {offsets = [2, 0], sizes = [1, 64], strides = [1, 1]} : vector<4x64xf32> to vector<1x64xf32>
    %1368 = vector.extract_strided_slice %1355 {offsets = [2, 0], sizes = [8, 64], strides = [1, 1]} : vector<11x64xf32> to vector<8x64xf32>
    %1369 = vector.broadcast %1367 : vector<1x64xf32> to vector<8x64xf32>
    %1370 = arith.mulf %1369, %1368 : vector<8x64xf32>
    %1371 = arith.addf %1366, %1370 : vector<8x64xf32>
    %1372 = vector.extract_strided_slice %1316 {offsets = [3, 0], sizes = [1, 64], strides = [1, 1]} : vector<4x64xf32> to vector<1x64xf32>
    %1373 = vector.extract_strided_slice %1355 {offsets = [3, 0], sizes = [8, 64], strides = [1, 1]} : vector<11x64xf32> to vector<8x64xf32>
    %1374 = vector.broadcast %1372 : vector<1x64xf32> to vector<8x64xf32>
    %1375 = arith.mulf %1374, %1373 : vector<8x64xf32>
    %1376 = arith.addf %1371, %1375 : vector<8x64xf32>
    %cst_183 = arith.constant 0.000000e+00 : f32
    %1377 = vector.broadcast %cst_183 : f32 to vector<8x64xf32>
    %1378 = arith.subf %1377, %1376 : vector<8x64xf32>
    %1379 = math.exp %1378 : vector<8x64xf32>
    %cst_184 = arith.constant 1.000000e+00 : f32
    %1380 = vector.broadcast %cst_184 : f32 to vector<8x64xf32>
    %1381 = arith.addf %1380, %1379 : vector<8x64xf32>
    %cst_185 = arith.constant 1.000000e+00 : f32
    %1382 = vector.broadcast %cst_185 : f32 to vector<8x64xf32>
    %1383 = arith.divf %1382, %1381 : vector<8x64xf32>
    %1384 = arith.mulf %1376, %1383 : vector<8x64xf32>
    %1385 = tpu.concatenate %1352, %1384 in 0 : vector<8x64xf32>, vector<8x64xf32> -> vector<16x64xf32>
    %1386 = arith.truncf %1385 : vector<16x64xf32> to vector<16x64xbf16>
    %c5_186 = arith.constant 5 : index
    %c0_187 = arith.constant 0 : index
    %c0_188 = arith.constant 0 : index
    %1387 = vector.load %arg4[%c5_186, %c0_187, %c0_188] : memref<6x64x128xbf16, #tpu.memory_space<vmem>>, vector<1x64x128xbf16>
    %1388 = vector.shape_cast %1387 : vector<1x64x128xbf16> to vector<64x128xbf16>
    %cst_189 = arith.constant dense<0.000000e+00> : vector<16x128xf32>
    %1389 = tpu.matmul %1386, %1388, %cst_189 {dimension_numbers = #tpu.dot_dimension_numbers<[1], [0], [0], [1], [0, 0, 1, 1], [], []>} : vector<16x64xbf16>, vector<64x128xbf16>, vector<16x128xf32> -> vector<16x128xf32>
    %1390 = vector.extract_strided_slice %1389 {offsets = [0, 0], sizes = [16, 64], strides = [1, 1]} : vector<16x128xf32> to vector<16x64xf32>
    %1391 = vector.broadcast %1318 : vector<1x64xf32> to vector<16x64xf32>
    %1392 = arith.addf %1390, %1391 : vector<16x64xf32>
    %cst_190 = arith.constant 0.000000e+00 : f32
    %1393 = vector.broadcast %cst_190 : f32 to vector<16x64xf32>
    %1394 = arith.maximumf %1392, %1393 : vector<16x64xf32>
    %1395 = math.absf %1392 : vector<16x64xf32>
    %cst_191 = arith.constant 0.000000e+00 : f32
    %1396 = vector.broadcast %cst_191 : f32 to vector<16x64xf32>
    %1397 = arith.subf %1396, %1395 : vector<16x64xf32>
    %1398 = math.exp %1397 : vector<16x64xf32>
    %cst_192 = arith.constant 1.000000e+00 : f32
    %1399 = vector.broadcast %cst_192 : f32 to vector<16x64xf32>
    %1400 = arith.addf %1399, %1398 : vector<16x64xf32>
    %1401 = math.log %1400 : vector<16x64xf32>
    %1402 = arith.addf %1394, %1401 : vector<16x64xf32>
    %1403 = vector.extract_strided_slice %1389 {offsets = [0, 64], sizes = [16, 8], strides = [1, 1]} : vector<16x128xf32> to vector<16x8xf32>
    %1404 = vector.extract_strided_slice %1389 {offsets = [0, 72], sizes = [16, 8], strides = [1, 1]} : vector<16x128xf32> to vector<16x8xf32>
    %1405 = vector.shape_cast %1402 : vector<16x64xf32> to vector<16x1x64xf32>
    %1406 = vector.shape_cast %1320 : vector<8x64xf32> to vector<1x8x64xf32>
    %1407 = vector.broadcast %1405 : vector<16x1x64xf32> to vector<16x8x64xf32>
    %1408 = vector.broadcast %1406 : vector<1x8x64xf32> to vector<16x8x64xf32>
    %1409 = arith.mulf %1407, %1408 : vector<16x8x64xf32>
    %1410 = math.exp %1409 : vector<16x8x64xf32>
    %1411 = arith.mulf %1402, %1385 : vector<16x64xf32>
    %1412 = vector.shape_cast %1411 : vector<16x64xf32> to vector<16x1x64xf32>
    %1413 = vector.shape_cast %1403 : vector<16x8xf32> to vector<16x8x1xf32>
    %1414 = vector.broadcast %1412 : vector<16x1x64xf32> to vector<16x8x64xf32>
    %1415 = vector.broadcast %1413 : vector<16x8x1xf32> to vector<16x8x64xf32>
    %1416 = arith.mulf %1414, %1415 : vector<16x8x64xf32>
    %1417 = vector.extract_strided_slice %1410 {offsets = [0, 0, 0], sizes = [8, 8, 64], strides = [1, 1, 1]} : vector<16x8x64xf32> to vector<8x8x64xf32>
    %1418 = vector.extract_strided_slice %1416 {offsets = [0, 0, 0], sizes = [8, 8, 64], strides = [1, 1, 1]} : vector<16x8x64xf32> to vector<8x8x64xf32>
    %1419 = vector.extract_strided_slice %1404 {offsets = [0, 0], sizes = [8, 8], strides = [1, 1]} : vector<16x8xf32> to vector<8x8xf32>
    %1420 = vector.extract_strided_slice %1417 {offsets = [0, 0, 0], sizes = [1, 8, 64], strides = [1, 1, 1]} : vector<8x8x64xf32> to vector<1x8x64xf32>
    %1421 = vector.shape_cast %1420 : vector<1x8x64xf32> to vector<8x64xf32>
    %1422 = arith.mulf %1421, %1029 : vector<8x64xf32>
    %1423 = vector.extract_strided_slice %1418 {offsets = [0, 0, 0], sizes = [1, 8, 64], strides = [1, 1, 1]} : vector<8x8x64xf32> to vector<1x8x64xf32>
    %1424 = vector.shape_cast %1423 : vector<1x8x64xf32> to vector<8x64xf32>
    %1425 = arith.addf %1422, %1424 : vector<8x64xf32>
    %1426 = vector.extract_strided_slice %1417 {offsets = [1, 0, 0], sizes = [1, 8, 64], strides = [1, 1, 1]} : vector<8x8x64xf32> to vector<1x8x64xf32>
    %1427 = vector.shape_cast %1426 : vector<1x8x64xf32> to vector<8x64xf32>
    %1428 = arith.mulf %1427, %1425 : vector<8x64xf32>
    %1429 = vector.extract_strided_slice %1418 {offsets = [1, 0, 0], sizes = [1, 8, 64], strides = [1, 1, 1]} : vector<8x8x64xf32> to vector<1x8x64xf32>
    %1430 = vector.shape_cast %1429 : vector<1x8x64xf32> to vector<8x64xf32>
    %1431 = arith.addf %1428, %1430 : vector<8x64xf32>
    %1432 = vector.extract_strided_slice %1417 {offsets = [2, 0, 0], sizes = [1, 8, 64], strides = [1, 1, 1]} : vector<8x8x64xf32> to vector<1x8x64xf32>
    %1433 = vector.shape_cast %1432 : vector<1x8x64xf32> to vector<8x64xf32>
    %1434 = arith.mulf %1433, %1431 : vector<8x64xf32>
    %1435 = vector.extract_strided_slice %1418 {offsets = [2, 0, 0], sizes = [1, 8, 64], strides = [1, 1, 1]} : vector<8x8x64xf32> to vector<1x8x64xf32>
    %1436 = vector.shape_cast %1435 : vector<1x8x64xf32> to vector<8x64xf32>
    %1437 = arith.addf %1434, %1436 : vector<8x64xf32>
    %1438 = vector.extract_strided_slice %1417 {offsets = [3, 0, 0], sizes = [1, 8, 64], strides = [1, 1, 1]} : vector<8x8x64xf32> to vector<1x8x64xf32>
    %1439 = vector.shape_cast %1438 : vector<1x8x64xf32> to vector<8x64xf32>
    %1440 = arith.mulf %1439, %1437 : vector<8x64xf32>
    %1441 = vector.extract_strided_slice %1418 {offsets = [3, 0, 0], sizes = [1, 8, 64], strides = [1, 1, 1]} : vector<8x8x64xf32> to vector<1x8x64xf32>
    %1442 = vector.shape_cast %1441 : vector<1x8x64xf32> to vector<8x64xf32>
    %1443 = arith.addf %1440, %1442 : vector<8x64xf32>
    %1444 = vector.extract_strided_slice %1417 {offsets = [4, 0, 0], sizes = [1, 8, 64], strides = [1, 1, 1]} : vector<8x8x64xf32> to vector<1x8x64xf32>
    %1445 = vector.shape_cast %1444 : vector<1x8x64xf32> to vector<8x64xf32>
    %1446 = arith.mulf %1445, %1443 : vector<8x64xf32>
    %1447 = vector.extract_strided_slice %1418 {offsets = [4, 0, 0], sizes = [1, 8, 64], strides = [1, 1, 1]} : vector<8x8x64xf32> to vector<1x8x64xf32>
    %1448 = vector.shape_cast %1447 : vector<1x8x64xf32> to vector<8x64xf32>
    %1449 = arith.addf %1446, %1448 : vector<8x64xf32>
    %1450 = vector.extract_strided_slice %1417 {offsets = [5, 0, 0], sizes = [1, 8, 64], strides = [1, 1, 1]} : vector<8x8x64xf32> to vector<1x8x64xf32>
    %1451 = vector.shape_cast %1450 : vector<1x8x64xf32> to vector<8x64xf32>
    %1452 = arith.mulf %1451, %1449 : vector<8x64xf32>
    %1453 = vector.extract_strided_slice %1418 {offsets = [5, 0, 0], sizes = [1, 8, 64], strides = [1, 1, 1]} : vector<8x8x64xf32> to vector<1x8x64xf32>
    %1454 = vector.shape_cast %1453 : vector<1x8x64xf32> to vector<8x64xf32>
    %1455 = arith.addf %1452, %1454 : vector<8x64xf32>
    %1456 = vector.extract_strided_slice %1417 {offsets = [6, 0, 0], sizes = [1, 8, 64], strides = [1, 1, 1]} : vector<8x8x64xf32> to vector<1x8x64xf32>
    %1457 = vector.shape_cast %1456 : vector<1x8x64xf32> to vector<8x64xf32>
    %1458 = arith.mulf %1457, %1455 : vector<8x64xf32>
    %1459 = vector.extract_strided_slice %1418 {offsets = [6, 0, 0], sizes = [1, 8, 64], strides = [1, 1, 1]} : vector<8x8x64xf32> to vector<1x8x64xf32>
    %1460 = vector.shape_cast %1459 : vector<1x8x64xf32> to vector<8x64xf32>
    %1461 = arith.addf %1458, %1460 : vector<8x64xf32>
    %1462 = vector.extract_strided_slice %1417 {offsets = [7, 0, 0], sizes = [1, 8, 64], strides = [1, 1, 1]} : vector<8x8x64xf32> to vector<1x8x64xf32>
    %1463 = vector.shape_cast %1462 : vector<1x8x64xf32> to vector<8x64xf32>
    %1464 = arith.mulf %1463, %1461 : vector<8x64xf32>
    %1465 = vector.extract_strided_slice %1418 {offsets = [7, 0, 0], sizes = [1, 8, 64], strides = [1, 1, 1]} : vector<8x8x64xf32> to vector<1x8x64xf32>
    %1466 = vector.shape_cast %1465 : vector<1x8x64xf32> to vector<8x64xf32>
    %1467 = arith.addf %1464, %1466 : vector<8x64xf32>
    %1468 = vector.shape_cast %1425 : vector<8x64xf32> to vector<1x8x64xf32>
    %1469 = vector.shape_cast %1431 : vector<8x64xf32> to vector<1x8x64xf32>
    %1470 = vector.shape_cast %1437 : vector<8x64xf32> to vector<1x8x64xf32>
    %1471 = vector.shape_cast %1443 : vector<8x64xf32> to vector<1x8x64xf32>
    %1472 = vector.shape_cast %1449 : vector<8x64xf32> to vector<1x8x64xf32>
    %1473 = vector.shape_cast %1455 : vector<8x64xf32> to vector<1x8x64xf32>
    %1474 = vector.shape_cast %1461 : vector<8x64xf32> to vector<1x8x64xf32>
    %1475 = vector.shape_cast %1467 : vector<8x64xf32> to vector<1x8x64xf32>
    %1476 = tpu.concatenate %1468, %1469, %1470, %1471, %1472, %1473, %1474, %1475 in 0 : vector<1x8x64xf32>, vector<1x8x64xf32>, vector<1x8x64xf32>, vector<1x8x64xf32>, vector<1x8x64xf32>, vector<1x8x64xf32>, vector<1x8x64xf32>, vector<1x8x64xf32> -> vector<8x8x64xf32>
    %1477 = vector.shape_cast %1419 : vector<8x8xf32> to vector<8x8x1xf32>
    %1478 = vector.broadcast %1477 : vector<8x8x1xf32> to vector<8x8x64xf32>
    %1479 = arith.mulf %1476, %1478 : vector<8x8x64xf32>
    %cst_193 = arith.constant dense<0.000000e+00> : vector<8x64xf32>
    %1480 = vector.multi_reduction <add>, %1479, %cst_193 [1] : vector<8x8x64xf32> to vector<8x64xf32>
    %1481 = vector.extract_strided_slice %1410 {offsets = [8, 0, 0], sizes = [8, 8, 64], strides = [1, 1, 1]} : vector<16x8x64xf32> to vector<8x8x64xf32>
    %1482 = vector.extract_strided_slice %1416 {offsets = [8, 0, 0], sizes = [8, 8, 64], strides = [1, 1, 1]} : vector<16x8x64xf32> to vector<8x8x64xf32>
    %1483 = vector.extract_strided_slice %1404 {offsets = [8, 0], sizes = [8, 8], strides = [1, 1]} : vector<16x8xf32> to vector<8x8xf32>
    %1484 = vector.extract_strided_slice %1481 {offsets = [0, 0, 0], sizes = [1, 8, 64], strides = [1, 1, 1]} : vector<8x8x64xf32> to vector<1x8x64xf32>
    %1485 = vector.shape_cast %1484 : vector<1x8x64xf32> to vector<8x64xf32>
    %1486 = arith.mulf %1485, %1032 : vector<8x64xf32>
    %1487 = vector.extract_strided_slice %1482 {offsets = [0, 0, 0], sizes = [1, 8, 64], strides = [1, 1, 1]} : vector<8x8x64xf32> to vector<1x8x64xf32>
    %1488 = vector.shape_cast %1487 : vector<1x8x64xf32> to vector<8x64xf32>
    %1489 = arith.addf %1486, %1488 : vector<8x64xf32>
    %1490 = vector.extract_strided_slice %1481 {offsets = [1, 0, 0], sizes = [1, 8, 64], strides = [1, 1, 1]} : vector<8x8x64xf32> to vector<1x8x64xf32>
    %1491 = vector.shape_cast %1490 : vector<1x8x64xf32> to vector<8x64xf32>
    %1492 = arith.mulf %1491, %1489 : vector<8x64xf32>
    %1493 = vector.extract_strided_slice %1482 {offsets = [1, 0, 0], sizes = [1, 8, 64], strides = [1, 1, 1]} : vector<8x8x64xf32> to vector<1x8x64xf32>
    %1494 = vector.shape_cast %1493 : vector<1x8x64xf32> to vector<8x64xf32>
    %1495 = arith.addf %1492, %1494 : vector<8x64xf32>
    %1496 = vector.extract_strided_slice %1481 {offsets = [2, 0, 0], sizes = [1, 8, 64], strides = [1, 1, 1]} : vector<8x8x64xf32> to vector<1x8x64xf32>
    %1497 = vector.shape_cast %1496 : vector<1x8x64xf32> to vector<8x64xf32>
    %1498 = arith.mulf %1497, %1495 : vector<8x64xf32>
    %1499 = vector.extract_strided_slice %1482 {offsets = [2, 0, 0], sizes = [1, 8, 64], strides = [1, 1, 1]} : vector<8x8x64xf32> to vector<1x8x64xf32>
    %1500 = vector.shape_cast %1499 : vector<1x8x64xf32> to vector<8x64xf32>
    %1501 = arith.addf %1498, %1500 : vector<8x64xf32>
    %1502 = vector.extract_strided_slice %1481 {offsets = [3, 0, 0], sizes = [1, 8, 64], strides = [1, 1, 1]} : vector<8x8x64xf32> to vector<1x8x64xf32>
    %1503 = vector.shape_cast %1502 : vector<1x8x64xf32> to vector<8x64xf32>
    %1504 = arith.mulf %1503, %1501 : vector<8x64xf32>
    %1505 = vector.extract_strided_slice %1482 {offsets = [3, 0, 0], sizes = [1, 8, 64], strides = [1, 1, 1]} : vector<8x8x64xf32> to vector<1x8x64xf32>
    %1506 = vector.shape_cast %1505 : vector<1x8x64xf32> to vector<8x64xf32>
    %1507 = arith.addf %1504, %1506 : vector<8x64xf32>
    %1508 = vector.extract_strided_slice %1481 {offsets = [4, 0, 0], sizes = [1, 8, 64], strides = [1, 1, 1]} : vector<8x8x64xf32> to vector<1x8x64xf32>
    %1509 = vector.shape_cast %1508 : vector<1x8x64xf32> to vector<8x64xf32>
    %1510 = arith.mulf %1509, %1507 : vector<8x64xf32>
    %1511 = vector.extract_strided_slice %1482 {offsets = [4, 0, 0], sizes = [1, 8, 64], strides = [1, 1, 1]} : vector<8x8x64xf32> to vector<1x8x64xf32>
    %1512 = vector.shape_cast %1511 : vector<1x8x64xf32> to vector<8x64xf32>
    %1513 = arith.addf %1510, %1512 : vector<8x64xf32>
    %1514 = vector.extract_strided_slice %1481 {offsets = [5, 0, 0], sizes = [1, 8, 64], strides = [1, 1, 1]} : vector<8x8x64xf32> to vector<1x8x64xf32>
    %1515 = vector.shape_cast %1514 : vector<1x8x64xf32> to vector<8x64xf32>
    %1516 = arith.mulf %1515, %1513 : vector<8x64xf32>
    %1517 = vector.extract_strided_slice %1482 {offsets = [5, 0, 0], sizes = [1, 8, 64], strides = [1, 1, 1]} : vector<8x8x64xf32> to vector<1x8x64xf32>
    %1518 = vector.shape_cast %1517 : vector<1x8x64xf32> to vector<8x64xf32>
    %1519 = arith.addf %1516, %1518 : vector<8x64xf32>
    %1520 = vector.extract_strided_slice %1481 {offsets = [6, 0, 0], sizes = [1, 8, 64], strides = [1, 1, 1]} : vector<8x8x64xf32> to vector<1x8x64xf32>
    %1521 = vector.shape_cast %1520 : vector<1x8x64xf32> to vector<8x64xf32>
    %1522 = arith.mulf %1521, %1519 : vector<8x64xf32>
    %1523 = vector.extract_strided_slice %1482 {offsets = [6, 0, 0], sizes = [1, 8, 64], strides = [1, 1, 1]} : vector<8x8x64xf32> to vector<1x8x64xf32>
    %1524 = vector.shape_cast %1523 : vector<1x8x64xf32> to vector<8x64xf32>
    %1525 = arith.addf %1522, %1524 : vector<8x64xf32>
    %1526 = vector.extract_strided_slice %1481 {offsets = [7, 0, 0], sizes = [1, 8, 64], strides = [1, 1, 1]} : vector<8x8x64xf32> to vector<1x8x64xf32>
    %1527 = vector.shape_cast %1526 : vector<1x8x64xf32> to vector<8x64xf32>
    %1528 = arith.mulf %1527, %1525 : vector<8x64xf32>
    %1529 = vector.extract_strided_slice %1482 {offsets = [7, 0, 0], sizes = [1, 8, 64], strides = [1, 1, 1]} : vector<8x8x64xf32> to vector<1x8x64xf32>
    %1530 = vector.shape_cast %1529 : vector<1x8x64xf32> to vector<8x64xf32>
    %1531 = arith.addf %1528, %1530 : vector<8x64xf32>
    %1532 = vector.shape_cast %1489 : vector<8x64xf32> to vector<1x8x64xf32>
    %1533 = vector.shape_cast %1495 : vector<8x64xf32> to vector<1x8x64xf32>
    %1534 = vector.shape_cast %1501 : vector<8x64xf32> to vector<1x8x64xf32>
    %1535 = vector.shape_cast %1507 : vector<8x64xf32> to vector<1x8x64xf32>
    %1536 = vector.shape_cast %1513 : vector<8x64xf32> to vector<1x8x64xf32>
    %1537 = vector.shape_cast %1519 : vector<8x64xf32> to vector<1x8x64xf32>
    %1538 = vector.shape_cast %1525 : vector<8x64xf32> to vector<1x8x64xf32>
    %1539 = vector.shape_cast %1531 : vector<8x64xf32> to vector<1x8x64xf32>
    %1540 = tpu.concatenate %1532, %1533, %1534, %1535, %1536, %1537, %1538, %1539 in 0 : vector<1x8x64xf32>, vector<1x8x64xf32>, vector<1x8x64xf32>, vector<1x8x64xf32>, vector<1x8x64xf32>, vector<1x8x64xf32>, vector<1x8x64xf32>, vector<1x8x64xf32> -> vector<8x8x64xf32>
    %1541 = vector.shape_cast %1483 : vector<8x8xf32> to vector<8x8x1xf32>
    %1542 = vector.broadcast %1541 : vector<8x8x1xf32> to vector<8x8x64xf32>
    %1543 = arith.mulf %1540, %1542 : vector<8x8x64xf32>
    %cst_194 = arith.constant dense<0.000000e+00> : vector<8x64xf32>
    %1544 = vector.multi_reduction <add>, %1543, %cst_194 [1] : vector<8x8x64xf32> to vector<8x64xf32>
    %1545 = tpu.concatenate %1480, %1544 in 0 : vector<8x64xf32>, vector<8x64xf32> -> vector<16x64xf32>
    %1546 = vector.broadcast %1319 : vector<1x64xf32> to vector<16x64xf32>
    %1547 = arith.mulf %1546, %1385 : vector<16x64xf32>
    %1548 = arith.addf %1545, %1547 : vector<16x64xf32>
    %cst_195 = arith.constant 0.000000e+00 : f32
    %1549 = vector.broadcast %cst_195 : f32 to vector<16x64xf32>
    %1550 = arith.subf %1549, %1313 : vector<16x64xf32>
    %1551 = math.exp %1550 : vector<16x64xf32>
    %cst_196 = arith.constant 1.000000e+00 : f32
    %1552 = vector.broadcast %cst_196 : f32 to vector<16x64xf32>
    %1553 = arith.addf %1552, %1551 : vector<16x64xf32>
    %cst_197 = arith.constant 1.000000e+00 : f32
    %1554 = vector.broadcast %cst_197 : f32 to vector<16x64xf32>
    %1555 = arith.divf %1554, %1553 : vector<16x64xf32>
    %1556 = arith.mulf %1313, %1555 : vector<16x64xf32>
    %1557 = arith.mulf %1548, %1556 : vector<16x64xf32>
    %1558 = arith.truncf %1557 : vector<16x64xf32> to vector<16x64xbf16>
    %c5_198 = arith.constant 5 : index
    %c0_199 = arith.constant 0 : index
    %c0_200 = arith.constant 0 : index
    %1559 = vector.load %arg5[%c5_198, %c0_199, %c0_200] : memref<6x64x32xbf16, #tpu.memory_space<vmem>>, vector<1x64x32xbf16>
    %1560 = vector.shape_cast %1559 : vector<1x64x32xbf16> to vector<64x32xbf16>
    %cst_201 = arith.constant dense<0.000000e+00> : vector<16x32xf32>
    %1561 = tpu.matmul %1558, %1560, %cst_201 {dimension_numbers = #tpu.dot_dimension_numbers<[1], [0], [0], [1], [0, 0, 1, 1], [], []>} : vector<16x64xbf16>, vector<64x32xbf16>, vector<16x32xf32> -> vector<16x32xf32>
    %1562 = arith.addf %1297, %1561 : vector<16x32xf32>
    %1563 = arith.mulf %1562, %1562 : vector<16x32xf32>
    %cst_202 = arith.constant dense<0.000000e+00> : vector<16xf32>
    %1564 = vector.multi_reduction <add>, %1563, %cst_202 [1] : vector<16x32xf32> to vector<16xf32>
    %1565 = vector.shape_cast %1564 : vector<16xf32> to vector<16x1xf32>
    %cst_203 = arith.constant 3.200000e+01 : f32
    %1566 = vector.broadcast %cst_203 : f32 to vector<16x1xf32>
    %1567 = arith.divf %1565, %1566 : vector<16x1xf32>
    %cst_204 = arith.constant 9.99999974E-6 : f32
    %1568 = vector.broadcast %cst_204 : f32 to vector<16x1xf32>
    %1569 = arith.addf %1567, %1568 : vector<16x1xf32>
    %1570 = math.rsqrt %1569 : vector<16x1xf32>
    %1571 = vector.broadcast %1570 : vector<16x1xf32> to vector<16x32xf32>
    %1572 = arith.mulf %1562, %1571 : vector<16x32xf32>
    %1573 = arith.truncf %1572 : vector<16x32xf32> to vector<16x32xbf16>
    %c0_205 = arith.constant 0 : index
    %c0_206 = arith.constant 0 : index
    %1574 = vector.load %arg6[%c0_205, %c0_206] : memref<32x128xbf16, #tpu.memory_space<vmem>>, vector<32x128xbf16>
    %cst_207 = arith.constant dense<0.000000e+00> : vector<16x128xf32>
    %1575 = tpu.matmul %1573, %1574, %cst_207 {dimension_numbers = #tpu.dot_dimension_numbers<[1], [0], [0], [1], [0, 0, 1, 1], [], []>} : vector<16x32xbf16>, vector<32x128xbf16>, vector<16x128xf32> -> vector<16x128xf32>
    %1576 = vector.shape_cast %1575 : vector<16x128xf32> to vector<2x8x128xf32>
    %c0_208 = arith.constant 0 : index
    %c0_209 = arith.constant 0 : index
    %c0_210 = arith.constant 0 : index
    %1577 = vector.load %arg8[%c0_208, %c0_209, %c0_210] : memref<2x8x128xf32, #tpu.memory_space<vmem>>, vector<2x8x128xf32>
    tpu.vector_store %arg8[%c0_208, %c0_209, %c0_210], %1576 {strides = array<i32>} : memref<2x8x128xf32, #tpu.memory_space<vmem>>, vector<2x8x128xf32>,
    %1578 = tpu.concatenate %805, %808 in 1 : vector<8x64xf32>, vector<8x64xf32> -> vector<8x128xf32>
    %c0_211 = arith.constant 0 : index
    %c0_212 = arith.constant 0 : index
    %c0_213 = arith.constant 0 : index
    %1579 = vector.load %arg9[%c0_211, %c0_212, %c0_213] : memref<2x8x128xf32, #tpu.memory_space<vmem>>, vector<1x8x128xf32>
    %1580 = vector.shape_cast %1579 : vector<1x8x128xf32> to vector<8x128xf32>
    %1581 = vector.shape_cast %1578 : vector<8x128xf32> to vector<1x8x128xf32>
    tpu.vector_store %arg9[%c0_211, %c0_212, %c0_213], %1581 {strides = array<i32>} : memref<2x8x128xf32, #tpu.memory_space<vmem>>, vector<1x8x128xf32>,
    %1582 = tpu.concatenate %1029, %1032 in 1 : vector<8x64xf32>, vector<8x64xf32> -> vector<8x128xf32>
    %c1_214 = arith.constant 1 : index
    %c0_215 = arith.constant 0 : index
    %c0_216 = arith.constant 0 : index
    %1583 = vector.load %arg9[%c1_214, %c0_215, %c0_216] : memref<2x8x128xf32, #tpu.memory_space<vmem>>, vector<1x8x128xf32>
    %1584 = vector.shape_cast %1583 : vector<1x8x128xf32> to vector<8x128xf32>
    %1585 = vector.shape_cast %1582 : vector<8x128xf32> to vector<1x8x128xf32>
    tpu.vector_store %arg9[%c1_214, %c0_215, %c0_216], %1585 {strides = array<i32>} : memref<2x8x128xf32, #tpu.memory_space<vmem>>, vector<1x8x128xf32>,
    %cst_217 = arith.constant dense<0xFF800000> : vector<16xf32>
    %1586 = vector.multi_reduction <maximumf>, %1575, %cst_217 [1] : vector<16x128xf32> to vector<16xf32>
    %1587 = vector.shape_cast %1586 : vector<16xf32> to vector<16x1xf32>
    %1588 = vector.broadcast %1587 : vector<16x1xf32> to vector<16x128xf32>
    %1589 = arith.subf %1575, %1588 : vector<16x128xf32>
    %1590 = math.exp %1589 : vector<16x128xf32>
    %cst_218 = arith.constant dense<0.000000e+00> : vector<16xf32>
    %1591 = vector.multi_reduction <add>, %1590, %cst_218 [1] : vector<16x128xf32> to vector<16xf32>
    %1592 = vector.shape_cast %1591 : vector<16xf32> to vector<16x1xf32>
    %1593 = math.log %1592 : vector<16x1xf32>
    %1594 = arith.addf %1587, %1593 : vector<16x1xf32>
    %c0_219 = arith.constant 0 : index
    %c0_220 = arith.constant 0 : index
    %1595 = vector.load %arg0[%c0_219, %c0_220] : memref<16x1xi32, #tpu.memory_space<vmem>>, vector<16x1xi32>
    %1596 = tpu.iota {dimensions = array<i32: 1>} : vector<16x128xi32>
    %1597 = vector.broadcast %1595 : vector<16x1xi32> to vector<16x128xi32>
    %1598 = arith.cmpi eq, %1596, %1597 : vector<16x128xi32>
    %cst_221 = arith.constant 0.000000e+00 : f32
    %1599 = vector.broadcast %cst_221 : f32 to vector<16x128xf32>
    %1600 = arith.select %1598, %1575, %1599 : vector<16x128xi1>, vector<16x128xf32>
    %cst_222 = arith.constant dense<0.000000e+00> : vector<16xf32>
    %1601 = vector.multi_reduction <add>, %1600, %cst_222 [1] : vector<16x128xf32> to vector<16xf32>
    %1602 = vector.shape_cast %1601 : vector<16xf32> to vector<16x1xf32>
    %c0_i32 = arith.constant 0 : i32
    %1603 = vector.broadcast %c0_i32 : i32 to vector<16x1xi32>
    %1604 = arith.cmpi sge, %1595, %1603 : vector<16x1xi32>
    %1605 = arith.subf %1594, %1602 : vector<16x1xf32>
    %cst_223 = arith.constant 0.000000e+00 : f32
    %1606 = vector.broadcast %cst_223 : f32 to vector<16x1xf32>
    %1607 = arith.select %1604, %1605, %1606 : vector<16x1xi1>, vector<16x1xf32>
    %1608 = vector.shape_cast %1607 : vector<16x1xf32> to vector<1x16x1xf32>
    %cst_224 = arith.constant dense<0.000000e+00> : vector<1xf32>
    %1609 = vector.multi_reduction <add>, %1608, %cst_224 [1, 2] : vector<1x16x1xf32> to vector<1xf32>
    %1610 = vector.shape_cast %1609 : vector<1xf32> to vector<1x1x1xf32>
    %1611 = vector.extract %1610[0, 0, 0] : f32 from vector<1x1x1xf32>
    %1612 = vector.broadcast %1611 : f32 to vector<1x128xf32>
    %c0_225 = arith.constant 0 : index
    %c0_226 = arith.constant 0 : index
    %1613 = vector.load %arg10[%c0_225, %c0_226] : memref<1x128xf32, #tpu.memory_space<vmem>>, vector<1x128xf32>
    tpu.vector_store %arg10[%c0_225, %c0_226], %1612 {strides = array<i32>} : memref<1x128xf32, #tpu.memory_space<vmem>>, vector<1x128xf32>,
    return
  }
}

</mosaic_0001>

<bundles_post_ra>
// kernel: mamba_vae_forward.1
= control target key start
LH: loop header
LB: loop body
LE: loop exit
PB: predicated region body
PF: predicated region fallthrough
CT: control target
= control target key end

     0   :  { %vm38_vm0 = vcmask 261120   ;;  %s10980_s0 = inlined_call_operand.vmem [shape: s32[16,1], index: 0, kind: input, shape index: {}]   ;;  %s10981_s1 = inlined_call_operand.vmem [shape: f32[16,32], index: 1, kind: input, shape index: {}]   ;;  %s10982_s2 = inlined_call_operand.vmem [shape: bf16[6,32,128], index: 2, kind: input, shape index: {}]   ;;  %s10983_s3 = inlined_call_operand.vmem [shape: f32[6,15,64], index: 3, kind: input, shape index: {}]   ;;  %s10984_s4 = inlined_call_operand.vmem [shape: bf16[6,64,128], index: 4, kind: input, shape index: {}]   ;;  %s10985_s5 = inlined_call_operand.vmem [shape: bf16[6,64,32], index: 5, kind: input, shape index: {}]   ;;  %s10986_s6 = inlined_call_operand.vmem [shape: bf16[32,128], index: 6, kind: input, shape index: {}]   ;;  %s10987_s7 = inlined_call_operand.vmem [shape: f32[2,2,8,64], index: 7, kind: input, shape index: {}]   ;;  %s10988_s8 = inlined_call_operand.hbm [shape: f32[2,8,128], index: 8, kind: output, shape index: {0}]   ;;  %s10989_s9 = inlined_call_operand.vmem [shape: f32[2,8,128], index: 9, kind: output, shape index: {1}]   ;;  %s10990_s10 = inlined_call_operand.vmem [shape: f32[1,128], index: 10, kind: output, shape index: {2}]  }
   0x1   :  { %v34_v0 = vld [vmem:[%s10981_s1] sm:$0xff] }
   0x2   :  { %16 = vsyncpa [#allocation3], 0  ;;  %v36_v1 = vmul.f32 %v34_v0, %v34_v0  ;;  %v35_v2 = vld [vmem:[%s10981_s1 + $0x8] sm:$0xff]  ;;  %v8059_v6 = vmov 32.0   ;;  %v7327_v13 = vld [vmem:[%s10982_s2] sm:$0xff]  ;;  %vm117_vm8 = vcmask 1042432  }
   0x3   :  { %v37_v4 = vmul.f32 %v35_v2, %v35_v2  ;;  %7469 = vrcp.f32 %v8059_v6  ;;  %v7328_v12 = vld [vmem:[%s10982_s2 + $0x8] sm:$0xff]  ;;  %v8142_v38 = vld [vmem:[%s10983_s3] sm:$0xff]  ;;  %vm128_vm9 = vcmask 1046528   ;;  %v7332_v62 = vld [vmem:[%s10984_s4 + $0x18] sm:$0xff]  ;;  %vm11004_vm10 = vcmask 1045504   ;;  %s8060_s11 = smov 64  }
   0x4   :  { %v39_v3 = vsel %vm38_vm0, %v36_v1, 0.0  ;;  %104 = vmatpush.bf16.msra.mxu0 %v7328_v12  ;;  %v123_v39 = vperm.slane %v8142_v38, 1  ;;  %v119_v41 = vperm.slane %v8142_v38, 0  ;;  %v134_v43 = vperm.slane %v8142_v38, 2  ;;  %270 = vmatpush.bf16.msra.mxu1 %v7332_v62  ;;  %s6953_s29 = sshll.u32 %s10988_s8, 4  ;;  %s8064_s12 = smov 8   ;;  %s6954_s29 = int_to_ptr.hbm [resolvable:$true] %s6953_s29 }
   0x5   :  { %40 = vadd.xlane.f32.xlu0 %v39_v3  ;;  %v42_v5 = vsel %vm38_vm0, %v37_v4, 0.0  ;;  %v121_v44 = vperm.slane %v8142_v38, 4  ;;  %v145_v47 = vperm.slane %v8142_v38, 3  ;;  %vm11003_vm11 = vcmask 1044480   ;;  %v7331_v4 = vld [vmem:[%s10984_s4 + $0x10] sm:$0xff] }
   0x8   :  { %105 = vmatpush.bf16.msra.mxu0 %v7327_v13  ;;  %271 = vmatpush.bf16.msra.mxu1 %v7331_v4 }
   0x9   :  { %v7470_v7 = vpop.eup %7469 }
   0xa   :  { %v46_v8 = vmul.f32 32.0, %v7470_v7  ;;  %vm50_vm1 = vweird.f32 %v7470_v7 }
   0xc   :  { %v47_v9 = vsub.f32 1.0, %v46_v8 }
   0xd   :  { %43 = vadd.xlane.f32.xlu0 %v42_v5 }
   0xe   :  { %v48_v10 = vmul.f32 %v7470_v7, %v47_v9 }
  0x10   :  { %v49_v11 = vadd.f32 %v7470_v7, %v48_v10 }
  0x12   :  { %v8134_v14 = vsel %vm50_vm1, %v7470_v7, %v49_v11 }
  0x13   :  { %11022 = vst [vmem:[#allocation5_spill] sm:$0xff] %v8134_v14 }
  0x78   :  { %v41_v15 = vpop.xlane.xlu0 %40 }
  0x79   :  { %v52_v16 = vmul.f32 %v8134_v14, %v41_v15 }
  0x7b   :  { %v54_v17 = vadd.f32 1e-05, %v52_v16 }
  0x7d   :  { %7471 = vrsqrt.f32 %v54_v17  ;;  %vm62_vm3 = vweird.f32 %v54_v17 }
  0x80   :  { %v44_v18 = vpop.xlane.xlu0 %43 }
  0x81   :  { %v53_v19 = vmul.f32 %v8134_v14, %v44_v18  ;;  %v7330_v18 = vld [vmem:[%s10984_s4 + $0x8] sm:$0xff] }
  0x82   :  { %272 = vmatpush.bf16.msra.mxu1 %v7330_v18 }
  0x83   :  { %v7472_v20 = vpop.eup %7471  ;;  %v55_v21 = vadd.f32 1e-05, %v53_v19 }
  0x84   :  { %v57_v22 = vmul.f32 %v7472_v20, %v54_v17  ;;  %vm63_vm2 = vweird.f32 %v7472_v20 }
  0x85   :  { %7473 = vrsqrt.f32 %v55_v21  ;;  %vm64_vm5 = vmor %vm62_vm3, %vm63_vm2  ;;  %vm72_vm6 = vweird.f32 %v55_v21 }
  0x86   :  { %v58_v23 = vmul.f32 %v7472_v20, %v57_v22 }
  0x88   :  { %v59_v24 = vmul.f32 0.5, %v58_v23 }
  0x8a   :  { %v60_v26 = vsub.f32 1.5, %v59_v24 }
  0x8b   :  { %v7474_v25 = vpop.eup %7473 }
  0x8c   :  { %v67_v27 = vmul.f32 %v7474_v25, %v55_v21  ;;  %v61_v30 = vmul.f32 %v7472_v20, %v60_v26  ;;  %vm73_vm4 = vweird.f32 %v7474_v25  ;;  %v7329_v26 = vld [vmem:[%s10984_s4] sm:$0xff] }
  0x8d   :  { %vm74_vm7 = vmor %vm72_vm6, %vm73_vm4  ;;  %273 = vmatpush.bf16.msra.mxu1 %v7329_v26 }
  0x8e   :  { %v68_v28 = vmul.f32 %v7474_v25, %v67_v27  ;;  %v65_v32 = vsel %vm64_vm5, %v7472_v20, %v61_v30  ;;  %vm262_vm5 = vcmask 523264  }
  0x8f   :  { %v76_v35 = vmul.f32 %v65_v32, %v34_v0 }
  0x90   :  { %v69_v29 = vmul.f32 0.5, %v68_v28 }
  0x92   :  { %v70_v31 = vsub.f32 1.5, %v69_v29 }
  0x94   :  { %v71_v33 = vmul.f32 %v7474_v25, %v70_v31 }
  0x96   :  { %v75_v34 = vsel %vm74_vm7, %v7474_v25, %v71_v33 }
  0x97   :  { %v77_v36 = vmul.f32 %v75_v34, %v35_v2 }
  0x99   :  { %v78_v37 = vpack.c.bf16 %v77_v36, %v76_v35  ;;  %v10991_v35 = vlaneseq }
  0x9b   :  { %6981 = vmatmul.msk.bf16.vlgmr.msra.gmra.mxu0 %vm38_vm0, %v78_v37  ;;  %v465_v37 = vshrl.u32 %v10991_v35, 7 }
 0x118   :  { %v8145_v40 = vpop.f32.mrf.mxu0 }
 0x119   :  { %v115_v42 = vrot.slane %v8145_v40, 5 }
 0x11b   :  { %v118_v45 = vsel %vm117_vm8, 0.0, %v115_v42  ;;  %v125_v46 = vmul.f32 %v123_v39, %v115_v42  ;;  %v136_v52 = vmul.f32 %v134_v43, %v115_v42  ;;  %v147_v55 = vmul.f32 %v145_v47, %v115_v42 }
 0x11c   :  { %v120_v48 = vmul.f32 %v119_v41, %v118_v45  ;;  %v124_v49 = vmul.f32 %v123_v39, %v118_v45  ;;  %v135_v51 = vmul.f32 %v134_v43, %v118_v45  ;;  %v146_v56 = vmul.f32 %v145_v47, %v118_v45 }
 0x11d   :  { %v130_v50 = vrot.slane %v125_v46, 1  ;;  %v141_v60 = vrot.slane %v136_v52, 2  ;;  %v152_v0 = vrot.slane %v147_v55, 3 }
 0x11e   :  { %v129_v53 = vrot.slane %v124_v49, 1  ;;  %v122_v54 = vadd.f32 %v121_v44, %v120_v48  ;;  %v140_v59 = vrot.slane %v135_v51, 2  ;;  %v151_v8 = vrot.slane %v146_v56, 3 }
 0x120   :  { %v8153_v57 = vpop.f32.mrf.mxu0  ;;  %v131_v58 = vsel %vm128_vm9, %v129_v53, %v130_v50  ;;  %v142_v12 = vsel %vm11004_vm10, %v140_v59, %v141_v60  ;;  %v153_v20 = vsel %vm11003_vm11, %v151_v8, %v152_v0  ;;  %v8193_v8 = vadd.s32 72, %v465_v37 }
 0x121   :  { %v177_v61 = vrot.slane %v8153_v57, 5  ;;  %v133_v63 = vadd.f32 %v131_v58, %v122_v54 }
 0x122   :  { %11025 = vst [vmem:[#allocation8_spill] sm:$0xff] %v8193_v8 }
 0x123   :  { %v179_v1 = vsel %vm117_vm8, 0.0, %v177_v61  ;;  %v183_v2 = vmul.f32 %v177_v61, %v123_v39  ;;  %v192_v3 = vmul.f32 %v177_v61, %v134_v43  ;;  %v201_v11 = vmul.f32 %v177_v61, %v145_v47 }
 0x124   :  { %v180_v5 = vmul.f32 %v179_v1, %v119_v41  ;;  %v182_v6 = vmul.f32 %v179_v1, %v123_v39  ;;  %v191_v7 = vmul.f32 %v179_v1, %v134_v43  ;;  %v200_v10 = vmul.f32 %v179_v1, %v145_v47 }
 0x125   :  { %v187_v9 = vrot.slane %v183_v2, 1  ;;  %v144_v15 = vadd.f32 %v142_v12, %v133_v63  ;;  %v196_v17 = vrot.slane %v192_v3, 2  ;;  %v205_v21 = vrot.slane %v201_v11, 3 }
 0x126   :  { %v186_v13 = vrot.slane %v182_v6, 1  ;;  %v195_v16 = vrot.slane %v191_v7, 2  ;;  %v181_v19 = vadd.f32 %v180_v5, %v121_v44  ;;  %v204_v24 = vrot.slane %v200_v10, 3 }
 0x127   :  { %v155_v22 = vadd.f32 %v153_v20, %v144_v15  ;;  %v8176_v41 = vadd.s32 64, %v465_v37  ;;  %v1165_v10 = vsub.f32 0.0, %v8153_v57 }
 0x128   :  { %v188_v23 = vsel %vm128_vm9, %v186_v13, %v187_v9  ;;  %v197_v28 = vsel %vm11004_vm10, %v195_v16, %v196_v17  ;;  %v206_v31 = vsel %vm11003_vm11, %v204_v24, %v205_v21 }
 0x129   :  { %v190_v25 = vadd.f32 %v188_v23, %v181_v19  ;;  %v156_v27 = vsub.f32 0.0, %v155_v22  ;;  %11023 = vst [vmem:[#allocation6_spill] sm:$0xff] %v8176_v41  ;;  %7395 = vset.pattern.permute.xlu0 %v8176_v41  ;;  %7394 = vset.pattern.permute.xlu2 %v8176_v41  ;;  %v1168_v11 = vmul.f32 1.442695, %v1165_v10 }
 0x12a   :  { %7393 = vset.pattern.permute.xlu1 %v8176_v41 }
 0x12b   :  { %v199_v29 = vadd.f32 %v197_v28, %v190_v25  ;;  %v157_v30 = vmul.f32 1.442695, %v156_v27 }
 0x12d   :  { %v208_v32 = vadd.f32 %v206_v31, %v199_v29  ;;  %7475 = vpow2.f32 %v157_v30 }
 0x12f   :  { %v209_v33 = vsub.f32 0.0, %v208_v32 }
 0x131   :  { %v210_v34 = vmul.f32 1.442695, %v209_v33 }
 0x133   :  { %v7476_v36 = vpop.eup %7475  ;;  %7477 = vpow2.f32 %v210_v34 }
 0x134   :  { %v159_v39 = vadd.f32 1.0, %v7476_v36  ;;  %v1164_v36 = vsub.f32 0.0, %v8145_v40 }
 0x136   :  { %7479 = vrcp.f32 %v159_v39  ;;  %v171_v51 = vand.u32 2147483648, %v159_v39  ;;  %vm165_vm13 = vweird.f32 %v159_v39  ;;  %v169_v52 = vand.u32 2147483647, %v159_v39 }
 0x137   :  { %v1166_v37 = vmul.f32 1.442695, %v1164_v36 }
 0x138   :  { %v172_v59 = vor.u32 1.1754944e-38, %v171_v51  ;;  %vm170_vm1 = vcmp.eq.f32.partialorder %v169_v52, 8.507059e+37 }
 0x139   :  { %v7478_v42 = vpop.eup %7477 }
 0x13a   :  { %v212_v43 = vadd.f32 1.0, %v7478_v42 }
 0x13c   :  { %v7480_v44 = vpop.eup %7479  ;;  %7481 = vrcp.f32 %v212_v43  ;;  %v224_v54 = vand.u32 2147483648, %v212_v43  ;;  %v222_v58 = vand.u32 2147483647, %v212_v43  ;;  %vm218_vm2 = vweird.f32 %v212_v43 }
 0x13d   :  { %v161_v45 = vmul.f32 %v7480_v44, %v159_v39  ;;  %vm166_vm12 = vweird.f32 %v7480_v44  ;;  %7483 = vpow2.f32 %v1168_v11 }
 0x13e   :  { %vm167_vm14 = vmor %vm165_vm13, %vm166_vm12  ;;  %v225_v62 = vor.u32 1.1754944e-38, %v224_v54  ;;  %vm223_vm4 = vcmp.eq.f32.partialorder %v222_v58, 8.507059e+37 }
 0x13f   :  { %v162_v46 = vsub.f32 1.0, %v161_v45  ;;  %v280_v45 = vperm.slane %v8142_v38, 5 }
 0x141   :  { %v163_v47 = vmul.f32 %v7480_v44, %v162_v46 }
 0x142   :  { %v7482_v48 = vpop.eup %7481 }
 0x143   :  { %v164_v49 = vadd.f32 %v7480_v44, %v163_v47  ;;  %v214_v50 = vmul.f32 %v7482_v48, %v212_v43  ;;  %vm219_vm15 = vweird.f32 %v7482_v48  ;;  %v7484_v15 = vpop.eup %7483 }
 0x144   :  { %vm220_vm3 = vmor %vm218_vm2, %vm219_vm15  ;;  %v1171_v16 = vadd.f32 1.0, %v7484_v15 }
 0x145   :  { %v215_v53 = vsub.f32 1.0, %v214_v50  ;;  %v168_v55 = vsel %vm167_vm14, %v7480_v44, %v164_v49 }
 0x146   :  { %v173_v61 = vsel %vm170_vm1, %v172_v59, %v168_v55  ;;  %7485 = vrcp.f32 %v1171_v16  ;;  %v1198_v27 = vand.u32 2147483648, %v1171_v16  ;;  %vm1192_vm7 = vweird.f32 %v1171_v16 }
 0x147   :  { %v216_v56 = vmul.f32 %v7482_v48, %v215_v53  ;;  %v8181_v1 = vmul.f32 %v173_v61, %v155_v22  ;;  %v1196_v28 = vand.u32 2147483647, %v1171_v16  ;;  %7487 = vpow2.f32 %v1166_v37 }
 0x148   :  { %v1199_v31 = vor.u32 1.1754944e-38, %v1198_v27 }
 0x149   :  { %v217_v60 = vadd.f32 %v7482_v48, %v216_v56  ;;  %vm1197_vm13 = vcmp.eq.f32.partialorder %v1196_v28, 8.507059e+37 }
 0x14b   :  { %v221_v63 = vsel %vm220_vm3, %v7482_v48, %v217_v60  ;;  %vm783_vm3 = vcmask 1040384  }
 0x14c   :  { %v226_v0 = vsel %vm223_vm4, %v225_v62, %v221_v63  ;;  %v7486_v19 = vpop.eup %7485  ;;  %vm1128_vm4 = vcmask 1041409  }
 0x14d   :  { %v8183_v2 = vmul.f32 %v226_v0, %v208_v32  ;;  %v1188_v20 = vmul.f32 %v7486_v19, %v1171_v16  ;;  %vm1193_vm6 = vweird.f32 %v7486_v19  ;;  %v7488_v43 = vpop.eup %7487 }
 0x14e   :  { %vm1194_vm12 = vmor %vm1192_vm7, %vm1193_vm6  ;;  %v1170_v44 = vadd.f32 1.0, %v7488_v43  ;;  %vm1130_vm6 = vcmask 1042434   ;;  %vm1132_vm7 = vcmask 1043459  }
 0x14f   :  { %11024 = vst [vmem:[#allocation7_spill] sm:$0xff] %v8183_v2  ;;  %v229_v3 = vpack.c.bf16 %v8183_v2, %v8181_v1  ;;  %v1189_v22 = vsub.f32 1.0, %v1188_v20 }
 0x150   :  { %7489 = vrcp.f32 %v1170_v44  ;;  %v1183_v56 = vand.u32 2147483648, %v1170_v44  ;;  %vm1177_vm15 = vweird.f32 %v1170_v44  ;;  %v1181_v58 = vand.u32 2147483647, %v1170_v44 }
 0x151   :  { %6998 = vmatmul.msk.bf16.vlgmr.msra.gmra.mxu1 %vm262_vm5, %v229_v3  ;;  %v1190_v25 = vmul.f32 %v7486_v19, %v1189_v22 }
 0x152   :  { %v1184_v63 = vor.u32 1.1754944e-38, %v1183_v56  ;;  %vm1182_vm2 = vcmp.eq.f32.partialorder %v1181_v58, 8.507059e+37 }
 0x153   :  { %v1191_v26 = vadd.f32 %v7486_v19, %v1190_v25 }
 0x155   :  { %v1195_v30 = vsel %vm1194_vm12, %v7486_v19, %v1191_v26  ;;  %vm11002_vm12 = vcmask 1044484  }
 0x156   :  { %v1200_v32 = vsel %vm1197_vm13, %v1199_v31, %v1195_v30  ;;  %v7490_v48 = vpop.eup %7489  ;;  %vm11001_vm13 = vcmask 1045509  }
 0x157   :  { %v1203_v33 = vmul.f32 %v1200_v32, %v8153_v57  ;;  %v1173_v50 = vmul.f32 %v7490_v48, %v1170_v44  ;;  %vm1178_vm14 = vweird.f32 %v7490_v48 }
 0x158   :  { %vm1179_vm1 = vmor %vm1177_vm15, %vm1178_vm14  ;;  %vm11000_vm14 = vcmask 1046534   ;;  %vm10999_vm15 = vcmask 1047559  }
 0x159   :  { %v1174_v52 = vsub.f32 1.0, %v1173_v50 }
 0x15b   :  { %v1175_v53 = vmul.f32 %v7490_v48, %v1174_v52 }
 0x15d   :  { %v1176_v54 = vadd.f32 %v7490_v48, %v1175_v53 }
 0x15f   :  { %v1180_v61 = vsel %vm1179_vm1, %v7490_v48, %v1176_v54 }
 0x160   :  { %v1185_v0 = vsel %vm1182_vm2, %v1184_v63, %v1180_v61 }
 0x1ce   :  { %v8188_v4 = vpop.f32.mrf.mxu1 }
 0x1cf   :  { %v477_v5 = vperm.slane %v8188_v4, 2  ;;  %v470_v6 = vperm.slane %v8188_v4, 1  ;;  %v463_v7 = vperm.slane %v8188_v4, 0  ;;  %v484_v9 = vperm.slane %v8188_v4, 3 }
 0x1d0   :  { %v491_v12 = vperm.slane %v8188_v4, 4  ;;  %v498_v13 = vperm.slane %v8188_v4, 5  ;;  %v512_v17 = vperm.slane %v8188_v4, 7  ;;  %v505_v18 = vperm.slane %v8188_v4, 6 }
 0x1d1   :  { %482 = vperm.xlu0 %7395, %v477_v5   ;;  %475 = vperm.xlu2 %7394, %v470_v6   ;;  %v281_v46 = vadd.f32 %v280_v45, %v8188_v4  ;;  %v1202_v4 = vmul.f32 %v1185_v0, %v8145_v40 }
 0x1d2   :  { %468 = vperm.xlu1 %7393, %v463_v7  }
 0x1d3   :  { %v285_v47 = vand.u32 2147483647, %v281_v46 }
 0x1d5   :  { %v287_v49 = vsub.f32 0.0, %v285_v47 }
 0x1d6   :  { %v8207_v21 = vpop.f32.mrf.mxu1 }
 0x1d7   :  { %v547_v23 = vperm.slane %v8207_v21, 4  ;;  %v519_v24 = vperm.slane %v8207_v21, 0  ;;  %v533_v29 = vperm.slane %v8207_v21, 2  ;;  %v540_v34 = vperm.slane %v8207_v21, 3 }
 0x1d8   :  { %v526_v39 = vperm.slane %v8207_v21, 1  ;;  %v554_v57 = vperm.slane %v8207_v21, 5  ;;  %v561_v42 = vperm.slane %v8207_v21, 6  ;;  %v289_v51 = vmul.f32 1.442695, %v287_v49 }
 0x1d9   :  { %7397 = vset.pattern.permute.xlu0 %v8193_v8  ;;  %489 = vperm.xlu2 %7394, %v484_v9   ;;  %v568_v60 = vperm.slane %v8207_v21, 7  ;;  %v8232_v3 = vadd.f32 %v280_v45, %v8207_v21 }
 0x1da   :  { %7398 = vset.pattern.permute.xlu1 %v8193_v8  ;;  %7491 = vpow2.f32 %v289_v51 }
 0x1e0   :  { %v7492_v55 = vpop.eup %7491 }
 0x1e1   :  { %689 = vperm.xlu0 %7397, %v470_v6   ;;  %496 = vperm.xlu2 %7394, %v491_v12   ;;  %v293_v62 = vadd.f32 1.0, %v7492_v55 }
 0x1e2   :  { %695 = vperm.xlu1 %7398, %v477_v5   ;;  %v286_v5 = vand.u32 2147483647, %v8232_v3 }
 0x1e3   :  { %7493 = vlog2.f32 %v293_v62  ;;  %v284_v62 = vmax.f32 %v8232_v3, 0.0 }
 0x1e4   :  { %v288_v10 = vsub.f32 0.0, %v286_v5 }
 0x1e9   :  { %7399 = vset.pattern.permute.xlu0 %v8176_v41  ;;  %503 = vperm.xlu2 %7394, %v498_v13  }
 0x1ea   :  { %713 = vperm.xlu1 %7398, %v498_v13   ;;  %v291_v13 = vmul.f32 1.442695, %v288_v10 }
 0x1ec   :  { %7495 = vpow2.f32 %v291_v13 }
 0x1f1   :  { %517 = vperm.xlu0 %7399, %v512_v17   ;;  %510 = vperm.xlu2 %7394, %v505_v18  }
 0x1f2   :  { %719 = vperm.xlu1 %7398, %v505_v18   ;;  %v8253_v18 = vld [vmem:[%s10983_s3 + $0x8] sm:$0x7f] }
 0x1f9   :  { %7406 = vset.pattern.permute.xlu0 %v8193_v8  ;;  %7396 = vset.pattern.permute.xlu2 %v8193_v8 }
 0x1fa   :  { %7400 = vset.pattern.permute.xlu1 %v8176_v41 }
 0x201   :  { %683 = vperm.xlu2 %7396, %v463_v7   ;;  %956 = vperm.xlu0 %7406, %v547_v23  }
 0x202   :  { %524 = vperm.xlu1 %7400, %v519_v24  }
 0x209   :  { %701 = vperm.xlu2 %7396, %v484_v9   ;;  %725 = vperm.xlu0 %7406, %v512_v17   ;;  %v7494_v9 = vpop.eup %7493 }
 0x20a   :  { %538 = vperm.xlu1 %7400, %v533_v29   ;;  %v296_v11 = vmul.f32 0.6931472, %v7494_v9  ;;  %v7496_v19 = vpop.eup %7495 }
 0x211   :  { %707 = vperm.xlu2 %7396, %v491_v12   ;;  %1208 = vrot.lane.b32.xlu0 %v1203_v33, %s8060_s11  ;;  %v283_v12 = vmax.f32 %v281_v46, 0.0 }
 0x212   :  { %545 = vperm.xlu1 %7400, %v540_v34   ;;  %7407 = vset.pattern.permute.xlu0 %v8176_v41 }
 0x213   :  { %v8243_v16 = vadd.f32 %v296_v11, %v283_v12 }
 0x215   :  { %v317_v17 = vperm.slane %v8243_v16, 0  ;;  %v303_v20 = vrot.slane %v8243_v16, 1  ;;  %v304_v30 = vrot.slane %v8243_v16, 2  ;;  %v305_v44 = vrot.slane %v8243_v16, 3 }
 0x216   :  { %v306_v47 = vrot.slane %v8243_v16, 4  ;;  %v307_v48 = vrot.slane %v8243_v16, 5  ;;  %v308_v49 = vrot.slane %v8243_v16, 6 }
 0x217   :  { %v349_v22 = vmul.f32 %v317_v17, %v8142_v38  ;;  %v318_v26 = vperm.slane %v303_v20, 0  ;;  %v319_v36 = vperm.slane %v304_v30, 0  ;;  %v320_v58 = vperm.slane %v305_v44, 0 }
 0x219   :  { %7401 = vset.pattern.permute.xlu2 %v8176_v41  ;;  %v381_v27 = vmul.f32 1.442695, %v349_v22  ;;  %v351_v31 = vmul.f32 %v318_v26, %v8142_v38  ;;  %v352_v32 = vmul.f32 %v318_v26, %v8253_v18  ;;  %v353_v51 = vmul.f32 %v319_v36, %v8142_v38 }
 0x21a   :  { %552 = vperm.xlu1 %7400, %v547_v23   ;;  %v350_v23 = vmul.f32 %v317_v17, %v8253_v18  ;;  %v354_v55 = vmul.f32 %v319_v36, %v8253_v18  ;;  %v356_v30 = vmul.f32 %v320_v58, %v8253_v18 }
 0x21b   :  { %v385_v37 = vmul.f32 1.442695, %v351_v31  ;;  %v389_v9 = vmul.f32 1.442695, %v353_v51 }
 0x21c   :  { %v383_v28 = vmul.f32 1.442695, %v350_v23  ;;  %v391_v17 = vmul.f32 1.442695, %v354_v55  ;;  %v355_v23 = vmul.f32 %v320_v58, %v8142_v38 }
 0x221   :  { %531 = vperm.xlu2 %7401, %v526_v39  }
 0x222   :  { %559 = vperm.xlu1 %7400, %v554_v57  }
 0x229   :  { %7403 = vset.pattern.permute.xlu2 %v8193_v8 }
 0x22a   :  { %566 = vperm.xlu1 %7400, %v561_v42  }
 0x22b   :  { %v8228_v59 = vpop.permute.xlu2 %475 }
 0x231   :  { %938 = vperm.xlu2 %7403, %v526_v39  }
 0x232   :  { %7402 = vset.pattern.permute.xlu1 %v8193_v8 }
 0x233   :  { %v8237_v7 = vpop.permute.xlu2 %489 }
 0x239   :  { %944 = vperm.xlu2 %7403, %v533_v29   ;;  %v8264_v29 = vmul.f32 %v8243_v16, %v8181_v1 }
 0x23a   :  { %932 = vperm.xlu1 %7402, %v519_v24   ;;  %v294_v24 = vadd.f32 1.0, %v7496_v19  ;;  %v322_v19 = vperm.slane %v307_v48, 0 }
 0x23b   :  { %v8247_v40 = vpop.permute.xlu2 %496  ;;  %v575_v33 = vperm.slane %v8264_v29, 0  ;;  %v449_v50 = vrot.slane %v8264_v29, 1  ;;  %v451_v53 = vrot.slane %v8264_v29, 3  ;;  %v452_v54 = vrot.slane %v8264_v29, 4 }
 0x23c   :  { %7497 = vlog2.f32 %v294_v24  ;;  %v450_v63 = vrot.slane %v8264_v29, 2  ;;  %v453_v0 = vrot.slane %v8264_v29, 5  ;;  %v323_v24 = vperm.slane %v308_v49, 0 }
 0x23d   :  { %7499 = vpow2.f32 %v381_v27  ;;  %v8293_v12 = vperm.slane %v451_v53, 0  ;;  %v8295_v13 = vperm.slane %v452_v54, 0  ;;  %v454_v49 = vrot.slane %v8264_v29, 6 }
 0x23e   :  { %7501 = vpow2.f32 %v383_v28  ;;  %v577_v28 = vperm.slane %v450_v63, 0  ;;  %v361_v44 = vmul.f32 %v323_v24, %v8142_v38  ;;  %v362_v48 = vmul.f32 %v323_v24, %v8253_v18 }
 0x23f   :  { %7503 = vpow2.f32 %v385_v37  ;;  %v8309_v37 = vperm.slane %v453_v0, 0 }
 0x240   :  { %v405_v0 = vmul.f32 1.442695, %v361_v44 }
 0x241   :  { %962 = vperm.xlu2 %7403, %v554_v57  }
 0x242   :  { %7404 = vset.pattern.permute.xlu1 %v8176_v41  ;;  %v7498_v57 = vpop.eup %7497 }
 0x243   :  { %v8260_v25 = vpop.permute.xlu2 %503  ;;  %v7500_v43 = vpop.eup %7499  ;;  %v298_v56 = vmul.f32 0.6931472, %v7498_v57  ;;  %v360_v57 = vmul.f32 %v322_v19, %v8253_v18 }
 0x244   :  { %v469_v6 = vpop.permute.xlu1 %468  ;;  %v7502_v46 = vpop.eup %7501 }
 0x245   :  { %v607_v39 = vmul.f32 %v575_v33, %v469_v6  ;;  %v624_v61 = vmul.f32 0.0, %v7502_v46  ;;  %v576_v6 = vperm.slane %v449_v50, 0  ;;  %v7504_v3 = vpop.eup %7503  ;;  %v8297_v20 = vadd.f32 %v298_v56, %v284_v62  ;;  %v483_v46 = vpop.permute.xlu0 %482 }
 0x246   :  { %v403_v56 = vmul.f32 1.442695, %v360_v57  ;;  %v609_v63 = vmul.f32 %v577_v28, %v483_v46 }
 0x247   :  { %v626_v52 = vrot.slane %v607_v39, 1  ;;  %v608_v22 = vmul.f32 %v576_v6, %v8228_v59  ;;  %v359_v39 = vmul.f32 %v322_v19, %v8142_v38  ;;  %v325_v58 = vperm.slane %v8297_v20, 0 }
 0x248   :  { %v311_v24 = vrot.slane %v8297_v20, 2 }
 0x249   :  { %968 = vperm.xlu2 %7403, %v561_v42   ;;  %v387_v42 = vmul.f32 1.442695, %v352_v32  ;;  %v8291_v11 = vadd.f32 %v626_v52, %v624_v61  ;;  %v309_v32 = vrot.slane %v8243_v16, 7  ;;  %v8316_v16 = vmul.f32 %v8297_v20, %v8183_v2 }
 0x24a   :  { %573 = vperm.xlu1 %7404, %v568_v60   ;;  %v401_v55 = vmul.f32 1.442695, %v359_v39  ;;  %v327_v44 = vperm.slane %v311_v24, 0 }
 0x24b   :  { %v8274_v45 = vpop.permute.xlu2 %510  ;;  %7505 = vpow2.f32 %v387_v42  ;;  %v633_v42 = vrot.slane %v608_v22, 1  ;;  %v324_v50 = vperm.slane %v309_v32, 0  ;;  %v312_v32 = vrot.slane %v8297_v20, 3 }
 0x24c   :  { %7507 = vpow2.f32 %v389_v9  ;;  %v407_v9 = vmul.f32 1.442695, %v362_v48  ;;  %v583_v48 = vperm.slane %v8316_v16, 0  ;;  %v460_v35 = vrot.slane %v8316_v16, 5 }
 0x24d   :  { %7509 = vpow2.f32 %v391_v17  ;;  %v363_v17 = vmul.f32 %v324_v50, %v8142_v38  ;;  %v364_v19 = vmul.f32 %v324_v50, %v8253_v18 }
 0x251   :  { %1206 = vrot.lane.b32.xlu2 %v1202_v4, %s8060_s11  ;;  %v321_v4 = vperm.slane %v306_v47, 0  ;;  %v7506_v27 = vpop.eup %7505  ;;  %v395_v47 = vmul.f32 1.442695, %v356_v30  ;;  %v640_v30 = vrot.slane %v609_v63, 1  ;;  %v458_v63 = vrot.slane %v8316_v16, 3 }
 0x252   :  { %7405 = vset.pattern.permute.xlu1 %v8193_v8  ;;  %7408 = vset.pattern.permute.xlu2 %v8176_v41  ;;  %v631_v36 = vmul.f32 %v7506_v27, %v8291_v11  ;;  %v7508_v62 = vpop.eup %7507  ;;  %v8336_v27 = vperm.slane %v454_v49, 0  ;;  %v8408_v8 = vperm.slane %v460_v35, 0 }
 0x253   :  { %v357_v31 = vmul.f32 %v321_v4, %v8142_v38  ;;  %v358_v59 = vmul.f32 %v321_v4, %v8253_v18  ;;  %v455_v4 = vrot.slane %v8264_v29, 7  ;;  %v7510_v6 = vpop.eup %7509  ;;  %v365_v29 = vmul.f32 %v325_v58, %v8142_v38 }
 0x254   :  { %v8241_v15 = vpop.permute.xlu1 %695 }
 0x255   :  { %v397_v53 = vmul.f32 1.442695, %v357_v31  ;;  %v399_v54 = vmul.f32 1.442695, %v358_v59  ;;  %v8339_v31 = vperm.slane %v455_v4, 0  ;;  %v366_v59 = vmul.f32 %v325_v58, %v8253_v18 }
 0x257   :  { %v415_v58 = vmul.f32 1.442695, %v366_v59  ;;  %v8376_v59 = vperm.slane %v458_v63, 0 }
 0x25a   :  { %950 = vperm.xlu1 %7405, %v540_v34  }
 0x25b   :  { %v8301_v26 = vpop.permute.xlu2 %683 }
 0x25c   :  { %v8258_v21 = vpop.permute.xlu1 %713 }
 0x262   :  { %974 = vperm.xlu1 %7405, %v568_v60   ;;  %v623_v60 = vmul.f32 0.0, %v7500_v43  ;;  %v393_v43 = vmul.f32 1.442695, %v355_v23 }
 0x263   :  { %v8333_v23 = vpop.permute.xlu2 %701 }
 0x264   :  { %v8271_v34 = vpop.permute.xlu1 %719  ;;  %v8289_v10 = vadd.f32 %v626_v52, %v623_v60  ;;  %v8322_v52 = vadd.f32 %v633_v42, %v631_v36  ;;  %v310_v60 = vrot.slane %v8297_v20, 1  ;;  %7511 = vpow2.f32 %v393_v43 }
 0x265   :  { %7513 = vpow2.f32 %v395_v47  ;;  %v411_v36 = vmul.f32 1.442695, %v364_v19  ;;  %v456_v43 = vrot.slane %v8316_v16, 1  ;;  %v413_v47 = vmul.f32 1.442695, %v365_v29 }
 0x266   :  { %v630_v33 = vmul.f32 %v7504_v3, %v8289_v10  ;;  %v638_v22 = vmul.f32 %v7510_v6, %v8322_v52  ;;  %7515 = vpow2.f32 %v397_v53  ;;  %v326_v28 = vperm.slane %v310_v60, 0 }
 0x267   :  { %7517 = vpow2.f32 %v399_v54  ;;  %v610_v53 = vmul.f32 %v8293_v12, %v8237_v7  ;;  %v457_v60 = vrot.slane %v8316_v16, 2  ;;  %v8361_v7 = vperm.slane %v456_v43, 0 }
 0x268   :  { %v8320_v51 = vadd.f32 %v633_v42, %v630_v33  ;;  %7519 = vpow2.f32 %v401_v55  ;;  %v409_v33 = vmul.f32 1.442695, %v363_v17  ;;  %v8345_v42 = vadd.f32 %v640_v30, %v638_v22 }
 0x269   :  { %7521 = vpow2.f32 %v403_v56  ;;  %v367_v49 = vmul.f32 %v326_v28, %v8142_v38  ;;  %v368_v54 = vmul.f32 %v326_v28, %v8253_v18  ;;  %v328_v55 = vperm.slane %v312_v32, 0  ;;  %v690_v32 = vpop.permute.xlu0 %689 }
 0x26a   :  { %7409 = vset.pattern.permute.xlu1 %v8176_v41  ;;  %v637_v3 = vmul.f32 %v7508_v62, %v8320_v51  ;;  %v7512_v39 = vpop.eup %7511  ;;  %7523 = vpow2.f32 %v405_v0  ;;  %v369_v12 = vmul.f32 %v327_v44, %v8142_v38  ;;  %v370_v19 = vmul.f32 %v327_v44, %v8253_v18 }
 0x26b   :  { %v7514_v46 = vpop.eup %7513  ;;  %7525 = vpow2.f32 %v407_v9  ;;  %v417_v17 = vmul.f32 1.442695, %v367_v49  ;;  %v647_v22 = vrot.slane %v610_v53, 1  ;;  %v8368_v24 = vpop.permute.xlu2 %707  ;;  %v419_v29 = vmul.f32 1.442695, %v368_v54 }
 0x26c   :  { %v8343_v57 = vadd.f32 %v640_v30, %v637_v3  ;;  %v7516_v50 = vpop.eup %7515  ;;  %7527 = vpow2.f32 %v409_v33  ;;  %v645_v6 = vmul.f32 %v7514_v46, %v8345_v42  ;;  %v313_v3 = vrot.slane %v8297_v20, 4 }
 0x26d   :  { %v7518_v56 = vpop.eup %7517  ;;  %7529 = vpow2.f32 %v411_v36  ;;  %v371_v28 = vmul.f32 %v328_v55, %v8142_v38  ;;  %v8373_v33 = vperm.slane %v457_v60, 0  ;;  %v372_v36 = vmul.f32 %v328_v55, %v8253_v18 }
 0x26e   :  { %v8357_v0 = vpop.eup %7519  ;;  %v644_v4 = vmul.f32 %v7512_v39, %v8343_v57  ;;  %7531 = vpow2.f32 %v413_v47  ;;  %v8382_v44 = vadd.f32 %v647_v22, %v645_v6  ;;  %v421_v46 = vmul.f32 1.442695, %v369_v12 }
 0x26f   :  { %v8364_v9 = vpop.eup %7521  ;;  %7533 = vpow2.f32 %v415_v58  ;;  %v459_v47 = vrot.slane %v8316_v16, 4  ;;  %v423_v53 = vmul.f32 1.442695, %v370_v19  ;;  %v329_v54 = vperm.slane %v313_v3, 0 }
 0x270   :  { %v8371_v30 = vpop.eup %7523  ;;  %v8380_v43 = vadd.f32 %v647_v22, %v644_v4  ;;  %7535 = vpow2.f32 %v417_v17  ;;  %v314_v58 = vrot.slane %v8297_v20, 5  ;;  %v611_v55 = vmul.f32 %v8295_v13, %v8247_v40 }
 0x271   :  { %v8378_v39 = vpop.eup %7525  ;;  %v736_v60 = vrot.slane %v690_v32, 1  ;;  %7537 = vpow2.f32 %v419_v29  ;;  %v425_v63 = vmul.f32 1.442695, %v371_v28  ;;  %v737_v6 = vrot.slane %v8241_v15, 1 }
 0x272   :  { %v8385_v49 = vpop.eup %7527  ;;  %v427_v22 = vmul.f32 1.442695, %v372_v36  ;;  %v651_v19 = vmul.f32 %v7516_v50, %v8380_v43  ;;  %v652_v3 = vmul.f32 %v7518_v56, %v8382_v44  ;;  %7539 = vpow2.f32 %v421_v46 }
 0x273   :  { %v8390_v4 = vpop.eup %7529  ;;  %v8397_v41 = vperm.slane %v459_v47, 0  ;;  %7541 = vpow2.f32 %v423_v53  ;;  %v373_v29 = vmul.f32 %v329_v54, %v8142_v38  ;;  %v330_v15 = vperm.slane %v314_v58, 0 }
 0x274   :  { %v8287_v5 = vpop.permute.xlu1 %524  ;;  %v7532_v17 = vpop.eup %7531  ;;  %v753_v28 = vmul.f32 %v736_v60, %v8320_v51  ;;  %v754_v32 = vmul.f32 %v736_v60, %v8322_v52  ;;  %v374_v56 = vmul.f32 %v329_v54, %v8253_v18  ;;  %v755_v46 = vmul.f32 %v737_v6, %v8343_v57 }
 0x275   :  { %v615_v12 = vmul.f32 %v583_v48, %v8287_v5  ;;  %v7534_v40 = vpop.eup %7533  ;;  %v315_v5 = vrot.slane %v8297_v20, 6  ;;  %v654_v48 = vrot.slane %v611_v55, 1  ;;  %v756_v47 = vmul.f32 %v737_v6, %v8345_v42 }
 0x276   :  { %v7536_v36 = vpop.eup %7535  ;;  %v872_v55 = vmul.f32 0.0, %v7532_v17  ;;  %7543 = vpow2.f32 %v425_v63  ;;  %v873_v51 = vmul.f32 0.0, %v7534_v40  ;;  %v375_v54 = vmul.f32 %v330_v15, %v8142_v38 }
 0x277   :  { %v875_v53 = vrot.slane %v615_v12, 1  ;;  %v7538_v14 = vpop.eup %7537  ;;  %v8410_v58 = vadd.f32 %v654_v48, %v651_v19  ;;  %v8412_v2 = vadd.f32 %v654_v48, %v652_v3  ;;  %v376_v60 = vmul.f32 %v330_v15, %v8253_v18 }
 0x278   :  { %v7540_v57 = vpop.eup %7539  ;;  %v612_v42 = vmul.f32 %v8309_v37, %v8260_v25  ;;  %v787_v35 = vrot.slane %v753_v28, 7  ;;  %v788_v6 = vrot.slane %v754_v32, 7  ;;  %v790_v19 = vrot.slane %v755_v46, 7 }
 0x279   :  { %v7542_v12 = vpop.eup %7541  ;;  %v791_v3 = vrot.slane %v756_v47, 7  ;;  %v735_v17 = vrot.slane %v8301_v26, 1  ;;  %v8420_v63 = vadd.f32 %v875_v53, %v872_v55  ;;  %v659_v40 = vmul.f32 %v8364_v9, %v8412_v2 }
 0x27a   :  { %v8426_v15 = vadd.f32 %v875_v53, %v873_v51  ;;  %v429_v48 = vmul.f32 1.442695, %v373_v29  ;;  %7545 = vpow2.f32 %v427_v22  ;;  %v431_v37 = vmul.f32 1.442695, %v374_v56 }
 0x27b   :  { %v532_v50 = vpop.permute.xlu2 %531  ;;  %v433_v28 = vmul.f32 1.442695, %v375_v54  ;;  %v789_v26 = vsel %vm783_vm3, %v787_v35, %v788_v6  ;;  %v331_v46 = vperm.slane %v315_v5, 0  ;;  %v316_v47 = vrot.slane %v8297_v20, 7 }
 0x27c   :  { %v8326_v61 = vpop.permute.xlu1 %538  ;;  %v616_v52 = vmul.f32 %v8361_v7, %v532_v50  ;;  %v658_v7 = vmul.f32 %v8357_v0, %v8410_v58  ;;  %v8428_v32 = vpop.eup %7543  ;;  %v661_v50 = vrot.slane %v612_v42, 1  ;;  %v792_v0 = vsel %vm783_vm3, %v790_v19, %v791_v3 }
 0x27d   :  { %v751_v55 = vmul.f32 %v735_v17, %v8289_v10  ;;  %v752_v9 = vmul.f32 %v735_v17, %v8291_v11  ;;  %v879_v29 = vmul.f32 %v7536_v36, %v8420_v63  ;;  %v740_v51 = vrot.slane %v8258_v21, 1 }
 0x27e   :  { %v882_v25 = vrot.slane %v616_v52, 1  ;;  %v663_v22 = vadd.f32 %v661_v50, %v658_v7  ;;  %v664_v56 = vadd.f32 %v661_v50, %v659_v40  ;;  %v880_v52 = vmul.f32 %v7538_v14, %v8426_v15 }
 0x27f   :  { %v823_v5 = vsel %vm262_vm5, %v789_v26, 0.0  ;;  %v435_v42 = vmul.f32 1.442695, %v376_v60  ;;  %v461_v10 = vrot.slane %v8316_v16, 6  ;;  %7547 = vpow2.f32 %v429_v48 }
 0x280   :  { %v8441_v54 = vadd.f32 %v882_v25, %v879_v29  ;;  %v8446_v11 = vadd.f32 %v882_v25, %v880_v52  ;;  %v377_v36 = vmul.f32 %v331_v46, %v8142_v38  ;;  %v332_v35 = vperm.slane %v316_v47, 0  ;;  %v7546_v6 = vpop.eup %7545 }
 0x281   :  { %v830_v21 = vsel %vm262_vm5, %v792_v0, 0.0  ;;  %v784_v19 = vrot.slane %v751_v55, 7  ;;  %v785_v14 = vrot.slane %v752_v9, 7  ;;  %v617_v3 = vmul.f32 %v8373_v33, %v8326_v61  ;;  %v518_v55 = vpop.permute.xlu0 %517 }
 0x282   :  { %v824_v17 = vrot.slane %v823_v5, 4  ;;  %v761_v7 = vmul.f32 %v740_v51, %v663_v22  ;;  %v762_v40 = vmul.f32 %v740_v51, %v664_v56  ;;  %7549 = vpow2.f32 %v431_v37  ;;  %v8462_v37 = vld [vmem:[%s10983_s3] sm:$0xff] }
 0x283   :  { %v886_v60 = vmul.f32 %v7540_v57, %v8441_v54  ;;  %7551 = vpow2.f32 %v433_v28  ;;  %v378_v48 = vmul.f32 %v331_v46, %v8253_v18  ;;  %v462_v38 = vrot.slane %v8316_v16, 7 }
 0x284   :  { %v8354_v62 = vpop.permute.xlu1 %545  ;;  %v831_v25 = vrot.slane %v830_v21, 4  ;;  %v887_v50 = vmul.f32 %v7542_v12, %v8446_v11  ;;  %7553 = vpow2.f32 %v435_v42  ;;  %v8456_v26 = vperm.slane %v461_v10, 0 }
 0x285   :  { %v786_v47 = vsel %vm783_vm3, %v784_v19, %v785_v14  ;;  %v889_v61 = vrot.slane %v617_v3, 1  ;;  %v437_v33 = vmul.f32 1.442695, %v377_v36  ;;  %v379_v57 = vmul.f32 %v8462_v37, %v332_v35  ;;  %v8465_v28 = vpop.eup %7547 }
 0x286   :  { %v613_v16 = vmul.f32 %v8336_v27, %v8274_v45  ;;  %v825_v12 = vadd.f32 %v824_v17, %v823_v5  ;;  %v799_v46 = vrot.slane %v761_v7, 7  ;;  %v800_v0 = vrot.slane %v762_v40, 7 }
 0x287   :  { %v8469_v9 = vadd.f32 %v889_v61, %v886_v60  ;;  %v618_v29 = vmul.f32 %v8376_v59, %v8354_v62  ;;  %v439_v52 = vmul.f32 1.442695, %v378_v48  ;;  %v380_v42 = vmul.f32 %v332_v35, %v8253_v18 }
 0x288   :  { %v7550_v10 = vpop.eup %7549  ;;  %v665_v36 = vmul.f32 %v8371_v30, %v663_v22  ;;  %v832_v19 = vadd.f32 %v831_v25, %v830_v21  ;;  %v816_v45 = vsel %vm262_vm5, %v786_v47, 0.0  ;;  %v8478_v27 = vadd.f32 %v889_v61, %v887_v50 }
 0x289   :  { %v8480_v5 = vpop.eup %7551  ;;  %v666_v14 = vmul.f32 %v8378_v39, %v664_v56  ;;  %7555 = vpow2.f32 %v437_v33  ;;  %v441_v62 = vmul.f32 1.442695, %v379_v57  ;;  %v8485_v59 = vperm.slane %v462_v38, 0  ;;  %v8502_v33 = vpop.permute.xlu0 %956 }
 0x28a   :  { %v8487_v17 = vpop.eup %7553  ;;  %v668_v18 = vrot.slane %v613_v16, 1  ;;  %v826_v35 = vrot.slane %v825_v12, 2  ;;  %v801_v30 = vsel %vm783_vm3, %v799_v46, %v800_v0  ;;  %v738_v22 = vrot.slane %v8333_v23, 1 }
 0x28b   :  { %v8443_v20 = vpop.permute.xlu2 %938  ;;  %v817_v21 = vrot.slane %v816_v45, 4  ;;  %v893_v7 = vmul.f32 %v8428_v32, %v8469_v9  ;;  %v896_v40 = vrot.slane %v618_v29, 1  ;;  %v443_v39 = vmul.f32 1.442695, %v380_v42 }
 0x28c   :  { %v8399_v13 = vpop.permute.xlu1 %552  ;;  %v670_v56 = vadd.f32 %v668_v18, %v665_v36  ;;  %v833_v60 = vrot.slane %v832_v19, 2  ;;  %v894_v48 = vmul.f32 %v7546_v6, %v8478_v27  ;;  %7557 = vpow2.f32 %v439_v52 }
 0x28d   :  { %v671_v38 = vadd.f32 %v668_v18, %v666_v14  ;;  %v851_v25 = vsel %vm262_vm5, %v801_v30, 0.0  ;;  %v614_v50 = vmul.f32 %v8339_v31, %v518_v55  ;;  %v619_v47 = vmul.f32 %v8397_v41, %v8399_v13 }
 0x28e   :  { %v8498_v23 = vadd.f32 %v826_v35, %v825_v12  ;;  %v757_v61 = vmul.f32 %v738_v22, %v8380_v43  ;;  %v758_v32 = vmul.f32 %v738_v22, %v8382_v44  ;;  %7559 = vpow2.f32 %v441_v62 }
 0x28f   :  { %v8504_v57 = vpop.eup %7555  ;;  %v818_v6 = vadd.f32 %v817_v21, %v816_v45  ;;  %v741_v16 = vrot.slane %v8271_v34, 1  ;;  %v8507_v46 = vadd.f32 %v896_v40, %v893_v7  ;;  %7561 = vpow2.f32 %v443_v39 }
 0x290   :  { %v8509_v0 = vadd.f32 %v833_v60, %v832_v19  ;;  %v852_v41 = vrot.slane %v851_v25, 4  ;;  %v672_v13 = vmul.f32 %v8385_v49, %v670_v56  ;;  %v8512_v43 = vadd.f32 %v896_v40, %v894_v48 }
 0x291   :  { %v673_v44 = vmul.f32 %v8390_v4, %v671_v38  ;;  %v675_v12 = vrot.slane %v614_v50, 1  ;;  %v739_v55 = vrot.slane %v8368_v24, 1  ;;  %v903_v29 = vrot.slane %v619_v47, 1 }
 0x292   :  { %v8516_v52 = vpop.eup %7557  ;;  %v828_v34 = vrot.slane %v8498_v23, 1  ;;  %v793_v42 = vrot.slane %v757_v61, 7  ;;  %v794_v36 = vrot.slane %v758_v32, 7  ;;  %v819_v19 = vrot.slane %v818_v6, 2 }
 0x293   :  { %v8483_v3 = vpop.permute.xlu2 %944  ;;  %v763_v14 = vmul.f32 %v741_v16, %v670_v56  ;;  %v985_v62 = vrot.slane %v8443_v20, 1  ;;  %v900_v49 = vmul.f32 %v8465_v28, %v8507_v46  ;;  %v8524_v35 = vadd.f32 %v852_v41, %v851_v25 }
 0x294   :  { %v8436_v53 = vpop.permute.xlu1 %559  ;;  %v8522_v4 = vpop.eup %7559  ;;  %v764_v24 = vmul.f32 %v741_v16, %v671_v38  ;;  %v901_v30 = vmul.f32 %v7550_v10, %v8512_v43  ;;  %v677_v7 = vadd.f32 %v675_v12, %v672_v13  ;;  %v759_v40 = vmul.f32 %v739_v55, %v8410_v58 }
 0x295   :  { %v620_v22 = vmul.f32 %v8408_v8, %v8436_v53  ;;  %v8529_v21 = vpop.eup %7561  ;;  %v760_v20 = vmul.f32 %v739_v55, %v8412_v2  ;;  %v905_v39 = vadd.f32 %v903_v29, %v900_v49  ;;  %v795_v28 = vsel %vm783_vm3, %v793_v42, %v794_v36  ;;  %v726_v2 = vpop.permute.xlu0 %725 }
 0x296   :  { %v906_v56 = vadd.f32 %v903_v29, %v901_v30  ;;  %v678_v38 = vadd.f32 %v675_v12, %v673_v44  ;;  %v1002_v10 = vmul.f32 %v985_v62, %v8441_v54  ;;  %v1003_v8 = vmul.f32 %v985_v62, %v8446_v11 }
 0x297   :  { %v986_v53 = vrot.slane %v8483_v3, 1  ;;  %v8539_v25 = vadd.f32 %v819_v19, %v818_v6  ;;  %v802_v58 = vrot.slane %v763_v14, 7  ;;  %v803_v50 = vrot.slane %v764_v24, 7 }
 0x298   :  { %v910_v47 = vrot.slane %v620_v22, 1  ;;  %v837_v61 = vsel %vm262_vm5, %v795_v28, 0.0  ;;  %v796_v32 = vrot.slane %v759_v40, 7  ;;  %v797_v16 = vrot.slane %v760_v20, 7 }
 0x299   :  { %v742_v3 = vrot.slane %v726_v2, 1  ;;  %v1035_v6 = vrot.slane %v1002_v10, 7  ;;  %v1036_v41 = vrot.slane %v1003_v8, 7  ;;  %v1004_v13 = vmul.f32 %v986_v53, %v8469_v9 }
 0x29a   :  { %v988_v44 = vrot.slane %v8502_v33, 1  ;;  %v1005_v12 = vmul.f32 %v986_v53, %v8478_v27  ;;  %v838_v42 = vrot.slane %v837_v61, 4  ;;  %v854_v2 = vrot.slane %v8524_v35, 2 }
 0x29b   :  { %v963_v18 = vpop.permute.xlu2 %962  ;;  %v765_v62 = vmul.f32 %v742_v3, %v677_v7  ;;  %v766_v9 = vmul.f32 %v742_v3, %v678_v38  ;;  %v1037_v33 = vsel %vm783_vm3, %v1035_v6, %v1036_v41  ;;  %v1038_v49 = vrot.slane %v1004_v13, 7  ;;  %v7335_v13 = vld [vmem:[%s10985_s5 + $0x10] sm:$0xff] }
 0x29c   :  { %v8473_v51 = vpop.permute.xlu1 %566  ;;  %v989_v36 = vrot.slane %v963_v18, 1  ;;  %v1039_v27 = vrot.slane %v1005_v12, 7  ;;  %v829_v3 = vadd.f32 %v828_v34, %v8498_v23 }
 0x29d   :  { %v621_v54 = vmul.f32 %v8456_v26, %v8473_v51  ;;  %v1008_v51 = vmul.f32 %v988_v44, %v905_v39  ;;  %v805_v38 = vrot.slane %v765_v62, 7  ;;  %v806_v10 = vrot.slane %v766_v9, 7 }
 0x29f   :  { %v917_v19 = vrot.slane %v621_v54, 1  ;;  %v1044_v28 = vrot.slane %v1008_v51, 7  ;;  %v821_v54 = vrot.slane %v8539_v25, 1 }
 0x2a3   :  { %v969_v26 = vpop.permute.xlu2 %968 }
 0x2a4   :  { %v990_v22 = vrot.slane %v969_v26, 1 }
 0x2ac   :  { %v933_v31 = vpop.permute.xlu1 %932 }
 0x2ad   :  { %v984_v45 = vrot.slane %v933_v31, 1 }
 0x2af   :  { %v1000_v60 = vmul.f32 %v984_v45, %v8420_v63  ;;  %v1001_v48 = vmul.f32 %v984_v45, %v8426_v15  ;;  %v907_v63 = vmul.f32 %v8480_v5, %v905_v39  ;;  %v908_v15 = vmul.f32 %v8487_v17, %v906_v56 }
 0x2b0   :  { %v804_v5 = vsel %vm783_vm3, %v802_v58, %v803_v50  ;;  %v798_v17 = vsel %vm783_vm3, %v796_v32, %v797_v16  ;;  %v1009_v45 = vmul.f32 %v988_v44, %v906_v56  ;;  %v807_v44 = vsel %vm783_vm3, %v805_v38, %v806_v10  ;;  %v7333_v38 = vld [vmem:[%s10985_s5] sm:$0xff] }
 0x2b1   :  { %v1032_v11 = vrot.slane %v1000_v60, 7  ;;  %v1033_v31 = vrot.slane %v1001_v48, 7  ;;  %v912_v55 = vadd.f32 %v910_v47, %v907_v63  ;;  %v913_v29 = vadd.f32 %v910_v47, %v908_v15  ;;  %v7336_v63 = vld [vmem:[%s10985_s5 + $0x18] sm:$0xff] }
 0x2b2   :  { %v858_v40 = vsel %vm262_vm5, %v804_v5, 0.0  ;;  %v1045_v56 = vrot.slane %v1009_v45, 7  ;;  %v844_v48 = vsel %vm262_vm5, %v798_v17, 0.0  ;;  %v839_v47 = vadd.f32 %v838_v42, %v837_v61  ;;  %1254 = vmatpush.bf16.msra.mxu2 %v7336_v63 }
 0x2b3   :  { %v1034_v14 = vsel %vm783_vm3, %v1032_v11, %v1033_v31  ;;  %v914_v24 = vmul.f32 %v8504_v57, %v912_v55  ;;  %v915_v30 = vmul.f32 %v8516_v52, %v913_v29  ;;  %v1010_v18 = vmul.f32 %v989_v36, %v912_v55 }
 0x2b4   :  { %v1011_v20 = vmul.f32 %v989_v36, %v913_v29  ;;  %v1064_v39 = vsel %vm262_vm5, %v1034_v14, 0.0  ;;  %v1071_v57 = vsel %vm262_vm5, %v1037_v33, 0.0  ;;  %v1040_v52 = vsel %vm783_vm3, %v1038_v49, %v1039_v27 }
 0x2b5   :  { %v8557_v60 = vadd.f32 %v917_v19, %v914_v24  ;;  %v8559_v7 = vadd.f32 %v917_v19, %v915_v30  ;;  %v1065_v58 = vrot.slane %v1064_v39, 4  ;;  %v1047_v32 = vrot.slane %v1010_v18, 7 }
 0x2b6   :  { %v1048_v16 = vrot.slane %v1011_v20, 7  ;;  %v835_v15 = vrot.slane %v8509_v0, 1  ;;  %v1072_v11 = vrot.slane %v1071_v57, 4  ;;  %v1046_v31 = vsel %vm783_vm3, %v1044_v28, %v1045_v56  ;;  %1255 = vmatpush.bf16.msra.mxu2 %v7335_v13 }
 0x2b7   :  { %v1012_v8 = vmul.f32 %v990_v22, %v8557_v60  ;;  %v1013_v53 = vmul.f32 %v990_v22, %v8559_v7  ;;  %v859_v6 = vrot.slane %v858_v40, 4  ;;  %v845_v41 = vrot.slane %v844_v48, 4 }
 0x2b8   :  { %v1078_v61 = vsel %vm262_vm5, %v1040_v52, 0.0  ;;  %v1066_v29 = vadd.f32 %v1065_v58, %v1064_v39  ;;  %v8582_v42 = vadd.f32 %v854_v2, %v8524_v35  ;;  %v840_v5 = vrot.slane %v839_v47, 2  ;;  %v7334_v35 = vld [vmem:[%s10985_s5 + $0x8] sm:$0xff] }
 0x2b9   :  { %v1050_v12 = vrot.slane %v1012_v8, 7  ;;  %v1051_v55 = vrot.slane %v1013_v53, 7  ;;  %v1092_v23 = vsel %vm262_vm5, %v1046_v31, 0.0  ;;  %v1049_v34 = vsel %vm783_vm3, %v1047_v32, %v1048_v16 }
 0x2ba   :  { %v8587_v17 = vadd.f32 %v835_v15, %v8509_v0  ;;  %v822_v36 = vadd.f32 %v821_v54, %v8539_v25  ;;  %v1073_v26 = vadd.f32 %v1072_v11, %v1071_v57  ;;  %v1079_v51 = vrot.slane %v1078_v61, 4  ;;  %1256 = vmatpush.bf16.msra.mxu2 %v7334_v35 }
 0x2bb   :  { %v860_v45 = vadd.f32 %v859_v6, %v858_v40  ;;  %v846_v19 = vadd.f32 %v845_v41, %v844_v48  ;;  %v865_v14 = vsel %vm262_vm5, %v807_v44, 0.0  ;;  %v1093_v62 = vrot.slane %v1092_v23, 4 }
 0x2bc   :  { %v574_v50 = vpop.permute.xlu1 %573  ;;  %v1099_v9 = vsel %vm262_vm5, %v1049_v34, 0.0  ;;  %v1052_v0 = vsel %vm783_vm3, %v1050_v12, %v1051_v55  ;;  %v1067_v33 = vrot.slane %v1066_v29, 2  ;;  %v856_v25 = vrot.slane %v8582_v42, 1 }
 0x2bd   :  { %v841_v27 = vadd.f32 %v840_v5, %v839_v47  ;;  %v622_v24 = vmul.f32 %v8485_v59, %v574_v50  ;;  %v866_v22 = vrot.slane %v865_v14, 4  ;;  %v1074_v40 = vrot.slane %v1073_v26, 2 }
 0x2be   :  { %v1080_v18 = vadd.f32 %v1079_v51, %v1078_v61  ;;  %v1129_v20 = vsel %vm1128_vm4, %v829_v3, %v822_v36  ;;  %v1100_v39 = vrot.slane %v1099_v9, 4  ;;  %v1106_v28 = vsel %vm262_vm5, %v1052_v0, 0.0  ;;  %1257 = vmatpush.bf16.msra.mxu2 %v7333_v38 }
 0x2bf   :  { %v861_v10 = vrot.slane %v860_v45, 2  ;;  %v847_v59 = vrot.slane %v846_v19, 2  ;;  %v1094_v57 = vadd.f32 %v1093_v62, %v1092_v23  ;;  %v1068_v52 = vadd.f32 %v1067_v33, %v1066_v29 }
 0x2c0   :  { %v842_v8 = vrot.slane %v841_v27, 1  ;;  %v924_v53 = vrot.slane %v622_v24, 1  ;;  %v867_v2 = vadd.f32 %v866_v22, %v865_v14  ;;  %v1075_v47 = vadd.f32 %v1074_v40, %v1073_v26 }
 0x2c1   :  { %v1081_v32 = vrot.slane %v1080_v18, 2  ;;  %v1101_v16 = vadd.f32 %v1100_v39, %v1099_v9  ;;  %v922_v63 = vmul.f32 %v8529_v21, %v8559_v7  ;;  %v848_v54 = vadd.f32 %v847_v59, %v846_v19 }
 0x2c2   :  { %v1095_v11 = vrot.slane %v1094_v57, 2  ;;  %v1069_v31 = vrot.slane %v1068_v52, 1  ;;  %v868_v12 = vrot.slane %v867_v2, 2  ;;  %v1076_v55 = vrot.slane %v1075_v47, 1 }
 0x2c3   :  { %v927_v61 = vadd.f32 %v924_v53, %v922_v63  ;;  %v1082_v29 = vadd.f32 %v1081_v32, %v1080_v18  ;;  %v862_v23 = vadd.f32 %v861_v10, %v860_v45  ;;  %v849_v34 = vrot.slane %v848_v54, 1 }
 0x2c4   :  { %v1096_v36 = vadd.f32 %v1095_v11, %v1094_v57  ;;  %v1070_v26 = vadd.f32 %v1069_v31, %v1068_v52  ;;  %v843_v35 = vadd.f32 %v842_v8, %v841_v27  ;;  %v869_v0 = vadd.f32 %v868_v12, %v867_v2  ;;  %v1207_v12 = vpop.permute.xlu2 %1206 }
 0x2c5   :  { %v1083_v62 = vrot.slane %v1082_v29, 1  ;;  %v1077_v33 = vadd.f32 %v1076_v55, %v1075_v47  ;;  %v850_v22 = vadd.f32 %v849_v34, %v848_v54  ;;  %v1131_v45 = vsel %vm1130_vm6, %v8587_v17, %v1129_v20 }
 0x2c6   :  { %v1097_v40 = vrot.slane %v1096_v36, 1  ;;  %v863_v38 = vrot.slane %v862_v23, 1  ;;  %v1133_v10 = vsel %vm1132_vm7, %v843_v35, %v1131_v45  ;;  %v870_v57 = vrot.slane %v869_v0, 1 }
 0x2c7   :  { %v1151_v39 = vsel %vm1128_vm4, %v1077_v33, %v1070_v26  ;;  %v857_v20 = vadd.f32 %v856_v25, %v8582_v42  ;;  %v1159_v54 = vperm.slane %v8462_v37, 6  ;;  %v11029_v33 = vld [vmem:[#allocation5_spill] sm:$0xff] }
 0x2cc   :  { %v951_v49 = vpop.permute.xlu1 %950 }
 0x2cd   :  { %v987_v30 = vrot.slane %v951_v49, 1 }
 0x2cf   :  { %v1006_v56 = vmul.f32 %v987_v30, %v8507_v46  ;;  %v1007_v48 = vmul.f32 %v987_v30, %v8512_v43  ;;  %v1107_v46 = vrot.slane %v1106_v28, 4  ;;  %v921_v43 = vmul.f32 %v8522_v4, %v8557_v60 }
 0x2d0   :  { %v1102_v60 = vrot.slane %v1101_v16, 2 }
 0x2d1   :  { %v1041_v58 = vrot.slane %v1006_v56, 7  ;;  %v1042_v50 = vrot.slane %v1007_v48, 7  ;;  %v926_v41 = vadd.f32 %v924_v53, %v921_v43  ;;  %v1108_v4 = vadd.f32 %v1107_v46, %v1106_v28 }
 0x2d2   :  { %v1103_v49 = vadd.f32 %v1102_v60, %v1101_v16  ;;  %v1084_v56 = vadd.f32 %v1083_v62, %v1082_v29  ;;  %v1098_v53 = vadd.f32 %v1097_v40, %v1096_v36  ;;  %v871_v16 = vadd.f32 %v870_v57, %v869_v0  ;;  %v7338_v62 = vld [vmem:[%s10982_s2 + $0x18] sm:$0xff] }
 0x2d3   :  { %v1043_v15 = vsel %vm783_vm3, %v1041_v58, %v1042_v50  ;;  %v1109_v9 = vrot.slane %v1108_v4, 2  ;;  %v1135_v58 = vsel %vm11002_vm12, %v850_v22, %v1133_v10  ;;  %1327 = vmatpush.bf16.msra.mxu3 %v7338_v62 }
 0x2d4   :  { %v1085_v3 = vsel %vm262_vm5, %v1043_v15, 0.0  ;;  %v975_v6 = vpop.permute.xlu1 %974  ;;  %v1104_v59 = vrot.slane %v1103_v49, 1  ;;  %v1152_v17 = vsel %vm1130_vm6, %v1084_v56, %v1151_v39  ;;  %v1137_v43 = vsel %vm11001_vm13, %v857_v20, %v1135_v58 }
 0x2d5   :  { %v1086_v13 = vrot.slane %v1085_v3, 4  ;;  %v991_v44 = vrot.slane %v975_v6, 1  ;;  %v1110_v48 = vadd.f32 %v1109_v9, %v1108_v4  ;;  %v864_v15 = vadd.f32 %v863_v38, %v862_v23  ;;  %v1209_v4 = vpop.permute.xlu0 %1208  ;;  %v7337_v9 = vld [vmem:[%s10982_s2 + $0x10] sm:$0xff] }
 0x2d6   :  { %v1105_v46 = vadd.f32 %v1104_v59, %v1103_v49 }
 0x2d7   :  { %v1087_v5 = vadd.f32 %v1086_v13, %v1085_v3  ;;  %v1014_v21 = vmul.f32 %v991_v44, %v926_v41  ;;  %v1015_v7 = vmul.f32 %v991_v44, %v927_v61  ;;  %v1111_v47 = vrot.slane %v1110_v48, 1  ;;  %v11026_v61 = vld [vmem:[#allocation7_spill] sm:$0xff]  ;;  %1328 = vmatpush.bf16.msra.mxu3 %v7337_v9 }
 0x2d8   :  { %v1139_v25 = vsel %vm11000_vm14, %v864_v15, %v1137_v43  ;;  %v1160_v41 = vmul.f32 %v1159_v54, %v8181_v1  ;;  %v1161_v13 = vmul.f32 %v1159_v54, %v11026_v61  ;;  %v8024_v1 = vld [vmem:[%s10981_s1] sm:$0xff] }
 0x2d9   :  { %v1088_v51 = vrot.slane %v1087_v5, 2  ;;  %v1053_v19 = vrot.slane %v1014_v21, 7  ;;  %v1054_v14 = vrot.slane %v1015_v7, 7  ;;  %v1112_v42 = vadd.f32 %v1111_v47, %v1110_v48 }
 0x2da   :  { %v1141_v3 = vsel %vm10999_vm15, %v871_v16, %v1139_v25 }
 0x2db   :  { %v1089_v24 = vadd.f32 %v1088_v51, %v1087_v5  ;;  %v1055_v30 = vsel %vm783_vm3, %v1053_v19, %v1054_v14  ;;  %v1162_v29 = vadd.f32 %v1160_v41, %v1141_v3  ;;  %v8025_v51 = vld [vmem:[%s10981_s1 + $0x8] sm:$0xff] }
 0x2dc   :  { %v1113_v18 = vsel %vm262_vm5, %v1055_v30, 0.0 }
 0x2dd   :  { %v1090_v28 = vrot.slane %v1089_v24, 1  ;;  %v1114_v27 = vrot.slane %v1113_v18, 4  ;;  %v1212_v60 = vmul.f32 %v1207_v12, %v1162_v29  ;;  %v7342_v29 = vld [vmem:[%s10984_s4 + $0x38] sm:$0xff] }
 0x2de   :  { %1490 = vmatpush.bf16.msrb.mxu0 %v7342_v29 }
 0x2df   :  { %v1091_v52 = vadd.f32 %v1090_v28, %v1089_v24  ;;  %v1115_v8 = vadd.f32 %v1114_v27, %v1113_v18 }
 0x2e1   :  { %v1116_v50 = vrot.slane %v1115_v8, 2  ;;  %v1153_v2 = vsel %vm1132_vm7, %v1091_v52, %v1152_v17 }
 0x2e2   :  { %v1154_v32 = vsel %vm11002_vm12, %v1098_v53, %v1153_v2 }
 0x2e3   :  { %v1117_v63 = vadd.f32 %v1116_v50, %v1115_v8  ;;  %v1155_v31 = vsel %vm11001_vm13, %v1105_v46, %v1154_v32  ;;  %v8664_v50 = vld [vmem:[%s10983_s3 + $0x10] sm:$0xff] }
 0x2e4   :  { %v1156_v44 = vsel %vm11000_vm14, %v1112_v42, %v1155_v31  ;;  %v1346_v2 = vperm.slane %v8664_v50, 1  ;;  %v1342_v32 = vperm.slane %v8664_v50, 0  ;;  %v1356_v16 = vperm.slane %v8664_v50, 2 }
 0x2e5   :  { %v1118_v11 = vrot.slane %v1117_v63, 1  ;;  %v1366_v43 = vperm.slane %v8664_v50, 3  ;;  %v1344_v15 = vperm.slane %v8664_v50, 4 }
 0x2e7   :  { %v1119_v6 = vadd.f32 %v1118_v11, %v1117_v63 }
 0x2e9   :  { %v1157_v55 = vsel %vm10999_vm15, %v1119_v6, %v1156_v44 }
 0x2ea   :  { %v1163_v37 = vadd.f32 %v1161_v13, %v1157_v55 }
 0x2ec   :  { %v1213_v5 = vmul.f32 %v1209_v4, %v1163_v37 }
 0x2ee   :  { %v1214_v21 = vpack.c.bf16 %v1213_v5, %v1212_v60 }
 0x2f0   :  { %7015 = vmatmul.msk.bf16.vlgmr.msra.gmra.mxu2 %vm262_vm5, %v1214_v21 }
 0x373   :  { %v1259_v7 = vpop.f32.mrf.mxu2 }
 0x374   :  { %v8637_v23 = vadd.f32 %v8024_v1, %v1259_v7 }
 0x376   :  { %11027 = vst [vmem:[#allocation7_spill] sm:$0xff] %v8637_v23  ;;  %v1266_v34 = vmul.f32 %v8637_v23, %v8637_v23 }
 0x378   :  { %v1268_v36 = vsel %vm38_vm0, %v1266_v34, 0.0  ;;  %v7341_v34 = vld [vmem:[%s10984_s4 + $0x30] sm:$0xff] }
 0x379   :  { %1269 = vadd.xlane.f32.xlu1 %v1268_v36  ;;  %1491 = vmatpush.bf16.msrb.mxu0 %v7341_v34 }
 0x37b   :  { %v1261_v26 = vpop.f32.mrf.mxu2 }
 0x37c   :  { %v8645_v19 = vadd.f32 %v8025_v51, %v1261_v26 }
 0x37e   :  { %11028 = vst [vmem:[#allocation9_spill] sm:$0xff] %v8645_v19  ;;  %v1267_v14 = vmul.f32 %v8645_v19, %v8645_v19 }
 0x380   :  { %v1271_v35 = vsel %vm38_vm0, %v1267_v14, 0.0 }
 0x381   :  { %1272 = vadd.xlane.f32.xlu2 %v1271_v35 }
 0x3ec   :  { %v1270_v0 = vpop.xlane.xlu1 %1269 }
 0x3ed   :  { %v1274_v49 = vmul.f32 %v1270_v0, %v11029_v33 }
 0x3ef   :  { %v1276_v24 = vadd.f32 1e-05, %v1274_v49 }
 0x3f1   :  { %7563 = vrsqrt.f32 %v1276_v24  ;;  %vm1284_vm2 = vweird.f32 %v1276_v24 }
 0x3f4   :  { %v1273_v30 = vpop.xlane.xlu2 %1272 }
 0x3f5   :  { %v1275_v22 = vmul.f32 %v1273_v30, %v11029_v33 }
 0x3f7   :  { %v7564_v40 = vpop.eup %7563  ;;  %v1277_v45 = vadd.f32 1e-05, %v1275_v22 }
 0x3f8   :  { %v1279_v18 = vmul.f32 %v7564_v40, %v1276_v24  ;;  %vm1285_vm1 = vweird.f32 %v7564_v40 }
 0x3f9   :  { %7565 = vrsqrt.f32 %v1277_v45  ;;  %vm1286_vm14 = vmor %vm1284_vm2, %vm1285_vm1  ;;  %vm1294_vm13 = vweird.f32 %v1277_v45 }
 0x3fa   :  { %v1280_v39 = vmul.f32 %v7564_v40, %v1279_v18 }
 0x3fc   :  { %v1281_v28 = vmul.f32 0.5, %v1280_v39 }
 0x3fe   :  { %v1282_v56 = vsub.f32 1.5, %v1281_v28 }
 0x3ff   :  { %v7566_v27 = vpop.eup %7565 }
 0x400   :  { %v1289_v48 = vmul.f32 %v7566_v27, %v1277_v45  ;;  %v1283_v59 = vmul.f32 %v7564_v40, %v1282_v56  ;;  %vm1295_vm15 = vweird.f32 %v7566_v27 }
 0x401   :  { %vm1296_vm12 = vmor %vm1294_vm13, %vm1295_vm15 }
 0x402   :  { %v1290_v38 = vmul.f32 %v7566_v27, %v1289_v48  ;;  %v1287_v52 = vsel %vm1286_vm14, %v7564_v40, %v1283_v59  ;;  %v7340_v40 = vld [vmem:[%s10984_s4 + $0x28] sm:$0xff] }
 0x403   :  { %v1298_v58 = vmul.f32 %v1287_v52, %v8637_v23  ;;  %1492 = vmatpush.bf16.msrb.mxu0 %v7340_v40 }
 0x404   :  { %v1291_v10 = vmul.f32 0.5, %v1290_v38 }
 0x406   :  { %v1292_v57 = vsub.f32 1.5, %v1291_v10  ;;  %v7339_v10 = vld [vmem:[%s10984_s4 + $0x20] sm:$0xff] }
 0x407   :  { %1493 = vmatpush.bf16.msrb.mxu0 %v7339_v10 }
 0x408   :  { %v1293_v8 = vmul.f32 %v7566_v27, %v1292_v57 }
 0x40a   :  { %v1297_v53 = vsel %vm1296_vm12, %v7566_v27, %v1293_v8 }
 0x40b   :  { %v1299_v17 = vmul.f32 %v1297_v53, %v8645_v19 }
 0x40d   :  { %v1300_v20 = vpack.c.bf16 %v1299_v17, %v1298_v58 }
 0x40f   :  { %7028 = vmatmul.msk.bf16.vlgmr.msra.gmra.mxu3 %vm38_vm0, %v1300_v20 }
 0x492   :  { %v8667_v47 = vpop.f32.mrf.mxu3 }
 0x493   :  { %v1339_v46 = vrot.slane %v8667_v47, 5  ;;  %v2376_v40 = vsub.f32 0.0, %v8667_v47 }
 0x495   :  { %v1341_v63 = vsel %vm117_vm8, 0.0, %v1339_v46  ;;  %v1348_v54 = vmul.f32 %v1346_v2, %v1339_v46  ;;  %v1358_v6 = vmul.f32 %v1356_v16, %v1339_v46  ;;  %v1368_v41 = vmul.f32 %v1366_v43, %v1339_v46 }
 0x496   :  { %v1343_v11 = vmul.f32 %v1342_v32, %v1341_v63  ;;  %v1347_v31 = vmul.f32 %v1346_v2, %v1341_v63  ;;  %v1357_v3 = vmul.f32 %v1356_v16, %v1341_v63  ;;  %v1367_v44 = vmul.f32 %v1366_v43, %v1341_v63 }
 0x497   :  { %v1352_v42 = vrot.slane %v1348_v54, 1  ;;  %v1362_v4 = vrot.slane %v1358_v6, 2  ;;  %v1372_v60 = vrot.slane %v1368_v41, 3 }
 0x498   :  { %v1351_v25 = vrot.slane %v1347_v31, 1  ;;  %v1345_v61 = vadd.f32 %v1344_v15, %v1343_v11  ;;  %v1361_v37 = vrot.slane %v1357_v3, 2  ;;  %v1371_v36 = vrot.slane %v1367_v44, 3 }
 0x49a   :  { %v1353_v13 = vsel %vm128_vm9, %v1351_v25, %v1352_v42  ;;  %v8676_v12 = vpop.f32.mrf.mxu3  ;;  %v1363_v0 = vsel %vm11004_vm10, %v1361_v37, %v1362_v4  ;;  %v1373_v18 = vsel %vm11003_vm11, %v1371_v36, %v1372_v60 }
 0x49b   :  { %v1397_v55 = vrot.slane %v8676_v12, 5  ;;  %v1355_v5 = vadd.f32 %v1353_v13, %v1345_v61 }
 0x49d   :  { %v1399_v21 = vsel %vm117_vm8, 0.0, %v1397_v55  ;;  %v1403_v7 = vmul.f32 %v1397_v55, %v1346_v2  ;;  %v1412_v1 = vmul.f32 %v1397_v55, %v1356_v16  ;;  %v1421_v9 = vmul.f32 %v1397_v55, %v1366_v43 }
 0x49e   :  { %v1400_v26 = vmul.f32 %v1399_v21, %v1342_v32  ;;  %v1402_v51 = vmul.f32 %v1399_v21, %v1346_v2  ;;  %v1411_v14 = vmul.f32 %v1399_v21, %v1356_v16  ;;  %v1420_v62 = vmul.f32 %v1399_v21, %v1366_v43 }
 0x49f   :  { %v1407_v35 = vrot.slane %v1403_v7, 1  ;;  %v1416_v22 = vrot.slane %v1412_v1, 2  ;;  %v1365_v45 = vadd.f32 %v1363_v0, %v1355_v5  ;;  %v1425_v27 = vrot.slane %v1421_v9, 3  ;;  %v11032_v0 = vld [vmem:[#allocation6_spill] sm:$0xff] }
 0x4a0   :  { %v1401_v49 = vadd.f32 %v1400_v26, %v1344_v15  ;;  %v1406_v24 = vrot.slane %v1402_v51, 1  ;;  %v1415_v30 = vrot.slane %v1411_v14, 2  ;;  %v1424_v28 = vrot.slane %v1420_v62, 3 }
 0x4a1   :  { %v1375_v56 = vadd.f32 %v1373_v18, %v1365_v45  ;;  %v2377_v45 = vsub.f32 0.0, %v8676_v12  ;;  %v2378_v18 = vmul.f32 1.442695, %v2376_v40 }
 0x4a2   :  { %v1408_v39 = vsel %vm128_vm9, %v1406_v24, %v1407_v35  ;;  %v1417_v38 = vsel %vm11004_vm10, %v1415_v30, %v1416_v22  ;;  %v1426_v8 = vsel %vm11003_vm11, %v1424_v28, %v1425_v27  ;;  %v11031_v35 = vld [vmem:[#allocation8_spill] sm:$0xff] }
 0x4a3   :  { %v1410_v48 = vadd.f32 %v1408_v39, %v1401_v49  ;;  %v1376_v59 = vsub.f32 0.0, %v1375_v56  ;;  %v2380_v39 = vmul.f32 1.442695, %v2377_v45 }
 0x4a5   :  { %v1419_v57 = vadd.f32 %v1417_v38, %v1410_v48  ;;  %v1377_v52 = vmul.f32 1.442695, %v1376_v59 }
 0x4a7   :  { %v1428_v53 = vadd.f32 %v1426_v8, %v1419_v57  ;;  %7567 = vpow2.f32 %v1377_v52  ;;  %v1500_v8 = vperm.slane %v8664_v50, 5 }
 0x4a9   :  { %v1429_v58 = vsub.f32 0.0, %v1428_v53 }
 0x4ab   :  { %v1430_v17 = vmul.f32 1.442695, %v1429_v58 }
 0x4ad   :  { %v7568_v20 = vpop.eup %7567  ;;  %7569 = vpow2.f32 %v1430_v17 }
 0x4ae   :  { %v1379_v2 = vadd.f32 1.0, %v7568_v20 }
 0x4b0   :  { %7571 = vrcp.f32 %v1379_v2  ;;  %v1391_v42 = vand.u32 2147483648, %v1379_v2  ;;  %vm1385_vm13 = vweird.f32 %v1379_v2  ;;  %v1389_v25 = vand.u32 2147483647, %v1379_v2 }
 0x4b2   :  { %v1392_v44 = vor.u32 1.1754944e-38, %v1391_v42  ;;  %vm1390_vm1 = vcmp.eq.f32.partialorder %v1389_v25, 8.507059e+37 }
 0x4b3   :  { %v7570_v32 = vpop.eup %7569 }
 0x4b4   :  { %v1432_v46 = vadd.f32 1.0, %v7570_v32 }
 0x4b6   :  { %v7572_v16 = vpop.eup %7571  ;;  %7573 = vrcp.f32 %v1432_v46  ;;  %v1444_v6 = vand.u32 2147483648, %v1432_v46  ;;  %v1442_v13 = vand.u32 2147483647, %v1432_v46  ;;  %vm1438_vm2 = vweird.f32 %v1432_v46 }
 0x4b7   :  { %v1381_v43 = vmul.f32 %v7572_v16, %v1379_v2  ;;  %vm1386_vm12 = vweird.f32 %v7572_v16  ;;  %7575 = vpow2.f32 %v2378_v18 }
 0x4b8   :  { %vm1387_vm14 = vmor %vm1385_vm13, %vm1386_vm12  ;;  %v1445_v37 = vor.u32 1.1754944e-38, %v1444_v6  ;;  %vm1443_vm10 = vcmp.eq.f32.partialorder %v1442_v13, 8.507059e+37  ;;  %7577 = vpow2.f32 %v2380_v39  ;;  %v8786_v39 = vld [vmem:[%s10983_s3 + $0x18] sm:$0x7f] }
 0x4b9   :  { %v1382_v63 = vsub.f32 1.0, %v1381_v43 }
 0x4bb   :  { %v1383_v15 = vmul.f32 %v7572_v16, %v1382_v63 }
 0x4bc   :  { %v7574_v54 = vpop.eup %7573 }
 0x4bd   :  { %v1384_v11 = vadd.f32 %v7572_v16, %v1383_v15  ;;  %v1434_v31 = vmul.f32 %v7574_v54, %v1432_v46  ;;  %vm1439_vm15 = vweird.f32 %v7574_v54 }
 0x4be   :  { %vm1440_vm11 = vmor %vm1438_vm2, %vm1439_vm15 }
 0x4bf   :  { %v1435_v3 = vsub.f32 1.0, %v1434_v31  ;;  %v1388_v41 = vsel %vm1387_vm14, %v7572_v16, %v1384_v11 }
 0x4c0   :  { %v1393_v29 = vsel %vm1390_vm1, %v1392_v44, %v1388_v41 }
 0x4c1   :  { %v1436_v61 = vmul.f32 %v7574_v54, %v1435_v3  ;;  %v8697_v5 = vmul.f32 %v1393_v29, %v1375_v56  ;;  %v7576_v56 = vpop.eup %7575 }
 0x4c2   :  { %v7578_v48 = vpop.eup %7577  ;;  %v2382_v38 = vadd.f32 1.0, %v7576_v56 }
 0x4c3   :  { %v1437_v55 = vadd.f32 %v7574_v54, %v1436_v61  ;;  %v2383_v10 = vadd.f32 1.0, %v7578_v48 }
 0x4c4   :  { %7579 = vrcp.f32 %v2382_v38  ;;  %vm2389_vm12 = vweird.f32 %v2382_v38  ;;  %v2395_v25 = vand.u32 2147483648, %v2382_v38  ;;  %v2393_v41 = vand.u32 2147483647, %v2382_v38 }
 0x4c5   :  { %v1441_v4 = vsel %vm1440_vm11, %v7574_v54, %v1437_v55  ;;  %7581 = vrcp.f32 %v2383_v10  ;;  %v2410_v3 = vand.u32 2147483648, %v2383_v10  ;;  %vm2404_vm14 = vweird.f32 %v2383_v10 }
 0x4c6   :  { %v1446_v60 = vsel %vm1443_vm10, %v1445_v37, %v1441_v4  ;;  %v2408_v61 = vand.u32 2147483647, %v2383_v10  ;;  %v2396_v55 = vor.u32 1.1754944e-38, %v2395_v25  ;;  %vm2394_vm1 = vcmp.eq.f32.partialorder %v2393_v41, 8.507059e+37 }
 0x4c7   :  { %v8699_v21 = vmul.f32 %v1446_v60, %v1428_v53  ;;  %v2411_v29 = vor.u32 1.1754944e-38, %v2410_v3 }
 0x4c8   :  { %vm2409_vm2 = vcmp.eq.f32.partialorder %v2408_v61, 8.507059e+37 }
 0x4c9   :  { %11030 = vst [vmem:[#allocation10_spill] sm:$0xff] %v8699_v21  ;;  %v1449_v7 = vpack.c.bf16 %v8699_v21, %v8697_v5 }
 0x4ca   :  { %v7580_v52 = vpop.eup %7579 }
 0x4cb   :  { %7055 = vmatmul.msk.bf16.vlgmr.msrb.gmra.mxu0 %vm262_vm5, %v1449_v7  ;;  %v7582_v53 = vpop.eup %7581  ;;  %v2385_v17 = vmul.f32 %v7580_v52, %v2382_v38  ;;  %vm2390_vm10 = vweird.f32 %v7580_v52 }
 0x4cc   :  { %v2400_v20 = vmul.f32 %v7582_v53, %v2383_v10  ;;  %vm2405_vm11 = vweird.f32 %v7582_v53  ;;  %vm8750_vm13 = vmor %vm2389_vm12, %vm2390_vm10  ;;  %vm11037_vm10 = vcmask 1044484   ;;  %vm11039_vm12 = vcmask 1045509  }
 0x4cd   :  { %v2386_v32 = vsub.f32 1.0, %v2385_v17  ;;  %vm2406_vm15 = vmor %vm2404_vm14, %vm2405_vm11  ;;  %vm11041_vm14 = vcmask 1047559  }
 0x4ce   :  { %v2401_v46 = vsub.f32 1.0, %v2400_v20  ;;  %vm11038_vm11 = vmmov %vm11037_vm10 }
 0x4cf   :  { %v2387_v63 = vmul.f32 %v7580_v52, %v2386_v32 }
 0x4d0   :  { %v2402_v15 = vmul.f32 %v7582_v53, %v2401_v46 }
 0x4d1   :  { %v2388_v11 = vadd.f32 %v7580_v52, %v2387_v63 }
 0x4d2   :  { %v2403_v31 = vadd.f32 %v7582_v53, %v2402_v15 }
 0x4d3   :  { %v2392_v13 = vsel %vm8750_vm13, %v7580_v52, %v2388_v11  ;;  %vm11040_vm13 = vcmask 1046534  }
 0x4d4   :  { %v2407_v44 = vsel %vm2406_vm15, %v7582_v53, %v2403_v31  ;;  %v2397_v4 = vsel %vm2394_vm1, %v2396_v55, %v2392_v13  ;;  %vm11042_vm15 = vmmov %vm11039_vm12 }
 0x4d5   :  { %v2412_v60 = vsel %vm2409_vm2, %v2411_v29, %v2407_v44  ;;  %vm11043_vm1 = vmmov %vm11040_vm13 }
 0x4d6   :  { %vm11045_vm2 = vmmov %vm11041_vm14 }
 0x548   :  { %v8704_v1 = vpop.f32.mrf.mxu0 }
 0x549   :  { %v1718_v34 = vperm.slane %v8704_v1, 5  ;;  %v1697_v36 = vperm.slane %v8704_v1, 2  ;;  %v1683_v26 = vperm.slane %v8704_v1, 0  ;;  %v1725_v51 = vperm.slane %v8704_v1, 6 }
 0x54a   :  { %v1690_v14 = vperm.slane %v8704_v1, 1  ;;  %v1704_v62 = vperm.slane %v8704_v1, 3  ;;  %v1711_v9 = vperm.slane %v8704_v1, 4  ;;  %v1732_v24 = vperm.slane %v8704_v1, 7 }
 0x54b   :  { %1723 = vperm.xlu1 %7409, %v1718_v34   ;;  %1702 = vperm.xlu2 %7408, %v1697_v36   ;;  %v1501_v2 = vadd.f32 %v1500_v8, %v8704_v1 }
 0x54c   :  { %1688 = vperm.xlu0 %7407, %v1683_v26  }
 0x54d   :  { %v1505_v16 = vand.u32 2147483647, %v1501_v2 }
 0x54f   :  { %v1507_v54 = vsub.f32 0.0, %v1505_v16 }
 0x550   :  { %v8718_v49 = vpop.f32.mrf.mxu0 }
 0x551   :  { %v1753_v30 = vperm.slane %v8718_v49, 2  ;;  %v1781_v22 = vperm.slane %v8718_v49, 6  ;;  %v1739_v28 = vperm.slane %v8718_v49, 0  ;;  %v1767_v27 = vperm.slane %v8718_v49, 4 }
 0x552   :  { %v1788_v59 = vperm.slane %v8718_v49, 7  ;;  %v1746_v57 = vperm.slane %v8718_v49, 1  ;;  %v1760_v58 = vperm.slane %v8718_v49, 3  ;;  %v1774_v43 = vperm.slane %v8718_v49, 5 }
 0x553   :  { %7412 = vset.pattern.permute.xlu1 %v11031_v35  ;;  %1730 = vperm.xlu2 %7408, %v1725_v51   ;;  %v1509_v42 = vmul.f32 1.442695, %v1507_v54  ;;  %v8762_v37 = vadd.f32 %v1500_v8, %v8718_v49 }
 0x554   :  { %1695 = vperm.xlu0 %7407, %v1690_v14  }
 0x555   :  { %7583 = vpow2.f32 %v1509_v42  ;;  %v1504_v52 = vmax.f32 %v8762_v37, 0.0 }
 0x55b   :  { %1915 = vperm.xlu1 %7412, %v1697_v36   ;;  %7411 = vset.pattern.permute.xlu2 %v11031_v35  ;;  %v7584_v7 = vpop.eup %7583  ;;  %v2415_v36 = vmul.f32 %v2412_v60, %v8676_v12 }
 0x55c   :  { %1709 = vperm.xlu0 %7407, %v1704_v62   ;;  %v1513_v1 = vadd.f32 1.0, %v7584_v7 }
 0x55e   :  { %7585 = vlog2.f32 %v1513_v1 }
 0x563   :  { %1927 = vperm.xlu1 %7412, %v1711_v9   ;;  %1909 = vperm.xlu2 %7411, %v1690_v14  }
 0x564   :  { %1716 = vperm.xlu0 %7407, %v1711_v9   ;;  %v7586_v12 = vpop.eup %7585 }
 0x56b   :  { %7416 = vset.pattern.permute.xlu1 %v11032_v0  ;;  %7413 = vset.pattern.permute.xlu2 %v11032_v0 }
 0x56c   :  { %7410 = vset.pattern.permute.xlu0 %v11031_v35 }
 0x573   :  { %1737 = vperm.xlu2 %7413, %v1732_v24   ;;  %1758 = vperm.xlu1 %7416, %v1753_v30  }
 0x574   :  { %1903 = vperm.xlu0 %7410, %v1683_v26   ;;  %v1506_v26 = vand.u32 2147483647, %v8762_v37 }
 0x57b   :  { %7414 = vset.pattern.permute.xlu2 %v11031_v35  ;;  %1786 = vperm.xlu1 %7416, %v1781_v22  }
 0x57c   :  { %1921 = vperm.xlu0 %7410, %v1704_v62   ;;  %v1516_v62 = vmul.f32 0.6931472, %v7586_v12 }
 0x583   :  { %1933 = vperm.xlu2 %7414, %v1718_v34   ;;  %7418 = vset.pattern.permute.xlu1 %v11031_v35  ;;  %v2414_v34 = vmul.f32 %v2397_v4, %v8667_v47 }
 0x584   :  { %1939 = vperm.xlu0 %7410, %v1725_v51   ;;  %v1508_v51 = vsub.f32 0.0, %v1506_v26 }
 0x586   :  { %v1511_v14 = vmul.f32 1.442695, %v1508_v51 }
 0x588   :  { %7587 = vpow2.f32 %v1511_v14 }
 0x58b   :  { %7417 = vset.pattern.permute.xlu2 %v11032_v0  ;;  %2151 = vperm.xlu1 %7418, %v1739_v28  }
 0x58c   :  { %7415 = vset.pattern.permute.xlu0 %v11032_v0 }
 0x58e   :  { %v7588_v9 = vpop.eup %7587 }
 0x593   :  { %1772 = vperm.xlu2 %7417, %v1767_v27   ;;  %7421 = vset.pattern.permute.xlu1 %v11032_v0 }
 0x594   :  { %1744 = vperm.xlu0 %7415, %v1739_v28  }
 0x59b   :  { %7419 = vset.pattern.permute.xlu2 %v11031_v35  ;;  %1793 = vperm.xlu1 %7421, %v1788_v59  }
 0x59c   :  { %1751 = vperm.xlu0 %7415, %v1746_v57  }
 0x5a3   :  { %2157 = vperm.xlu2 %7419, %v1746_v57   ;;  %7422 = vset.pattern.permute.xlu1 %v11031_v35 }
 0x5a4   :  { %1765 = vperm.xlu0 %7415, %v1760_v58  }
 0x5a5   :  { %v8810_v42 = vpop.permute.xlu2 %1702 }
 0x5ab   :  { %2169 = vperm.xlu2 %7419, %v1760_v58   ;;  %2181 = vperm.xlu1 %7422, %v1774_v43  }
 0x5ac   :  { %1779 = vperm.xlu0 %7415, %v1774_v43  }
 0x5b3   :  { %2187 = vperm.xlu2 %7419, %v1781_v22   ;;  %1945 = vperm.xlu1 %7422, %v1732_v24   ;;  %v1503_v24 = vmax.f32 %v1501_v2, 0.0  ;;  %v1514_v22 = vadd.f32 1.0, %v7588_v9 }
 0x5b4   :  { %7420 = vset.pattern.permute.xlu0 %v11031_v35 }
 0x5b5   :  { %7589 = vlog2.f32 %v1514_v22 }
 0x5bb   :  { %2418 = vrot.lane.b32.xlu2 %v2414_v34, %s8060_s11  ;;  %2420 = vrot.lane.b32.xlu1 %v2415_v36, %s8060_s11 }
 0x5bc   :  { %2163 = vperm.xlu0 %7420, %v1753_v30   ;;  %7424 = vset.pattern.permute.xlu2 %v11032_v0  ;;  %v8777_v30 = vadd.f32 %v1516_v62, %v1503_v24 }
 0x5bd   :  { %7423 = vset.pattern.permute.xlu1 %v11032_v0  ;;  %v8824_v36 = vpop.permute.xlu1 %1723 }
 0x5be   :  { %v1689_v47 = vpop.permute.xlu0 %1688  ;;  %v1537_v45 = vperm.slane %v8777_v30, 0  ;;  %v1523_v18 = vrot.slane %v8777_v30, 1  ;;  %v1524_v28 = vrot.slane %v8777_v30, 2  ;;  %v8791_v49 = vmul.f32 %v8777_v30, %v8697_v5 }
 0x5bf   :  { %v1525_v10 = vrot.slane %v8777_v30, 3  ;;  %v1526_v32 = vrot.slane %v8777_v30, 4  ;;  %v1527_v11 = vrot.slane %v8777_v30, 5  ;;  %v1528_v31 = vrot.slane %v8777_v30, 6 }
 0x5c0   :  { %v1538_v56 = vperm.slane %v1523_v18, 0  ;;  %v1570_v48 = vmul.f32 %v8786_v39, %v1537_v45  ;;  %v1539_v38 = vperm.slane %v1524_v28, 0  ;;  %v1670_v8 = vrot.slane %v8791_v49, 2 }
 0x5c1   :  { %v1674_v17 = vrot.slane %v8791_v49, 6  ;;  %v1673_v16 = vrot.slane %v8791_v49, 5  ;;  %v1540_v63 = vperm.slane %v1525_v10, 0  ;;  %v1669_v54 = vrot.slane %v8791_v49, 1 }
 0x5c2   :  { %v1571_v58 = vmul.f32 %v8664_v50, %v1538_v56  ;;  %v1603_v20 = vmul.f32 1.442695, %v1570_v48  ;;  %v1572_v2 = vmul.f32 %v8786_v39, %v1538_v56  ;;  %v1573_v43 = vmul.f32 %v8664_v50, %v1539_v38 }
 0x5c3   :  { %v1574_v15 = vmul.f32 %v8786_v39, %v1539_v38  ;;  %v8812_v25 = vperm.slane %v1670_v8, 0  ;;  %v1795_v3 = vperm.slane %v8791_v49, 0  ;;  %v8815_v41 = vperm.slane %v1674_v17, 0 }
 0x5c4   :  { %2175 = vperm.xlu0 %7420, %v1767_v27   ;;  %v1569_v27 = vmul.f32 %v8664_v50, %v1537_v45  ;;  %v1605_v6 = vmul.f32 1.442695, %v1571_v58  ;;  %v1607_v61 = vmul.f32 1.442695, %v1572_v2  ;;  %v1541_v13 = vperm.slane %v1526_v32, 0 }
 0x5c5   :  { %v8819_v55 = vperm.slane %v1673_v16, 0  ;;  %v1609_v29 = vmul.f32 1.442695, %v1573_v43  ;;  %v1575_v37 = vmul.f32 %v8664_v50, %v1540_v63  ;;  %v1611_v4 = vmul.f32 1.442695, %v1574_v15 }
 0x5c6   :  { %v8779_v40 = vpop.permute.xlu0 %1695  ;;  %v1601_v53 = vmul.f32 1.442695, %v1569_v27  ;;  %v1796_v60 = vperm.slane %v1669_v54, 0  ;;  %v1675_v7 = vrot.slane %v8791_v49, 7  ;;  %v1671_v34 = vrot.slane %v8791_v49, 3 }
 0x5c7   :  { %v1576_v26 = vmul.f32 %v8786_v39, %v1540_v63  ;;  %v1542_v1 = vperm.slane %v1527_v11, 0  ;;  %v1672_v51 = vrot.slane %v8791_v49, 4  ;;  %v1827_v14 = vmul.f32 %v1795_v3, %v1689_v47 }
 0x5c8   :  { %7591 = vpow2.f32 %v1601_v53  ;;  %v1577_v62 = vmul.f32 %v8664_v50, %v1541_v13  ;;  %v1578_v9 = vmul.f32 %v8786_v39, %v1541_v13  ;;  %v1613_v22 = vmul.f32 1.442695, %v1575_v37 }
 0x5c9   :  { %7593 = vpow2.f32 %v1603_v20  ;;  %v1529_v18 = vrot.slane %v8777_v30, 7  ;;  %v8837_v49 = vperm.slane %v1675_v7, 0  ;;  %v8839_v47 = vperm.slane %v1671_v34, 0  ;;  %v8845_v30 = vpop.permute.xlu2 %1730 }
 0x5ca   :  { %7595 = vpow2.f32 %v1605_v6  ;;  %v1543_v27 = vperm.slane %v1528_v31, 0  ;;  %v1615_v56 = vmul.f32 1.442695, %v1576_v26  ;;  %v1579_v48 = vmul.f32 %v8664_v50, %v1542_v1 }
 0x5cb   :  { %7597 = vpow2.f32 %v1607_v61  ;;  %v1580_v38 = vmul.f32 %v8786_v39, %v1542_v1  ;;  %v8843_v10 = vperm.slane %v1672_v51, 0  ;;  %v1617_v8 = vmul.f32 1.442695, %v1577_v62 }
 0x5cc   :  { %2193 = vperm.xlu0 %7420, %v1788_v59   ;;  %v7590_v59 = vpop.eup %7589  ;;  %7599 = vpow2.f32 %v1609_v29  ;;  %v1619_v53 = vmul.f32 1.442695, %v1578_v9  ;;  %v1544_v2 = vperm.slane %v1529_v18, 0  ;;  %v1581_v43 = vmul.f32 %v8664_v50, %v1543_v27 }
 0x5cd   :  { %v1518_v46 = vmul.f32 0.6931472, %v7590_v59  ;;  %7601 = vpow2.f32 %v1611_v4  ;;  %v8852_v54 = vpop.permute.xlu1 %1915  ;;  %v1621_v11 = vmul.f32 1.442695, %v1579_v48  ;;  %v1582_v3 = vmul.f32 %v8786_v39, %v1543_v27 }
 0x5ce   :  { %v8796_v57 = vpop.permute.xlu0 %1709  ;;  %v7592_v24 = vpop.eup %7591  ;;  %7603 = vpow2.f32 %v1613_v22  ;;  %v1583_v4 = vmul.f32 %v8664_v50, %v1544_v2  ;;  %v1625_v26 = vmul.f32 1.442695, %v1581_v43  ;;  %v1584_v62 = vmul.f32 %v8786_v39, %v1544_v2 }
 0x5cf   :  { %v8817_v44 = vadd.f32 %v1518_v46, %v1504_v52  ;;  %v7594_v28 = vpop.eup %7593  ;;  %v1843_v59 = vmul.f32 0.0, %v7592_v24  ;;  %v1846_v52 = vrot.slane %v1827_v14, 1  ;;  %v1828_v46 = vmul.f32 %v1796_v60, %v8779_v40 }
 0x5d0   :  { %v7596_v58 = vpop.eup %7595  ;;  %v1844_v17 = vmul.f32 0.0, %v7594_v28  ;;  %7605 = vpow2.f32 %v1615_v56  ;;  %v1623_v40 = vmul.f32 1.442695, %v1580_v38  ;;  %v1627_v9 = vmul.f32 1.442695, %v1582_v3 }
 0x5d1   :  { %v8834_v45 = vmul.f32 %v8817_v44, %v8699_v21  ;;  %v7598_v32 = vpop.eup %7597  ;;  %v1545_v63 = vperm.slane %v8817_v44, 0  ;;  %v8856_v61 = vadd.f32 %v1846_v52, %v1843_v59  ;;  %7607 = vpow2.f32 %v1617_v8  ;;  %v1910_v27 = vpop.permute.xlu2 %1909 }
 0x5d2   :  { %v7600_v15 = vpop.eup %7599  ;;  %v8858_v13 = vadd.f32 %v1846_v52, %v1844_v17  ;;  %7609 = vpow2.f32 %v1619_v53  ;;  %v1530_v60 = vrot.slane %v8817_v44, 1  ;;  %v1853_v7 = vrot.slane %v1828_v46, 1 }
 0x5d3   :  { %v1677_v20 = vrot.slane %v8834_v45, 2  ;;  %v1679_v16 = vrot.slane %v8834_v45, 4  ;;  %v1681_v31 = vrot.slane %v8834_v45, 6  ;;  %v7602_v6 = vpop.eup %7601  ;;  %v1585_v1 = vmul.f32 %v8664_v50, %v1545_v63 }
 0x5d4   :  { %v8869_v51 = vpop.eup %7603  ;;  %7611 = vpow2.f32 %v1621_v11  ;;  %v1850_v24 = vmul.f32 %v7596_v58, %v8856_v61  ;;  %v1851_v22 = vmul.f32 %v7598_v32, %v8858_v13  ;;  %v1531_v18 = vrot.slane %v8817_v44, 2 }
 0x5d5   :  { %v8862_v37 = vperm.slane %v1677_v20, 0  ;;  %v8866_v34 = vperm.slane %v1679_v16, 0  ;;  %v8871_v14 = vperm.slane %v1681_v31, 0  ;;  %7613 = vpow2.f32 %v1623_v40  ;;  %v8892_v31 = vpop.permute.xlu1 %1927 }
 0x5d6   :  { %v8828_v12 = vpop.permute.xlu0 %1716  ;;  %v8877_v28 = vpop.eup %7605  ;;  %v1629_v56 = vmul.f32 1.442695, %v1583_v4  ;;  %v1586_v48 = vmul.f32 %v8786_v39, %v1545_v63  ;;  %v1546_v59 = vperm.slane %v1530_v60, 0  ;;  %v1855_v8 = vadd.f32 %v1853_v7, %v1850_v24 }
 0x5d7   :  { %v8881_v52 = vpop.eup %7607  ;;  %v1856_v53 = vadd.f32 %v1853_v7, %v1851_v22  ;;  %7615 = vpow2.f32 %v1625_v26  ;;  %v1633_v58 = vmul.f32 1.442695, %v1585_v1  ;;  %v1631_v20 = vmul.f32 1.442695, %v1584_v62 }
 0x5d8   :  { %v8883_v17 = vpop.eup %7609  ;;  %7617 = vpow2.f32 %v1627_v9  ;;  %v1682_v2 = vrot.slane %v8834_v45, 7  ;;  %v1676_v32 = vrot.slane %v8834_v45, 1  ;;  %v1829_v46 = vmul.f32 %v8812_v25, %v8810_v42 }
 0x5d9   :  { %v1956_v16 = vrot.slane %v1910_v27, 1  ;;  %v1547_v43 = vperm.slane %v1531_v18, 0  ;;  %v1532_v63 = vrot.slane %v8817_v44, 3  ;;  %7619 = vpow2.f32 %v1629_v56 }
 0x5da   :  { %v8890_v11 = vpop.eup %7611  ;;  %v1635_v3 = vmul.f32 1.442695, %v1586_v48  ;;  %v1587_v40 = vmul.f32 %v8664_v50, %v1546_v59  ;;  %v1533_v4 = vrot.slane %v8817_v44, 4  ;;  %v1857_v7 = vmul.f32 %v7600_v15, %v1855_v8 }
 0x5db   :  { %v8896_v60 = vpop.eup %7613  ;;  %v1858_v26 = vmul.f32 %v7602_v6, %v1856_v53  ;;  %v1973_v1 = vmul.f32 %v1956_v16, %v1855_v8  ;;  %v1974_v42 = vmul.f32 %v1956_v16, %v1856_v53  ;;  %7621 = vpow2.f32 %v1631_v20 }
 0x5dc   :  { %v8900_v62 = vperm.slane %v1682_v2, 0  ;;  %v1588_v9 = vmul.f32 %v8786_v39, %v1546_v59  ;;  %v8903_v24 = vperm.slane %v1676_v32, 0  ;;  %v1860_v18 = vrot.slane %v1829_v46, 1 }
 0x5dd   :  { %v8905_v22 = vpop.eup %7615  ;;  %v1589_v27 = vmul.f32 %v8664_v50, %v1547_v43  ;;  %v1590_v56 = vmul.f32 %v8786_v39, %v1547_v43  ;;  %v1548_v15 = vperm.slane %v1532_v63, 0  ;;  %v1957_v48 = vrot.slane %v8852_v54, 1 }
 0x5de   :  { %v8909_v6 = vpop.eup %7617  ;;  %7623 = vpow2.f32 %v1633_v58  ;;  %v1637_v8 = vmul.f32 1.442695, %v1587_v40  ;;  %v1549_v53 = vperm.slane %v1533_v4, 0  ;;  %v2006_v20 = vrot.slane %v1973_v1, 7 }
 0x5df   :  { %v2007_v2 = vrot.slane %v1974_v42, 7  ;;  %v1862_v59 = vadd.f32 %v1860_v18, %v1857_v7  ;;  %v1863_v32 = vadd.f32 %v1860_v18, %v1858_v26  ;;  %v8912_v16 = vpop.eup %7619  ;;  %v1830_v46 = vmul.f32 %v8839_v47, %v8796_v57  ;;  %v8928_v18 = vpop.permute.xlu2 %1737 }
 0x5e0   :  { %7625 = vpow2.f32 %v1635_v3  ;;  %v1639_v38 = vmul.f32 1.442695, %v1588_v9  ;;  %v1534_v43 = vrot.slane %v8817_v44, 5  ;;  %v1641_v63 = vmul.f32 1.442695, %v1589_v27 }
 0x5e1   :  { %v1643_v0 = vmul.f32 1.442695, %v1590_v56  ;;  %v1591_v54 = vmul.f32 %v8664_v50, %v1548_v15  ;;  %v1592_v58 = vmul.f32 %v8786_v39, %v1548_v15  ;;  %v8919_v40 = vpop.eup %7621  ;;  %7627 = vpow2.f32 %v1637_v8 }
 0x5e2   :  { %v1593_v7 = vmul.f32 %v8664_v50, %v1549_v53  ;;  %v1594_v26 = vmul.f32 %v8786_v39, %v1549_v53  ;;  %v1678_v57 = vrot.slane %v8834_v45, 3  ;;  %v2008_v47 = vsel %vm783_vm3, %v2006_v20, %v2007_v2 }
 0x5e3   :  { %v1975_v3 = vmul.f32 %v1957_v48, %v1862_v59  ;;  %v1976_v1 = vmul.f32 %v1957_v48, %v1863_v32  ;;  %v1535_v42 = vrot.slane %v8817_v44, 6  ;;  %v1864_v27 = vmul.f32 %v8869_v51, %v1862_v59 }
 0x5e4   :  { %v7624_v9 = vpop.eup %7623  ;;  %v1865_v56 = vmul.f32 %v8877_v28, %v1863_v32  ;;  %v1867_v15 = vrot.slane %v1830_v46, 1  ;;  %v1550_v8 = vperm.slane %v1534_v43, 0  ;;  %7629 = vpow2.f32 %v1639_v38 }
 0x5e5   :  { %v8921_v4 = vpop.permute.xlu1 %1758  ;;  %v1645_v53 = vmul.f32 1.442695, %v1591_v54  ;;  %v1647_v33 = vmul.f32 1.442695, %v1592_v58  ;;  %v1536_v20 = vrot.slane %v8817_v44, 7  ;;  %v2042_v48 = vsel %vm262_vm5, %v2008_v47, 0.0 }
 0x5e6   :  { %v8860_v29 = vpop.permute.xlu0 %1903  ;;  %v7626_v2 = vpop.eup %7625  ;;  %v1831_v19 = vmul.f32 %v8843_v10, %v8828_v12  ;;  %7631 = vpow2.f32 %v1641_v63  ;;  %v1649_v23 = vmul.f32 1.442695, %v1593_v7  ;;  %v2009_v51 = vrot.slane %v1975_v3, 7 }
 0x5e7   :  { %v2010_v59 = vrot.slane %v1976_v1, 7  ;;  %v1651_v28 = vmul.f32 1.442695, %v1594_v26  ;;  %v1551_v32 = vperm.slane %v1535_v42, 0  ;;  %v8938_v46 = vpop.eup %7627  ;;  %v8940_v43 = vadd.f32 %v1867_v15, %v1864_v27 }
 0x5e8   :  { %v8942_v38 = vadd.f32 %v1867_v15, %v1865_v56  ;;  %7633 = vpow2.f32 %v1643_v0  ;;  %v1595_v44 = vmul.f32 %v8664_v50, %v1550_v8  ;;  %v2043_v54 = vrot.slane %v2042_v48, 4 }
 0x5e9   :  { %7635 = vpow2.f32 %v1645_v53  ;;  %v1596_v58 = vmul.f32 %v8786_v39, %v1550_v8  ;;  %v1552_v12 = vperm.slane %v1536_v20, 0  ;;  %v1874_v10 = vrot.slane %v1831_v19, 1 }
 0x5ea   :  { %7637 = vpow2.f32 %v1647_v33  ;;  %v8946_v63 = vperm.slane %v1678_v57, 0  ;;  %v8949_v26 = vpop.eup %7629  ;;  %v2011_v47 = vsel %vm783_vm3, %v2009_v51, %v2010_v59  ;;  %v2091_v3 = vmul.f32 0.0, %v7624_v9  ;;  %v8959_v33 = vpop.permute.xlu2 %1933 }
 0x5eb   :  { %7639 = vpow2.f32 %v1649_v23  ;;  %v1597_v0 = vmul.f32 %v8664_v50, %v1551_v32  ;;  %v1871_v42 = vmul.f32 %v8881_v52, %v8940_v43  ;;  %v1872_v19 = vmul.f32 %v8883_v17, %v8942_v38 }
 0x5ec   :  { %v8953_v1 = vpop.eup %7631  ;;  %v1598_v27 = vmul.f32 %v8786_v39, %v1551_v32  ;;  %v1653_v56 = vmul.f32 1.442695, %v1595_v44  ;;  %v2044_v15 = vadd.f32 %v2043_v54, %v2042_v48  ;;  %v1655_v23 = vmul.f32 1.442695, %v1596_v58 }
 0x5ed   :  { %v8961_v57 = vpop.permute.xlu1 %1786  ;;  %v1599_v8 = vmul.f32 %v8664_v50, %v1552_v12  ;;  %v1600_v53 = vmul.f32 %v8786_v39, %v1552_v12  ;;  %v2049_v52 = vsel %vm262_vm5, %v2011_v47, 0.0  ;;  %v1876_v51 = vadd.f32 %v1874_v10, %v1871_v42 }
 0x5ee   :  { %v8898_v25 = vpop.permute.xlu0 %1921  ;;  %v8966_v20 = vpop.eup %7633  ;;  %v1877_v17 = vadd.f32 %v1874_v10, %v1872_v19  ;;  %v11035_v59 = vperm.slane %v8834_v45, 0  ;;  %v1955_v32 = vrot.slane %v8860_v29, 1  ;;  %v2092_v48 = vmul.f32 0.0, %v7626_v2 }
 0x5ef   :  { %v8971_v21 = vpop.eup %7635  ;;  %7641 = vpow2.f32 %v1651_v28  ;;  %v1657_v44 = vmul.f32 1.442695, %v1597_v0  ;;  %v1832_v50 = vmul.f32 %v8819_v55, %v8824_v36  ;;  %v1659_v58 = vmul.f32 1.442695, %v1598_v27 }
 0x5f0   :  { %v8974_v54 = vpop.eup %7637  ;;  %7643 = vpow2.f32 %v1653_v56  ;;  %v2045_v10 = vrot.slane %v2044_v15, 2  ;;  %v2050_v47 = vrot.slane %v2049_v52, 4  ;;  %v1959_v42 = vrot.slane %v8892_v31, 1 }
 0x5f1   :  { %v8978_v12 = vpop.eup %7639  ;;  %7645 = vpow2.f32 %v1655_v23  ;;  %v1878_v29 = vmul.f32 %v8890_v11, %v1876_v51  ;;  %v1879_v2 = vmul.f32 %v8896_v60, %v1877_v17  ;;  %v1661_v28 = vmul.f32 1.442695, %v1599_v8 }
 0x5f2   :  { %v1663_v0 = vmul.f32 1.442695, %v1600_v53  ;;  %v1979_v19 = vmul.f32 %v1959_v42, %v1876_v51  ;;  %v1971_v55 = vmul.f32 %v1955_v32, %v8856_v61  ;;  %7647 = vpow2.f32 %v1657_v44  ;;  %v1773_v27 = vpop.permute.xlu2 %1772 }
 0x5f3   :  { %v1881_v36 = vrot.slane %v1832_v50, 1  ;;  %v8995_v60 = vmul.f32 %v8815_v41, %v8845_v30  ;;  %v2046_v23 = vadd.f32 %v2045_v10, %v2044_v15  ;;  %v2051_v8 = vadd.f32 %v2050_v47, %v2049_v52 }
 0x5f4   :  { %7649 = vpow2.f32 %v1659_v58  ;;  %v2003_v50 = vrot.slane %v1971_v55, 7  ;;  %v1837_v41 = vmul.f32 %v8862_v37, %v8921_v4  ;;  %v11036_v10 = vrot.slane %v8834_v45, 5 }
 0x5f5   :  { %v8991_v11 = vpop.eup %7641  ;;  %v1884_v51 = vadd.f32 %v1881_v36, %v1879_v2  ;;  %7651 = vpow2.f32 %v1661_v28  ;;  %v1888_v37 = vrot.slane %v8995_v60, 1 }
 0x5f6   :  { %v8932_v35 = vpop.permute.xlu0 %1939  ;;  %v8997_v53 = vpop.eup %7643  ;;  %v1808_v47 = vperm.slane %v11036_v10, 0  ;;  %7653 = vpow2.f32 %v1663_v0 }
 0x5f7   :  { %v1886_v60 = vmul.f32 %v8909_v6, %v1884_v51 }
 0x5fd   :  { %v8985_v56 = vpop.permute.xlu1 %2151 }
 0x606   :  { %v1745_v9 = vpop.permute.xlu0 %1744 }
 0x607   :  { %v1835_v7 = vmul.f32 %v11035_v59, %v1745_v9  ;;  %v1980_v9 = vmul.f32 %v1959_v42, %v1877_v17  ;;  %v1960_v17 = vrot.slane %v8959_v33, 1  ;;  %v2052_v33 = vrot.slane %v2051_v8, 2 }
 0x609   :  { %v2094_v39 = vrot.slane %v1835_v7, 1  ;;  %v1972_v7 = vmul.f32 %v1955_v32, %v8858_v13  ;;  %v1883_v13 = vadd.f32 %v1881_v36, %v1878_v29  ;;  %v9001_v32 = vpop.eup %7645  ;;  %v2016_v44 = vrot.slane %v1980_v9, 7 }
 0x60a   :  { %v9009_v58 = vpop.eup %7647  ;;  %v9026_v36 = vadd.f32 %v2052_v33, %v2051_v8 }
 0x60b   :  { %v8987_v59 = vadd.f32 %v2094_v39, %v2091_v3  ;;  %v8989_v31 = vadd.f32 %v2094_v39, %v2092_v48  ;;  %v2015_v48 = vrot.slane %v1979_v19, 7  ;;  %v2004_v30 = vrot.slane %v1972_v7, 7 }
 0x60c   :  { %v1981_v2 = vmul.f32 %v1960_v17, %v1883_v13  ;;  %v1982_v19 = vmul.f32 %v1960_v17, %v1884_v51  ;;  %v1885_v7 = vmul.f32 %v8905_v22, %v1883_v13  ;;  %v1839_v13 = vmul.f32 %v8866_v34, %v1773_v27 }
 0x60d   :  { %v2098_v15 = vmul.f32 %v8938_v46, %v8987_v59  ;;  %v2099_v52 = vmul.f32 %v8949_v26, %v8989_v31  ;;  %v9018_v46 = vpop.eup %7649  ;;  %v2047_v26 = vrot.slane %v2046_v23, 1  ;;  %v2017_v29 = vsel %vm783_vm3, %v2015_v48, %v2016_v44  ;;  %v9022_v55 = vpop.permute.xlu1 %1793 }
 0x60e   :  { %v1752_v61 = vpop.permute.xlu0 %1751  ;;  %v2005_v9 = vsel %vm783_vm3, %v2003_v50, %v2004_v30  ;;  %v2063_v17 = vsel %vm262_vm5, %v2017_v29, 0.0  ;;  %v2019_v8 = vrot.slane %v1982_v19, 7  ;;  %v2054_v51 = vrot.slane %v9026_v36, 1 }
 0x60f   :  { %v1836_v3 = vmul.f32 %v8903_v24, %v1752_v61  ;;  %v9013_v24 = vmul.f32 %v8837_v49, %v8928_v18  ;;  %v2108_v49 = vrot.slane %v1837_v41, 1  ;;  %v2158_v18 = vpop.permute.xlu2 %2157  ;;  %v2035_v50 = vsel %vm262_vm5, %v2005_v9, 0.0 }
 0x610   :  { %v9043_v6 = vadd.f32 %v2047_v26, %v2046_v23  ;;  %v2064_v30 = vrot.slane %v2063_v17, 4  ;;  %v2204_v10 = vrot.slane %v2158_v18, 1  ;;  %v1891_v27 = vadd.f32 %v1888_v37, %v1886_v60 }
 0x611   :  { %v2101_v39 = vrot.slane %v1836_v3, 1  ;;  %v1895_v0 = vrot.slane %v9013_v24, 1  ;;  %v1958_v3 = vrot.slane %v8898_v25, 1 }
 0x613   :  { %v2103_v4 = vadd.f32 %v2101_v39, %v2098_v15  ;;  %v2104_v42 = vadd.f32 %v2101_v39, %v2099_v52  ;;  %v1890_v15 = vadd.f32 %v1888_v37, %v1885_v7  ;;  %v2036_v39 = vrot.slane %v2035_v50, 4 }
 0x614   :  { %v1977_v33 = vmul.f32 %v1958_v3, %v8940_v43  ;;  %v1978_v34 = vmul.f32 %v1958_v3, %v8942_v38  ;;  %v2203_v43 = vrot.slane %v8985_v56, 1 }
 0x615   :  { %v2105_v45 = vmul.f32 %v8953_v1, %v2103_v4  ;;  %v2106_v28 = vmul.f32 %v8966_v20, %v2104_v42  ;;  %v9036_v1 = vpop.eup %7651  ;;  %v2018_v20 = vrot.slane %v1981_v2, 7  ;;  %v2221_v2 = vmul.f32 %v2204_v10, %v2103_v4 }
 0x616   :  { %v1766_v61 = vpop.permute.xlu0 %1765  ;;  %v9041_v22 = vpop.eup %7653  ;;  %v2222_v19 = vmul.f32 %v2204_v10, %v2104_v42  ;;  %v2037_v7 = vadd.f32 %v2036_v39, %v2035_v50  ;;  %v2013_v4 = vrot.slane %v1978_v34, 7  ;;  %v2219_v42 = vmul.f32 %v2203_v43, %v8987_v59 }
 0x617   :  { %v1838_v48 = vmul.f32 %v8946_v63, %v1766_v61  ;;  %v9034_v44 = vadd.f32 %v2108_v49, %v2105_v45  ;;  %v9039_v41 = vadd.f32 %v2108_v49, %v2106_v28  ;;  %v2020_v23 = vsel %vm783_vm3, %v2018_v20, %v2019_v8  ;;  %v2170_v38 = vpop.permute.xlu2 %2169 }
 0x618   :  { %v9055_v45 = vadd.f32 %v2064_v30, %v2063_v17  ;;  %v2012_v61 = vrot.slane %v1977_v33, 7  ;;  %v2254_v3 = vrot.slane %v2221_v2, 7  ;;  %v1893_v20 = vmul.f32 %v8919_v40, %v1891_v27 }
 0x619   :  { %v2112_v25 = vmul.f32 %v8971_v21, %v9034_v44  ;;  %v2115_v63 = vrot.slane %v1838_v48, 1  ;;  %v2113_v52 = vmul.f32 %v8974_v54, %v9039_v41  ;;  %v2122_v21 = vrot.slane %v1839_v13, 1 }
 0x61a   :  { %v1892_v54 = vmul.f32 %v8912_v16, %v1890_v15  ;;  %v2255_v16 = vrot.slane %v2222_v19, 7  ;;  %v2070_v48 = vsel %vm262_vm5, %v2020_v23, 0.0  ;;  %v2038_v8 = vrot.slane %v2037_v7, 2 }
 0x61b   :  { %v2117_v29 = vadd.f32 %v2115_v63, %v2112_v25  ;;  %v2118_v26 = vadd.f32 %v2115_v63, %v2113_v52  ;;  %v2206_v50 = vrot.slane %v2170_v38, 1  ;;  %v2014_v25 = vsel %vm783_vm3, %v2012_v61, %v2013_v4 }
 0x61c   :  { %v2251_v63 = vrot.slane %v2219_v42, 7  ;;  %v2256_v52 = vsel %vm783_vm3, %v2254_v3, %v2255_v16  ;;  %v1898_v10 = vadd.f32 %v1895_v0, %v1893_v20  ;;  %v2039_v23 = vadd.f32 %v2038_v8, %v2037_v7 }
 0x61d   :  { %v2119_v9 = vmul.f32 %v8978_v12, %v2117_v29  ;;  %v2182_v49 = vpop.permute.xlu1 %2181  ;;  %v2120_v18 = vmul.f32 %v8991_v11, %v2118_v26  ;;  %v2220_v12 = vmul.f32 %v2203_v43, %v8989_v31  ;;  %v1961_v31 = vrot.slane %v8932_v35, 1 }
 0x61e   :  { %v1780_v28 = vpop.permute.xlu0 %1779  ;;  %v2225_v39 = vmul.f32 %v2206_v50, %v2117_v29  ;;  %v2226_v33 = vmul.f32 %v2206_v50, %v2118_v26  ;;  %v2056_v34 = vsel %vm262_vm5, %v2014_v25, 0.0  ;;  %v2290_v26 = vsel %vm262_vm5, %v2256_v52, 0.0 }
 0x61f   :  { %v1840_v37 = vmul.f32 %v1808_v47, %v1780_v28  ;;  %v9060_v60 = vadd.f32 %v2122_v21, %v2119_v9  ;;  %v9064_v17 = vadd.f32 %v2122_v21, %v2120_v18  ;;  %v1841_v47 = vmul.f32 %v8871_v14, %v8961_v57 }
 0x620   :  { %v1897_v14 = vadd.f32 %v1895_v0, %v1892_v54  ;;  %v1983_v21 = vmul.f32 %v1961_v31, %v1890_v15  ;;  %v1984_v19 = vmul.f32 %v1961_v31, %v1891_v27  ;;  %v2208_v9 = vrot.slane %v2182_v49, 1  ;;  %v2188_v54 = vpop.permute.xlu2 %2187 }
 0x621   :  { %v2126_v56 = vmul.f32 %v8997_v53, %v9060_v60  ;;  %v2129_v11 = vrot.slane %v1840_v37, 1  ;;  %v2127_v59 = vmul.f32 %v9001_v32, %v9064_v17  ;;  %v2252_v53 = vrot.slane %v2220_v12, 7 }
 0x622   :  { %v2136_v57 = vrot.slane %v1841_v47, 1  ;;  %v2260_v43 = vrot.slane %v2225_v39, 7  ;;  %v2261_v18 = vrot.slane %v2226_v33, 7  ;;  %v2066_v15 = vrot.slane %v9055_v45, 2 }
 0x623   :  { %v2131_v13 = vadd.f32 %v2129_v11, %v2126_v56  ;;  %v2132_v30 = vadd.f32 %v2129_v11, %v2127_v59  ;;  %v2253_v29 = vsel %vm783_vm3, %v2251_v63, %v2252_v53  ;;  %v2071_v61 = vrot.slane %v2070_v48, 4 }
 0x624   :  { %v2040_v27 = vrot.slane %v2039_v23, 1  ;;  %v2057_v38 = vrot.slane %v2056_v34, 4  ;;  %v2021_v37 = vrot.slane %v1983_v21, 7  ;;  %v2022_v4 = vrot.slane %v1984_v19, 7 }
 0x625   :  { %v1946_v40 = vpop.permute.xlu1 %1945  ;;  %v2133_v32 = vmul.f32 %v9009_v58, %v2131_v13  ;;  %v2134_v35 = vmul.f32 %v9018_v46, %v2132_v30  ;;  %v2229_v0 = vmul.f32 %v2208_v9, %v2131_v13  ;;  %v2230_v7 = vmul.f32 %v2208_v9, %v2132_v30 }
 0x626   :  { %v1962_v2 = vrot.slane %v1946_v40, 1  ;;  %v2283_v49 = vsel %vm262_vm5, %v2253_v29, 0.0  ;;  %v2209_v42 = vrot.slane %v2188_v54, 1  ;;  %v2291_v12 = vrot.slane %v2290_v26, 4 }
 0x627   :  { %v9086_v46 = vadd.f32 %v2136_v57, %v2133_v32  ;;  %v9088_v24 = vadd.f32 %v2136_v57, %v2134_v35  ;;  %v2262_v3 = vsel %vm783_vm3, %v2260_v43, %v2261_v18  ;;  %v2266_v20 = vrot.slane %v2229_v0, 7 }
 0x628   :  { %v1985_v58 = vmul.f32 %v1962_v2, %v1897_v14  ;;  %v1986_v28 = vmul.f32 %v1962_v2, %v1898_v10  ;;  %v2267_v59 = vrot.slane %v2230_v7, 7  ;;  %v9098_v31 = vadd.f32 %v2054_v51, %v9026_v36  ;;  %v7346_v51 = vld [vmem:[%s10985_s5 + $0x38] sm:$0xff] }
 0x629   :  { %v2231_v11 = vmul.f32 %v2209_v42, %v9086_v46  ;;  %v2232_v47 = vmul.f32 %v2209_v42, %v9088_v24  ;;  %v9100_v50 = vadd.f32 %v2071_v61, %v2070_v48  ;;  %v2058_v13 = vadd.f32 %v2057_v38, %v2056_v34  ;;  %2467 = vmatpush.bf16.msrb.mxu3 %v7346_v51 }
 0x62a   :  { %v2024_v16 = vrot.slane %v1985_v58, 7  ;;  %v2025_v56 = vrot.slane %v1986_v28, 7  ;;  %v9103_v63 = vadd.f32 %v2066_v15, %v9055_v45  ;;  %v2041_v53 = vadd.f32 %v2040_v27, %v2039_v23 }
 0x62b   :  { %v2023_v30 = vsel %vm783_vm3, %v2021_v37, %v2022_v4  ;;  %v2284_v52 = vrot.slane %v2283_v49, 4  ;;  %v2304_v39 = vsel %vm262_vm5, %v2262_v3, 0.0  ;;  %v2292_v48 = vadd.f32 %v2291_v12, %v2290_v26 }
 0x62c   :  { %v2026_v33 = vsel %vm783_vm3, %v2024_v16, %v2025_v56  ;;  %v2268_v45 = vsel %vm783_vm3, %v2266_v20, %v2267_v59  ;;  %v2269_v40 = vrot.slane %v2231_v11, 7  ;;  %v2270_v57 = vrot.slane %v2232_v47, 7 }
 0x62d   :  { %v2059_v32 = vrot.slane %v2058_v13, 2  ;;  %v2077_v35 = vsel %vm262_vm5, %v2023_v30, 0.0  ;;  %v2285_v34 = vadd.f32 %v2284_v52, %v2283_v49  ;;  %v2305_v21 = vrot.slane %v2304_v39, 4 }
 0x62e   :  { %v2164_v8 = vpop.permute.xlu0 %2163  ;;  %v2084_v2 = vsel %vm262_vm5, %v2026_v33, 0.0  ;;  %v2068_v19 = vrot.slane %v9103_v63, 1  ;;  %v9123_v29 = vsel %vm1128_vm4, %v9043_v6, %v2041_v53  ;;  %v2318_v26 = vsel %vm262_vm5, %v2268_v45, 0.0  ;;  %v7344_v6 = vld [vmem:[%s10985_s5 + $0x28] sm:$0xff] }
 0x62f   :  { %v2205_v25 = vrot.slane %v2164_v8, 1  ;;  %v2078_v54 = vrot.slane %v2077_v35, 4  ;;  %v2293_v43 = vrot.slane %v2292_v48, 2  ;;  %v2271_v18 = vsel %vm783_vm3, %v2269_v40, %v2270_v57  ;;  %v7343_v8 = vld [vmem:[%s10985_s5 + $0x20] sm:$0xff] }
 0x630   :  { %v2060_v0 = vadd.f32 %v2059_v32, %v2058_v13  ;;  %v2085_v7 = vrot.slane %v2084_v2, 4  ;;  %v2286_v27 = vrot.slane %v2285_v34, 2  ;;  %v1842_v38 = vmul.f32 %v8900_v62, %v9022_v55 }
 0x631   :  { %v2223_v14 = vmul.f32 %v2205_v25, %v9034_v44  ;;  %v2224_v36 = vmul.f32 %v2205_v25, %v9039_v41  ;;  %v7345_v44 = vld [vmem:[%s10985_s5 + $0x30] sm:$0xff]  ;;  %v2073_v41 = vrot.slane %v9100_v50, 2  ;;  %v2306_v37 = vadd.f32 %v2305_v21, %v2304_v39 }
 0x632   :  { %2468 = vmatpush.bf16.msrb.mxu3 %v7345_v44  ;;  %v2319_v4 = vrot.slane %v2318_v26, 4  ;;  %v2325_v49 = vsel %vm262_vm5, %v2271_v18, 0.0  ;;  %v2079_v16 = vadd.f32 %v2078_v54, %v2077_v35  ;;  %v2294_v56 = vadd.f32 %v2293_v43, %v2292_v48 }
 0x633   :  { %v2257_v10 = vrot.slane %v2223_v14, 7  ;;  %v2258_v23 = vrot.slane %v2224_v36, 7  ;;  %v2140_v11 = vmul.f32 %v9036_v1, %v9086_v46  ;;  %v2141_v47 = vmul.f32 %v9041_v22, %v9088_v24 }
 0x634   :  { %v2086_v20 = vadd.f32 %v2085_v7, %v2084_v2  ;;  %v2143_v13 = vrot.slane %v1842_v38, 1  ;;  %v2326_v25 = vrot.slane %v2325_v49, 4  ;;  %v2061_v53 = vrot.slane %v2060_v0, 1 }
 0x635   :  { %v2259_v9 = vsel %vm783_vm3, %v2257_v10, %v2258_v23  ;;  %v2320_v30 = vadd.f32 %v2319_v4, %v2318_v26  ;;  %v2080_v46 = vrot.slane %v2079_v16, 2  ;;  %v2295_v22 = vrot.slane %v2294_v56, 1 }
 0x636   :  { %v2297_v58 = vsel %vm262_vm5, %v2259_v9, 0.0  ;;  %v2176_v28 = vpop.permute.xlu0 %2175  ;;  %2469 = vmatpush.bf16.msrb.mxu3 %v7344_v6  ;;  %v2145_v33 = vadd.f32 %v2143_v13, %v2140_v11  ;;  %v2087_v14 = vrot.slane %v2086_v20, 2  ;;  %v2146_v51 = vadd.f32 %v2143_v13, %v2141_v47 }
 0x637   :  { %v2298_v15 = vrot.slane %v2297_v58, 4  ;;  %v2207_v61 = vrot.slane %v2176_v28, 1  ;;  %v2327_v57 = vadd.f32 %v2326_v25, %v2325_v49  ;;  %v2321_v35 = vrot.slane %v2320_v30, 2 }
 0x638   :  { %v2062_v21 = vadd.f32 %v2061_v53, %v2060_v0  ;;  %v2081_v2 = vadd.f32 %v2080_v46, %v2079_v16  ;;  %v2296_v26 = vadd.f32 %v2295_v22, %v2294_v56  ;;  %v2088_v9 = vadd.f32 %v2087_v14, %v2086_v20 }
 0x639   :  { %v2299_v42 = vadd.f32 %v2298_v15, %v2297_v58  ;;  %v2227_v12 = vmul.f32 %v2207_v61, %v9060_v60  ;;  %v2228_v3 = vmul.f32 %v2207_v61, %v9064_v17  ;;  %v2287_v60 = vadd.f32 %v2286_v27, %v2285_v34 }
 0x63a   :  { %v2307_v17 = vrot.slane %v2306_v37, 2  ;;  %2470 = vmatpush.bf16.msrb.mxu3 %v7343_v8  ;;  %v2074_v34 = vadd.f32 %v2073_v41, %v9100_v50  ;;  %v2348_v58 = vsel %vm1130_vm6, %v9098_v31, %v9123_v29  ;;  %v2328_v7 = vrot.slane %v2327_v57, 2 }
 0x63b   :  { %v2300_v59 = vrot.slane %v2299_v42, 2  ;;  %v2263_v62 = vrot.slane %v2227_v12, 7  ;;  %v2264_v55 = vrot.slane %v2228_v3, 7  ;;  %v2288_v45 = vrot.slane %v2287_v60, 1 }
 0x63c   :  { %v2308_v40 = vadd.f32 %v2307_v17, %v2306_v37  ;;  %v2322_v6 = vadd.f32 %v2321_v35, %v2320_v30  ;;  %v2075_v50 = vrot.slane %v2074_v34, 1  ;;  %v2349_v41 = vsel %vm1132_vm7, %v2062_v21, %v2348_v58  ;;  %v7348_v58 = vld [vmem:[%s10982_s2 + $0x28] sm:$0xff] }
 0x63d   :  { %v2301_v52 = vadd.f32 %v2300_v59, %v2299_v42  ;;  %v2265_v1 = vsel %vm783_vm3, %v2263_v62, %v2264_v55  ;;  %v2289_v28 = vadd.f32 %v2288_v45, %v2287_v60  ;;  %v2082_v0 = vrot.slane %v2081_v2, 1  ;;  %2544 = vmatpush.bf16.msrb.mxu1 %v7348_v58 }
 0x63e   :  { %v2311_v24 = vsel %vm262_vm5, %v2265_v1, 0.0  ;;  %v2194_v39 = vpop.permute.xlu0 %2193  ;;  %v2309_v61 = vrot.slane %v2308_v40, 1  ;;  %v2089_v4 = vrot.slane %v2088_v9, 1  ;;  %v2069_v31 = vadd.f32 %v2068_v19, %v9103_v63  ;;  %v8026_v63 = vld [vmem:[%s10983_s3 + $0x10] sm:$0xff] }
 0x63f   :  { %v2312_v36 = vrot.slane %v2311_v24, 4  ;;  %v2210_v48 = vrot.slane %v2194_v39, 1  ;;  %v2302_v32 = vrot.slane %v2301_v52, 1  ;;  %v2363_v49 = vsel %vm1128_vm4, %v2296_v26, %v2289_v28 }
 0x640   :  { %v2329_v29 = vadd.f32 %v2328_v7, %v2327_v57  ;;  %v2310_v16 = vadd.f32 %v2309_v61, %v2308_v40  ;;  %v2323_v56 = vrot.slane %v2322_v6, 1  ;;  %v2083_v20 = vadd.f32 %v2082_v0, %v2081_v2  ;;  %v2419_v57 = vpop.permute.xlu2 %2418  ;;  %v7347_v7 = vld [vmem:[%s10982_s2 + $0x20] sm:$0xff] }
 0x641   :  { %v2313_v10 = vadd.f32 %v2312_v36, %v2311_v24  ;;  %v2233_v23 = vmul.f32 %v2210_v48, %v2145_v33  ;;  %v2234_v44 = vmul.f32 %v2210_v48, %v2146_v51  ;;  %v2303_v15 = vadd.f32 %v2302_v32, %v2301_v52  ;;  %v11044_v36 = vld [vmem:[#allocation10_spill] sm:$0xff]  ;;  %v2421_v32 = vpop.permute.xlu1 %2420  ;;  %2545 = vmatpush.bf16.msrb.mxu1 %v7347_v7 }
 0x642   :  { %v2350_v59 = vsel %vm11037_vm10, %v2069_v31, %v2349_v41  ;;  %v2076_v62 = vadd.f32 %v2075_v50, %v2074_v34  ;;  %v2090_v55 = vadd.f32 %v2089_v4, %v2088_v9  ;;  %v2330_v13 = vrot.slane %v2329_v29, 1  ;;  %v11046_v34 = vld [vmem:[#allocation7_spill] sm:$0xff]  ;;  %v11047_v9 = vld [vmem:[#allocation9_spill] sm:$0xff] }
 0x643   :  { %v2314_v54 = vrot.slane %v2313_v10, 2  ;;  %v2272_v43 = vrot.slane %v2233_v23, 7  ;;  %v2273_v18 = vrot.slane %v2234_v44, 7  ;;  %v2364_v3 = vsel %vm1130_vm6, %v2303_v15, %v2363_v49  ;;  %v11048_v15 = vld [vmem:[#allocation5_spill] sm:$0xff] }
 0x644   :  { %v2365_v8 = vsel %vm1132_vm7, %v2310_v16, %v2364_v3  ;;  %v2371_v19 = vperm.slane %v8026_v63, 6  ;;  %v2324_v25 = vadd.f32 %v2323_v56, %v2322_v6  ;;  %v2351_v30 = vsel %vm11039_vm12, %v2076_v62, %v2350_v59 }
 0x645   :  { %v2315_v27 = vadd.f32 %v2314_v54, %v2313_v10  ;;  %v2274_v38 = vsel %vm783_vm3, %v2272_v43, %v2273_v18  ;;  %v2352_v52 = vsel %vm11040_vm13, %v2083_v20, %v2351_v30  ;;  %v2331_v24 = vadd.f32 %v2330_v13, %v2329_v29 }
 0x646   :  { %v2332_v37 = vsel %vm262_vm5, %v2274_v38, 0.0  ;;  %v2353_v46 = vsel %vm11041_vm14, %v2090_v55, %v2352_v52  ;;  %v2372_v39 = vmul.f32 %v2371_v19, %v8697_v5  ;;  %v2373_v51 = vmul.f32 %v2371_v19, %v11044_v36  ;;  %v9204_v55 = vld [vmem:[%s10983_s3 + $0x20] sm:$0xff] }
 0x647   :  { %v2316_v42 = vrot.slane %v2315_v27, 1  ;;  %v2333_v12 = vrot.slane %v2332_v37, 4  ;;  %v2559_v13 = vperm.slane %v9204_v55, 0  ;;  %v2573_v63 = vperm.slane %v9204_v55, 2 }
 0x648   :  { %v2374_v48 = vadd.f32 %v2372_v39, %v2353_v46  ;;  %v2583_v19 = vperm.slane %v9204_v55, 3 }
 0x649   :  { %v2317_v11 = vadd.f32 %v2316_v42, %v2315_v27  ;;  %v2334_v47 = vadd.f32 %v2333_v12, %v2332_v37 }
 0x64a   :  { %v2424_v35 = vmul.f32 %v2419_v57, %v2374_v48 }
 0x64b   :  { %v2335_v60 = vrot.slane %v2334_v47, 2  ;;  %v2366_v17 = vsel %vm11038_vm11, %v2317_v11, %v2365_v8  ;;  %v2563_v8 = vperm.slane %v9204_v55, 1 }
 0x64c   :  { %v2367_v22 = vsel %vm11042_vm15, %v2324_v25, %v2366_v17 }
 0x64d   :  { %v2336_v53 = vadd.f32 %v2335_v60, %v2334_v47  ;;  %v2368_v14 = vsel %vm11043_vm1, %v2331_v24, %v2367_v22  ;;  %vm11049_vm1 = vcmask 1045504  }
 0x64f   :  { %v2337_v1 = vrot.slane %v2336_v53, 1 }
 0x651   :  { %v2338_v33 = vadd.f32 %v2337_v1, %v2336_v53  ;;  %v2561_v53 = vperm.slane %v9204_v55, 4 }
 0x653   :  { %v2369_v45 = vsel %vm11045_vm2, %v2338_v33, %v2368_v14  ;;  %vm11050_vm2 = vcmask 1044480  }
 0x654   :  { %v2375_v40 = vadd.f32 %v2373_v51, %v2369_v45 }
 0x656   :  { %v2425_v10 = vmul.f32 %v2421_v32, %v2375_v40  ;;  %v7352_v40 = vld [vmem:[%s10984_s4 + $0x58] sm:$0xff] }
 0x657   :  { %2707 = vmatpush.bf16.msrb.mxu2 %v7352_v40 }
 0x658   :  { %v2426_v23 = vpack.c.bf16 %v2425_v10, %v2424_v35 }
 0x65a   :  { %7080 = vmatmul.msk.bf16.vlgmr.msrb.gmra.mxu3 %vm262_vm5, %v2426_v23 }
 0x6dd   :  { %v2472_v44 = vpop.f32.mrf.mxu3 }
 0x6de   :  { %v9176_v21 = vadd.f32 %v2472_v44, %v11046_v34 }
 0x6e0   :  { %v2483_v5 = vmul.f32 %v9176_v21, %v9176_v21 }
 0x6e2   :  { %v2485_v2 = vsel %vm38_vm0, %v2483_v5, 0.0  ;;  %v7351_v5 = vld [vmem:[%s10984_s4 + $0x50] sm:$0xff] }
 0x6e3   :  { %2486 = vadd.xlane.f32.xlu0 %v2485_v2  ;;  %2708 = vmatpush.bf16.msrb.mxu2 %v7351_v5 }
 0x6e5   :  { %v2474_v26 = vpop.f32.mrf.mxu3 }
 0x6e6   :  { %v9182_v54 = vadd.f32 %v2474_v26, %v11047_v9 }
 0x6e8   :  { %v2484_v43 = vmul.f32 %v9182_v54, %v9182_v54 }
 0x6ea   :  { %v2488_v18 = vsel %vm38_vm0, %v2484_v43, 0.0 }
 0x6eb   :  { %2489 = vadd.xlane.f32.xlu2 %v2488_v18 }
 0x756   :  { %v2487_v28 = vpop.xlane.xlu0 %2486 }
 0x757   :  { %v2491_v61 = vmul.f32 %v2487_v28, %v11048_v15 }
 0x759   :  { %v2493_v6 = vadd.f32 1e-05, %v2491_v61 }
 0x75b   :  { %7655 = vrsqrt.f32 %v2493_v6  ;;  %vm2501_vm11 = vweird.f32 %v2493_v6 }
 0x75e   :  { %v2490_v27 = vpop.xlane.xlu2 %2489 }
 0x75f   :  { %v2492_v38 = vmul.f32 %v2490_v27, %v11048_v15 }
 0x761   :  { %v7656_v50 = vpop.eup %7655  ;;  %v2494_v41 = vadd.f32 1e-05, %v2492_v38 }
 0x762   :  { %v2496_v0 = vmul.f32 %v7656_v50, %v2493_v6  ;;  %vm2502_vm10 = vweird.f32 %v7656_v50 }
 0x763   :  { %7657 = vrsqrt.f32 %v2494_v41  ;;  %vm2503_vm13 = vmor %vm2501_vm11, %vm2502_vm10  ;;  %vm2511_vm14 = vweird.f32 %v2494_v41 }
 0x764   :  { %v2497_v37 = vmul.f32 %v7656_v50, %v2496_v0  ;;  %vm11051_vm10 = vmmov %vm11049_vm1 }
 0x765   :  { %vm11052_vm11 = vmmov %vm11050_vm2 }
 0x766   :  { %v2498_v4 = vmul.f32 0.5, %v2497_v37 }
 0x768   :  { %v2499_v42 = vsub.f32 1.5, %v2498_v4 }
 0x769   :  { %v7658_v49 = vpop.eup %7657 }
 0x76a   :  { %v2506_v12 = vmul.f32 %v7658_v49, %v2494_v41  ;;  %v2500_v29 = vmul.f32 %v7656_v50, %v2499_v42  ;;  %vm2512_vm12 = vweird.f32 %v7658_v49 }
 0x76b   :  { %vm2513_vm15 = vmor %vm2511_vm14, %vm2512_vm12 }
 0x76c   :  { %v2507_v31 = vmul.f32 %v7658_v49, %v2506_v12  ;;  %v2504_v56 = vsel %vm2503_vm13, %v7656_v50, %v2500_v29  ;;  %v7350_v50 = vld [vmem:[%s10984_s4 + $0x48] sm:$0xff]  ;;  %v7349_v29 = vld [vmem:[%s10984_s4 + $0x40] sm:$0xff] }
 0x76d   :  { %v2515_v20 = vmul.f32 %v2504_v56, %v9176_v21  ;;  %2709 = vmatpush.bf16.msrb.mxu2 %v7350_v50 }
 0x76e   :  { %v2508_v3 = vmul.f32 0.5, %v2507_v31 }
 0x770   :  { %v2509_v16 = vsub.f32 1.5, %v2508_v3 }
 0x771   :  { %2710 = vmatpush.bf16.msrb.mxu2 %v7349_v29 }
 0x772   :  { %v2510_v11 = vmul.f32 %v7658_v49, %v2509_v16 }
 0x774   :  { %v2514_v47 = vsel %vm2513_vm15, %v7658_v49, %v2510_v11 }
 0x775   :  { %v2516_v59 = vmul.f32 %v2514_v47, %v9182_v54 }
 0x777   :  { %v9197_v62 = vpack.c.bf16 %v2516_v59, %v2515_v20 }
 0x779   :  { %7093 = vmatmul.msk.bf16.vlgmr.msrb.gmra.mxu1 %vm38_vm0, %v9197_v62 }
 0x7f6   :  { %v9207_v60 = vpop.f32.mrf.mxu1 }
 0x7f7   :  { %v2556_v17 = vrot.slane %v9207_v60, 5  ;;  %v3593_v50 = vsub.f32 0.0, %v9207_v60 }
 0x7f9   :  { %v2558_v25 = vsel %vm117_vm8, 0.0, %v2556_v17  ;;  %v2565_v30 = vmul.f32 %v2563_v8, %v2556_v17  ;;  %v2575_v39 = vmul.f32 %v2573_v63, %v2556_v17  ;;  %v2585_v33 = vmul.f32 %v2583_v19, %v2556_v17  ;;  %v7363_v17 = vld [vmem:[%s10982_s2 + $0x40] sm:$0xff] }
 0x7fa   :  { %v2560_v52 = vmul.f32 %v2559_v13, %v2558_v25  ;;  %v2564_v1 = vmul.f32 %v2563_v8, %v2558_v25  ;;  %v2574_v24 = vmul.f32 %v2573_v63, %v2558_v25  ;;  %v2584_v51 = vmul.f32 %v2583_v19, %v2558_v25 }
 0x7fb   :  { %v2569_v46 = vrot.slane %v2565_v30, 1  ;;  %v2579_v32 = vrot.slane %v2575_v39, 2  ;;  %v2589_v35 = vrot.slane %v2585_v33, 3 }
 0x7fc   :  { %v2568_v22 = vrot.slane %v2564_v1, 1  ;;  %v2562_v14 = vadd.f32 %v2561_v53, %v2560_v52  ;;  %v2578_v57 = vrot.slane %v2574_v24, 2  ;;  %v2588_v2 = vrot.slane %v2584_v51, 3 }
 0x7fe   :  { %v2570_v36 = vsel %vm128_vm9, %v2568_v22, %v2569_v46  ;;  %v9216_v48 = vpop.f32.mrf.mxu1  ;;  %v2580_v7 = vsel %vm11049_vm1, %v2578_v57, %v2579_v32  ;;  %v2590_v0 = vsel %vm11050_vm2, %v2588_v2, %v2589_v35 }
 0x7ff   :  { %v2614_v45 = vrot.slane %v9216_v48, 5  ;;  %v2572_v10 = vadd.f32 %v2570_v36, %v2562_v14 }
 0x801   :  { %v2616_v23 = vsel %vm117_vm8, 0.0, %v2614_v45  ;;  %v2620_v44 = vmul.f32 %v2614_v45, %v2563_v8  ;;  %v2629_v34 = vmul.f32 %v2614_v45, %v2573_v63  ;;  %v2638_v28 = vmul.f32 %v2614_v45, %v2583_v19 }
 0x802   :  { %v2617_v26 = vmul.f32 %v2616_v23, %v2559_v13  ;;  %v2619_v9 = vmul.f32 %v2616_v23, %v2563_v8  ;;  %v2628_v43 = vmul.f32 %v2616_v23, %v2573_v63  ;;  %v2637_v58 = vmul.f32 %v2616_v23, %v2583_v19  ;;  %v7364_v8 = vld [vmem:[%s10982_s2 + $0x48] sm:$0xff] }
 0x803   :  { %v2624_v18 = vrot.slane %v2620_v44, 1  ;;  %v2633_v38 = vrot.slane %v2629_v34, 2  ;;  %v2582_v41 = vadd.f32 %v2580_v7, %v2572_v10  ;;  %v2642_v49 = vrot.slane %v2638_v28, 3  ;;  %4428 = vmatpush.bf16.msra.mxu2 %v7364_v8 }
 0x804   :  { %v2618_v61 = vadd.f32 %v2617_v26, %v2561_v53  ;;  %v2623_v6 = vrot.slane %v2619_v9, 1  ;;  %v2632_v27 = vrot.slane %v2628_v43, 2  ;;  %v2641_v4 = vrot.slane %v2637_v58, 3 }
 0x805   :  { %v2592_v42 = vadd.f32 %v2590_v0, %v2582_v41  ;;  %v3595_v41 = vmul.f32 1.442695, %v3593_v50 }
 0x806   :  { %v2625_v37 = vsel %vm128_vm9, %v2623_v6, %v2624_v18  ;;  %v2634_v31 = vsel %vm11051_vm10, %v2632_v27, %v2633_v38  ;;  %v2643_v11 = vsel %vm11052_vm11, %v2641_v4, %v2642_v49  ;;  %v11054_v6 = vld [vmem:[#allocation6_spill] sm:$0xff] }
 0x807   :  { %v2627_v12 = vadd.f32 %v2625_v37, %v2618_v61  ;;  %v2593_v3 = vsub.f32 0.0, %v2592_v42  ;;  %4429 = vmatpush.bf16.msra.mxu2 %v7363_v17  ;;  %v11053_v61 = vld [vmem:[#allocation8_spill] sm:$0xff]  ;;  %v2717_v37 = vperm.slane %v9204_v55, 5 }
 0x809   :  { %v2636_v16 = vadd.f32 %v2634_v31, %v2627_v12  ;;  %v2594_v56 = vmul.f32 1.442695, %v2593_v3 }
 0x80b   :  { %v2645_v47 = vadd.f32 %v2643_v11, %v2636_v16  ;;  %7659 = vpow2.f32 %v2594_v56 }
 0x80d   :  { %v2646_v20 = vsub.f32 0.0, %v2645_v47 }
 0x80f   :  { %v2647_v59 = vmul.f32 1.442695, %v2646_v20 }
 0x811   :  { %v7660_v13 = vpop.eup %7659  ;;  %7661 = vpow2.f32 %v2647_v59 }
 0x812   :  { %v2596_v63 = vadd.f32 1.0, %v7660_v13 }
 0x814   :  { %7663 = vrcp.f32 %v2596_v63  ;;  %v2608_v39 = vand.u32 2147483648, %v2596_v63  ;;  %vm2602_vm13 = vweird.f32 %v2596_v63  ;;  %v2606_v33 = vand.u32 2147483647, %v2596_v63 }
 0x816   :  { %v2609_v57 = vor.u32 1.1754944e-38, %v2608_v39  ;;  %vm2607_vm1 = vcmp.eq.f32.partialorder %v2606_v33, 8.507059e+37 }
 0x817   :  { %v7662_v19 = vpop.eup %7661 }
 0x818   :  { %v2649_v25 = vadd.f32 1.0, %v7662_v19 }
 0x81a   :  { %v7664_v53 = vpop.eup %7663  ;;  %7665 = vrcp.f32 %v2649_v25  ;;  %v2661_v36 = vand.u32 2147483648, %v2649_v25  ;;  %v2659_v40 = vand.u32 2147483647, %v2649_v25  ;;  %vm2655_vm2 = vweird.f32 %v2649_v25 }
 0x81b   :  { %v2598_v30 = vmul.f32 %v7664_v53, %v2596_v63  ;;  %vm2603_vm12 = vweird.f32 %v7664_v53  ;;  %7667 = vpow2.f32 %v3595_v41 }
 0x81c   :  { %vm2604_vm14 = vmor %vm2602_vm13, %vm2603_vm12  ;;  %v2662_v10 = vor.u32 1.1754944e-38, %v2661_v36  ;;  %vm2660_vm11 = vcmp.eq.f32.partialorder %v2659_v40, 8.507059e+37 }
 0x81d   :  { %v2599_v52 = vsub.f32 1.0, %v2598_v30 }
 0x81f   :  { %v2600_v1 = vmul.f32 %v7664_v53, %v2599_v52 }
 0x820   :  { %v7666_v46 = vpop.eup %7665 }
 0x821   :  { %v2601_v22 = vadd.f32 %v7664_v53, %v2600_v1  ;;  %v2651_v24 = vmul.f32 %v7666_v46, %v2649_v25  ;;  %vm2656_vm15 = vweird.f32 %v7666_v46 }
 0x822   :  { %vm2657_vm10 = vmor %vm2655_vm2, %vm2656_vm15 }
 0x823   :  { %v2652_v14 = vsub.f32 1.0, %v2651_v24  ;;  %v2605_v51 = vsel %vm2604_vm14, %v7664_v53, %v2601_v22 }
 0x824   :  { %v2610_v35 = vsel %vm2607_vm1, %v2609_v57, %v2605_v51 }
 0x825   :  { %v2653_v45 = vmul.f32 %v7666_v46, %v2652_v14  ;;  %v9243_v34 = vmul.f32 %v2610_v35, %v2592_v42  ;;  %v7668_v42 = vpop.eup %7667 }
 0x826   :  { %v3599_v12 = vadd.f32 1.0, %v7668_v42 }
 0x827   :  { %v2654_v32 = vadd.f32 %v7666_v46, %v2653_v45 }
 0x828   :  { %7669 = vrcp.f32 %v3599_v12  ;;  %v3612_v25 = vand.u32 2147483648, %v3599_v12  ;;  %vm3606_vm13 = vweird.f32 %v3599_v12  ;;  %v3610_v53 = vand.u32 2147483647, %v3599_v12 }
 0x829   :  { %v2658_v23 = vsel %vm2657_vm10, %v7666_v46, %v2654_v32 }
 0x82a   :  { %v2663_v44 = vsel %vm2660_vm11, %v2662_v10, %v2658_v23  ;;  %v3613_v1 = vor.u32 1.1754944e-38, %v3612_v25  ;;  %vm3611_vm15 = vcmp.eq.f32.partialorder %v3610_v53, 8.507059e+37  ;;  %v3594_v23 = vsub.f32 0.0, %v9216_v48 }
 0x82b   :  { %v9245_v5 = vmul.f32 %v2663_v44, %v2645_v47 }
 0x82d   :  { %v2666_v2 = vpack.c.bf16 %v9245_v5, %v9243_v34 }
 0x82e   :  { %v7670_v11 = vpop.eup %7669 }
 0x82f   :  { %7120 = vmatmul.msk.bf16.vlgmr.msrb.gmra.mxu2 %vm262_vm5, %v2666_v2  ;;  %v3602_v20 = vmul.f32 %v7670_v11, %v3599_v12  ;;  %vm3607_vm12 = vweird.f32 %v7670_v11 }
 0x830   :  { %vm3608_vm14 = vmor %vm3606_vm13, %vm3607_vm12  ;;  %vm11059_vm12 = vcmask 1044484   ;;  %vm11060_vm13 = vcmask 1045509  }
 0x831   :  { %v3603_v59 = vsub.f32 1.0, %v3602_v20 }
 0x833   :  { %v3604_v17 = vmul.f32 %v7670_v11, %v3603_v59 }
 0x835   :  { %v3605_v19 = vadd.f32 %v7670_v11, %v3604_v17 }
 0x837   :  { %v3609_v52 = vsel %vm3608_vm14, %v7670_v11, %v3605_v19  ;;  %vm11061_vm14 = vcmask 1046534  }
 0x838   :  { %v3614_v22 = vsel %vm3611_vm15, %v3613_v1, %v3609_v52  ;;  %vm11062_vm15 = vcmask 1045504  }
 0x839   :  { %v3631_v39 = vmul.f32 %v3614_v22, %v9207_v60  ;;  %v9304_v60 = vld [vmem:[%s10983_s3 + $0x28] sm:$0x7f] }
 0x83f   :  { %7198 = vmatmul.msk.bf16.vlgmr.msra.gmra.mxu2 %vm38_vm0, %v9197_v62 }
 0x8b2   :  { %v9252_v26 = vpop.f32.mrf.mxu2 }
 0x8b3   :  { %v2921_v9 = vperm.slane %v9252_v26, 3  ;;  %v2900_v43 = vperm.slane %v9252_v26, 0  ;;  %v2935_v18 = vperm.slane %v9252_v26, 5  ;;  %v2907_v58 = vperm.slane %v9252_v26, 1 }
 0x8b4   :  { %v2942_v28 = vperm.slane %v9252_v26, 6  ;;  %v2914_v62 = vperm.slane %v9252_v26, 2  ;;  %v2928_v7 = vperm.slane %v9252_v26, 4  ;;  %v2949_v0 = vperm.slane %v9252_v26, 7 }
 0x8b5   :  { %2926 = vperm.xlu2 %7424, %v2921_v9   ;;  %3120 = vperm.xlu0 %7420, %v2900_v43   ;;  %v2718_v49 = vadd.f32 %v2717_v37, %v9252_v26 }
 0x8b6   :  { %2905 = vperm.xlu1 %7423, %v2900_v43  }
 0x8b7   :  { %v2722_v31 = vand.u32 2147483647, %v2718_v49  ;;  %v2720_v33 = vmax.f32 %v2718_v49, 0.0 }
 0x8b9   :  { %v2724_v3 = vsub.f32 0.0, %v2722_v31 }
 0x8ba   :  { %v9263_v27 = vpop.f32.mrf.mxu2 }
 0x8bb   :  { %v2970_v38 = vperm.slane %v9263_v27, 2  ;;  %v2984_v4 = vperm.slane %v9263_v27, 4  ;;  %v3005_v29 = vperm.slane %v9263_v27, 7  ;;  %v2956_v16 = vperm.slane %v9263_v27, 0 }
 0x8bc   :  { %v2726_v56 = vmul.f32 1.442695, %v2724_v3  ;;  %v2963_v47 = vperm.slane %v9263_v27, 1  ;;  %v2977_v13 = vperm.slane %v9263_v27, 3  ;;  %v2998_v30 = vperm.slane %v9263_v27, 6 }
 0x8bd   :  { %2940 = vperm.xlu2 %7424, %v2935_v18   ;;  %3138 = vperm.xlu0 %7420, %v2921_v9   ;;  %v2991_v14 = vperm.slane %v9263_v27, 5 }
 0x8be   :  { %2912 = vperm.xlu1 %7423, %v2907_v58   ;;  %7671 = vpow2.f32 %v2726_v56 }
 0x8c4   :  { %v7672_v8 = vpop.eup %7671 }
 0x8c5   :  { %2947 = vperm.xlu2 %7424, %v2942_v28   ;;  %3156 = vperm.xlu0 %7420, %v2942_v28   ;;  %v2730_v63 = vadd.f32 1.0, %v7672_v8 }
 0x8c6   :  { %2919 = vperm.xlu1 %7423, %v2914_v62  }
 0x8c7   :  { %7673 = vlog2.f32 %v2730_v63 }
 0x8cd   :  { %7425 = vset.pattern.permute.xlu2 %v11053_v61  ;;  %7430 = vset.pattern.permute.xlu0 %v11054_v6  ;;  %v7674_v46 = vpop.eup %7673 }
 0x8ce   :  { %2933 = vperm.xlu1 %7423, %v2928_v7   ;;  %v2733_v24 = vmul.f32 0.6931472, %v7674_v46 }
 0x8d0   :  { %v9293_v36 = vadd.f32 %v2733_v24, %v2720_v33 }
 0x8d2   :  { %v2754_v51 = vperm.slane %v9293_v36, 0  ;;  %v2740_v57 = vrot.slane %v9293_v36, 1  ;;  %v9312_v2 = vmul.f32 %v9293_v36, %v9243_v34  ;;  %v2741_v43 = vrot.slane %v9293_v36, 2 }
 0x8d3   :  { %v2743_v22 = vrot.slane %v9293_v36, 4 }
 0x8d4   :  { %v2786_v40 = vmul.f32 %v9204_v55, %v2754_v51  ;;  %v2787_v32 = vmul.f32 %v9304_v60, %v2754_v51  ;;  %v2755_v10 = vperm.slane %v2740_v57, 0  ;;  %v2886_v42 = vrot.slane %v9312_v2, 1 }
 0x8d5   :  { %3126 = vperm.xlu2 %7425, %v2907_v58   ;;  %2975 = vperm.xlu0 %7430, %v2970_v38   ;;  %v3597_v58 = vmul.f32 1.442695, %v3594_v23  ;;  %v2887_v46 = vrot.slane %v9312_v2, 2 }
 0x8d6   :  { %7426 = vset.pattern.permute.xlu1 %v11053_v61  ;;  %v2818_v35 = vmul.f32 1.442695, %v2786_v40  ;;  %v2820_v44 = vmul.f32 1.442695, %v2787_v32  ;;  %v2789_v28 = vmul.f32 %v9304_v60, %v2755_v10  ;;  %v3013_v59 = vperm.slane %v2886_v42, 0 }
 0x8d7   :  { %v3014_v23 = vperm.slane %v2887_v46, 0 }
 0x8d8   :  { %7675 = vpow2.f32 %v2818_v35  ;;  %v2824_v49 = vmul.f32 1.442695, %v2789_v28 }
 0x8d9   :  { %7677 = vpow2.f32 %v2820_v44  ;;  %v2758_v44 = vperm.slane %v2743_v22, 0 }
 0x8da   :  { %7679 = vpow2.f32 %v3597_v58 }
 0x8dd   :  { %7427 = vset.pattern.permute.xlu2 %v11054_v6  ;;  %7432 = vset.pattern.permute.xlu0 %v11053_v61 }
 0x8de   :  { %3132 = vperm.xlu1 %7426, %v2914_v62   ;;  %v7676_v12 = vpop.eup %7675 }
 0x8df   :  { %v7678_v31 = vpop.eup %7677  ;;  %v3060_v8 = vmul.f32 0.0, %v7676_v12 }
 0x8e0   :  { %v7680_v63 = vpop.eup %7679 }
 0x8e5   :  { %2954 = vperm.xlu2 %7427, %v2949_v0   ;;  %3380 = vperm.xlu0 %7432, %v2970_v38   ;;  %v2756_v38 = vperm.slane %v2741_v43, 0 }
 0x8e6   :  { %3144 = vperm.xlu1 %7426, %v2928_v7   ;;  %v3012_v7 = vperm.slane %v9312_v2, 0 }
 0x8e7   :  { %v2790_v3 = vmul.f32 %v9204_v55, %v2756_v38 }
 0x8e9   :  { %v2826_v25 = vmul.f32 1.442695, %v2790_v3 }
 0x8ed   :  { %7428 = vset.pattern.permute.xlu2 %v11053_v61  ;;  %3392 = vperm.xlu0 %7432, %v2984_v4  }
 0x8ee   :  { %7429 = vset.pattern.permute.xlu1 %v11054_v6 }
 0x8f5   :  { %3150 = vperm.xlu2 %7428, %v2935_v18   ;;  %3410 = vperm.xlu0 %7432, %v3005_v29   ;;  %v2788_v18 = vmul.f32 %v9204_v55, %v2755_v10 }
 0x8f6   :  { %2961 = vperm.xlu1 %7429, %v2956_v16  }
 0x8f7   :  { %v2822_v41 = vmul.f32 1.442695, %v2788_v18 }
 0x8f9   :  { %7681 = vpow2.f32 %v2822_v41 }
 0x8fa   :  { %7683 = vpow2.f32 %v2824_v49  ;;  %v2794_v49 = vmul.f32 %v9204_v55, %v2758_v44 }
 0x8fb   :  { %7685 = vpow2.f32 %v2826_v25 }
 0x8fd   :  { %3374 = vperm.xlu2 %7428, %v2963_v47   ;;  %7435 = vset.pattern.permute.xlu0 %v11054_v6 }
 0x8fe   :  { %2968 = vperm.xlu1 %7429, %v2963_v47   ;;  %v2791_v47 = vmul.f32 %v9304_v60, %v2756_v38 }
 0x8ff   :  { %v7682_v24 = vpop.eup %7681 }
 0x900   :  { %v2828_v1 = vmul.f32 1.442695, %v2791_v47  ;;  %v7684_v51 = vpop.eup %7683 }
 0x901   :  { %v7686_v41 = vpop.eup %7685 }
 0x902   :  { %7687 = vpow2.f32 %v2828_v1 }
 0x905   :  { %3386 = vperm.xlu2 %7428, %v2977_v13  }
 0x906   :  { %2982 = vperm.xlu1 %7429, %v2977_v13   ;;  %v3061_v13 = vmul.f32 0.0, %v7678_v31 }
 0x908   :  { %v7688_v42 = vpop.eup %7687 }
 0x90d   :  { %3404 = vperm.xlu2 %7428, %v2998_v30  }
 0x90e   :  { %2989 = vperm.xlu1 %7429, %v2984_v4   ;;  %v2742_v4 = vrot.slane %v9293_v36, 3 }
 0x90f   :  { %v9299_v45 = vpop.permute.xlu2 %2926 }
 0x910   :  { %v2757_v11 = vperm.slane %v2742_v4, 0 }
 0x912   :  { %v2792_v52 = vmul.f32 %v9204_v55, %v2757_v11 }
 0x914   :  { %v2830_v32 = vmul.f32 1.442695, %v2792_v52 }
 0x915   :  { %3635 = vrot.lane.b32.xlu2 %v3631_v39, %s8060_s11  ;;  %v9333_v39 = vadd.f32 1.0, %v7680_v63 }
 0x916   :  { %2996 = vperm.xlu1 %7429, %v2991_v14   ;;  %7437 = vset.pattern.permute.xlu2 %v11054_v6 }
 0x917   :  { %v9314_v9 = vpop.permute.xlu2 %2940  ;;  %7689 = vrcp.f32 %v9333_v39  ;;  %vm3621_vm1 = vweird.f32 %v9333_v39 }
 0x918   :  { %7691 = vpow2.f32 %v2830_v32  ;;  %v2745_v32 = vrot.slane %v9293_v36, 6 }
 0x91e   :  { %3003 = vperm.xlu1 %7429, %v2998_v30  }
 0x91f   :  { %v9327_v20 = vpop.permute.xlu2 %2947 }
 0x926   :  { %7431 = vset.pattern.permute.xlu1 %v11053_v61 }
 0x928   :  { %v2906_v62 = vpop.permute.xlu1 %2905 }
 0x929   :  { %v3044_v50 = vmul.f32 %v3012_v7, %v2906_v62  ;;  %v2888_v62 = vrot.slane %v9312_v2, 3  ;;  %v3121_v7 = vpop.permute.xlu0 %3120 }
 0x92a   :  { %v3172_v47 = vrot.slane %v3121_v7, 1 }
 0x92b   :  { %v3063_v56 = vrot.slane %v3044_v50, 1  ;;  %v2744_v50 = vrot.slane %v9293_v36, 5 }
 0x92d   :  { %v3065_v53 = vadd.f32 %v3063_v56, %v3060_v8  ;;  %v3066_v30 = vadd.f32 %v3063_v56, %v3061_v13  ;;  %v2795_v56 = vmul.f32 %v9304_v60, %v2758_v44  ;;  %v9346_v8 = vpop.eup %7689  ;;  %v3015_v13 = vperm.slane %v2888_v62, 0 }
 0x92e   :  { %3368 = vperm.xlu1 %7431, %v2956_v16   ;;  %v2793_v16 = vmul.f32 %v9304_v60, %v2757_v11  ;;  %v9344_v11 = vadd.f32 %v2717_v37, %v9263_v27  ;;  %v2759_v63 = vperm.slane %v2744_v50, 0  ;;  %v7692_v37 = vpop.eup %7691  ;;  %vm3622_vm2 = vweird.f32 %v9346_v8 }
 0x92f   :  { %v3067_v40 = vmul.f32 %v7682_v24, %v3065_v53  ;;  %v3068_v57 = vmul.f32 %v7684_v51, %v3066_v30  ;;  %v3127_v35 = vpop.permute.xlu2 %3126  ;;  %v3188_v25 = vmul.f32 %v3172_v47, %v3065_v53  ;;  %v3189_v52 = vmul.f32 %v3172_v47, %v3066_v30  ;;  %vm9392_vm11 = vmor %vm3621_vm1, %vm3622_vm2 }
 0x930   :  { %v2913_v17 = vpop.permute.xlu1 %2912  ;;  %v2832_v10 = vmul.f32 1.442695, %v2793_v16  ;;  %v3173_v38 = vrot.slane %v3127_v35, 1  ;;  %v2834_v16 = vmul.f32 1.442695, %v2794_v49  ;;  %v3047_v46 = vmul.f32 %v3015_v13, %v9299_v45  ;;  %vm11064_vm2 = vmmov %vm11062_vm15 }
 0x931   :  { %v3045_v19 = vmul.f32 %v3013_v59, %v2913_v17  ;;  %v2796_v53 = vmul.f32 %v9204_v55, %v2759_v63  ;;  %v2797_v30 = vmul.f32 %v9304_v60, %v2759_v63  ;;  %v3220_v35 = vrot.slane %v3188_v25, 7 }
 0x932   :  { %7693 = vpow2.f32 %v2832_v10  ;;  %v3221_v10 = vrot.slane %v3189_v52, 7  ;;  %v3084_v44 = vrot.slane %v3047_v46, 1  ;;  %v2891_v27 = vrot.slane %v9312_v2, 6 }
 0x933   :  { %v3070_v33 = vrot.slane %v3045_v19, 1  ;;  %v2889_v19 = vrot.slane %v9312_v2, 4  ;;  %7695 = vpow2.f32 %v2834_v16  ;;  %vm11063_vm1 = vcmask 1044480  }
 0x935   :  { %v3072_v43 = vadd.f32 %v3070_v33, %v3067_v40  ;;  %v3073_v18 = vadd.f32 %v3070_v33, %v3068_v57  ;;  %v2836_v33 = vmul.f32 1.442695, %v2795_v56  ;;  %v3617_v40 = vmul.f32 %v9346_v8, %v9333_v39 }
 0x936   :  { %7433 = vset.pattern.permute.xlu1 %v11054_v6 }
 0x937   :  { %v3190_v12 = vmul.f32 %v3173_v38, %v3072_v43  ;;  %v3191_v31 = vmul.f32 %v3173_v38, %v3073_v18  ;;  %v3074_v3 = vmul.f32 %v7686_v41, %v3072_v43  ;;  %v3075_v59 = vmul.f32 %v7688_v42, %v3073_v18 }
 0x938   :  { %v2920_v58 = vpop.permute.xlu1 %2919  ;;  %v7694_v51 = vpop.eup %7693  ;;  %7697 = vpow2.f32 %v2836_v33  ;;  %v3016_v18 = vperm.slane %v2889_v19, 0  ;;  %v3222_v38 = vsel %vm783_vm3, %v3220_v35, %v3221_v10  ;;  %v3618_v49 = vsub.f32 1.0, %v3617_v40 }
 0x939   :  { %v3046_v28 = vmul.f32 %v3014_v23, %v2920_v58  ;;  %v3223_v22 = vrot.slane %v3190_v12, 7  ;;  %v3224_v24 = vrot.slane %v3191_v31, 7  ;;  %v2840_v42 = vmul.f32 1.442695, %v2797_v30  ;;  %v7696_v12 = vpop.eup %7695 }
 0x93a   :  { %v2890_v31 = vrot.slane %v9312_v2, 5  ;;  %v3252_v56 = vsel %vm262_vm5, %v3222_v38, 0.0  ;;  %v3619_v52 = vmul.f32 %v9346_v8, %v3618_v49  ;;  %v3627_v33 = vand.u32 2147483648, %v9333_v39 }
 0x93b   :  { %v3077_v4 = vrot.slane %v3046_v28, 1  ;;  %v3225_v43 = vsel %vm783_vm3, %v3223_v22, %v3224_v24  ;;  %v2838_v28 = vmul.f32 1.442695, %v2796_v53  ;;  %v3253_v46 = vrot.slane %v3252_v56, 4  ;;  %v3139_v22 = vpop.permute.xlu0 %3138 }
 0x93c   :  { %v3259_v50 = vsel %vm262_vm5, %v3225_v43, 0.0  ;;  %v3620_v30 = vadd.f32 %v9346_v8, %v3619_v52  ;;  %v3175_v35 = vrot.slane %v3139_v22, 1 }
 0x93d   :  { %v9348_v17 = vadd.f32 %v3077_v4, %v3074_v3  ;;  %v9353_v1 = vadd.f32 %v3077_v4, %v3075_v59  ;;  %v2760_v4 = vperm.slane %v2745_v32, 0  ;;  %v3260_v47 = vrot.slane %v3259_v50, 4 }
 0x93e   :  { %3010 = vperm.xlu1 %7433, %v3005_v29   ;;  %v2723_v29 = vand.u32 2147483647, %v9344_v11  ;;  %v7698_v3 = vpop.eup %7697  ;;  %7699 = vpow2.f32 %v2838_v28 }
 0x93f   :  { %v3081_v57 = vmul.f32 %v7692_v37, %v9348_v17  ;;  %v3082_v45 = vmul.f32 %v7694_v51, %v9353_v1  ;;  %v2798_v25 = vmul.f32 %v9204_v55, %v2760_v4  ;;  %7701 = vpow2.f32 %v2840_v42  ;;  %v9375_v24 = vpop.permute.xlu2 %2954 }
 0x940   :  { %v2934_v23 = vpop.permute.xlu1 %2933  ;;  %v2725_v58 = vsub.f32 0.0, %v2723_v29  ;;  %v2799_v16 = vmul.f32 %v9304_v60, %v2760_v4  ;;  %v3625_v37 = vand.u32 2147483647, %v9333_v39  ;;  %v3017_v51 = vperm.slane %v2890_v31, 0 }
 0x941   :  { %v3048_v62 = vmul.f32 %v3016_v18, %v2934_v23  ;;  %v3086_v7 = vadd.f32 %v3084_v44, %v3081_v57  ;;  %v3087_v41 = vadd.f32 %v3084_v44, %v3082_v45  ;;  %v3261_v40 = vadd.f32 %v3260_v47, %v3259_v50 }
 0x942   :  { %v2728_v63 = vmul.f32 1.442695, %v2725_v58  ;;  %v2842_v53 = vmul.f32 1.442695, %v2798_v25  ;;  %v3049_v32 = vmul.f32 %v3017_v51, %v9314_v9  ;;  %v2844_v10 = vmul.f32 1.442695, %v2799_v16 }
 0x943   :  { %v3088_v59 = vmul.f32 %v7696_v12, %v3086_v7  ;;  %v3091_v13 = vrot.slane %v3048_v62, 1  ;;  %v3089_v19 = vmul.f32 %v7698_v3, %v3087_v41  ;;  %vm9383_vm10 = vcmp.eq.f32.partialorder %v3625_v37, 8.507059e+37 }
 0x944   :  { %7703 = vpow2.f32 %v2728_v63  ;;  %v7700_v23 = vpop.eup %7699  ;;  %v3262_v58 = vrot.slane %v3261_v40, 2  ;;  %v3194_v62 = vmul.f32 %v3175_v35, %v3086_v7  ;;  %v3195_v38 = vmul.f32 %v3175_v35, %v3087_v41 }
 0x945   :  { %v3093_v29 = vadd.f32 %v3091_v13, %v3088_v59  ;;  %v3094_v57 = vadd.f32 %v3091_v13, %v3089_v19  ;;  %v7702_v18 = vpop.eup %7701  ;;  %7705 = vpow2.f32 %v2842_v53  ;;  %v3624_v42 = vsel %vm9392_vm11, %v9346_v8, %v3620_v30  ;;  %vm11066_vm11 = vmmov %vm11059_vm12 }
 0x946   :  { %7434 = vset.pattern.permute.xlu1 %v11053_v61  ;;  %v3628_v7 = vor.u32 1.1754944e-38, %v3627_v33  ;;  %v3098_v41 = vrot.slane %v3049_v32, 1  ;;  %7707 = vpow2.f32 %v2844_v10  ;;  %v3018_v31 = vperm.slane %v2891_v27, 0 }
 0x947   :  { %v3095_v28 = vmul.f32 %v7700_v23, %v3093_v29  ;;  %v3096_v50 = vmul.f32 %v7702_v18, %v3094_v57  ;;  %v3263_v59 = vadd.f32 %v3262_v58, %v3261_v40  ;;  %v3229_v13 = vrot.slane %v3194_v62, 7  ;;  %v3157_v18 = vpop.permute.xlu0 %3156 }
 0x948   :  { %v3230_v63 = vrot.slane %v3195_v38, 7  ;;  %v3050_v52 = vmul.f32 %v3018_v31, %v9327_v20 }
 0x949   :  { %v3100_v19 = vadd.f32 %v3098_v41, %v3095_v28  ;;  %v3101_v8 = vadd.f32 %v3098_v41, %v3096_v50 }
 0x94a   :  { %v7704_v12 = vpop.eup %7703  ;;  %v3231_v30 = vsel %vm783_vm3, %v3229_v13, %v3230_v63  ;;  %v3105_v20 = vrot.slane %v3050_v52, 1 }
 0x94b   :  { %v2731_v25 = vadd.f32 1.0, %v7704_v12  ;;  %v7706_v22 = vpop.eup %7705 }
 0x94c   :  { %v7708_v53 = vpop.eup %7707  ;;  %v3102_v32 = vmul.f32 %v7706_v22, %v3100_v19 }
 0x94d   :  { %v3103_v35 = vmul.f32 %v7708_v53, %v3101_v8  ;;  %7709 = vlog2.f32 %v2731_v25 }
 0x94e   :  { %3398 = vperm.xlu1 %7434, %v2991_v14   ;;  %v3254_v14 = vadd.f32 %v3253_v46, %v3252_v56  ;;  %v9413_v50 = vadd.f32 %v3105_v20, %v3102_v32 }
 0x94f   :  { %v3151_v3 = vpop.permute.xlu2 %3150 }
 0x950   :  { %v3133_v45 = vpop.permute.xlu1 %3132  ;;  %v3255_v39 = vrot.slane %v3254_v14, 2  ;;  %v3177_v16 = vrot.slane %v3151_v3, 1 }
 0x951   :  { %v3174_v43 = vrot.slane %v3133_v45, 1 }
 0x952   :  { %v3256_v33 = vadd.f32 %v3255_v39, %v3254_v14  ;;  %v3198_v44 = vmul.f32 %v3177_v16, %v3100_v19  ;;  %v3199_v27 = vmul.f32 %v3177_v16, %v3101_v8  ;;  %v2721_v16 = vmax.f32 %v9344_v11, 0.0 }
 0x953   :  { %v3192_v4 = vmul.f32 %v3174_v43, %v9348_v17  ;;  %v3193_v49 = vmul.f32 %v3174_v43, %v9353_v1  ;;  %v3629_v17 = vsel %vm9383_vm10, %v3628_v7, %v3624_v42  ;;  %v7710_v41 = vpop.eup %7709  ;;  %vm11065_vm10 = vmmov %vm11063_vm1 }
 0x954   :  { %v3632_v26 = vmul.f32 %v3629_v17, %v9216_v48  ;;  %v3257_v43 = vrot.slane %v3256_v33, 1  ;;  %v3273_v48 = vsel %vm262_vm5, %v3231_v30, 0.0  ;;  %v2735_v17 = vmul.f32 0.6931472, %v7710_v41 }
 0x955   :  { %v3226_v56 = vrot.slane %v3192_v4, 7  ;;  %v3227_v47 = vrot.slane %v3193_v49, 7  ;;  %v3235_v4 = vrot.slane %v3198_v44, 7  ;;  %v3236_v49 = vrot.slane %v3199_v27, 7 }
 0x956   :  { %3162 = vperm.xlu1 %7434, %v2949_v0   ;;  %v3264_v0 = vrot.slane %v3263_v59, 1  ;;  %v3258_v42 = vadd.f32 %v3257_v43, %v3256_v33  ;;  %v3274_v12 = vrot.slane %v3273_v48, 4  ;;  %v9428_v22 = vadd.f32 %v2735_v17, %v2721_v16 }
 0x957   :  { %v3228_v1 = vsel %vm783_vm3, %v3226_v56, %v3227_v47  ;;  %v3237_v47 = vsel %vm783_vm3, %v3235_v4, %v3236_v49 }
 0x958   :  { %v3266_v37 = vsel %vm262_vm5, %v3228_v1, 0.0  ;;  %v3145_v46 = vpop.permute.xlu1 %3144  ;;  %v3265_v62 = vadd.f32 %v3264_v0, %v3263_v59  ;;  %v3275_v8 = vadd.f32 %v3274_v12, %v3273_v48  ;;  %v3287_v25 = vsel %vm262_vm5, %v3237_v47, 0.0 }
 0x959   :  { %v3267_v51 = vrot.slane %v3266_v37, 4  ;;  %v3176_v40 = vrot.slane %v3145_v46, 1  ;;  %v2762_v30 = vperm.slane %v9428_v22, 0 }
 0x95a   :  { %v3564_v56 = vsel %vm1128_vm4, %v3265_v62, %v3258_v42  ;;  %v3276_v33 = vrot.slane %v3275_v8, 2 }
 0x95b   :  { %v3268_v10 = vadd.f32 %v3267_v51, %v3266_v37  ;;  %v3196_v45 = vmul.f32 %v3176_v40, %v3093_v29  ;;  %v3197_v23 = vmul.f32 %v3176_v40, %v3094_v57  ;;  %v9415_v29 = vadd.f32 %v3105_v20, %v3103_v35 }
 0x95c   :  { %v3178_v57 = vrot.slane %v3157_v18, 1  ;;  %v3288_v51 = vrot.slane %v3287_v25, 4  ;;  %v2802_v11 = vmul.f32 %v9204_v55, %v2762_v30  ;;  %v2747_v20 = vrot.slane %v9428_v22, 1 }
 0x95d   :  { %v3269_v14 = vrot.slane %v3268_v10, 2  ;;  %v3232_v58 = vrot.slane %v3196_v45, 7  ;;  %v3233_v28 = vrot.slane %v3197_v23, 7  ;;  %v2803_v27 = vmul.f32 %v9304_v60, %v2762_v30 }
 0x95e   :  { %3637 = vrot.lane.b32.xlu1 %v3632_v26, %s8060_s11  ;;  %v3200_v31 = vmul.f32 %v3178_v57, %v9413_v50  ;;  %v3201_v39 = vmul.f32 %v3178_v57, %v9415_v29  ;;  %v3277_v26 = vadd.f32 %v3276_v33, %v3275_v8  ;;  %v3289_v0 = vadd.f32 %v3288_v51, %v3287_v25 }
 0x95f   :  { %v3270_v38 = vadd.f32 %v3269_v14, %v3268_v10  ;;  %v3234_v9 = vsel %vm783_vm3, %v3232_v58, %v3233_v28  ;;  %7436 = vset.pattern.permute.xlu1 %v11054_v6  ;;  %v2850_v14 = vmul.f32 1.442695, %v2802_v11  ;;  %v2763_v58 = vperm.slane %v2747_v20, 0 }
 0x960   :  { %v3280_v59 = vsel %vm262_vm5, %v3234_v9, 0.0  ;;  %v3238_v13 = vrot.slane %v3200_v31, 7  ;;  %v3239_v63 = vrot.slane %v3201_v39, 7  ;;  %v3278_v45 = vrot.slane %v3277_v26, 1 }
 0x961   :  { %v3271_v7 = vrot.slane %v3270_v38, 1  ;;  %v3281_v52 = vrot.slane %v3280_v59, 4  ;;  %v3290_v23 = vrot.slane %v3289_v0, 2  ;;  %v2852_v48 = vmul.f32 1.442695, %v2803_v27 }
 0x962   :  { %v3240_v1 = vsel %vm783_vm3, %v3238_v13, %v3239_v63  ;;  %v3279_v28 = vadd.f32 %v3278_v45, %v3277_v26  ;;  %v2748_v9 = vrot.slane %v9428_v22, 2  ;;  %7711 = vpow2.f32 %v2850_v14  ;;  %v9461_v45 = vld [vmem:[%s10983_s3 + $0x40] sm:$0xff] }
 0x963   :  { %v3272_v3 = vadd.f32 %v3271_v7, %v3270_v38  ;;  %v3294_v46 = vsel %vm262_vm5, %v3240_v1, 0.0  ;;  %v3282_v40 = vadd.f32 %v3281_v52, %v3280_v59  ;;  %v3291_v18 = vadd.f32 %v3290_v23, %v3289_v0 }
 0x964   :  { %v3295_v53 = vrot.slane %v3294_v46, 4  ;;  %v9436_v38 = vmul.f32 %v9428_v22, %v9245_v5  ;;  %v2804_v42 = vmul.f32 %v9204_v55, %v2763_v58  ;;  %7713 = vpow2.f32 %v2852_v48 }
 0x965   :  { %v3565_v19 = vsel %vm1130_vm6, %v3272_v3, %v3564_v56  ;;  %v3283_v32 = vrot.slane %v3282_v40, 2  ;;  %v3292_v49 = vrot.slane %v3291_v18, 1  ;;  %v2805_v12 = vmul.f32 %v9304_v60, %v2763_v58 }
 0x966   :  { %v3296_v10 = vadd.f32 %v3295_v53, %v3294_v46  ;;  %v3566_v4 = vsel %vm1132_vm7, %v3279_v28, %v3565_v19  ;;  %v3020_v31 = vperm.slane %v9436_v38, 0  ;;  %v2764_v39 = vperm.slane %v2748_v9, 0  ;;  %v9454_v53 = vpop.f32.mrf.mxu2 }
 0x967   :  { %v3284_v44 = vadd.f32 %v3283_v32, %v3282_v40  ;;  %v3293_v56 = vadd.f32 %v3292_v49, %v3291_v18  ;;  %v2854_v59 = vmul.f32 1.442695, %v2804_v42  ;;  %v2893_v13 = vrot.slane %v9436_v38, 1 }
 0x968   :  { %v2962_v37 = vpop.permute.xlu1 %2961  ;;  %v3297_v43 = vrot.slane %v3296_v10, 2  ;;  %v2856_v63 = vmul.f32 1.442695, %v2805_v12  ;;  %v2749_v19 = vrot.slane %v9428_v22, 3  ;;  %v7712_v8 = vpop.eup %7711  ;;  %v2806_v1 = vmul.f32 %v9204_v55, %v2764_v39 }
 0x969   :  { %v3285_v62 = vrot.slane %v3284_v44, 1  ;;  %v3052_v47 = vmul.f32 %v3020_v31, %v2962_v37  ;;  %v2807_v46 = vmul.f32 %v9304_v60, %v2764_v39  ;;  %7715 = vpow2.f32 %v2854_v59 }
 0x96a   :  { %v3298_v57 = vadd.f32 %v3297_v43, %v3296_v10  ;;  %v7714_v16 = vpop.eup %7713  ;;  %v3021_v37 = vperm.slane %v2893_v13, 0  ;;  %7717 = vpow2.f32 %v2856_v63  ;;  %v2765_v40 = vperm.slane %v2749_v19, 0 }
 0x96b   :  { %v3286_v41 = vadd.f32 %v3285_v62, %v3284_v44  ;;  %v3311_v33 = vrot.slane %v3052_v47, 1  ;;  %v3308_v26 = vmul.f32 0.0, %v7712_v8  ;;  %v3309_v0 = vmul.f32 0.0, %v7714_v16 }
 0x96c   :  { %v3299_v3 = vrot.slane %v3298_v57, 1  ;;  %v2858_v30 = vmul.f32 1.442695, %v2806_v1  ;;  %v2860_v10 = vmul.f32 1.442695, %v2807_v46  ;;  %v4440_v20 = vrot.slane %v9454_v53, 5 }
 0x96d   :  { %v3567_v17 = vsel %vm11059_vm12, %v3286_v41, %v3566_v4  ;;  %v9463_v23 = vadd.f32 %v3311_v33, %v3308_v26  ;;  %v9465_v11 = vadd.f32 %v3311_v33, %v3309_v0  ;;  %v2894_v44 = vrot.slane %v9436_v38, 2  ;;  %v2976_v41 = vpop.permute.xlu0 %2975  ;;  %vm11067_vm12 = vmmov %vm11060_vm13 }
 0x96e   :  { %v3300_v25 = vadd.f32 %v3299_v3, %v3298_v57  ;;  %v3568_v52 = vsel %vm11060_vm13, %v3293_v56, %v3567_v17  ;;  %7719 = vpow2.f32 %v2858_v30  ;;  %v2750_v14 = vrot.slane %v9428_v22, 4  ;;  %vm11068_vm13 = vmmov %vm11061_vm14 }
 0x96f   :  { %v7716_v27 = vpop.eup %7715  ;;  %v9477_v28 = vperm.slane %v9461_v45, 1  ;;  %7721 = vpow2.f32 %v2860_v10  ;;  %v2809_v62 = vmul.f32 %v9304_v60, %v2765_v40  ;;  %v4443_v48 = vperm.slane %v9461_v45, 0 }
 0x970   :  { %v2969_v35 = vpop.permute.xlu1 %2968  ;;  %v9452_v51 = vsel %vm11061_vm14, %v3300_v25, %v3568_v52  ;;  %v7718_v58 = vpop.eup %7717  ;;  %v3315_v9 = vmul.f32 %v7716_v27, %v9463_v23  ;;  %v4442_v4 = vsel %vm117_vm8, 0.0, %v4440_v20  ;;  %v9485_v49 = vperm.slane %v9461_v45, 2 }
 0x971   :  { %v3053_v55 = vmul.f32 %v3021_v37, %v2969_v35  ;;  %v9472_v35 = vld [vmem:[%s10983_s3 + $0x20] sm:$0xff]  ;;  %v3316_v57 = vmul.f32 %v7718_v58, %v9465_v11  ;;  %v9488_v42 = vperm.slane %v9461_v45, 3  ;;  %v3022_v12 = vperm.slane %v2894_v44, 0 }
 0x972   :  { %v2808_v18 = vmul.f32 %v9472_v35, %v2765_v40  ;;  %v2766_v56 = vperm.slane %v2750_v14, 0  ;;  %v4445_v47 = vperm.slane %v9461_v45, 4  ;;  %v4449_v59 = vmul.f32 %v9477_v28, %v4440_v20  ;;  %v9506_v40 = vpop.f32.mrf.mxu2 }
 0x973   :  { %v3318_v43 = vrot.slane %v3053_v55, 1  ;;  %v2864_v13 = vmul.f32 1.442695, %v2809_v62  ;;  %v4448_v19 = vmul.f32 %v9477_v28, %v4442_v4  ;;  %v3054_v17 = vmul.f32 %v3022_v12, %v2976_v41 }
 0x974   :  { %v2862_v3 = vmul.f32 1.442695, %v2808_v18  ;;  %v7720_v63 = vpop.eup %7719  ;;  %v2895_v8 = vrot.slane %v9436_v38, 3  ;;  %v2751_v25 = vrot.slane %v9428_v22, 5  ;;  %v4444_v16 = vmul.f32 %v4443_v48, %v4442_v4 }
 0x975   :  { %v9490_v31 = vadd.f32 %v3318_v43, %v3315_v9  ;;  %v9492_v39 = vadd.f32 %v3318_v43, %v3316_v57  ;;  %v7722_v52 = vpop.eup %7721  ;;  %v4458_v46 = vmul.f32 %v9485_v49, %v4442_v4  ;;  %v4459_v33 = vmul.f32 %v9485_v49, %v4440_v20 }
 0x976   :  { %v4469_v37 = vmul.f32 %v9488_v42, %v4440_v20  ;;  %7723 = vpow2.f32 %v2862_v3  ;;  %v2810_v30 = vmul.f32 %v9472_v35, %v2766_v56  ;;  %v4453_v55 = vrot.slane %v4449_v59, 1 }
 0x977   :  { %v3322_v26 = vmul.f32 %v7720_v63, %v9490_v31  ;;  %v3323_v0 = vmul.f32 %v7722_v52, %v9492_v39  ;;  %v4468_v10 = vmul.f32 %v9488_v42, %v4442_v4  ;;  %7725 = vpow2.f32 %v2864_v13 }
 0x978   :  { %v9441_v7 = vpop.permute.xlu1 %2982  ;;  %v2811_v44 = vmul.f32 %v9304_v60, %v2766_v56  ;;  %v4452_v27 = vrot.slane %v4448_v19, 1  ;;  %v3325_v43 = vrot.slane %v3054_v17, 1  ;;  %v3023_v18 = vperm.slane %v2895_v8, 0 }
 0x979   :  { %v2767_v14 = vperm.slane %v2751_v25, 0  ;;  %v4463_v20 = vrot.slane %v4459_v33, 2  ;;  %v4498_v58 = vrot.slane %v9506_v40, 5  ;;  %v2896_v62 = vrot.slane %v9436_v38, 4 }
 0x97a   :  { %v2752_v9 = vrot.slane %v9428_v22, 6  ;;  %v3055_v57 = vmul.f32 %v3023_v18, %v9441_v7  ;;  %v9517_v41 = vadd.f32 %v3325_v43, %v3322_v26  ;;  %v9519_v12 = vadd.f32 %v3325_v43, %v3323_v0  ;;  %v9527_v0 = vpop.permute.xlu2 %3374 }
 0x97b   :  { %v2866_v4 = vmul.f32 1.442695, %v2810_v30  ;;  %v4462_v3 = vrot.slane %v4458_v46, 2  ;;  %v4472_v56 = vrot.slane %v4468_v10, 3  ;;  %v4473_v59 = vrot.slane %v4469_v37, 3 }
 0x97c   :  { %v2868_v13 = vmul.f32 1.442695, %v2811_v44  ;;  %v7724_v63 = vpop.eup %7723  ;;  %v4446_v19 = vadd.f32 %v4445_v47, %v4444_v16  ;;  %v4454_v17 = vsel %vm128_vm9, %v4452_v27, %v4453_v55  ;;  %v2812_v8 = vmul.f32 %v9472_v35, %v2767_v14 }
 0x97d   :  { %v7726_v25 = vpop.eup %7725  ;;  %v4500_v7 = vsel %vm117_vm8, 0.0, %v4498_v58  ;;  %v3024_v52 = vperm.slane %v2896_v62, 0  ;;  %v2813_v33 = vmul.f32 %v9304_v60, %v2767_v14  ;;  %v2768_v26 = vperm.slane %v2752_v9, 0 }
 0x97e   :  { %v3329_v46 = vmul.f32 %v7724_v63, %v9517_v41  ;;  %v3330_v37 = vmul.f32 %v7726_v25, %v9519_v12  ;;  %v3332_v30 = vrot.slane %v3055_v57, 1  ;;  %7727 = vpow2.f32 %v2866_v4 }
 0x97f   :  { %v9532_v55 = vsel %vm11062_vm15, %v4462_v3, %v4463_v20  ;;  %v9535_v10 = vsel %vm11063_vm1, %v4472_v56, %v4473_v59  ;;  %v4504_v44 = vmul.f32 %v4498_v58, %v9477_v28  ;;  %7729 = vpow2.f32 %v2868_v13 }
 0x980   :  { %v9456_v32 = vpop.permute.xlu1 %2989  ;;  %v2870_v43 = vmul.f32 1.442695, %v2812_v8  ;;  %v2897_v18 = vrot.slane %v9436_v38, 5  ;;  %v2753_v14 = vrot.slane %v9428_v22, 7  ;;  %v9541_v62 = vadd.f32 %v4454_v17, %v4446_v19  ;;  %v3381_v19 = vpop.permute.xlu0 %3380 }
 0x981   :  { %v3056_v27 = vmul.f32 %v3024_v52, %v9456_v32  ;;  %v4501_v9 = vmul.f32 %v4500_v7, %v4443_v48  ;;  %v4503_v20 = vmul.f32 %v4500_v7, %v9477_v28  ;;  %v2872_v57 = vmul.f32 1.442695, %v2813_v33 }
 0x982   :  { %v4512_v4 = vmul.f32 %v4500_v7, %v9485_v49  ;;  %v9547_v3 = vadd.f32 %v3332_v30, %v3329_v46  ;;  %v9549_v56 = vadd.f32 %v3332_v30, %v3330_v37  ;;  %v2814_v32 = vmul.f32 %v9472_v35, %v2768_v26 }
 0x983   :  { %v4508_v59 = vrot.slane %v4504_v44, 1  ;;  %v4513_v13 = vmul.f32 %v4498_v58, %v9485_v49  ;;  %v9554_v22 = vmul.f32 %v4500_v7, %v9488_v42  ;;  %v2815_v63 = vmul.f32 %v9304_v60, %v2768_v26 }
 0x984   :  { %v7728_v48 = vpop.eup %7727  ;;  %v3339_v28 = vrot.slane %v3056_v27, 1  ;;  %7731 = vpow2.f32 %v2870_v43  ;;  %v3025_v17 = vperm.slane %v2897_v18, 0  ;;  %v2769_v8 = vperm.slane %v2753_v14, 0 }
 0x985   :  { %v7730_v25 = vpop.eup %7729  ;;  %v4502_v52 = vadd.f32 %v4501_v9, %v4445_v47  ;;  %v9560_v33 = vmul.f32 %v4498_v58, %v9488_v42  ;;  %7733 = vpow2.f32 %v2872_v57  ;;  %v2898_v49 = vrot.slane %v9436_v38, 6  ;;  %v3387_v47 = vpop.permute.xlu2 %3386 }
 0x986   :  { %v3336_v7 = vmul.f32 %v7728_v48, %v9547_v3  ;;  %v3337_v26 = vmul.f32 %v7730_v25, %v9549_v56  ;;  %v2874_v37 = vmul.f32 1.442695, %v2814_v32  ;;  %v4507_v44 = vrot.slane %v4503_v20, 1 }
 0x987   :  { %v4516_v27 = vrot.slane %v4512_v4, 2  ;;  %v2876_v43 = vmul.f32 1.442695, %v2815_v63  ;;  %v4517_v14 = vrot.slane %v4513_v13, 2  ;;  %v2816_v58 = vmul.f32 %v9472_v35, %v2769_v8 }
 0x988   :  { %v9498_v1 = vpop.permute.xlu1 %2996  ;;  %v9566_v9 = vadd.f32 %v3339_v28, %v3336_v7  ;;  %v9568_v42 = vadd.f32 %v3339_v28, %v3337_v26  ;;  %v4525_v57 = vrot.slane %v9554_v22, 3  ;;  %v3421_v48 = vrot.slane %v9527_v0, 1 }
 0x989   :  { %v3057_v46 = vmul.f32 %v3025_v17, %v9498_v1  ;;  %v3026_v25 = vperm.slane %v2898_v49, 0  ;;  %v2817_v1 = vmul.f32 %v9304_v60, %v2769_v8  ;;  %7735 = vpow2.f32 %v2874_v37 }
 0x98a   :  { %v7732_v32 = vpop.eup %7731  ;;  %v4509_v28 = vsel %vm128_vm9, %v4507_v44, %v4508_v59  ;;  %v3438_v17 = vmul.f32 %v3421_v48, %v9490_v31  ;;  %v3439_v7 = vmul.f32 %v3421_v48, %v9492_v39  ;;  %7737 = vpow2.f32 %v2876_v43 }
 0x98b   :  { %v3346_v20 = vrot.slane %v3057_v46, 1  ;;  %v7734_v63 = vpop.eup %7733  ;;  %v3343_v0 = vmul.f32 %v7732_v32, %v9566_v9  ;;  %v2878_v8 = vmul.f32 1.442695, %v2816_v58  ;;  %v4518_v49 = vsel %vm11064_vm2, %v4516_v27, %v4517_v14  ;;  %v3393_v46 = vpop.permute.xlu0 %3392 }
 0x98c   :  { %v3344_v22 = vmul.f32 %v7734_v63, %v9568_v42  ;;  %v3422_v26 = vrot.slane %v3381_v19, 1  ;;  %v3423_v44 = vrot.slane %v3387_v47, 1  ;;  %v3471_v43 = vrot.slane %v3438_v17, 7 }
 0x98d   :  { %v9583_v37 = vadd.f32 %v3346_v20, %v3343_v0  ;;  %7739 = vpow2.f32 %v2878_v8  ;;  %v2899_v58 = vrot.slane %v9436_v38, 7  ;;  %vm11069_vm14 = vcmask 1047559  }
 0x98e   :  { %v9585_v59 = vadd.f32 %v3346_v20, %v3344_v22  ;;  %v3441_v27 = vmul.f32 %v3422_v26, %v9519_v12  ;;  %vm11070_vm15 = vmmov %vm11069_vm14 }
 0x98f   :  { %v7736_v48 = vpop.eup %7735 }
 0x990   :  { %v3004_v16 = vpop.permute.xlu1 %3003  ;;  %v7738_v19 = vpop.eup %7737  ;;  %v3350_v47 = vmul.f32 %v7736_v48, %v9583_v37  ;;  %v3475_v63 = vrot.slane %v3441_v27, 7 }
 0x991   :  { %v3058_v60 = vmul.f32 %v3026_v25, %v3004_v16  ;;  %v3440_v16 = vmul.f32 %v3422_v26, %v9517_v41  ;;  %v2746_v25 = vrot.slane %v9293_v36, 7  ;;  %v3351_v32 = vmul.f32 %v7738_v19, %v9585_v59 }
 0x992   :  { %v4466_v26 = vadd.f32 %v9532_v55, %v9541_v62 }
 0x993   :  { %v3353_v14 = vrot.slane %v3058_v60, 1  ;;  %v7740_v0 = vpop.eup %7739 }
 0x995   :  { %v3355_v38 = vadd.f32 %v3353_v14, %v3350_v47 }
 0x997   :  { %v3357_v48 = vmul.f32 %v7740_v0, %v3355_v38 }
 0x9a0   :  { %v3369_v30 = vpop.permute.xlu1 %3368 }
 0x9a1   :  { %v3420_v18 = vrot.slane %v3369_v30, 1  ;;  %v4511_v30 = vadd.f32 %v4509_v28, %v4502_v52  ;;  %v3443_v52 = vmul.f32 %v3423_v44, %v9549_v56  ;;  %v3356_v28 = vadd.f32 %v3353_v14, %v3351_v32  ;;  %v8028_v32 = vld [vmem:[%s10983_s3 + $0x28] sm:$0x7f] }
 0x9a2   :  { %v3027_v56 = vperm.slane %v2899_v58, 0 }
 0x9a3   :  { %v3436_v4 = vmul.f32 %v3420_v18, %v9463_v23  ;;  %v3437_v13 = vmul.f32 %v3420_v18, %v9465_v11  ;;  %v4526_v23 = vrot.slane %v9560_v33, 3  ;;  %v2880_v11 = vmul.f32 1.442695, %v2817_v1  ;;  %v3405_v1 = vpop.permute.xlu2 %3404 }
 0x9a4   :  { %v3472_v18 = vrot.slane %v3439_v7, 7  ;;  %v3442_v33 = vmul.f32 %v3423_v44, %v9547_v3  ;;  %v4520_v12 = vadd.f32 %v4518_v49, %v4511_v30  ;;  %v3426_v36 = vrot.slane %v3405_v1, 1 }
 0x9a5   :  { %v3468_v31 = vrot.slane %v3436_v4, 7  ;;  %v3469_v39 = vrot.slane %v3437_v13, 7  ;;  %7741 = vpow2.f32 %v2880_v11  ;;  %v4527_v20 = vsel %vm11065_vm10, %v4525_v57, %v4526_v23 }
 0x9a6   :  { %v3424_v4 = vrot.slane %v3393_v46, 1  ;;  %v3473_v3 = vsel %vm783_vm3, %v3471_v43, %v3472_v18  ;;  %v3474_v13 = vrot.slane %v3440_v16, 7  ;;  %v2761_v7 = vperm.slane %v2746_v25, 0 }
 0x9a7   :  { %v3470_v41 = vsel %vm783_vm3, %v3468_v31, %v3469_v39  ;;  %v3477_v22 = vrot.slane %v3442_v33, 7  ;;  %v3478_v60 = vrot.slane %v3443_v52, 7  ;;  %v9603_v11 = vadd.f32 %v4527_v20, %v4520_v12  ;;  %v3411_v39 = vpop.permute.xlu0 %3410 }
 0x9a8   :  { %v3500_v17 = vsel %vm262_vm5, %v3470_v41, 0.0  ;;  %v3444_v8 = vmul.f32 %v3424_v4, %v9566_v9  ;;  %v3445_v49 = vmul.f32 %v3424_v4, %v9568_v42  ;;  %v3507_v46 = vsel %vm262_vm5, %v3473_v3, 0.0 }
 0x9a9   :  { %v3476_v30 = vsel %vm783_vm3, %v3474_v13, %v3475_v63  ;;  %v3448_v44 = vmul.f32 %v3426_v36, %v3355_v38  ;;  %v3449_v43 = vmul.f32 %v3426_v36, %v3356_v28  ;;  %v3501_v18 = vrot.slane %v3500_v17, 4 }
 0x9aa   :  { %v2800_v42 = vmul.f32 %v9472_v35, %v2761_v7  ;;  %v3508_v27 = vrot.slane %v3507_v46, 4  ;;  %v3479_v14 = vsel %vm783_vm3, %v3477_v22, %v3478_v60  ;;  %v3480_v55 = vrot.slane %v3444_v8, 7 }
 0x9ab   :  { %v7742_v23 = vpop.eup %7741  ;;  %v3481_v62 = vrot.slane %v3445_v49, 7  ;;  %v3427_v19 = vrot.slane %v3411_v39, 1  ;;  %v3514_v33 = vsel %vm262_vm5, %v3476_v30, 0.0  ;;  %v3486_v1 = vrot.slane %v3448_v44, 7 }
 0x9ac   :  { %v3358_v9 = vmul.f32 %v7742_v23, %v3356_v28  ;;  %v3487_v52 = vrot.slane %v3449_v43, 7  ;;  %v3502_v47 = vadd.f32 %v3501_v18, %v3500_v17  ;;  %v2801_v41 = vmul.f32 %v8028_v32, %v2761_v7 }
 0x9ad   :  { %v9618_v12 = vadd.f32 %v9535_v10, %v4466_v26  ;;  %v3521_v20 = vsel %vm262_vm5, %v3479_v14, 0.0  ;;  %v4530_v13 = vsub.f32 0.0, %v9603_v11  ;;  %v3509_v63 = vadd.f32 %v3508_v27, %v3507_v46 }
 0x9ae   :  { %v3515_v38 = vrot.slane %v3514_v33, 4  ;;  %v3482_v28 = vsel %vm783_vm3, %v3480_v55, %v3481_v62  ;;  %v3522_v0 = vrot.slane %v3521_v20, 4  ;;  %v3488_v7 = vsel %vm783_vm3, %v3486_v1, %v3487_v52 }
 0x9af   :  { %v3503_v10 = vrot.slane %v3502_v47, 2  ;;  %v2848_v22 = vmul.f32 1.442695, %v2801_v41  ;;  %v4477_v60 = vsub.f32 0.0, %v9618_v12  ;;  %v3528_v8 = vsel %vm262_vm5, %v3482_v28, 0.0 }
 0x9b0   :  { %v3011_v57 = vpop.permute.xlu1 %3010  ;;  %v4531_v49 = vmul.f32 1.442695, %v4530_v13  ;;  %v3516_v23 = vadd.f32 %v3515_v38, %v3514_v33  ;;  %v2892_v26 = vrot.slane %v9312_v2, 7  ;;  %v3542_v46 = vsel %vm262_vm5, %v3488_v7, 0.0  ;;  %v7355_v13 = vld [vmem:[%s10985_s5 + $0x50] sm:$0xff] }
 0x9b1   :  { %v3059_v31 = vmul.f32 %v3027_v56, %v3011_v57  ;;  %v2846_v56 = vmul.f32 1.442695, %v2800_v42  ;;  %v3510_v57 = vrot.slane %v3509_v63, 2  ;;  %v3523_v39 = vadd.f32 %v3522_v0, %v3521_v20 }
 0x9b2   :  { %v3529_v30 = vrot.slane %v3528_v8, 4  ;;  %v3504_v44 = vadd.f32 %v3503_v10, %v3502_v47  ;;  %v4478_v43 = vmul.f32 1.442695, %v4477_v60  ;;  %v3019_v27 = vperm.slane %v2892_v26, 0 }
 0x9b3   :  { %v3360_v16 = vrot.slane %v3059_v31, 1  ;;  %7743 = vpow2.f32 %v2846_v56  ;;  %v3511_v18 = vadd.f32 %v3510_v57, %v3509_v63  ;;  %v3524_v2 = vrot.slane %v3523_v39, 2 }
 0x9b4   :  { %7745 = vpow2.f32 %v2848_v22  ;;  %v3530_v55 = vadd.f32 %v3529_v30, %v3528_v8  ;;  %v3505_v62 = vrot.slane %v3504_v44, 1  ;;  %v3051_v1 = vmul.f32 %v3019_v27, %v9375_v24  ;;  %v7353_v27 = vld [vmem:[%s10985_s5 + $0x40] sm:$0xff] }
 0x9b5   :  { %v9610_v58 = vadd.f32 %v3360_v16, %v3357_v48  ;;  %v9612_v25 = vadd.f32 %v3360_v16, %v3358_v9  ;;  %v3517_v48 = vrot.slane %v3516_v23, 2  ;;  %v3543_v9 = vrot.slane %v3542_v46, 4 }
 0x9b6   :  { %7747 = vpow2.f32 %v4531_v49  ;;  %v3512_v20 = vrot.slane %v3511_v18, 1  ;;  %v3112_v56 = vrot.slane %v3051_v1, 1 }
 0x9b7   :  { %v3450_v4 = vmul.f32 %v3427_v19, %v9610_v58  ;;  %v3451_v3 = vmul.f32 %v3427_v19, %v9612_v25  ;;  %v7356_v19 = vld [vmem:[%s10985_s5 + $0x58] sm:$0xff]  ;;  %7749 = vpow2.f32 %v4478_v43 }
 0x9b8   :  { %3684 = vmatpush.bf16.msra.mxu0 %v7356_v19  ;;  %v3513_v10 = vadd.f32 %v3512_v20, %v3511_v18  ;;  %v7368_v19 = vld [vmem:[%s10984_s4 + $0x98] sm:$0xff] }
 0x9b9   :  { %v3489_v36 = vrot.slane %v3450_v4, 7  ;;  %v3490_v17 = vrot.slane %v3451_v3, 7  ;;  %v7744_v33 = vpop.eup %7743  ;;  %v3518_v4 = vadd.f32 %v3517_v48, %v3516_v23  ;;  %v3544_v3 = vadd.f32 %v3543_v9, %v3542_v46 }
 0x9ba   :  { %v7746_v41 = vpop.eup %7745  ;;  %v3109_v28 = vmul.f32 %v7744_v33, %v9413_v50  ;;  %v7354_v50 = vld [vmem:[%s10985_s5 + $0x48] sm:$0xff] }
 0x9bb   :  { %v3491_v31 = vsel %vm783_vm3, %v3489_v36, %v3490_v17  ;;  %v3110_v24 = vmul.f32 %v7746_v41, %v9415_v29  ;;  %v3525_v36 = vadd.f32 %v3524_v2, %v3523_v39  ;;  %v3506_v17 = vadd.f32 %v3505_v62, %v3504_v44 }
 0x9bc   :  { %v3549_v16 = vsel %vm262_vm5, %v3491_v31, 0.0  ;;  %v3519_v22 = vrot.slane %v3518_v4, 1  ;;  %v3545_v60 = vrot.slane %v3544_v3, 2  ;;  %3685 = vmatpush.bf16.msra.mxu0 %v7355_v13  ;;  %v9648_v57 = vadd.f32 %v3112_v56, %v3109_v28 }
 0x9bd   :  { %v3550_v52 = vrot.slane %v3549_v16, 4  ;;  %v9650_v23 = vadd.f32 %v3112_v56, %v3110_v24  ;;  %v3526_v39 = vrot.slane %v3525_v36, 1  ;;  %v3580_v44 = vsel %vm1128_vm4, %v3513_v10, %v3506_v17  ;;  %v7366_v10 = vld [vmem:[%s10984_s4 + $0x88] sm:$0xff] }
 0x9bf   :  { %v3551_v7 = vadd.f32 %v3550_v52, %v3549_v16  ;;  %v3520_v16 = vadd.f32 %v3519_v22, %v3518_v4  ;;  %v3527_v52 = vadd.f32 %v3526_v39, %v3525_v36  ;;  %v7365_v39 = vld [vmem:[%s10984_s4 + $0x80] sm:$0xff] }
 0x9c0   :  { %v3399_v42 = vpop.permute.xlu1 %3398  ;;  %3686 = vmatpush.bf16.msra.mxu0 %v7354_v50  ;;  %v3588_v50 = vperm.slane %v9472_v35, 6 }
 0x9c1   :  { %v3425_v14 = vrot.slane %v3399_v42, 1  ;;  %v3552_v9 = vrot.slane %v3551_v7, 2  ;;  %v3546_v42 = vadd.f32 %v3545_v60, %v3544_v3  ;;  %v3581_v1 = vsel %vm1130_vm6, %v3520_v16, %v3580_v44 }
 0x9c3   :  { %v3446_v47 = vmul.f32 %v3425_v14, %v9583_v37  ;;  %v3447_v32 = vmul.f32 %v3425_v14, %v9585_v59  ;;  %v3531_v37 = vrot.slane %v3530_v55, 2  ;;  %v7748_v59 = vpop.eup %7747  ;;  %v3553_v41 = vadd.f32 %v3552_v9, %v3551_v7 }
 0x9c4   :  { %v7750_v46 = vpop.eup %7749  ;;  %v9652_v31 = vadd.f32 1.0, %v7748_v59  ;;  %v3547_v4 = vrot.slane %v3546_v42, 1  ;;  %3687 = vmatpush.bf16.msra.mxu0 %v7353_v27  ;;  %v3636_v27 = vpop.permute.xlu2 %3635 }
 0x9c5   :  { %v3483_v63 = vrot.slane %v3446_v47, 7  ;;  %v3484_v38 = vrot.slane %v3447_v32, 7  ;;  %v3532_v30 = vadd.f32 %v3531_v37, %v3530_v55  ;;  %v9660_v14 = vadd.f32 1.0, %v7750_v46 }
 0x9c6   :  { %7751 = vrcp.f32 %v9652_v31  ;;  %v3554_v37 = vrot.slane %v3553_v41, 1  ;;  %v3548_v59 = vadd.f32 %v3547_v4, %v3546_v42  ;;  %vm4539_vm10 = vweird.f32 %v9652_v31 }
 0x9c7   :  { %v3485_v0 = vsel %vm783_vm3, %v3483_v63, %v3484_v38  ;;  %v3533_v33 = vrot.slane %v3532_v30, 1  ;;  %7753 = vrcp.f32 %v9660_v14  ;;  %v3582_v63 = vsel %vm1132_vm7, %v3527_v52, %v3581_v1  ;;  %v7367_v38 = vld [vmem:[%s10984_s4 + $0x90] sm:$0xff] }
 0x9c8   :  { %v3535_v8 = vsel %vm262_vm5, %v3485_v0, 0.0  ;;  %v3163_v49 = vpop.permute.xlu1 %3162  ;;  %4591 = vmatpush.bf16.msrb.mxu0 %v7368_v19 }
 0x9c9   :  { %v3536_v29 = vrot.slane %v3535_v8, 4  ;;  %v3179_v26 = vrot.slane %v3163_v49, 1  ;;  %v3534_v28 = vadd.f32 %v3533_v33, %v3532_v30  ;;  %v3555_v49 = vadd.f32 %v3554_v37, %v3553_v41 }
 0x9ca   :  { %v3590_v30 = vmul.f32 %v3588_v50, %v9245_v5 }
 0x9cb   :  { %v3537_v43 = vadd.f32 %v3536_v29, %v3535_v8  ;;  %v3202_v18 = vmul.f32 %v3179_v26, %v9648_v57  ;;  %v3203_v48 = vmul.f32 %v3179_v26, %v9650_v23  ;;  %v3583_v56 = vsel %vm11066_vm11, %v3534_v28, %v3582_v63 }
 0x9cc   :  { %v7752_v17 = vpop.eup %7751  ;;  %4592 = vmatpush.bf16.msrb.mxu0 %v7367_v38 }
 0x9cd   :  { %v3538_v2 = vrot.slane %v3537_v43, 2  ;;  %v3241_v62 = vrot.slane %v3202_v18, 7  ;;  %v3242_v55 = vrot.slane %v3203_v48, 7  ;;  %v7754_v60 = vpop.eup %7753  ;;  %v4535_v29 = vmul.f32 %v7752_v17, %v9652_v31 }
 0x9ce   :  { %v4482_v44 = vmul.f32 %v7754_v60, %v9660_v14  ;;  %v3589_v18 = vmul.f32 %v3588_v50, %v9243_v34  ;;  %vm4540_vm1 = vweird.f32 %v7752_v17  ;;  %v4545_v34 = vand.u32 2147483648, %v9652_v31 }
 0x9cf   :  { %v3539_v47 = vadd.f32 %v3538_v2, %v3537_v43  ;;  %v3243_v32 = vsel %vm783_vm3, %v3241_v62, %v3242_v55  ;;  %v4536_v9 = vsub.f32 1.0, %v4535_v29  ;;  %vm4487_vm2 = vweird.f32 %v7754_v60  ;;  %vm4541_vm11 = vmor %vm4539_vm10, %vm4540_vm1 }
 0x9d0   :  { %v3301_v20 = vsel %vm262_vm5, %v3243_v32, 0.0  ;;  %4593 = vmatpush.bf16.msrb.mxu0 %v7366_v10  ;;  %v4483_v42 = vsub.f32 1.0, %v4482_v44  ;;  %v3638_v2 = vpop.permute.xlu1 %3637  ;;  %v4490_v32 = vand.u32 2147483647, %v9660_v14  ;;  %v4601_v44 = vperm.slane %v9461_v45, 5 }
 0x9d1   :  { %v3540_v3 = vrot.slane %v3539_v47, 1  ;;  %v3302_v13 = vrot.slane %v3301_v20, 4  ;;  %v4537_v19 = vmul.f32 %v7752_v17, %v4536_v9 }
 0x9d2   :  { %v4484_v5 = vmul.f32 %v7754_v60, %v4483_v42 }
 0x9d3   :  { %v3303_v24 = vadd.f32 %v3302_v13, %v3301_v20  ;;  %v3541_v36 = vadd.f32 %v3540_v3, %v3539_v47  ;;  %v4538_v1 = vadd.f32 %v7752_v17, %v4537_v19  ;;  %v4492_v47 = vand.u32 2147483648, %v9660_v14 }
 0x9d4   :  { %4594 = vmatpush.bf16.msrb.mxu0 %v7365_v39  ;;  %v4485_v52 = vadd.f32 %v7754_v60, %v4484_v5  ;;  %v4546_v20 = vor.u32 1.1754944e-38, %v4545_v34 }
 0x9d5   :  { %v3304_v0 = vrot.slane %v3303_v24, 2  ;;  %v3584_v7 = vsel %vm11067_vm12, %v3541_v36, %v3583_v56  ;;  %vm4486_vm12 = vweird.f32 %v9660_v14  ;;  %v4542_v41 = vsel %vm4541_vm11, %v7752_v17, %v4538_v1 }
 0x9d6   :  { %v3585_v22 = vsel %vm11068_vm13, %v3548_v59, %v3584_v7  ;;  %vm4488_vm13 = vmor %vm4486_vm12, %vm4487_vm2  ;;  %v4493_v3 = vor.u32 1.1754944e-38, %v4492_v47 }
 0x9d7   :  { %v3305_v8 = vadd.f32 %v3304_v0, %v3303_v24  ;;  %v3586_v46 = vsel %vm11069_vm14, %v3555_v49, %v3585_v22  ;;  %v4489_v4 = vsel %vm4488_vm13, %v7754_v60, %v4485_v52  ;;  %v5478_v49 = vsub.f32 0.0, %v9506_v40 }
 0x9d8   :  { %v3592_v48 = vadd.f32 %v3590_v30, %v3586_v46 }
 0x9d9   :  { %v3306_v26 = vrot.slane %v3305_v8, 1  ;;  %v5481_v50 = vmul.f32 1.442695, %v5478_v49 }
 0x9da   :  { %v3642_v55 = vmul.f32 %v3638_v2, %v3592_v48 }
 0x9db   :  { %v3307_v43 = vadd.f32 %v3306_v26, %v3305_v8  ;;  %7755 = vpow2.f32 %v5481_v50  ;;  %v9784_v50 = vld [vmem:[%s10983_s3 + $0x48] sm:$0x7f] }
 0x9dd   :  { %v3570_v35 = vsel %vm11070_vm15, %v3307_v43, %v9452_v51  ;;  %v4543_v51 = vand.u32 2147483647, %v9652_v31  ;;  %vm4491_vm15 = vcmp.eq.f32.partialorder %v4490_v32, 8.507059e+37 }
 0x9de   :  { %v3591_v16 = vadd.f32 %v3589_v18, %v3570_v35  ;;  %v4494_v63 = vsel %vm4491_vm15, %v4493_v3, %v4489_v4  ;;  %v5477_v35 = vsub.f32 0.0, %v9454_v53 }
 0x9df   :  { %vm4544_vm14 = vcmp.eq.f32.partialorder %v4543_v51, 8.507059e+37  ;;  %v9702_v31 = vmul.f32 %v4494_v63, %v9618_v12 }
 0x9e0   :  { %v3641_v62 = vmul.f32 %v3636_v27, %v3591_v16  ;;  %v4547_v13 = vsel %vm4544_vm14, %v4546_v20, %v4542_v41  ;;  %v5479_v2 = vmul.f32 1.442695, %v5477_v35 }
 0x9e1   :  { %v9699_v38 = vmul.f32 %v4547_v13, %v9603_v11  ;;  %v7756_v26 = vpop.eup %7755 }
 0x9e2   :  { %v3643_v33 = vpack.c.bf16 %v3642_v55, %v3641_v62  ;;  %v5484_v46 = vadd.f32 1.0, %v7756_v26 }
 0x9e3   :  { %v4550_v28 = vpack.c.bf16 %v9699_v38, %v9702_v31 }
 0x9e4   :  { %7145 = vmatmul.msk.bf16.vlgmr.msra.gmra.mxu0 %vm262_vm5, %v3643_v33  ;;  %7757 = vrcp.f32 %v5484_v46  ;;  %v5511_v34 = vand.u32 2147483648, %v5484_v46  ;;  %vm5505_vm2 = vweird.f32 %v5484_v46  ;;  %v5509_v52 = vand.u32 2147483647, %v5484_v46 }
 0x9e5   :  { %7759 = vpow2.f32 %v5479_v2 }
 0x9e6   :  { %v5512_v32 = vor.u32 1.1754944e-38, %v5511_v34  ;;  %vm5510_vm11 = vcmp.eq.f32.partialorder %v5509_v52, 8.507059e+37 }
 0x9ea   :  { %v7758_v43 = vpop.eup %7757 }
 0x9eb   :  { %v5501_v18 = vmul.f32 %v7758_v43, %v5484_v46  ;;  %vm5506_vm1 = vweird.f32 %v7758_v43  ;;  %v7760_v47 = vpop.eup %7759  ;;  %v2479_v46 = vld [vmem:[%s10987_s7] sm:$0xff] }
 0x9ec   :  { %vm5507_vm10 = vmor %vm5505_vm2, %vm5506_vm1  ;;  %v5483_v20 = vadd.f32 1.0, %v7760_v47 }
 0x9ed   :  { %v5502_v16 = vsub.f32 1.0, %v5501_v18 }
 0x9ee   :  { %vm5490_vm13 = vweird.f32 %v5483_v20 }
 0x9ef   :  { %v5503_v55 = vmul.f32 %v7758_v43, %v5502_v16 }
 0x9f1   :  { %v5504_v5 = vadd.f32 %v7758_v43, %v5503_v55 }
 0x9f3   :  { %v5508_v51 = vsel %vm5507_vm10, %v7758_v43, %v5504_v5 }
 0x9f4   :  { %7225 = vmatmul.msk.bf16.vlgmr.msrb.gmra.mxu0 %vm262_vm5, %v4550_v28  ;;  %v5513_v41 = vsel %vm5510_vm11, %v5512_v32, %v5508_v51 }
 0x9f5   :  { %v5516_v3 = vmul.f32 %v5513_v41, %v9506_v40  ;;  %v9813_v41 = vld [vmem:[%s10983_s3 + $0x40] sm:$0xff] }
 0xa61   :  { %v3689_v14 = vpop.f32.mrf.mxu0 }
 0xa62   :  { %v9708_v24 = vadd.f32 %v3689_v14, %v9176_v21 }
 0xa64   :  { %v3706_v36 = vmul.f32 %v9708_v24, %v9708_v24 }
 0xa66   :  { %v3708_v37 = vsel %vm38_vm0, %v3706_v36, 0.0 }
 0xa67   :  { %3709 = vadd.xlane.f32.xlu0 %v3708_v37 }
 0xa69   :  { %v3691_v11 = vpop.f32.mrf.mxu0 }
 0xa6a   :  { %v9714_v17 = vadd.f32 %v3691_v11, %v9182_v54 }
 0xa6c   :  { %v3707_v12 = vmul.f32 %v9714_v17, %v9714_v17 }
 0xa6e   :  { %v3711_v59 = vsel %vm38_vm0, %v3707_v12, 0.0 }
 0xa6f   :  { %3712 = vadd.xlane.f32.xlu2 %v3711_v59 }
 0xa71   :  { %v9719_v56 = vpop.f32.mrf.mxu0 }
 0xa72   :  { %v4791_v0 = vperm.slane %v9719_v56, 1  ;;  %v4784_v7 = vperm.slane %v9719_v56, 0  ;;  %v4798_v10 = vperm.slane %v9719_v56, 2  ;;  %v4812_v22 = vperm.slane %v9719_v56, 4 }
 0xa73   :  { %v4805_v60 = vperm.slane %v9719_v56, 3  ;;  %v4819_v8 = vperm.slane %v9719_v56, 5  ;;  %v4826_v29 = vperm.slane %v9719_v56, 6  ;;  %v4602_v48 = vadd.f32 %v4601_v44, %v9719_v56 }
 0xa74   :  { %4796 = vperm.xlu1 %7436, %v4791_v0   ;;  %v4833_v62 = vperm.slane %v9719_v56, 7 }
 0xa75   :  { %v4606_v42 = vand.u32 2147483647, %v4602_v48  ;;  %v4604_v37 = vmax.f32 %v4602_v48, 0.0 }
 0xa77   :  { %v4608_v19 = vsub.f32 0.0, %v4606_v42 }
 0xa79   :  { %v9737_v39 = vpop.f32.mrf.mxu0  ;;  %v4610_v1 = vmul.f32 1.442695, %v4608_v19 }
 0xa7a   :  { %v4854_v30 = vperm.slane %v9737_v39, 2  ;;  %v4840_v9 = vperm.slane %v9737_v39, 0  ;;  %v4875_v27 = vperm.slane %v9737_v39, 5  ;;  %v4847_v33 = vperm.slane %v9737_v39, 1 }
 0xa7b   :  { %4789 = vperm.xlu0 %7435, %v4784_v7   ;;  %7761 = vpow2.f32 %v4610_v1  ;;  %v4889_v59 = vperm.slane %v9737_v39, 7  ;;  %v4868_v52 = vperm.slane %v9737_v39, 4 }
 0xa7c   :  { %4803 = vperm.xlu1 %7436, %v4798_v10   ;;  %7763 = vrcp.f32 %v5483_v20 }
 0xa81   :  { %v7762_v4 = vpop.eup %7761 }
 0xa82   :  { %v4614_v13 = vadd.f32 1.0, %v7762_v4  ;;  %v7764_v63 = vpop.eup %7763 }
 0xa83   :  { %7439 = vset.pattern.permute.xlu0 %v11053_v61  ;;  %v5486_v28 = vmul.f32 %v7764_v63, %v5483_v20  ;;  %vm5491_vm12 = vweird.f32 %v7764_v63 }
 0xa84   :  { %4817 = vperm.xlu1 %7436, %v4812_v22   ;;  %7765 = vlog2.f32 %v4614_v13  ;;  %vm9776_vm14 = vmor %vm5490_vm13, %vm5491_vm12 }
 0xa85   :  { %v5487_v40 = vsub.f32 1.0, %v5486_v28 }
 0xa87   :  { %4810 = vperm.xlu2 %7437, %v4805_v60   ;;  %v5488_v11 = vmul.f32 %v7764_v63, %v5487_v40 }
 0xa8a   :  { %v7766_v14 = vpop.eup %7765 }
 0xa8b   :  { %5010 = vperm.xlu0 %7439, %v4791_v0   ;;  %v4617_v36 = vmul.f32 0.6931472, %v7766_v14  ;;  %v5489_v0 = vadd.f32 %v7764_v63, %v5488_v11 }
 0xa8c   :  { %4824 = vperm.xlu1 %7436, %v4819_v8  }
 0xa8d   :  { %v9769_v12 = vadd.f32 %v4617_v36, %v4604_v37  ;;  %v5493_v26 = vsel %vm9776_vm14, %v7764_v63, %v5489_v0  ;;  %vm11079_vm14 = vcmask 1044484  }
 0xa8f   :  { %7438 = vset.pattern.permute.xlu2 %v11053_v61  ;;  %v4638_v56 = vperm.slane %v9769_v12, 0  ;;  %v9796_v43 = vmul.f32 %v9769_v12, %v9702_v31  ;;  %v4625_v48 = vrot.slane %v9769_v12, 2  ;;  %v4626_v55 = vrot.slane %v9769_v12, 3 }
 0xa90   :  { %v4628_v63 = vrot.slane %v9769_v12, 5 }
 0xa91   :  { %v4670_v18 = vmul.f32 %v9461_v45, %v4638_v56  ;;  %v4671_v16 = vmul.f32 %v9784_v50, %v4638_v56  ;;  %v4770_v19 = vrot.slane %v9796_v43, 1  ;;  %v4640_v1 = vperm.slane %v4625_v48, 0 }
 0xa92   :  { %v4641_v13 = vperm.slane %v4626_v55, 0  ;;  %v4772_v0 = vrot.slane %v9796_v43, 3  ;;  %v4629_v55 = vrot.slane %v9769_v12, 6 }
 0xa93   :  { %5028 = vperm.xlu0 %7439, %v4812_v22   ;;  %v4861_v22 = vperm.slane %v9737_v39, 3  ;;  %v4702_v5 = vmul.f32 1.442695, %v4670_v18  ;;  %v4704_v51 = vmul.f32 1.442695, %v4671_v16  ;;  %v4897_v40 = vperm.slane %v4770_v19, 0 }
 0xa94   :  { %4831 = vperm.xlu1 %7436, %v4826_v29   ;;  %v4674_v36 = vmul.f32 %v9813_v41, %v4640_v1  ;;  %v4675_v56 = vmul.f32 %v9784_v50, %v4640_v1 }
 0xa96   :  { %v4710_v48 = vmul.f32 1.442695, %v4674_v36  ;;  %v4712_v1 = vmul.f32 1.442695, %v4675_v56 }
 0xa97   :  { %5004 = vperm.xlu2 %7438, %v4784_v7   ;;  %v5496_v7 = vand.u32 2147483648, %v5483_v20 }
 0xa99   :  { %v5497_v35 = vor.u32 1.1754944e-38, %v5496_v7 }
 0xa9b   :  { %7444 = vset.pattern.permute.xlu0 %v11054_v6 }
 0xa9c   :  { %7440 = vset.pattern.permute.xlu1 %v11053_v61 }
 0xa9f   :  { %5034 = vperm.xlu2 %7438, %v4819_v8   ;;  %v5494_v8 = vand.u32 2147483647, %v5483_v20 }
 0xaa1   :  { %vm5495_vm15 = vcmp.eq.f32.partialorder %v5494_v8, 8.507059e+37  ;;  %v7357_v8 = vld [vmem:[%s10982_s2 + $0x30] sm:$0xff] }
 0xaa2   :  { %v5498_v2 = vsel %vm5495_vm15, %v5497_v35, %v5493_v26  ;;  %v4677_v26 = vmul.f32 %v9784_v50, %v4641_v13  ;;  %vm11080_vm15 = vcmask 1045509  }
 0xaa3   :  { %4859 = vperm.xlu0 %7444, %v4854_v30   ;;  %v9807_v47 = vmul.f32 %v5498_v2, %v9454_v53  ;;  %v4627_v53 = vrot.slane %v9769_v12, 4  ;;  %v4773_v2 = vrot.slane %v9796_v43, 4 }
 0xaa4   :  { %5016 = vperm.xlu1 %7440, %v4798_v10  }
 0xaa5   :  { %v4642_v35 = vperm.slane %v4627_v53, 0 }
 0xaa7   :  { %7443 = vset.pattern.permute.xlu2 %v11054_v6  ;;  %v4679_v53 = vmul.f32 %v9784_v50, %v4642_v35 }
 0xaab   :  { %7450 = vset.pattern.permute.xlu0 %v11053_v61 }
 0xaac   :  { %7441 = vset.pattern.permute.xlu1 %v11054_v6 }
 0xaaf   :  { %4845 = vperm.xlu2 %7443, %v4840_v9  }
 0xab3   :  { %5282 = vperm.xlu0 %7450, %v4875_v27  }
 0xab4   :  { %4838 = vperm.xlu1 %7441, %v4833_v62  }
 0xab7   :  { %4852 = vperm.xlu2 %7443, %v4847_v33  }
 0xabb   :  { %5046 = vperm.xlu0 %7450, %v4833_v62   ;;  %v3697_v62 = vrot.slane %v2479_v46, 1  ;;  %v4771_v46 = vrot.slane %v9796_v43, 2 }
 0xabc   :  { %7442 = vset.pattern.permute.xlu1 %v11053_v61 }
 0xabd   :  { %v9847_v18 = vadd.f32 %v3697_v62, %v9650_v23 }
 0xabf   :  { %7447 = vset.pattern.permute.xlu2 %v11053_v61  ;;  %11074 = vst [vmem:[#allocation7_spill] sm:$0xff] %v9847_v18 }
 0xac3   :  { %5521 = vrot.lane.b32.xlu0 %v5516_v3, %s8060_s11  ;;  %v9818_v3 = vadd.f32 %v3697_v62, %v9648_v57  ;;  %v7358_v57 = vld [vmem:[%s10982_s2 + $0x38] sm:$0xff] }
 0xac4   :  { %5022 = vperm.xlu1 %7442, %v4805_v60   ;;  %7451 = vset.pattern.permute.xlu0 %v11054_v6 }
 0xac5   :  { %11073 = vst [vmem:[#allocation10_spill] sm:$0xff] %v9818_v3  ;;  %3767 = vmatpush.bf16.msra.mxu3 %v7358_v57 }
 0xac7   :  { %5264 = vperm.xlu2 %7447, %v4854_v30  }
 0xac9   :  { %3768 = vmatpush.bf16.msra.mxu3 %v7357_v8 }
 0xacc   :  { %5040 = vperm.xlu1 %7442, %v4826_v29   ;;  %v4624_v29 = vrot.slane %v9769_v12, 1 }
 0xace   :  { %v4639_v42 = vperm.slane %v4624_v29, 0  ;;  %v4676_v29 = vmul.f32 %v9813_v41, %v4641_v13  ;;  %v4678_v13 = vmul.f32 %v9813_v41, %v4642_v35  ;;  %v4644_v35 = vperm.slane %v4629_v55, 0 }
 0xacf   :  { %7448 = vset.pattern.permute.xlu2 %v11054_v6 }
 0xad0   :  { %v4672_v20 = vmul.f32 %v9813_v41, %v4639_v42  ;;  %v4673_v4 = vmul.f32 %v9784_v50, %v4639_v42  ;;  %v4896_v42 = vperm.slane %v9796_v43, 0  ;;  %v4714_v62 = vmul.f32 1.442695, %v4676_v29 }
 0xad2   :  { %v4708_v60 = vmul.f32 1.442695, %v4673_v4 }
 0xad4   :  { %7445 = vset.pattern.permute.xlu1 %v11054_v6 }
 0xad7   :  { %4894 = vperm.xlu2 %7448, %v4889_v59  }
 0xada   :  { %v3710_v10 = vpop.xlane.xlu0 %3709 }
 0xadb   :  { %v3714_v49 = vmul.f32 %v3710_v10, %v11048_v15  ;;  %v4706_v10 = vmul.f32 1.442695, %v4672_v20 }
 0xadc   :  { %4866 = vperm.xlu1 %7445, %v4861_v22  }
 0xadd   :  { %v9792_v30 = vadd.f32 1e-05, %v3714_v49 }
 0xadf   :  { %7767 = vrsqrt.f32 %v9792_v30  ;;  %7449 = vset.pattern.permute.xlu2 %v11053_v61  ;;  %vm3724_vm2 = vweird.f32 %v9792_v30 }
 0xae0   :  { %7769 = vpow2.f32 %v4702_v5  ;;  %v9853_v5 = vperm.slane %v4772_v0, 0 }
 0xae1   :  { %7771 = vpow2.f32 %v4704_v51  ;;  %v4716_v51 = vmul.f32 1.442695, %v4677_v26 }
 0xae2   :  { %v3713_v34 = vpop.xlane.xlu2 %3712 }
 0xae3   :  { %v3715_v32 = vmul.f32 %v3713_v34, %v11048_v15  ;;  %v4643_v34 = vperm.slane %v4628_v63, 0 }
 0xae4   :  { %4873 = vperm.xlu1 %7445, %v4868_v52  }
 0xae5   :  { %v9824_v28 = vpop.eup %7767  ;;  %v9826_v14 = vadd.f32 1e-05, %v3715_v32  ;;  %v4898_v32 = vperm.slane %v4771_v46, 0  ;;  %v4680_v56 = vmul.f32 %v9813_v41, %v4643_v34  ;;  %v4718_v46 = vmul.f32 1.442695, %v4678_v13 }
 0xae6   :  { %v3719_v37 = vmul.f32 %v9824_v28, %v9792_v30  ;;  %v4797_v11 = vpop.permute.xlu1 %4796  ;;  %v7770_v19 = vpop.eup %7769  ;;  %vm3725_vm1 = vweird.f32 %v9824_v28 }
 0xae7   :  { %7773 = vrsqrt.f32 %v9826_v14  ;;  %v9837_v7 = vmul.f32 %v4897_v40, %v4797_v11  ;;  %5270 = vperm.xlu2 %7449, %v4861_v22   ;;  %v4882_v22 = vperm.slane %v9737_v39, 6  ;;  %v7772_v23 = vpop.eup %7771  ;;  %v4774_v40 = vrot.slane %v9796_v43, 5  ;;  %vm9882_vm11 = vmor %vm3724_vm2, %vm3725_vm1 }
 0xae8   :  { %v3720_v49 = vmul.f32 %v9824_v28, %v3719_v37  ;;  %7775 = vpow2.f32 %v4706_v10  ;;  %v4900_v11 = vperm.slane %v4773_v2, 0  ;;  %v4681_v10 = vmul.f32 %v9784_v50, %v4643_v34 }
 0xae9   :  { %7777 = vpow2.f32 %v4708_v60  ;;  %v4944_v8 = vmul.f32 %v7770_v19, %v9818_v3  ;;  %v4954_v19 = vrot.slane %v9837_v7, 1  ;;  %vm3734_vm12 = vweird.f32 %v9826_v14 }
 0xaea   :  { %v3721_v16 = vmul.f32 0.5, %v3720_v49  ;;  %7779 = vpow2.f32 %v4710_v48  ;;  %v4811_v57 = vpop.permute.xlu2 %4810  ;;  %v4945_v49 = vmul.f32 %v7772_v23, %v9847_v18  ;;  %v4720_v48 = vmul.f32 1.442695, %v4679_v53 }
 0xaeb   :  { %7781 = vpow2.f32 %v4712_v1  ;;  %v4722_v23 = vmul.f32 1.442695, %v4680_v56  ;;  %v4724_v30 = vmul.f32 1.442695, %v4681_v10  ;;  %v4682_v7 = vmul.f32 %v9813_v41, %v4644_v35 }
 0xaec   :  { %4880 = vperm.xlu1 %7445, %v4875_v27   ;;  %v3722_v36 = vsub.f32 1.5, %v3721_v16  ;;  %7783 = vpow2.f32 %v4714_v62  ;;  %v4931_v56 = vmul.f32 %v9853_v5, %v4811_v57  ;;  %vm11081_vm1 = vcmask 1046534  }
 0xaed   :  { %v9857_v20 = vpop.eup %7773  ;;  %v4790_v4 = vpop.permute.xlu0 %4789  ;;  %7785 = vpow2.f32 %v4716_v51  ;;  %v4683_v51 = vmul.f32 %v9784_v50, %v4644_v35  ;;  %v4726_v57 = vmul.f32 1.442695, %v4682_v7  ;;  %vm11082_vm2 = vcmask 1047559  }
 0xaee   :  { %v3729_v63 = vmul.f32 %v9857_v20, %v9826_v14  ;;  %v4928_v27 = vmul.f32 %v4896_v42, %v4790_v4  ;;  %v4804_v37 = vpop.permute.xlu1 %4803  ;;  %v7776_v26 = vpop.eup %7775  ;;  %v3723_v42 = vmul.f32 %v9824_v28, %v3722_v36  ;;  %vm3735_vm10 = vweird.f32 %v9857_v20 }
 0xaef   :  { %v4930_v0 = vmul.f32 %v4898_v32, %v4804_v37  ;;  %5288 = vperm.xlu2 %7449, %v4882_v22   ;;  %v7778_v16 = vpop.eup %7777  ;;  %vm3736_vm13 = vmor %vm3734_vm12, %vm3735_vm10  ;;  %7787 = vpow2.f32 %v4718_v46  ;;  %v4630_v46 = vrot.slane %v9769_v12, 7  ;;  %v4901_v12 = vperm.slane %v4774_v40, 0 }
 0xaf0   :  { %v3730_v60 = vmul.f32 %v9857_v20, %v3729_v63  ;;  %v4947_v29 = vrot.slane %v4928_v27, 1  ;;  %v7780_v32 = vpop.eup %7779  ;;  %v3727_v62 = vsel %vm9882_vm11, %v9824_v28, %v3723_v42  ;;  %7789 = vpow2.f32 %v4720_v48 }
 0xaf1   :  { %v7782_v53 = vpop.eup %7781  ;;  %7791 = vpow2.f32 %v4722_v23  ;;  %vm11083_vm10 = vcmask 1045504   ;;  %vm11084_vm11 = vcmask 1044480  }
 0xaf2   :  { %v3731_v2 = vmul.f32 0.5, %v3730_v60  ;;  %v9871_v1 = vadd.f32 %v4947_v29, %v4944_v8  ;;  %v9873_v34 = vadd.f32 %v4947_v29, %v4945_v49  ;;  %v4961_v8 = vrot.slane %v4930_v0, 1  ;;  %v5005_v49 = vpop.permute.xlu2 %5004  ;;  %v7784_v29 = vpop.eup %7783  ;;  %vm11085_vm12 = vmmov %vm11083_vm10 }
 0xaf3   :  { %v4968_v0 = vrot.slane %v4931_v56, 1  ;;  %7793 = vpow2.f32 %v4724_v30 }
 0xaf4   :  { %v3732_v4 = vsub.f32 1.5, %v3731_v2  ;;  %v4951_v55 = vmul.f32 %v7776_v26, %v9871_v1  ;;  %v4952_v13 = vmul.f32 %v7778_v16, %v9873_v34  ;;  %4887 = vperm.xlu1 %7445, %v4882_v22   ;;  %v3738_v26 = vmul.f32 %v3727_v62, %v9708_v24 }
 0xaf5   :  { %v5056_v16 = vrot.slane %v5005_v49, 1  ;;  %7795 = vpow2.f32 %v4726_v57 }
 0xaf6   :  { %v3733_v63 = vmul.f32 %v9857_v20, %v3732_v4  ;;  %v4956_v22 = vadd.f32 %v4954_v19, %v4951_v55  ;;  %v4957_v27 = vadd.f32 %v4954_v19, %v4952_v13  ;;  %v4818_v37 = vpop.permute.xlu1 %4817  ;;  %v4645_v13 = vperm.slane %v4630_v46, 0 }
 0xaf7   :  { %v4932_v14 = vmul.f32 %v4900_v11, %v4818_v37  ;;  %5519 = vrot.lane.b32.xlu2 %v9807_v47, %s8060_s11  ;;  %v5072_v45 = vmul.f32 %v5056_v16, %v9871_v1 }
 0xaf8   :  { %v3737_v10 = vsel %vm3736_vm13, %v9857_v20, %v3733_v63  ;;  %v4958_v28 = vmul.f32 %v7780_v32, %v4956_v22  ;;  %v4959_v60 = vmul.f32 %v7782_v53, %v4957_v27  ;;  %7453 = vset.pattern.permute.xlu2 %v11054_v6  ;;  %v7786_v20 = vpop.eup %7785  ;;  %v4728_v32 = vmul.f32 1.442695, %v4683_v51  ;;  %vm11086_vm13 = vmmov %vm11084_vm11 }
 0xaf9   :  { %v3739_v5 = vmul.f32 %v3737_v10, %v9714_v17  ;;  %v7788_v24 = vpop.eup %7787  ;;  %v9913_v17 = vadd.f32 %v4601_v44, %v9737_v39  ;;  %v5073_v44 = vmul.f32 %v5056_v16, %v9873_v34  ;;  %v4975_v36 = vrot.slane %v4932_v14, 1 }
 0xafa   :  { %v9902_v11 = vadd.f32 %v4961_v8, %v4958_v28  ;;  %v9904_v47 = vadd.f32 %v4961_v8, %v4959_v60  ;;  %v7790_v53 = vpop.eup %7789  ;;  %7797 = vpow2.f32 %v4728_v32  ;;  %v4775_v51 = vrot.slane %v9796_v43, 6 }
 0xafb   :  { %v3740_v35 = vpack.c.bf16 %v3739_v5, %v3738_v26  ;;  %v7792_v37 = vpop.eup %7791  ;;  %v4607_v56 = vand.u32 2147483647, %v9913_v17  ;;  %v5104_v14 = vrot.slane %v5072_v45, 7  ;;  %v5105_v49 = vrot.slane %v5073_v44, 7 }
 0xafc   :  { %v4965_v42 = vmul.f32 %v7784_v29, %v9902_v11  ;;  %v4966_v2 = vmul.f32 %v7786_v20, %v9904_v47  ;;  %7446 = vset.pattern.permute.xlu1 %v11053_v61  ;;  %v7794_v10 = vpop.eup %7793  ;;  %v5035_v29 = vpop.permute.xlu2 %5034  ;;  %v4684_v26 = vmul.f32 %v9813_v41, %v4645_v13  ;;  %v4902_v16 = vperm.slane %v4775_v51, 0 }
 0xafd   :  { %v5011_v48 = vpop.permute.xlu0 %5010  ;;  %7158 = vmatmul.msk.bf16.vlgmr.msra.gmra.mxu3 %vm38_vm0, %v3740_v35  ;;  %v7796_v34 = vpop.eup %7795  ;;  %v4609_v20 = vsub.f32 0.0, %v4607_v56  ;;  %v5106_v32 = vsel %vm783_vm3, %v5104_v14, %v5105_v49 }
 0xafe   :  { %v9918_v19 = vadd.f32 %v4968_v0, %v4965_v42  ;;  %v9920_v23 = vadd.f32 %v4968_v0, %v4966_v2  ;;  %v5057_v4 = vrot.slane %v5011_v48, 1  ;;  %v4825_v55 = vpop.permute.xlu1 %4824  ;;  %v5061_v0 = vrot.slane %v5035_v29, 1 }
 0xaff   :  { %v4933_v30 = vmul.f32 %v4901_v12, %v4825_v55  ;;  %v4730_v55 = vmul.f32 1.442695, %v4684_v26  ;;  %v5136_v56 = vsel %vm262_vm5, %v5106_v32, 0.0 }
 0xb00   :  { %v4972_v7 = vmul.f32 %v7788_v24, %v9918_v19  ;;  %v4973_v40 = vmul.f32 %v7790_v53, %v9920_v23  ;;  %v5074_v62 = vmul.f32 %v5057_v4, %v4956_v22  ;;  %v5075_v63 = vmul.f32 %v5057_v4, %v4957_v27  ;;  %v7798_v12 = vpop.eup %7797 }
 0xb01   :  { %v4685_v22 = vmul.f32 %v9784_v50, %v4645_v13  ;;  %v4982_v46 = vrot.slane %v4933_v30, 1  ;;  %7799 = vpow2.f32 %v4730_v55 }
 0xb02   :  { %v4977_v28 = vadd.f32 %v4975_v36, %v4972_v7  ;;  %v4978_v60 = vadd.f32 %v4975_v36, %v4973_v40  ;;  %v5107_v1 = vrot.slane %v5074_v62, 7  ;;  %v5108_v8 = vrot.slane %v5075_v63, 7 }
 0xb03   :  { %v4732_v13 = vmul.f32 1.442695, %v4685_v22 }
 0xb04   :  { %v5109_v27 = vsel %vm783_vm3, %v5107_v1, %v5108_v8  ;;  %v4979_v5 = vmul.f32 %v7792_v37, %v4977_v28  ;;  %v4980_v57 = vmul.f32 %v7794_v10, %v4978_v60  ;;  %5252 = vperm.xlu1 %7446, %v4840_v9   ;;  %v4612_v8 = vmul.f32 1.442695, %v4609_v20 }
 0xb05   :  { %v5029_v35 = vpop.permute.xlu0 %5028  ;;  %v5143_v53 = vsel %vm262_vm5, %v5109_v27, 0.0  ;;  %7801 = vpow2.f32 %v4732_v13 }
 0xb06   :  { %v4984_v42 = vadd.f32 %v4982_v46, %v4979_v5  ;;  %v4985_v2 = vadd.f32 %v4982_v46, %v4980_v57  ;;  %v5060_v24 = vrot.slane %v5029_v35, 1  ;;  %v4832_v48 = vpop.permute.xlu1 %4831  ;;  %v5144_v14 = vrot.slane %v5143_v53, 4 }
 0xb07   :  { %v4934_v4 = vmul.f32 %v4902_v16, %v4832_v48  ;;  %7803 = vpow2.f32 %v4612_v8  ;;  %v7800_v29 = vpop.eup %7799 }
 0xb08   :  { %v5082_v45 = vmul.f32 %v5061_v0, %v4984_v42  ;;  %v5083_v44 = vmul.f32 %v5061_v0, %v4985_v2  ;;  %v5080_v36 = vmul.f32 %v5060_v24, %v4977_v28  ;;  %v5081_v9 = vmul.f32 %v5060_v24, %v4978_v60 }
 0xb09   :  { %v4986_v30 = vmul.f32 %v7796_v34, %v4984_v42  ;;  %v4987_v7 = vmul.f32 %v7798_v12, %v4985_v2  ;;  %v4989_v40 = vrot.slane %v4934_v4, 1  ;;  %v5137_v60 = vrot.slane %v5136_v56, 4 }
 0xb0a   :  { %v5119_v62 = vrot.slane %v5082_v45, 7  ;;  %v5120_v63 = vrot.slane %v5083_v44, 7  ;;  %v5116_v37 = vrot.slane %v5080_v36, 7  ;;  %v5117_v51 = vrot.slane %v5081_v9, 7 }
 0xb0b   :  { %v9936_v10 = vadd.f32 %v4989_v40, %v4986_v30  ;;  %v9938_v1 = vadd.f32 %v4989_v40, %v4987_v7  ;;  %v5145_v34 = vadd.f32 %v5144_v14, %v5143_v53  ;;  %v5138_v26 = vadd.f32 %v5137_v60, %v5136_v56  ;;  %v7802_v22 = vpop.eup %7801 }
 0xb0c   :  { %v9941_v49 = vsel %vm783_vm3, %v5119_v62, %v5120_v63  ;;  %5258 = vperm.xlu1 %7446, %v4847_v33   ;;  %v5118_v28 = vsel %vm783_vm3, %v5116_v37, %v5117_v51  ;;  %v4776_v53 = vrot.slane %v9796_v43, 7  ;;  %v4605_v40 = vmax.f32 %v9913_v17, 0.0 }
 0xb0d   :  { %v5146_v27 = vrot.slane %v5145_v34, 2  ;;  %v4993_v5 = vmul.f32 %v7800_v29, %v9936_v10  ;;  %v4994_v57 = vmul.f32 %v7802_v22, %v9938_v1  ;;  %v7804_v46 = vpop.eup %7803  ;;  %v5139_v33 = vrot.slane %v5138_v26, 2  ;;  %v2480_v22 = vld [vmem:[%s10987_s7 + $0x8] sm:$0xff] }
 0xb0e   :  { %v4615_v0 = vadd.f32 1.0, %v7804_v46 }
 0xb0f   :  { %v5147_v16 = vadd.f32 %v5146_v27, %v5145_v34  ;;  %v5140_v24 = vadd.f32 %v5139_v33, %v5138_v26 }
 0xb10   :  { %7805 = vlog2.f32 %v4615_v0 }
 0xb11   :  { %v5148_v32 = vrot.slane %v5147_v16, 1  ;;  %v5141_v55 = vrot.slane %v5140_v24, 1 }
 0xb13   :  { %v5149_v13 = vadd.f32 %v5148_v32, %v5147_v16  ;;  %v5142_v45 = vadd.f32 %v5141_v55, %v5140_v24  ;;  %v3702_v16 = vrot.slane %v2480_v22, 1 }
 0xb14   :  { %5276 = vperm.xlu1 %7446, %v4868_v52  }
 0xb15   :  { %v9954_v52 = vpop.permute.xlu0 %4859  ;;  %v5448_v44 = vsel %vm1128_vm4, %v5149_v13, %v5142_v45  ;;  %v4846_v13 = vpop.permute.xlu2 %4845 }
 0xb16   :  { %v5017_v20 = vpop.permute.xlu1 %5016 }
 0xb17   :  { %v5058_v35 = vrot.slane %v5017_v20, 1 }
 0xb19   :  { %v5076_v42 = vmul.f32 %v5058_v35, %v9902_v11  ;;  %v5077_v2 = vmul.f32 %v5058_v35, %v9904_v47  ;;  %v7806_v47 = vpop.eup %7805 }
 0xb1a   :  { %v4619_v9 = vmul.f32 0.6931472, %v7806_v47 }
 0xb1b   :  { %v5110_v48 = vrot.slane %v5076_v42, 7  ;;  %v5111_v12 = vrot.slane %v5077_v2, 7 }
 0xb1c   :  { %5294 = vperm.xlu1 %7446, %v4889_v59   ;;  %v4903_v59 = vperm.slane %v4776_v53, 0  ;;  %v9964_v43 = vadd.f32 %v4619_v9, %v4605_v40 }
 0xb1d   :  { %v5112_v4 = vsel %vm783_vm3, %v5110_v48, %v5111_v12 }
 0xb1e   :  { %v5150_v11 = vsel %vm262_vm5, %v5112_v4, 0.0  ;;  %v4646_v14 = vperm.slane %v9964_v43, 0  ;;  %v4631_v27 = vrot.slane %v9964_v43, 1  ;;  %v9979_v24 = vmul.f32 %v9964_v43, %v9699_v38 }
 0xb1f   :  { %v5151_v36 = vrot.slane %v5150_v11, 4  ;;  %v4632_v55 = vrot.slane %v9964_v43, 2 }
 0xb20   :  { %v4686_v17 = vmul.f32 %v9813_v41, %v4646_v14  ;;  %v4687_v20 = vmul.f32 %v9784_v50, %v4646_v14  ;;  %v4647_v48 = vperm.slane %v4631_v27, 0 }
 0xb21   :  { %v5152_v62 = vadd.f32 %v5151_v36, %v5150_v11 }
 0xb22   :  { %v4734_v2 = vmul.f32 1.442695, %v4686_v17  ;;  %v4688_v36 = vmul.f32 %v9813_v41, %v4647_v48 }
 0xb23   :  { %v5153_v51 = vrot.slane %v5152_v62, 2 }
 0xb24   :  { %7452 = vset.pattern.permute.xlu1 %v11054_v6  ;;  %7807 = vpow2.f32 %v4734_v2 }
 0xb25   :  { %v9961_v39 = vpop.permute.xlu0 %5282  ;;  %v5154_v26 = vadd.f32 %v5153_v51, %v5152_v62  ;;  %v4689_v62 = vmul.f32 %v9784_v50, %v4647_v48 }
 0xb26   :  { %v4839_v30 = vpop.permute.xlu1 %4838 }
 0xb27   :  { %v4935_v7 = vmul.f32 %v4903_v59, %v4839_v30  ;;  %v5155_v0 = vrot.slane %v5154_v26, 1  ;;  %v4777_v59 = vrot.slane %v9979_v24, 1 }
 0xb29   :  { %v4996_v63 = vrot.slane %v4935_v7, 1  ;;  %v5156_v53 = vadd.f32 %v5155_v0, %v5154_v26 }
 0xb2a   :  { %v7808_v17 = vpop.eup %7807 }
 0xb2b   :  { %v4998_v37 = vadd.f32 %v4996_v63, %v4993_v5  ;;  %v4999_v56 = vadd.f32 %v4996_v63, %v4994_v57  ;;  %v5164_v5 = vsel %vm262_vm5, %v5118_v28, 0.0  ;;  %v5171_v57 = vsel %vm262_vm5, %v9941_v49, 0.0 }
 0xb2c   :  { %v5165_v42 = vrot.slane %v5164_v5, 4  ;;  %v5172_v32 = vrot.slane %v5171_v57, 4  ;;  %v4736_v28 = vmul.f32 1.442695, %v4687_v20  ;;  %v9983_v49 = vadd.f32 %v3702_v16, %v9610_v58 }
 0xb2d   :  { %v5047_v8 = vpop.permute.xlu0 %5046  ;;  %v9991_v58 = vadd.f32 %v3702_v16, %v9612_v25  ;;  %v4778_v63 = vrot.slane %v9979_v24, 2 }
 0xb2e   :  { %v5063_v60 = vrot.slane %v5047_v8, 1  ;;  %11077 = vst [vmem:[#allocation9_spill] sm:$0xff] %v9983_v49  ;;  %v5166_v47 = vadd.f32 %v5165_v42, %v5164_v5  ;;  %v5173_v9 = vadd.f32 %v5172_v32, %v5171_v57  ;;  %7809 = vpow2.f32 %v4736_v28 }
 0xb2f   :  { %11078 = vst [vmem:[#allocation8_spill] sm:$0xff] %v9991_v58  ;;  %v4738_v8 = vmul.f32 1.442695, %v4688_v36  ;;  %v4633_v5 = vrot.slane %v9964_v43, 3  ;;  %v4906_v57 = vperm.slane %v4778_v63, 0 }
 0xb30   :  { %v5086_v34 = vmul.f32 %v5063_v60, %v4998_v37  ;;  %v5087_v29 = vmul.f32 %v5063_v60, %v4999_v56  ;;  %v9998_v56 = vsel %vm1130_vm6, %v5156_v53, %v5448_v44  ;;  %v5167_v51 = vrot.slane %v5166_v47, 2 }
 0xb31   :  { %7811 = vpow2.f32 %v4738_v8  ;;  %v4649_v53 = vperm.slane %v4633_v5, 0 }
 0xb32   :  { %v5125_v46 = vrot.slane %v5086_v34, 7  ;;  %v5126_v33 = vrot.slane %v5087_v29, 7  ;;  %v5174_v34 = vrot.slane %v5173_v9, 2  ;;  %v4905_v29 = vperm.slane %v4777_v59, 0 }
 0xb33   :  { %v5168_v0 = vadd.f32 %v5167_v51, %v5166_v47  ;;  %v4634_v51 = vrot.slane %v9964_v43, 4 }
 0xb34   :  { %v5127_v35 = vsel %vm783_vm3, %v5125_v46, %v5126_v33  ;;  %v4740_v46 = vmul.f32 1.442695, %v4689_v62  ;;  %v7810_v16 = vpop.eup %7809  ;;  %v5175_v48 = vadd.f32 %v5174_v34, %v5173_v9 }
 0xb35   :  { %v5185_v30 = vsel %vm262_vm5, %v5127_v35, 0.0  ;;  %v5169_v47 = vrot.slane %v5168_v0, 1 }
 0xb36   :  { %v5023_v12 = vpop.permute.xlu1 %5022  ;;  %v5186_v14 = vrot.slane %v5185_v30, 4  ;;  %7813 = vpow2.f32 %v4740_v46  ;;  %v5176_v62 = vrot.slane %v5175_v48, 1 }
 0xb37   :  { %v5059_v4 = vrot.slane %v5023_v12, 1  ;;  %v4853_v12 = vpop.permute.xlu2 %4852  ;;  %v5170_v34 = vadd.f32 %v5169_v47, %v5168_v0 }
 0xb38   :  { %v5187_v2 = vadd.f32 %v5186_v14, %v5185_v30  ;;  %v4937_v36 = vmul.f32 %v4905_v29, %v4853_v12 }
 0xb39   :  { %v5078_v45 = vmul.f32 %v5059_v4, %v9918_v19  ;;  %v5079_v11 = vmul.f32 %v5059_v4, %v9920_v23  ;;  %v4648_v19 = vperm.slane %v4632_v55, 0  ;;  %v4904_v23 = vperm.slane %v9979_v24, 0 }
 0xb3a   :  { %v5188_v59 = vrot.slane %v5187_v2, 2  ;;  %v5202_v29 = vrot.slane %v4937_v36, 1 }
 0xb3b   :  { %v5113_v7 = vrot.slane %v5078_v45, 7  ;;  %v5114_v40 = vrot.slane %v5079_v11, 7  ;;  %v4936_v27 = vmul.f32 %v4904_v23, %v4846_v13  ;;  %v4690_v33 = vmul.f32 %v9813_v41, %v4648_v19 }
 0xb3c   :  { %v4691_v42 = vmul.f32 %v9784_v50, %v4648_v19  ;;  %v5192_v45 = vmul.f32 %v7808_v17, %v9983_v49  ;;  %v7812_v19 = vpop.eup %7811 }
 0xb3d   :  { %v5115_v37 = vsel %vm783_vm3, %v5113_v7, %v5114_v40  ;;  %v5195_v55 = vrot.slane %v4936_v27, 1  ;;  %v4742_v13 = vmul.f32 1.442695, %v4690_v33  ;;  %v5177_v27 = vadd.f32 %v5176_v62, %v5175_v48 }
 0xb3e   :  { %v5157_v60 = vsel %vm262_vm5, %v5115_v37, 0.0  ;;  %v5041_v25 = vpop.permute.xlu1 %5040  ;;  %v4744_v30 = vmul.f32 1.442695, %v4691_v42  ;;  %v4779_v37 = vrot.slane %v9979_v24, 3  ;;  %v4635_v42 = vrot.slane %v9964_v43, 5 }
 0xb3f   :  { %v5158_v26 = vrot.slane %v5157_v60, 4  ;;  %v5062_v22 = vrot.slane %v5041_v25, 1  ;;  %v10010_v23 = vadd.f32 %v5195_v55, %v5192_v45  ;;  %7815 = vpow2.f32 %v4742_v13  ;;  %v7814_v25 = vpop.eup %7813 }
 0xb40   :  { %7817 = vpow2.f32 %v4744_v30  ;;  %v4938_v48 = vmul.f32 %v4906_v57, %v9954_v52  ;;  %v4651_v47 = vperm.slane %v4635_v42, 0  ;;  %v4780_v62 = vrot.slane %v9979_v24, 4 }
 0xb41   :  { %v5159_v44 = vadd.f32 %v5158_v26, %v5157_v60  ;;  %v5084_v20 = vmul.f32 %v5062_v22, %v9936_v10  ;;  %v5085_v35 = vmul.f32 %v5062_v22, %v9938_v1  ;;  %v5193_v10 = vmul.f32 %v7810_v16, %v9991_v58 }
 0xb42   :  { %v4692_v60 = vmul.f32 %v9813_v41, %v4649_v53  ;;  %v4693_v26 = vmul.f32 %v9784_v50, %v4649_v53  ;;  %v5189_v22 = vadd.f32 %v5188_v59, %v5187_v2  ;;  %v5199_v33 = vmul.f32 %v7812_v19, %v10010_v23 }
 0xb43   :  { %v5160_v32 = vrot.slane %v5159_v44, 2  ;;  %v5122_v4 = vrot.slane %v5084_v20, 7  ;;  %v5123_v28 = vrot.slane %v5085_v35, 7  ;;  %v10012_v63 = vadd.f32 %v5195_v55, %v5193_v10 }
 0xb44   :  { %v4650_v20 = vperm.slane %v4634_v51, 0  ;;  %v4746_v16 = vmul.f32 1.442695, %v4692_v60  ;;  %v10025_v2 = vadd.f32 %v5202_v29, %v5199_v33  ;;  %v4748_v55 = vmul.f32 1.442695, %v4693_v26 }
 0xb45   :  { %v5161_v1 = vadd.f32 %v5160_v32, %v5159_v44  ;;  %v5124_v11 = vsel %vm783_vm3, %v5122_v4, %v5123_v28  ;;  %v5200_v5 = vmul.f32 %v7814_v25, %v10012_v63  ;;  %v5190_v32 = vrot.slane %v5189_v22, 1  ;;  %v7816_v4 = vpop.eup %7815  ;;  %v5265_v28 = vpop.permute.xlu2 %5264 }
 0xb46   :  { %v5178_v9 = vsel %vm262_vm5, %v5124_v11, 0.0  ;;  %v4907_v53 = vperm.slane %v4779_v37, 0  ;;  %v4694_v45 = vmul.f32 %v9813_v41, %v4650_v20  ;;  %v7818_v10 = vpop.eup %7817  ;;  %7819 = vpow2.f32 %v4746_v16 }
 0xb47   :  { %v5162_v7 = vrot.slane %v5161_v1, 1  ;;  %v5179_v40 = vrot.slane %v5178_v9, 4  ;;  %v10027_v12 = vadd.f32 %v5202_v29, %v5200_v5  ;;  %v4695_v11 = vmul.f32 %v9784_v50, %v4650_v20 }
 0xb48   :  { %v5206_v36 = vmul.f32 %v7816_v4, %v10025_v2  ;;  %v5209_v52 = vrot.slane %v4938_v48, 1  ;;  %v5191_v57 = vadd.f32 %v5190_v32, %v5189_v22  ;;  %7821 = vpow2.f32 %v4748_v55 }
 0xb49   :  { %v5163_v8 = vadd.f32 %v5162_v7, %v5161_v1  ;;  %v5180_v14 = vadd.f32 %v5179_v40, %v5178_v9  ;;  %v5207_v59 = vmul.f32 %v7818_v10, %v10027_v12  ;;  %v4750_v40 = vmul.f32 1.442695, %v4694_v45 }
 0xb4a   :  { %v4752_v19 = vmul.f32 1.442695, %v4695_v11  ;;  %v5211_v37 = vadd.f32 %v5209_v52, %v5206_v36  ;;  %v4908_v26 = vperm.slane %v4780_v62, 0  ;;  %v5306_v55 = vrot.slane %v5265_v28, 1 }
 0xb4b   :  { %v5181_v17 = vrot.slane %v5180_v14, 2  ;;  %v5450_v46 = vsel %vm1132_vm7, %v5163_v8, %v9998_v56  ;;  %v5212_v51 = vadd.f32 %v5209_v52, %v5207_v59  ;;  %7823 = vpow2.f32 %v4750_v40 }
 0xb4c   :  { %v5451_v44 = vsel %vm11079_vm14, %v5170_v34, %v5450_v46  ;;  %v7820_v60 = vpop.eup %7819  ;;  %v4697_v34 = vmul.f32 %v9784_v50, %v4651_v47  ;;  %7825 = vpow2.f32 %v4752_v19  ;;  %v5324_v52 = vmul.f32 %v5306_v55, %v5211_v37 }
 0xb4d   :  { %v5182_v35 = vadd.f32 %v5181_v17, %v5180_v14  ;;  %v5452_v0 = vsel %vm11080_vm15, %v5177_v27, %v5451_v44  ;;  %v4696_v14 = vmul.f32 %v9813_v41, %v4651_v47  ;;  %v10040_v25 = vpop.permute.xlu2 %4894  ;;  %v4781_v17 = vrot.slane %v9979_v24, 5 }
 0xb4e   :  { %v4867_v56 = vpop.permute.xlu1 %4866  ;;  %v7822_v22 = vpop.eup %7821  ;;  %v4636_v27 = vrot.slane %v9964_v43, 6  ;;  %v5213_v46 = vmul.f32 %v7820_v60, %v5211_v37  ;;  %v4756_v20 = vmul.f32 1.442695, %v4697_v34 }
 0xb4f   :  { %v5183_v13 = vrot.slane %v5182_v35, 1  ;;  %v4939_v30 = vmul.f32 %v4907_v53, %v4867_v56  ;;  %v5214_v33 = vmul.f32 %v7822_v22, %v5212_v51  ;;  %v4754_v44 = vmul.f32 1.442695, %v4696_v14 }
 0xb50   :  { %v4909_v32 = vperm.slane %v4781_v17, 0  ;;  %v4637_v22 = vrot.slane %v9964_v43, 7 }
 0xb51   :  { %v5184_v1 = vadd.f32 %v5183_v13, %v5182_v35  ;;  %v5216_v29 = vrot.slane %v4939_v30, 1  ;;  %v7824_v42 = vpop.eup %7823  ;;  %7827 = vpow2.f32 %v4754_v44 }
 0xb52   :  { %v7826_v4 = vpop.eup %7825  ;;  %7829 = vpow2.f32 %v4756_v20  ;;  %v4653_v44 = vperm.slane %v4637_v22, 0 }
 0xb53   :  { %v5453_v9 = vsel %vm11081_vm1, %v5184_v1, %v5452_v0  ;;  %v5218_v35 = vadd.f32 %v5216_v29, %v5213_v46  ;;  %v5219_v16 = vadd.f32 %v5216_v29, %v5214_v33  ;;  %v4652_v0 = vperm.slane %v4636_v27, 0 }
 0xb54   :  { %v10036_v7 = vsel %vm11082_vm2, %v5191_v57, %v5453_v9  ;;  %v5325_v57 = vmul.f32 %v5306_v55, %v5212_v51  ;;  %v5358_v29 = vrot.slane %v5324_v52, 7 }
 0xb55   :  { %v5271_v13 = vpop.permute.xlu2 %5270  ;;  %v5220_v53 = vmul.f32 %v7824_v42, %v5218_v35  ;;  %v5221_v45 = vmul.f32 %v7826_v4, %v5219_v16  ;;  %v4698_v1 = vmul.f32 %v9813_v41, %v4652_v0  ;;  %v4699_v59 = vmul.f32 %v9784_v50, %v4652_v0 }
 0xb56   :  { %v4874_v8 = vpop.permute.xlu1 %4873  ;;  %v5307_v11 = vrot.slane %v5271_v13, 1 }
 0xb57   :  { %v4940_v5 = vmul.f32 %v4908_v26, %v4874_v8  ;;  %v7828_v9 = vpop.eup %7827  ;;  %v4758_v19 = vmul.f32 1.442695, %v4698_v1  ;;  %v4782_v8 = vrot.slane %v9979_v24, 6  ;;  %v4760_v34 = vmul.f32 1.442695, %v4699_v59 }
 0xb58   :  { %v5326_v30 = vmul.f32 %v5307_v11, %v5218_v35  ;;  %v5327_v40 = vmul.f32 %v5307_v11, %v5219_v16  ;;  %v7830_v62 = vpop.eup %7829  ;;  %v5359_v26 = vrot.slane %v5325_v57, 7 }
 0xb59   :  { %v5223_v48 = vrot.slane %v4940_v5, 1  ;;  %7831 = vpow2.f32 %v4758_v19  ;;  %v4910_v33 = vperm.slane %v4782_v8, 0  ;;  %v5309_v5 = vrot.slane %v9961_v39, 1 }
 0xb5a   :  { %v5361_v17 = vrot.slane %v5326_v30, 7  ;;  %v5362_v37 = vrot.slane %v5327_v40, 7  ;;  %7833 = vpow2.f32 %v4760_v34  ;;  %v5360_v35 = vsel %vm783_vm3, %v5358_v29, %v5359_v26 }
 0xb5b   :  { %v10046_v47 = vadd.f32 %v5223_v48, %v5220_v53  ;;  %v10048_v36 = vadd.f32 %v5223_v48, %v5221_v45  ;;  %v5398_v43 = vsel %vm262_vm5, %v5360_v35, 0.0  ;;  %v4700_v39 = vmul.f32 %v9813_v41, %v4653_v44 }
 0xb5c   :  { %v5363_v16 = vsel %vm783_vm3, %v5361_v17, %v5362_v37  ;;  %v4701_v53 = vmul.f32 %v9784_v50, %v4653_v44  ;;  %v5399_v1 = vrot.slane %v5398_v43, 4 }
 0xb5d   :  { %v5227_v14 = vmul.f32 %v7828_v9, %v10046_v47  ;;  %v5228_v60 = vmul.f32 %v7830_v62, %v10048_v36  ;;  %v5289_v11 = vpop.permute.xlu2 %5288  ;;  %v4783_v9 = vrot.slane %v9979_v24, 7  ;;  %v4762_v40 = vmul.f32 1.442695, %v4700_v39 }
 0xb5e   :  { %v4881_v56 = vpop.permute.xlu1 %4880  ;;  %v4764_v62 = vmul.f32 1.442695, %v4701_v53  ;;  %v5400_v19 = vadd.f32 %v5399_v1, %v5398_v43 }
 0xb5f   :  { %v4941_v10 = vmul.f32 %v4909_v32, %v4881_v56  ;;  %v7832_v48 = vpop.eup %7831  ;;  %v5405_v56 = vsel %vm262_vm5, %v5363_v16, 0.0  ;;  %v4911_v29 = vperm.slane %v4783_v9, 0  ;;  %7835 = vpow2.f32 %v4762_v40 }
 0xb60   :  { %v7834_v4 = vpop.eup %7833  ;;  %v5406_v59 = vrot.slane %v5405_v56, 4  ;;  %7837 = vpow2.f32 %v4764_v62  ;;  %v5401_v22 = vrot.slane %v5400_v19, 2 }
 0xb61   :  { %v5230_v28 = vrot.slane %v4941_v10, 1  ;;  %v10068_v17 = vmul.f32 %v4911_v29, %v10040_v25 }
 0xb62   :  { %v5407_v8 = vadd.f32 %v5406_v59, %v5405_v56  ;;  %v10076_v35 = vadd.f32 %v5401_v22, %v5400_v19  ;;  %v7372_v22 = vld [vmem:[%s10985_s5 + $0x98] sm:$0xff] }
 0xb63   :  { %v5232_v51 = vadd.f32 %v5230_v28, %v5227_v14  ;;  %v5233_v27 = vadd.f32 %v5230_v28, %v5228_v60  ;;  %v5310_v28 = vrot.slane %v5289_v11, 1  ;;  %5568 = vmatpush.bf16.msrb.mxu3 %v7372_v22 }
 0xb64   :  { %v5408_v37 = vrot.slane %v5407_v8, 2 }
 0xb65   :  { %v5330_v0 = vmul.f32 %v5309_v5, %v5232_v51  ;;  %v5331_v42 = vmul.f32 %v5309_v5, %v5233_v27  ;;  %v5234_v45 = vmul.f32 %v7832_v48, %v5232_v51  ;;  %v5235_v10 = vmul.f32 %v7834_v4, %v5233_v27 }
 0xb66   :  { %v4888_v46 = vpop.permute.xlu1 %4887 }
 0xb67   :  { %v4942_v20 = vmul.f32 %v4910_v33, %v4888_v46  ;;  %v5367_v55 = vrot.slane %v5330_v0, 7  ;;  %v5368_v13 = vrot.slane %v5331_v42, 7  ;;  %v10081_v42 = vadd.f32 %v5408_v37, %v5407_v8 }
 0xb69   :  { %v5237_v32 = vrot.slane %v4942_v20, 1  ;;  %v5369_v30 = vsel %vm783_vm3, %v5367_v55, %v5368_v13  ;;  %v10074_v20 = vld [vmem:[%s10983_s3 + $0x30] sm:$0xff] }
 0xb6a   :  { %v5419_v41 = vsel %vm262_vm5, %v5369_v30, 0.0  ;;  %v3782_v55 = vperm.slane %v10074_v20, 0  ;;  %v10087_v13 = vperm.slane %v10074_v20, 1  ;;  %v10090_v39 = vperm.slane %v10074_v20, 2 }
 0xb6b   :  { %v5239_v52 = vadd.f32 %v5237_v32, %v5234_v45  ;;  %v5240_v57 = vadd.f32 %v5237_v32, %v5235_v10  ;;  %v5420_v51 = vrot.slane %v5419_v41, 4  ;;  %v10095_v1 = vperm.slane %v10074_v20, 3 }
 0xb6c   :  { %v3784_v9 = vperm.slane %v10074_v20, 4 }
 0xb6d   :  { %v5332_v50 = vmul.f32 %v5310_v28, %v5239_v52  ;;  %v5333_v60 = vmul.f32 %v5310_v28, %v5240_v57  ;;  %v10079_v25 = vadd.f32 %v5420_v51, %v5419_v41 }
 0xb6f   :  { %v5370_v27 = vrot.slane %v5332_v50, 7  ;;  %v5371_v46 = vrot.slane %v5333_v60, 7  ;;  %v5422_v11 = vrot.slane %v10079_v25, 2 }
 0xb71   :  { %v5372_v43 = vsel %vm783_vm3, %v5370_v27, %v5371_v46 }
 0xb76   :  { %v5253_v14 = vpop.permute.xlu1 %5252 }
 0xb77   :  { %v5304_v34 = vrot.slane %v5253_v14, 1 }
 0xb79   :  { %v5320_v26 = vmul.f32 %v5304_v34, %v10010_v23  ;;  %v5321_v24 = vmul.f32 %v5304_v34, %v10012_v63  ;;  %v7836_v23 = vpop.eup %7835  ;;  %v5244_v63 = vrot.slane %v10068_v17, 1 }
 0xb7a   :  { %v7838_v0 = vpop.eup %7837  ;;  %v5241_v48 = vmul.f32 %v7836_v23, %v5239_v52  ;;  %v5426_v52 = vsel %vm262_vm5, %v5372_v43, 0.0  ;;  %v7371_v43 = vld [vmem:[%s10985_s5 + $0x90] sm:$0xff] }
 0xb7b   :  { %v5352_v33 = vrot.slane %v5320_v26, 7  ;;  %v5353_v5 = vrot.slane %v5321_v24, 7  ;;  %v10098_v59 = vmul.f32 %v7838_v0, %v5240_v57  ;;  %v5427_v14 = vrot.slane %v5426_v52, 4  ;;  %5569 = vmatpush.bf16.msrb.mxu3 %v7371_v43 }
 0xb7d   :  { %v5354_v44 = vsel %vm783_vm3, %v5352_v33, %v5353_v5  ;;  %v7362_v33 = vld [vmem:[%s10984_s4 + $0x78] sm:$0xff] }
 0xb7e   :  { %v5259_v16 = vpop.permute.xlu1 %5258  ;;  %v5384_v32 = vsel %vm262_vm5, %v5354_v44, 0.0  ;;  %3930 = vmatpush.bf16.msra.mxu1 %v7362_v33 }
 0xb7f   :  { %v5305_v56 = vrot.slane %v5259_v16, 1  ;;  %v5385_v30 = vrot.slane %v5384_v32, 4 }
 0xb80   :  { %v3770_v4 = vpop.f32.mrf.mxu3 }
 0xb81   :  { %v5322_v53 = vmul.f32 %v5305_v56, %v10025_v2  ;;  %v5323_v45 = vmul.f32 %v5305_v56, %v10027_v12  ;;  %v3779_v10 = vrot.slane %v3770_v4, 5  ;;  %v5386_v37 = vadd.f32 %v5385_v30, %v5384_v32 }
 0xb82   :  { %v10121_v56 = vadd.f32 %v5427_v14, %v5426_v52 }
 0xb83   :  { %v5355_v40 = vrot.slane %v5322_v53, 7  ;;  %v5356_v28 = vrot.slane %v5323_v45, 7  ;;  %v3781_v62 = vsel %vm117_vm8, 0.0, %v3779_v10  ;;  %v3788_v19 = vmul.f32 %v10087_v13, %v3779_v10 }
 0xb84   :  { %v3783_v2 = vmul.f32 %v3782_v55, %v3781_v62  ;;  %v3787_v12 = vmul.f32 %v10087_v13, %v3781_v62  ;;  %v3797_v8 = vmul.f32 %v10090_v39, %v3781_v62  ;;  %v3798_v41 = vmul.f32 %v10090_v39, %v3779_v10 }
 0xb85   :  { %v5357_v57 = vsel %vm783_vm3, %v5355_v40, %v5356_v28  ;;  %v3807_v50 = vmul.f32 %v10095_v1, %v3781_v62  ;;  %v3792_v26 = vrot.slane %v3788_v19, 1  ;;  %v3808_v44 = vmul.f32 %v10095_v1, %v3779_v10 }
 0xb86   :  { %v5391_v60 = vsel %vm262_vm5, %v5357_v57, 0.0  ;;  %v3785_v34 = vadd.f32 %v3784_v9, %v3783_v2  ;;  %v3791_v29 = vrot.slane %v3787_v12, 1  ;;  %v5277_v24 = vpop.permute.xlu1 %5276  ;;  %v3801_v27 = vrot.slane %v3797_v8, 2 }
 0xb87   :  { %v5392_v51 = vrot.slane %v5391_v60, 4  ;;  %v3802_v46 = vrot.slane %v3798_v41, 2  ;;  %v3811_v23 = vrot.slane %v3807_v50, 3  ;;  %v5308_v16 = vrot.slane %v5277_v24, 1 }
 0xb88   :  { %v3793_v5 = vsel %vm128_vm9, %v3791_v29, %v3792_v26  ;;  %v3772_v0 = vpop.f32.mrf.mxu3  ;;  %v3812_v45 = vrot.slane %v3808_v44, 3  ;;  %v5387_v28 = vrot.slane %v5386_v37, 2  ;;  %v5246_v12 = vadd.f32 %v5244_v63, %v5241_v48  ;;  %v7361_v26 = vld [vmem:[%s10984_s4 + $0x70] sm:$0xff] }
 0xb89   :  { %v5393_v32 = vadd.f32 %v5392_v51, %v5391_v60  ;;  %v3795_v4 = vadd.f32 %v3793_v5, %v3785_v34  ;;  %v3803_v53 = vsel %vm11083_vm10, %v3801_v27, %v3802_v46  ;;  %v5328_v30 = vmul.f32 %v5308_v16, %v10046_v47  ;;  %v7370_v47 = vld [vmem:[%s10985_s5 + $0x88] sm:$0xff]  ;;  %3931 = vmatpush.bf16.msra.mxu1 %v7361_v26 }
 0xb8a   :  { %v5329_v10 = vmul.f32 %v5308_v16, %v10048_v36  ;;  %v3837_v40 = vrot.slane %v3772_v0, 5  ;;  %v3813_v52 = vsel %vm11084_vm11, %v3811_v23, %v3812_v45  ;;  %v5388_v24 = vadd.f32 %v5387_v28, %v5386_v37  ;;  %5570 = vmatpush.bf16.msrb.mxu3 %v7370_v47 }
 0xb8b   :  { %v5394_v62 = vrot.slane %v5393_v32, 2  ;;  %v3805_v2 = vadd.f32 %v3803_v53, %v3795_v4  ;;  %v5364_v19 = vrot.slane %v5328_v30, 7  ;;  %v5247_v30 = vadd.f32 %v5244_v63, %v10098_v59 }
 0xb8c   :  { %v5365_v8 = vrot.slane %v5329_v10, 7  ;;  %v3839_v14 = vsel %vm117_vm8, 0.0, %v3837_v40  ;;  %v3843_v48 = vmul.f32 %v3837_v40, %v10087_v13  ;;  %v3852_v29 = vmul.f32 %v3837_v40, %v10090_v39 }
 0xb8d   :  { %v5395_v57 = vadd.f32 %v5394_v62, %v5393_v32  ;;  %v10133_v36 = vadd.f32 %v3813_v52, %v3805_v2  ;;  %v3840_v41 = vmul.f32 %v3839_v14, %v3782_v55  ;;  %v3842_v50 = vmul.f32 %v3839_v14, %v10087_v13  ;;  %v7369_v13 = vld [vmem:[%s10985_s5 + $0x80] sm:$0xff] }
 0xb8e   :  { %v5366_v60 = vsel %vm783_vm3, %v5364_v19, %v5365_v8  ;;  %v3851_v34 = vmul.f32 %v3839_v14, %v10090_v39  ;;  %v5295_v27 = vpop.permute.xlu1 %5294  ;;  %v3847_v5 = vrot.slane %v3843_v48, 1  ;;  %v7360_v39 = vld [vmem:[%s10984_s4 + $0x68] sm:$0xff]  ;;  %v3856_v16 = vrot.slane %v3852_v29, 2  ;;  %5571 = vmatpush.bf16.msrb.mxu3 %v7369_v13  ;;  %v7359_v52 = vld [vmem:[%s10984_s4 + $0x60] sm:$0xff] }
 0xb8f   :  { %v3816_v22 = vsub.f32 0.0, %v10133_v36  ;;  %v5412_v51 = vsel %vm262_vm5, %v5366_v60, 0.0  ;;  %v3841_v55 = vadd.f32 %v3840_v41, %v3784_v9  ;;  %v3846_v33 = vrot.slane %v3842_v50, 1  ;;  %3932 = vmatpush.bf16.msra.mxu1 %v7360_v39 }
 0xb90   :  { %v5413_v46 = vrot.slane %v5412_v51, 4  ;;  %v3855_v44 = vrot.slane %v3851_v34, 2  ;;  %v5396_v37 = vrot.slane %v5395_v57, 1  ;;  %v3860_v9 = vmul.f32 %v3839_v14, %v10095_v1 }
 0xb91   :  { %v3817_v23 = vmul.f32 1.442695, %v3816_v22  ;;  %v3848_v43 = vsel %vm128_vm9, %v3846_v33, %v3847_v5  ;;  %v3861_v32 = vmul.f32 %v3837_v40, %v10095_v1  ;;  %v5311_v4 = vrot.slane %v5295_v27, 1 }
 0xb92   :  { %v5414_v0 = vadd.f32 %v5413_v46, %v5412_v51  ;;  %v5389_v53 = vrot.slane %v5388_v24, 1  ;;  %v3850_v45 = vadd.f32 %v3848_v43, %v3841_v55  ;;  %v3857_v28 = vsel %vm11085_vm12, %v3855_v44, %v3856_v16 }
 0xb93   :  { %7839 = vpow2.f32 %v3817_v23  ;;  %v3864_v62 = vrot.slane %v3860_v9, 3  ;;  %v3865_v2 = vrot.slane %v3861_v32, 3  ;;  %v5397_v1 = vadd.f32 %v5396_v37, %v5395_v57  ;;  %3933 = vmatpush.bf16.msra.mxu1 %v7359_v52 }
 0xb94   :  { %v5415_v10 = vrot.slane %v5414_v0, 2  ;;  %v3859_v40 = vadd.f32 %v3857_v28, %v3850_v45  ;;  %v5334_v19 = vmul.f32 %v5311_v4, %v5246_v12  ;;  %v5335_v8 = vmul.f32 %v5311_v4, %v5247_v30 }
 0xb95   :  { %v5403_v14 = vrot.slane %v10076_v35, 1  ;;  %v3866_v17 = vsel %vm11086_vm13, %v3864_v62, %v3865_v2  ;;  %v5390_v63 = vadd.f32 %v5389_v53, %v5388_v24  ;;  %v5410_v60 = vrot.slane %v10081_v42, 1 }
 0xb96   :  { %v5416_v47 = vadd.f32 %v5415_v10, %v5414_v0  ;;  %v10163_v59 = vadd.f32 %v3866_v17, %v3859_v40  ;;  %v5373_v41 = vrot.slane %v5334_v19, 7  ;;  %v5374_v50 = vrot.slane %v5335_v8, 7  ;;  %v5522_v8 = vpop.permute.xlu0 %5521 }
 0xb97   :  { %v5429_v48 = vrot.slane %v10121_v56, 2  ;;  %v5423_v12 = vadd.f32 %v5422_v11, %v10079_v25  ;;  %v5464_v29 = vsel %vm1128_vm4, %v5397_v1, %v5390_v63  ;;  %v5404_v22 = vadd.f32 %v5403_v14, %v10076_v35  ;;  %v8030_v35 = vld [vmem:[%s10983_s3 + $0x40] sm:$0xff]  ;;  %v5520_v14 = vpop.permute.xlu2 %5519 }
 0xb98   :  { %v5417_v34 = vrot.slane %v5416_v47, 1  ;;  %v3869_v26 = vsub.f32 0.0, %v10163_v59  ;;  %v5375_v24 = vsel %vm783_vm3, %v5373_v41, %v5374_v50  ;;  %v5411_v25 = vadd.f32 %v5410_v60, %v10081_v42 }
 0xb99   :  { %v7840_v57 = vpop.eup %7839  ;;  %v5433_v55 = vsel %vm262_vm5, %v5375_v24, 0.0  ;;  %v5430_v33 = vadd.f32 %v5429_v48, %v10121_v56  ;;  %v5465_v5 = vsel %vm1130_vm6, %v5404_v22, %v5464_v29  ;;  %v5424_v11 = vrot.slane %v5423_v12, 1 }
 0xb9a   :  { %v3819_v51 = vadd.f32 1.0, %v7840_v57  ;;  %v3870_v27 = vmul.f32 1.442695, %v3869_v26  ;;  %v5434_v46 = vrot.slane %v5433_v55, 4  ;;  %v5418_v44 = vadd.f32 %v5417_v34, %v5416_v47 }
 0xb9b   :  { %v5466_v39 = vsel %vm1132_vm7, %v5411_v25, %v5465_v5  ;;  %v5472_v23 = vperm.slane %v8030_v35, 6  ;;  %v5431_v16 = vrot.slane %v5430_v33, 1  ;;  %v5425_v9 = vadd.f32 %v5424_v11, %v5423_v12 }
 0xb9c   :  { %7841 = vrcp.f32 %v3819_v51  ;;  %v5435_v13 = vadd.f32 %v5434_v46, %v5433_v55  ;;  %v5467_v56 = vsel %vm11079_vm14, %v5418_v44, %v5466_v39  ;;  %vm3825_vm11 = vweird.f32 %v3819_v51 }
 0xb9d   :  { %7843 = vpow2.f32 %v3870_v27  ;;  %v5468_v42 = vsel %vm11080_vm15, %v5425_v9, %v5467_v56  ;;  %v5473_v45 = vmul.f32 %v5472_v23, %v9702_v31  ;;  %v5432_v30 = vadd.f32 %v5431_v16, %v5430_v33 }
 0xb9e   :  { %v5436_v37 = vrot.slane %v5435_v13, 2  ;;  %v5474_v2 = vmul.f32 %v5472_v23, %v9699_v38  ;;  %v3831_v38 = vand.u32 2147483648, %v3819_v51 }
 0xb9f   :  { %v5475_v52 = vadd.f32 %v5473_v45, %v10036_v7  ;;  %v5469_v1 = vsel %vm11081_vm1, %v5432_v30, %v5468_v42  ;;  %v3829_v7 = vand.u32 2147483647, %v3819_v51  ;;  %v3940_v30 = vperm.slane %v10074_v20, 5 }
 0xba0   :  { %v5437_v0 = vadd.f32 %v5436_v37, %v5435_v13  ;;  %v3832_v26 = vor.u32 1.1754944e-38, %v3831_v38 }
 0xba1   :  { %v5525_v17 = vmul.f32 %v5520_v14, %v5475_v52  ;;  %vm3830_vm14 = vcmp.eq.f32.partialorder %v3829_v7, 8.507059e+37 }
 0xba2   :  { %v7842_v43 = vpop.eup %7841  ;;  %v5438_v4 = vrot.slane %v5437_v0, 1 }
 0xba3   :  { %v7844_v32 = vpop.eup %7843  ;;  %v3821_v53 = vmul.f32 %v7842_v43, %v3819_v51  ;;  %vm3826_vm10 = vweird.f32 %v7842_v43 }
 0xba4   :  { %v3872_v10 = vadd.f32 1.0, %v7844_v32  ;;  %v5439_v28 = vadd.f32 %v5438_v4, %v5437_v0  ;;  %vm3827_vm12 = vmor %vm3825_vm11, %vm3826_vm10 }
 0xba5   :  { %v3822_v62 = vsub.f32 1.0, %v3821_v53 }
 0xba6   :  { %7845 = vrcp.f32 %v3872_v10  ;;  %v5470_v40 = vsel %vm11082_vm2, %v5439_v28, %v5469_v1  ;;  %v3884_v34 = vand.u32 2147483648, %v3872_v10  ;;  %v3882_v29 = vand.u32 2147483647, %v3872_v10 }
 0xba7   :  { %v5476_v19 = vadd.f32 %v5474_v2, %v5470_v40  ;;  %v3823_v47 = vmul.f32 %v7842_v43, %v3822_v62  ;;  %vm3878_vm15 = vweird.f32 %v3872_v10 }
 0xba8   :  { %v3885_v55 = vor.u32 1.1754944e-38, %v3884_v34  ;;  %vm3883_vm2 = vcmp.eq.f32.partialorder %v3882_v29, 8.507059e+37 }
 0xba9   :  { %v5526_v63 = vmul.f32 %v5522_v8, %v5476_v19  ;;  %v3824_v50 = vadd.f32 %v7842_v43, %v3823_v47 }
 0xbab   :  { %v5527_v41 = vpack.c.bf16 %v5526_v63, %v5525_v17  ;;  %v3828_v57 = vsel %vm3827_vm12, %v7842_v43, %v3824_v50  ;;  %v10230_v50 = vld [vmem:[%s10983_s3 + $0x38] sm:$0x7f] }
 0xbac   :  { %v7846_v31 = vpop.eup %7845  ;;  %v3833_v22 = vsel %vm3830_vm14, %v3832_v26, %v3828_v57 }
 0xbad   :  { %v3874_v60 = vmul.f32 %v7846_v31, %v3872_v10  ;;  %7250 = vmatmul.msk.bf16.vlgmr.msrb.gmra.mxu3 %vm262_vm5, %v5527_v41  ;;  %vm3879_vm13 = vweird.f32 %v7846_v31  ;;  %v10191_v33 = vmul.f32 %v3833_v22, %v10133_v36 }
 0xbae   :  { %vm3880_vm1 = vmor %vm3878_vm15, %vm3879_vm13 }
 0xbaf   :  { %v3875_v48 = vsub.f32 1.0, %v3874_v60 }
 0xbb1   :  { %v3876_v12 = vmul.f32 %v7846_v31, %v3875_v48 }
 0xbb3   :  { %v3877_v24 = vadd.f32 %v7846_v31, %v3876_v12 }
 0xbb5   :  { %v3881_v27 = vsel %vm3880_vm1, %v7846_v31, %v3877_v24  ;;  %vm11091_vm1 = vcmask 1045504  }
 0xbb6   :  { %v3886_v46 = vsel %vm3883_vm2, %v3885_v55, %v3881_v27  ;;  %vm11092_vm2 = vcmask 1044480  }
 0xbb7   :  { %v10194_v51 = vmul.f32 %v3886_v46, %v10163_v59 }
 0xbb9   :  { %v3889_v5 = vpack.c.bf16 %v10194_v51, %v10191_v33 }
 0xbbb   :  { %7185 = vmatmul.msk.bf16.vlgmr.msra.gmra.mxu1 %vm262_vm5, %v3889_v5 }
 0xc30   :  { %v5573_v44 = vpop.f32.mrf.mxu3 }
 0xc31   :  { %v10200_v25 = vadd.f32 %v5573_v44, %v9176_v21  ;;  %v7374_v44 = vld [vmem:[%s10982_s2 + $0x58] sm:$0xff] }
 0xc32   :  { %5641 = vmatpush.bf16.msrb.mxu1 %v7374_v44 }
 0xc33   :  { %11087 = vst [vmem:[#allocation6_spill] sm:$0xff] %v10200_v25  ;;  %v5580_v11 = vmul.f32 %v10200_v25, %v10200_v25 }
 0xc35   :  { %v5582_v13 = vsel %vm38_vm0, %v5580_v11, 0.0 }
 0xc36   :  { %5583 = vadd.xlane.f32.xlu1 %v5582_v13 }
 0xc38   :  { %v3935_v36 = vpop.f32.mrf.mxu1  ;;  %v5575_v39 = vpop.f32.mrf.mxu3 }
 0xc39   :  { %v4123_v37 = vperm.slane %v3935_v36, 0  ;;  %v10206_v59 = vadd.f32 %v5575_v39, %v9182_v54  ;;  %v4130_v21 = vperm.slane %v3935_v36, 1  ;;  %v4137_v16 = vperm.slane %v3935_v36, 2 }
 0xc3a   :  { %v4144_v56 = vperm.slane %v3935_v36, 3  ;;  %v4151_v9 = vperm.slane %v3935_v36, 4  ;;  %v4158_v0 = vperm.slane %v3935_v36, 5  ;;  %v4172_v43 = vperm.slane %v3935_v36, 7 }
 0xc3b   :  { %11088 = vst [vmem:[#allocation11_spill] sm:$0xff] %v10206_v59  ;;  %4128 = vperm.xlu0 %7451, %v4123_v37   ;;  %v5581_v35 = vmul.f32 %v10206_v59, %v10206_v59  ;;  %v4165_v54 = vperm.slane %v3935_v36, 6  ;;  %v3941_v28 = vadd.f32 %v3940_v30, %v3935_v36 }
 0xc3d   :  { %v5585_v23 = vsel %vm38_vm0, %v5581_v35, 0.0  ;;  %v3945_v62 = vand.u32 2147483647, %v3941_v28  ;;  %v3943_v63 = vmax.f32 %v3941_v28, 0.0 }
 0xc3e   :  { %5586 = vadd.xlane.f32.xlu2 %v5585_v23 }
 0xc3f   :  { %v3947_v52 = vsub.f32 0.0, %v3945_v62 }
 0xc40   :  { %v10211_v32 = vpop.f32.mrf.mxu1 }
 0xc41   :  { %v4193_v42 = vperm.slane %v10211_v32, 2  ;;  %v4214_v4 = vperm.slane %v10211_v32, 5  ;;  %v4179_v53 = vperm.slane %v10211_v32, 0  ;;  %v4221_v45 = vperm.slane %v10211_v32, 6 }
 0xc42   :  { %v4186_v10 = vperm.slane %v10211_v32, 1  ;;  %v4200_v2 = vperm.slane %v10211_v32, 3  ;;  %v3949_v1 = vmul.f32 1.442695, %v3947_v52  ;;  %v4207_v40 = vperm.slane %v10211_v32, 4 }
 0xc43   :  { %4135 = vperm.xlu0 %7451, %v4130_v21   ;;  %v4228_v19 = vperm.slane %v10211_v32, 7  ;;  %v7373_v21 = vld [vmem:[%s10982_s2 + $0x50] sm:$0xff] }
 0xc44   :  { %7847 = vpow2.f32 %v3949_v1  ;;  %5642 = vmatpush.bf16.msrb.mxu1 %v7373_v21 }
 0xc4a   :  { %v7848_v8 = vpop.eup %7847 }
 0xc4b   :  { %4142 = vperm.xlu0 %7451, %v4137_v16   ;;  %v3953_v14 = vadd.f32 1.0, %v7848_v8 }
 0xc4d   :  { %7849 = vlog2.f32 %v3953_v14 }
 0xc4f   :  { %4149 = vperm.xlu1 %7452, %v4144_v56  }
 0xc53   :  { %4156 = vperm.xlu0 %7451, %v4151_v9   ;;  %v7850_v47 = vpop.eup %7849 }
 0xc54   :  { %v3956_v17 = vmul.f32 0.6931472, %v7850_v47 }
 0xc56   :  { %4163 = vperm.xlu2 %7453, %v4158_v0   ;;  %v10224_v31 = vadd.f32 %v3956_v17, %v3943_v63 }
 0xc57   :  { %4177 = vperm.xlu1 %7452, %v4172_v43  }
 0xc58   :  { %v3977_v41 = vperm.slane %v10224_v31, 0  ;;  %v3963_v60 = vrot.slane %v10224_v31, 1  ;;  %v3964_v12 = vrot.slane %v10224_v31, 2  ;;  %v10240_v22 = vmul.f32 %v10224_v31, %v10191_v33 }
 0xc59   :  { %v3965_v39 = vrot.slane %v10224_v31, 3  ;;  %v3966_v0 = vrot.slane %v10224_v31, 4 }
 0xc5a   :  { %v4009_v38 = vmul.f32 %v10074_v20, %v3977_v41  ;;  %v4010_v7 = vmul.f32 %v10230_v50, %v3977_v41  ;;  %v3978_v48 = vperm.slane %v3963_v60, 0  ;;  %v3979_v24 = vperm.slane %v3964_v12, 0 }
 0xc5b   :  { %4170 = vperm.xlu0 %7451, %v4165_v54   ;;  %v4235_v36 = vperm.slane %v10240_v22, 0  ;;  %v4109_v56 = vrot.slane %v10240_v22, 1  ;;  %v3981_v8 = vperm.slane %v3966_v0, 0  ;;  %v3968_v12 = vrot.slane %v10224_v31, 6 }
 0xc5c   :  { %v4041_v34 = vmul.f32 1.442695, %v4009_v38  ;;  %v4043_v57 = vmul.f32 1.442695, %v4010_v7  ;;  %v4011_v29 = vmul.f32 %v10074_v20, %v3978_v48  ;;  %v4012_v26 = vmul.f32 %v10230_v50, %v3978_v48 }
 0xc5d   :  { %v4013_v11 = vmul.f32 %v10074_v20, %v3979_v24  ;;  %v4014_v23 = vmul.f32 %v10230_v50, %v3979_v24 }
 0xc5e   :  { %4198 = vperm.xlu2 %7453, %v4193_v42   ;;  %7851 = vpow2.f32 %v4041_v34  ;;  %v4045_v55 = vmul.f32 1.442695, %v4011_v29  ;;  %v4047_v27 = vmul.f32 1.442695, %v4012_v26 }
 0xc5f   :  { %4219 = vperm.xlu1 %7452, %v4214_v4   ;;  %7853 = vpow2.f32 %v4043_v57  ;;  %v4049_v9 = vmul.f32 1.442695, %v4013_v11  ;;  %v3980_v4 = vperm.slane %v3965_v39, 0  ;;  %v4017_v57 = vmul.f32 %v10074_v20, %v3981_v8 }
 0xc60   :  { %7855 = vpow2.f32 %v4045_v55  ;;  %v4018_v55 = vmul.f32 %v10230_v50, %v3981_v8 }
 0xc61   :  { %7857 = vpow2.f32 %v4047_v27  ;;  %v4015_v17 = vmul.f32 %v10074_v20, %v3980_v4  ;;  %v4016_v38 = vmul.f32 %v10230_v50, %v3980_v4  ;;  %v4113_v27 = vrot.slane %v10240_v22, 5 }
 0xc62   :  { %v4057_v21 = vmul.f32 1.442695, %v4017_v57 }
 0xc63   :  { %4184 = vperm.xlu0 %7451, %v4179_v53   ;;  %v4051_v53 = vmul.f32 1.442695, %v4014_v23  ;;  %v4053_v24 = vmul.f32 1.442695, %v4015_v17 }
 0xc64   :  { %v7852_v13 = vpop.eup %7851 }
 0xc65   :  { %v7854_v37 = vpop.eup %7853  ;;  %v4283_v43 = vmul.f32 0.0, %v7852_v13 }
 0xc66   :  { %4226 = vperm.xlu2 %7453, %v4221_v45   ;;  %v4284_v54 = vmul.f32 0.0, %v7854_v37  ;;  %v3967_v45 = vrot.slane %v10224_v31, 5  ;;  %v4111_v37 = vrot.slane %v10240_v22, 3 }
 0xc68   :  { %v3982_v7 = vperm.slane %v3967_v45, 0 }
 0xc6a   :  { %v4019_v44 = vmul.f32 %v10074_v20, %v3982_v7  ;;  %v4020_v23 = vmul.f32 %v10230_v50, %v3982_v7 }
 0xc6b   :  { %4191 = vperm.xlu0 %7451, %v4186_v10   ;;  %v7856_v10 = vpop.eup %7855 }
 0xc6c   :  { %v7858_v52 = vpop.eup %7857  ;;  %v4061_v4 = vmul.f32 1.442695, %v4019_v44 }
 0xc73   :  { %4205 = vperm.xlu0 %7451, %v4200_v2  }
 0xc7b   :  { %4212 = vperm.xlu0 %7451, %v4207_v40   ;;  %v4236_v40 = vperm.slane %v4109_v56, 0  ;;  %v3983_v56 = vperm.slane %v3968_v12, 0 }
 0xc83   :  { %4233 = vperm.xlu0 %7451, %v4228_v19   ;;  %v4110_v19 = vrot.slane %v10240_v22, 2 }
 0xca9   :  { %v5584_v46 = vpop.xlane.xlu1 %5583 }
 0xcaa   :  { %v5588_v5 = vmul.f32 %v5584_v46, %v11048_v15  ;;  %v4237_v46 = vperm.slane %v4110_v19, 0  ;;  %v4063_v19 = vmul.f32 1.442695, %v4020_v23 }
 0xcac   :  { %v10249_v33 = vadd.f32 1e-05, %v5588_v5  ;;  %v4055_v5 = vmul.f32 1.442695, %v4016_v38 }
 0xcad   :  { %v4129_v35 = vpop.permute.xlu0 %4128 }
 0xcae   :  { %v4267_v16 = vmul.f32 %v4235_v36, %v4129_v35  ;;  %7859 = vrsqrt.f32 %v10249_v33  ;;  %vm5598_vm11 = vweird.f32 %v10249_v33 }
 0xcaf   :  { %7861 = vpow2.f32 %v4049_v9 }
 0xcb0   :  { %v4286_v42 = vrot.slane %v4267_v16, 1  ;;  %7863 = vpow2.f32 %v4051_v53  ;;  %v3969_v16 = vrot.slane %v10224_v31, 7  ;;  %v4112_v53 = vrot.slane %v10240_v22, 4 }
 0xcb1   :  { %v5587_v2 = vpop.xlane.xlu2 %5586  ;;  %v4021_v31 = vmul.f32 %v10074_v20, %v3983_v56 }
 0xcb2   :  { %v4288_v28 = vadd.f32 %v4286_v42, %v4283_v43  ;;  %v4289_v62 = vadd.f32 %v4286_v42, %v4284_v54  ;;  %v5589_v1 = vmul.f32 %v5587_v2, %v11048_v15  ;;  %v4059_v43 = vmul.f32 1.442695, %v4018_v55 }
 0xcb3   :  { %v4238_v2 = vperm.slane %v4111_v37, 0  ;;  %v4239_v8 = vperm.slane %v4112_v53, 0 }
 0xcb4   :  { %v4290_v14 = vmul.f32 %v7856_v10, %v4288_v28  ;;  %v4291_v47 = vmul.f32 %v7858_v52, %v4289_v62  ;;  %v10262_v63 = vpop.eup %7859  ;;  %v10264_v41 = vadd.f32 1e-05, %v5589_v1  ;;  %v4240_v28 = vperm.slane %v4113_v27, 0 }
 0xcb5   :  { %v4136_v60 = vpop.permute.xlu0 %4135  ;;  %v5593_v48 = vmul.f32 %v10262_v63, %v10249_v33  ;;  %v7862_v11 = vpop.eup %7861  ;;  %v3984_v52 = vperm.slane %v3969_v16, 0  ;;  %vm5599_vm10 = vweird.f32 %v10262_v63 }
 0xcb6   :  { %v4268_v34 = vmul.f32 %v4236_v40, %v4136_v60  ;;  %7865 = vrsqrt.f32 %v10264_v41  ;;  %v7864_v35 = vpop.eup %7863  ;;  %vm10289_vm13 = vmor %vm5598_vm11, %vm5599_vm10  ;;  %vm5608_vm14 = vweird.f32 %v10264_v41 }
 0xcb7   :  { %v5594_v29 = vmul.f32 %v10262_v63, %v5593_v48  ;;  %7867 = vpow2.f32 %v4053_v24  ;;  %v4023_v12 = vmul.f32 %v10074_v20, %v3984_v52  ;;  %v4024_v33 = vmul.f32 %v10230_v50, %v3984_v52  ;;  %vm11094_vm10 = vmmov %vm11092_vm2 }
 0xcb8   :  { %v4293_v26 = vrot.slane %v4268_v34, 1  ;;  %7869 = vpow2.f32 %v4055_v5 }
 0xcb9   :  { %v5595_v13 = vmul.f32 0.5, %v5594_v29  ;;  %7871 = vpow2.f32 %v4057_v21  ;;  %v4065_v29 = vmul.f32 1.442695, %v4021_v31  ;;  %v4164_v5 = vpop.permute.xlu2 %4163  ;;  %v4115_v31 = vrot.slane %v10240_v22, 7 }
 0xcba   :  { %v4295_v36 = vadd.f32 %v4293_v26, %v4290_v14  ;;  %v4296_v39 = vadd.f32 %v4293_v26, %v4291_v47  ;;  %7873 = vpow2.f32 %v4059_v43  ;;  %v4022_v14 = vmul.f32 %v10230_v50, %v3983_v56 }
 0xcbb   :  { %v5596_v45 = vsub.f32 1.5, %v5595_v13  ;;  %7875 = vpow2.f32 %v4061_v4  ;;  %v4114_v56 = vrot.slane %v10240_v22, 6 }
 0xcbc   :  { %v4297_v9 = vmul.f32 %v7862_v11, %v4295_v36  ;;  %v4298_v0 = vmul.f32 %v7864_v35, %v4296_v39  ;;  %v7866_v54 = vpop.eup %7865  ;;  %7877 = vpow2.f32 %v4063_v19  ;;  %v4067_v13 = vmul.f32 1.442695, %v4022_v14 }
 0xcbd   :  { %v4143_v42 = vpop.permute.xlu0 %4142  ;;  %v5603_v10 = vmul.f32 %v7866_v54, %v10264_v41  ;;  %v7868_v47 = vpop.eup %7867  ;;  %v5597_v17 = vmul.f32 %v10262_v63, %v5596_v45  ;;  %vm5609_vm12 = vweird.f32 %v7866_v54  ;;  %7879 = vpow2.f32 %v4065_v29 }
 0xcbe   :  { %v4269_v62 = vmul.f32 %v4237_v46, %v4143_v42  ;;  %v7870_v34 = vpop.eup %7869  ;;  %vm5610_vm15 = vmor %vm5608_vm14, %vm5609_vm12  ;;  %v4069_v42 = vmul.f32 1.442695, %v4023_v12  ;;  %7881 = vpow2.f32 %v4067_v13  ;;  %v4071_v41 = vmul.f32 1.442695, %v4024_v33 }
 0xcbf   :  { %v5604_v1 = vmul.f32 %v7866_v54, %v5603_v10  ;;  %v7872_v27 = vpop.eup %7871  ;;  %v5601_v39 = vsel %vm10289_vm13, %v10262_v63, %v5597_v17  ;;  %v4242_v17 = vperm.slane %v4115_v31, 0 }
 0xcc0   :  { %v4300_v40 = vrot.slane %v4269_v62, 1  ;;  %v7874_v36 = vpop.eup %7873  ;;  %v5612_v4 = vmul.f32 %v5601_v39, %v10200_v25  ;;  %7883 = vpow2.f32 %v4069_v42 }
 0xcc1   :  { %v5605_v60 = vmul.f32 0.5, %v5604_v1  ;;  %v4150_v48 = vpop.permute.xlu1 %4149  ;;  %v7876_v23 = vpop.eup %7875  ;;  %v4241_v1 = vperm.slane %v4114_v56, 0  ;;  %7885 = vpow2.f32 %v4071_v41 }
 0xcc2   :  { %v4302_v38 = vadd.f32 %v4300_v40, %v4297_v9  ;;  %v4303_v7 = vadd.f32 %v4300_v40, %v4298_v0  ;;  %v4270_v57 = vmul.f32 %v4238_v2, %v4150_v48  ;;  %v4272_v0 = vmul.f32 %v4240_v28, %v4164_v5  ;;  %v7878_v10 = vpop.eup %7877 }
 0xcc3   :  { %v5606_v26 = vsub.f32 1.5, %v5605_v60  ;;  %v7880_v40 = vpop.eup %7879 }
 0xcc4   :  { %v4304_v24 = vmul.f32 %v7868_v47, %v4302_v38  ;;  %v4305_v55 = vmul.f32 %v7870_v34, %v4303_v7  ;;  %v4307_v44 = vrot.slane %v4270_v57, 1  ;;  %v7882_v7 = vpop.eup %7881 }
 0xcc5   :  { %v4157_v11 = vpop.permute.xlu0 %4156  ;;  %v5607_v37 = vmul.f32 %v7866_v54, %v5606_v26 }
 0xcc6   :  { %v4271_v35 = vmul.f32 %v4239_v8, %v4157_v11  ;;  %v4309_v21 = vadd.f32 %v4307_v44, %v4304_v24  ;;  %v4310_v16 = vadd.f32 %v4307_v44, %v4305_v55  ;;  %v7884_v12 = vpop.eup %7883  ;;  %v10311_v11 = vld [vmem:[%s10983_s3 + $0x50] sm:$0xff] }
 0xcc7   :  { %v5611_v9 = vsel %vm5610_vm15, %v7866_v54, %v5607_v37  ;;  %v4321_v54 = vrot.slane %v4272_v0, 1  ;;  %v7886_v24 = vpop.eup %7885  ;;  %v5660_v33 = vperm.slane %v10311_v11, 1  ;;  %v5670_v13 = vperm.slane %v10311_v11, 2 }
 0xcc8   :  { %v4314_v43 = vrot.slane %v4271_v35, 1  ;;  %v5613_v63 = vmul.f32 %v5611_v9, %v10206_v59  ;;  %v4311_v53 = vmul.f32 %v7872_v27, %v4309_v21  ;;  %v4312_v45 = vmul.f32 %v7874_v36, %v4310_v16 }
 0xcc9   :  { %v4178_v14 = vpop.permute.xlu1 %4177  ;;  %v5680_v36 = vperm.slane %v10311_v11, 3  ;;  %v5656_v37 = vperm.slane %v10311_v11, 0 }
 0xcca   :  { %v5614_v62 = vpack.c.bf16 %v5613_v63, %v5612_v4  ;;  %v4316_v2 = vadd.f32 %v4314_v43, %v4311_v53  ;;  %v4317_v52 = vadd.f32 %v4314_v43, %v4312_v45  ;;  %v4274_v34 = vmul.f32 %v4242_v17, %v4178_v14 }
 0xccc   :  { %v4318_v28 = vmul.f32 %v7876_v23, %v4316_v2  ;;  %v4319_v19 = vmul.f32 %v7878_v10, %v4317_v52  ;;  %7263 = vmatmul.msk.bf16.vlgmr.msrb.gmra.mxu1 %vm38_vm0, %v5614_v62  ;;  %v4335_v55 = vrot.slane %v4274_v34, 1  ;;  %v5658_v23 = vperm.slane %v10311_v11, 4 }
 0xccd   :  { %v4171_v8 = vpop.permute.xlu0 %4170 }
 0xcce   :  { %v4273_v47 = vmul.f32 %v4241_v1, %v4171_v8  ;;  %v4323_v60 = vadd.f32 %v4321_v54, %v4318_v28  ;;  %v4324_v38 = vadd.f32 %v4321_v54, %v4319_v19 }
 0xcd0   :  { %v4328_v48 = vrot.slane %v4273_v47, 1  ;;  %v4325_v57 = vmul.f32 %v7880_v40, %v4323_v60  ;;  %v4326_v22 = vmul.f32 %v7882_v7, %v4324_v38  ;;  %v7378_v7 = vld [vmem:[%s10984_s4 + $0xb8] sm:$0xff] }
 0xcd1   :  { %5804 = vmatpush.bf16.msrb.mxu2 %v7378_v7 }
 0xcd2   :  { %v4330_v29 = vadd.f32 %v4328_v48, %v4325_v57  ;;  %v4331_v26 = vadd.f32 %v4328_v48, %v4326_v22 }
 0xcd4   :  { %v4332_v27 = vmul.f32 %v7884_v12, %v4330_v29  ;;  %v4333_v46 = vmul.f32 %v7886_v24, %v4331_v26  ;;  %v7377_v26 = vld [vmem:[%s10984_s4 + $0xb0] sm:$0xff] }
 0xcd5   :  { %5805 = vmatpush.bf16.msrb.mxu2 %v7377_v26 }
 0xcd6   :  { %v10304_v5 = vadd.f32 %v4335_v55, %v4332_v27  ;;  %v10306_v44 = vadd.f32 %v4335_v55, %v4333_v46 }
 0xd49   :  { %v10316_v39 = vpop.f32.mrf.mxu1 }
 0xd4a   :  { %v5653_v35 = vrot.slane %v10316_v39, 5 }
 0xd4c   :  { %v5655_v21 = vsel %vm117_vm8, 0.0, %v5653_v35  ;;  %v5662_v16 = vmul.f32 %v5660_v33, %v5653_v35  ;;  %v5672_v56 = vmul.f32 %v5670_v13, %v5653_v35  ;;  %v5682_v9 = vmul.f32 %v5680_v36, %v5653_v35 }
 0xd4d   :  { %v5657_v0 = vmul.f32 %v5656_v37, %v5655_v21  ;;  %v5661_v43 = vmul.f32 %v5660_v33, %v5655_v21  ;;  %v5671_v42 = vmul.f32 %v5670_v13, %v5655_v21  ;;  %v5681_v4 = vmul.f32 %v5680_v36, %v5655_v21 }
 0xd4e   :  { %v5666_v63 = vrot.slane %v5662_v16, 1  ;;  %v5676_v10 = vrot.slane %v5672_v56, 2  ;;  %v5686_v52 = vrot.slane %v5682_v9, 3  ;;  %v7375_v9 = vld [vmem:[%s10984_s4 + $0xa0] sm:$0xff] }
 0xd4f   :  { %v5659_v53 = vadd.f32 %v5658_v23, %v5657_v0  ;;  %v5665_v45 = vrot.slane %v5661_v43, 1  ;;  %v5675_v41 = vrot.slane %v5671_v42, 2  ;;  %v5685_v2 = vrot.slane %v5681_v4, 3 }
 0xd51   :  { %v5667_v62 = vsel %vm128_vm9, %v5665_v45, %v5666_v63  ;;  %v10323_v31 = vpop.f32.mrf.mxu1  ;;  %v5677_v54 = vsel %vm11091_vm1, %v5675_v41, %v5676_v10  ;;  %v5687_v47 = vsel %vm11092_vm2, %v5685_v2, %v5686_v52 }
 0xd52   :  { %v5669_v1 = vadd.f32 %v5667_v62, %v5659_v53  ;;  %v5711_v40 = vrot.slane %v10323_v31, 5 }
 0xd54   :  { %v5679_v28 = vadd.f32 %v5677_v54, %v5669_v1  ;;  %v5713_v19 = vsel %vm117_vm8, 0.0, %v5711_v40  ;;  %v5717_v8 = vmul.f32 %v5711_v40, %v5660_v33  ;;  %v5726_v14 = vmul.f32 %v5711_v40, %v5670_v13  ;;  %vm11093_vm8 = vmmov %vm11091_vm1 }
 0xd55   :  { %v5714_v17 = vmul.f32 %v5713_v19, %v5656_v37  ;;  %v5716_v60 = vmul.f32 %v5713_v19, %v5660_v33  ;;  %v5725_v38 = vmul.f32 %v5713_v19, %v5670_v13  ;;  %v5734_v57 = vmul.f32 %v5713_v19, %v5680_v36 }
 0xd56   :  { %v10332_v48 = vadd.f32 %v5687_v47, %v5679_v28  ;;  %v5721_v34 = vrot.slane %v5717_v8, 1  ;;  %v5735_v22 = vmul.f32 %v5711_v40, %v5680_v36  ;;  %v5730_v27 = vrot.slane %v5726_v14, 2  ;;  %v7376_v36 = vld [vmem:[%s10984_s4 + $0xa8] sm:$0xff] }
 0xd57   :  { %v5715_v12 = vadd.f32 %v5714_v17, %v5658_v23  ;;  %v5720_v29 = vrot.slane %v5716_v60, 1  ;;  %v5729_v55 = vrot.slane %v5725_v38, 2  ;;  %v5738_v13 = vrot.slane %v5734_v57, 3  ;;  %5806 = vmatpush.bf16.msrb.mxu2 %v7376_v36 }
 0xd58   :  { %v5690_v24 = vsub.f32 0.0, %v10332_v48  ;;  %v5739_v37 = vrot.slane %v5735_v22, 3 }
 0xd59   :  { %v5722_v33 = vsel %vm128_vm9, %v5720_v29, %v5721_v34  ;;  %v5731_v23 = vsel %vm11093_vm8, %v5729_v55, %v5730_v27 }
 0xd5a   :  { %v5691_v46 = vmul.f32 1.442695, %v5690_v24  ;;  %v5724_v35 = vadd.f32 %v5722_v33, %v5715_v12  ;;  %v5740_v16 = vsel %vm11094_vm10, %v5738_v13, %v5739_v37 }
 0xd5b   :  { %5807 = vmatpush.bf16.msrb.mxu2 %v7375_v9 }
 0xd5c   :  { %7887 = vpow2.f32 %v5691_v46  ;;  %v5733_v21 = vadd.f32 %v5731_v23, %v5724_v35 }
 0xd5e   :  { %v5742_v56 = vadd.f32 %v5740_v16, %v5733_v21 }
 0xd60   :  { %v5743_v0 = vsub.f32 0.0, %v5742_v56 }
 0xd62   :  { %v7888_v43 = vpop.eup %7887  ;;  %v5744_v4 = vmul.f32 1.442695, %v5743_v0 }
 0xd63   :  { %v5693_v42 = vadd.f32 1.0, %v7888_v43 }
 0xd65   :  { %7889 = vrcp.f32 %v5693_v42  ;;  %v5705_v40 = vand.u32 2147483648, %v5693_v42  ;;  %vm5699_vm11 = vweird.f32 %v5693_v42  ;;  %v5703_v54 = vand.u32 2147483647, %v5693_v42 }
 0xd66   :  { %7891 = vpow2.f32 %v5744_v4 }
 0xd67   :  { %v5706_v17 = vor.u32 1.1754944e-38, %v5705_v40  ;;  %vm5704_vm14 = vcmp.eq.f32.partialorder %v5703_v54, 8.507059e+37 }
 0xd6b   :  { %v7890_v63 = vpop.eup %7889 }
 0xd6c   :  { %v7892_v53 = vpop.eup %7891  ;;  %v5695_v45 = vmul.f32 %v7890_v63, %v5693_v42  ;;  %vm5700_vm9 = vweird.f32 %v7890_v63 }
 0xd6d   :  { %v5746_v41 = vadd.f32 1.0, %v7892_v53  ;;  %vm5701_vm12 = vmor %vm5699_vm11, %vm5700_vm9  ;;  %v10389_v53 = vld [vmem:[%s10983_s3 + $0x30] sm:$0xff] }
 0xd6e   :  { %v5696_v10 = vsub.f32 1.0, %v5695_v45 }
 0xd6f   :  { %7893 = vrcp.f32 %v5746_v41  ;;  %v5758_v19 = vand.u32 2147483648, %v5746_v41  ;;  %v5756_v47 = vand.u32 2147483647, %v5746_v41  ;;  %vm5752_vm15 = vweird.f32 %v5746_v41 }
 0xd70   :  { %v5697_v62 = vmul.f32 %v7890_v63, %v5696_v10 }
 0xd71   :  { %v5759_v7 = vor.u32 1.1754944e-38, %v5758_v19  ;;  %vm5757_vm2 = vcmp.eq.f32.partialorder %v5756_v47, 8.507059e+37 }
 0xd72   :  { %v5698_v52 = vadd.f32 %v7890_v63, %v5697_v62  ;;  %v4185_v62 = vpop.permute.xlu0 %4184 }
 0xd74   :  { %v5702_v8 = vsel %vm5701_vm12, %v7890_v63, %v5698_v52 }
 0xd75   :  { %v7894_v2 = vpop.eup %7893  ;;  %v5707_v38 = vsel %vm5704_vm14, %v5706_v17, %v5702_v8 }
 0xd76   :  { %v5748_v1 = vmul.f32 %v7894_v2, %v5746_v41  ;;  %vm5753_vm13 = vweird.f32 %v7894_v2  ;;  %v10348_v22 = vmul.f32 %v5707_v38, %v10332_v48  ;;  %v3942_v48 = vadd.f32 %v3940_v30, %v10211_v32 }
 0xd77   :  { %vm5754_vm1 = vmor %vm5752_vm15, %vm5753_vm13 }
 0xd78   :  { %v5749_v28 = vsub.f32 1.0, %v5748_v1  ;;  %v3946_v37 = vand.u32 2147483647, %v3942_v48 }
 0xd7a   :  { %v5750_v14 = vmul.f32 %v7894_v2, %v5749_v28  ;;  %v3948_v35 = vsub.f32 0.0, %v3946_v37  ;;  %v5814_v37 = vperm.slane %v10311_v11, 5 }
 0xd7c   :  { %v5751_v60 = vadd.f32 %v7894_v2, %v5750_v14  ;;  %v3951_v20 = vmul.f32 1.442695, %v3948_v35 }
 0xd7e   :  { %v5755_v34 = vsel %vm5754_vm1, %v7894_v2, %v5751_v60  ;;  %7895 = vpow2.f32 %v3951_v20  ;;  %vm11107_vm1 = vcmask 1046534  }
 0xd7f   :  { %v5760_v57 = vsel %vm5757_vm2, %v5759_v7, %v5755_v34 }
 0xd80   :  { %v10350_v12 = vmul.f32 %v5760_v57, %v5742_v56  ;;  %v3944_v56 = vmax.f32 %v3942_v48, 0.0  ;;  %v4192_v57 = vpop.permute.xlu0 %4191 }
 0xd82   :  { %v5763_v29 = vpack.c.bf16 %v10350_v12, %v10348_v22 }
 0xd84   :  { %7290 = vmatmul.msk.bf16.vlgmr.msrb.gmra.mxu2 %vm262_vm5, %v5763_v29  ;;  %v7896_v32 = vpop.eup %7895 }
 0xd85   :  { %v3954_v30 = vadd.f32 1.0, %v7896_v32  ;;  %v6691_v32 = vsub.f32 0.0, %v10323_v31 }
 0xd87   :  { %7897 = vlog2.f32 %v3954_v30 }
 0xd8d   :  { %v7898_v23 = vpop.eup %7897 }
 0xd8e   :  { %v3958_v16 = vmul.f32 0.6931472, %v7898_v23 }
 0xd90   :  { %v10376_v43 = vadd.f32 %v3958_v16, %v3944_v56  ;;  %v6690_v16 = vsub.f32 0.0, %v10316_v39 }
 0xd92   :  { %v3985_v42 = vperm.slane %v10376_v43, 0  ;;  %v3970_v41 = vrot.slane %v10376_v43, 1  ;;  %v10401_v1 = vmul.f32 %v10376_v43, %v10194_v51  ;;  %v3971_v54 = vrot.slane %v10376_v43, 2 }
 0xd94   :  { %v4025_v45 = vmul.f32 %v10389_v53, %v3985_v42  ;;  %v4026_v10 = vmul.f32 %v10230_v50, %v3985_v42  ;;  %v3986_v52 = vperm.slane %v3970_v41, 0  ;;  %v4243_v51 = vperm.slane %v10401_v1, 0 }
 0xd95   :  { %v3987_v47 = vperm.slane %v3971_v54, 0  ;;  %v4116_v60 = vrot.slane %v10401_v1, 1  ;;  %v3973_v42 = vrot.slane %v10376_v43, 4 }
 0xd96   :  { %v4073_v2 = vmul.f32 1.442695, %v4025_v45  ;;  %v4075_v40 = vmul.f32 1.442695, %v4026_v10  ;;  %v4027_v8 = vmul.f32 %v10389_v53, %v3986_v52  ;;  %v4028_v14 = vmul.f32 %v10230_v50, %v3986_v52 }
 0xd97   :  { %v4275_v17 = vmul.f32 %v4243_v51, %v4185_v62  ;;  %v4029_v29 = vmul.f32 %v10389_v53, %v3987_v47  ;;  %v4030_v48 = vmul.f32 %v10230_v50, %v3987_v47  ;;  %v4117_v45 = vrot.slane %v10401_v1, 2  ;;  %v4199_v47 = vpop.permute.xlu2 %4198 }
 0xd98   :  { %7899 = vpow2.f32 %v4073_v2  ;;  %v4077_v38 = vmul.f32 1.442695, %v4027_v8  ;;  %v4079_v7 = vmul.f32 1.442695, %v4028_v14  ;;  %v6692_v51 = vmul.f32 1.442695, %v6690_v16 }
 0xd99   :  { %7901 = vpow2.f32 %v4075_v40  ;;  %v4083_v23 = vmul.f32 1.442695, %v4030_v48  ;;  %v6694_v40 = vmul.f32 1.442695, %v6691_v32  ;;  %v4118_v48 = vrot.slane %v10401_v1, 3 }
 0xd9a   :  { %7903 = vpow2.f32 %v4077_v38  ;;  %v4245_v38 = vperm.slane %v4117_v45, 0  ;;  %v4119_v45 = vrot.slane %v10401_v1, 4 }
 0xd9b   :  { %7905 = vpow2.f32 %v4079_v7 }
 0xd9e   :  { %v7900_v34 = vpop.eup %7899 }
 0xe07   :  { %v10355_v26 = vpop.f32.mrf.mxu2 }
 0xe08   :  { %v6011_v24 = vperm.slane %v10355_v26, 2  ;;  %v6004_v55 = vperm.slane %v10355_v26, 1  ;;  %v5997_v27 = vperm.slane %v10355_v26, 0  ;;  %v6032_v46 = vperm.slane %v10355_v26, 5 }
 0xe09   :  { %v6025_v33 = vperm.slane %v10355_v26, 4  ;;  %v6018_v13 = vperm.slane %v10355_v26, 3  ;;  %v6039_v36 = vperm.slane %v10355_v26, 6  ;;  %v6046_v0 = vperm.slane %v10355_v26, 7 }
 0xe0a   :  { %6016 = vperm.xlu1 %7452, %v6011_v24   ;;  %6009 = vperm.xlu0 %7451, %v6004_v55   ;;  %v10428_v10 = vadd.f32 %v5814_v37, %v10355_v26  ;;  %v2481_v26 = vld [vmem:[%s10987_s7 + $0x10] sm:$0xff] }
 0xe0b   :  { %6002 = vperm.xlu2 %7453, %v5997_v27  }
 0xe0f   :  { %v10372_v21 = vpop.f32.mrf.mxu2 }
 0xe10   :  { %v6053_v9 = vperm.slane %v10372_v21, 0  ;;  %v6067_v4 = vperm.slane %v10372_v21, 2  ;;  %v6074_v63 = vperm.slane %v10372_v21, 3  ;;  %v6088_v28 = vperm.slane %v10372_v21, 5 }
 0xe11   :  { %v6095_v19 = vperm.slane %v10372_v21, 6  ;;  %v6060_v14 = vperm.slane %v10372_v21, 1  ;;  %v6081_v32 = vperm.slane %v10372_v21, 4 }
 0xe12   :  { %6037 = vperm.xlu1 %7452, %v6032_v46   ;;  %6030 = vperm.xlu0 %7451, %v6025_v33  }
 0xe13   :  { %6023 = vperm.xlu2 %7453, %v6018_v13  }
 0xe1a   :  { %7456 = vset.pattern.permute.xlu1 %v11053_v61  ;;  %7454 = vset.pattern.permute.xlu0 %v11053_v61 }
 0xe1b   :  { %6044 = vperm.xlu2 %7453, %v6039_v36  }
 0xe22   :  { %6229 = vperm.xlu1 %7456, %v6011_v24   ;;  %6217 = vperm.xlu0 %7454, %v5997_v27   ;;  %v3972_v24 = vrot.slane %v10376_v43, 3  ;;  %v4342_v27 = vrot.slane %v4275_v17, 1 }
 0xe23   :  { %7455 = vset.pattern.permute.xlu2 %v11053_v61 }
 0xe24   :  { %v3988_v20 = vperm.slane %v3972_v24, 0 }
 0xe26   :  { %v4031_v2 = vmul.f32 %v10389_v53, %v3988_v20  ;;  %v4032_v52 = vmul.f32 %v10230_v50, %v3988_v20 }
 0xe28   :  { %v4085_v24 = vmul.f32 1.442695, %v4031_v2 }
 0xe2a   :  { %6241 = vperm.xlu1 %7456, %v6025_v33   ;;  %6235 = vperm.xlu0 %7454, %v6018_v13   ;;  %v4244_v33 = vperm.slane %v4116_v60, 0  ;;  %v3989_v60 = vperm.slane %v3973_v42, 0 }
 0xe2b   :  { %6223 = vperm.xlu2 %7455, %v6004_v55   ;;  %v7902_v55 = vpop.eup %7901 }
 0xe2c   :  { %v4276_v13 = vmul.f32 %v4244_v33, %v4192_v57  ;;  %v4340_v35 = vmul.f32 0.0, %v7902_v55  ;;  %v7904_v62 = vpop.eup %7903  ;;  %v4277_v55 = vmul.f32 %v4245_v38, %v4199_v47  ;;  %v3974_v33 = vrot.slane %v10376_v43, 5 }
 0xe2d   :  { %v7906_v54 = vpop.eup %7905  ;;  %v4034_v20 = vmul.f32 %v10230_v50, %v3989_v60  ;;  %v4247_v38 = vperm.slane %v4119_v45, 0 }
 0xe2e   :  { %v4345_v56 = vadd.f32 %v4342_v27, %v4340_v35  ;;  %v4349_v41 = vrot.slane %v4276_v13, 1 }
 0xe30   :  { %v4347_v17 = vmul.f32 %v7906_v54, %v4345_v56  ;;  %v3990_v56 = vperm.slane %v3974_v33, 0  ;;  %v4091_v54 = vmul.f32 1.442695, %v4034_v20 }
 0xe32   :  { %7459 = vset.pattern.permute.xlu1 %v11054_v6  ;;  %6253 = vperm.xlu0 %7454, %v6039_v36   ;;  %v4081_v36 = vmul.f32 1.442695, %v4029_v29  ;;  %v4352_v57 = vadd.f32 %v4349_v41, %v4347_v17  ;;  %v4206_v29 = vpop.permute.xlu0 %4205 }
 0xe33   :  { %7457 = vset.pattern.permute.xlu2 %v11054_v6 }
 0xe34   :  { %7907 = vpow2.f32 %v4081_v36 }
 0xe35   :  { %7909 = vpow2.f32 %v4083_v23  ;;  %v4246_v23 = vperm.slane %v4118_v48, 0  ;;  %v10459_v48 = vadd.f32 %v5814_v37, %v10372_v21 }
 0xe36   :  { %7911 = vpow2.f32 %v6694_v40 }
 0xe37   :  { %7913 = vpow2.f32 %v6692_v51  ;;  %v5820_v37 = vand.u32 2147483647, %v10459_v48 }
 0xe38   :  { %7915 = vpow2.f32 %v4085_v24 }
 0xe3a   :  { %7461 = vset.pattern.permute.xlu0 %v11054_v6  ;;  %6058 = vperm.xlu1 %7459, %v6053_v9   ;;  %v4213_v17 = vpop.permute.xlu0 %4212 }
 0xe3b   :  { %6051 = vperm.xlu2 %7457, %v6046_v0  }
 0xe42   :  { %6072 = vperm.xlu0 %7461, %v6067_v4   ;;  %6079 = vperm.xlu1 %7459, %v6074_v63  }
 0xe43   :  { %7458 = vset.pattern.permute.xlu2 %v11053_v61 }
 0xe4a   :  { %6093 = vperm.xlu0 %7461, %v6088_v28   ;;  %6100 = vperm.xlu1 %7459, %v6095_v19  }
 0xe4b   :  { %6247 = vperm.xlu2 %7458, %v6032_v46   ;;  %v4339_v46 = vmul.f32 0.0, %v7900_v34  ;;  %v5819_v34 = vand.u32 2147483647, %v10428_v10 }
 0xe4d   :  { %v4344_v30 = vadd.f32 %v4342_v27, %v4339_v46  ;;  %v4087_v27 = vmul.f32 1.442695, %v4032_v52  ;;  %v5821_v35 = vsub.f32 0.0, %v5819_v34 }
 0xe4f   :  { %v4346_v8 = vmul.f32 %v7904_v62, %v4344_v30  ;;  %v4356_v30 = vrot.slane %v4277_v55, 1  ;;  %7917 = vpow2.f32 %v4087_v27  ;;  %v4278_v62 = vmul.f32 %v4246_v23, %v4206_v29 }
 0xe50   :  { %v5823_v52 = vmul.f32 1.442695, %v5821_v35  ;;  %v4036_v29 = vmul.f32 %v10230_v50, %v3990_v56  ;;  %v6102_v55 = vperm.slane %v10372_v21, 7  ;;  %v4279_v27 = vmul.f32 %v4247_v38, %v4213_v17 }
 0xe51   :  { %v4351_v7 = vadd.f32 %v4349_v41, %v4346_v8  ;;  %v3975_v8 = vrot.slane %v10376_v43, 6 }
 0xe52   :  { %7464 = vset.pattern.permute.xlu0 %v11053_v61  ;;  %7462 = vset.pattern.permute.xlu1 %v11053_v61 }
 0xe53   :  { %7460 = vset.pattern.permute.xlu2 %v11054_v6  ;;  %v3991_v33 = vperm.slane %v3975_v8, 0  ;;  %v5822_v8 = vsub.f32 0.0, %v5820_v37 }
 0xe55   :  { %v4038_v45 = vmul.f32 %v10230_v50, %v3991_v33 }
 0xe5a   :  { %6477 = vperm.xlu0 %7464, %v6067_v4   ;;  %6465 = vperm.xlu1 %7462, %v6053_v9   ;;  %v7908_v4 = vpop.eup %7907  ;;  %v4033_v9 = vmul.f32 %v10389_v53, %v3989_v60  ;;  %v4035_v60 = vmul.f32 %v10389_v53, %v3990_v56 }
 0xe5b   :  { %6065 = vperm.xlu2 %7460, %v6060_v14   ;;  %v7910_v46 = vpop.eup %7909  ;;  %v4353_v13 = vmul.f32 %v7908_v4, %v4351_v7 }
 0xe5c   :  { %v4354_v36 = vmul.f32 %v7910_v46, %v4352_v57  ;;  %v7912_v16 = vpop.eup %7911  ;;  %v4089_v42 = vmul.f32 1.442695, %v4033_v9  ;;  %v4363_v57 = vrot.slane %v4278_v62, 1  ;;  %v4093_v4 = vmul.f32 1.442695, %v4035_v60  ;;  %v4220_v62 = vpop.permute.xlu1 %4219 }
 0xe5d   :  { %v7914_v41 = vpop.eup %7913  ;;  %v4358_v2 = vadd.f32 %v4356_v30, %v4353_v13  ;;  %v10448_v51 = vadd.f32 1.0, %v7912_v16  ;;  %v4095_v46 = vmul.f32 1.442695, %v4036_v29  ;;  %v4037_v16 = vmul.f32 %v10389_v53, %v3991_v33 }
 0xe5e   :  { %v4359_v40 = vadd.f32 %v4356_v30, %v4354_v36  ;;  %v7916_v47 = vpop.eup %7915  ;;  %7919 = vpow2.f32 %v4089_v42  ;;  %v10451_v7 = vadd.f32 1.0, %v7914_v41  ;;  %v3976_v36 = vrot.slane %v10376_v43, 7 }
 0xe5f   :  { %v4360_v34 = vmul.f32 %v7916_v47, %v4358_v2  ;;  %7921 = vpow2.f32 %v5823_v52  ;;  %v4370_v30 = vrot.slane %v4279_v27, 1  ;;  %v4097_v17 = vmul.f32 1.442695, %v4037_v16 }
 0xe60   :  { %7923 = vpow2.f32 %v4091_v54  ;;  %v3992_v2 = vperm.slane %v3976_v36, 0  ;;  %v4121_v29 = vrot.slane %v10401_v1, 6  ;;  %v5825_v33 = vmul.f32 1.442695, %v5822_v8 }
 0xe61   :  { %7925 = vrcp.f32 %v10448_v51  ;;  %v4365_v9 = vadd.f32 %v4363_v57, %v4360_v34  ;;  %vm6718_vm9 = vweird.f32 %v10448_v51  ;;  %vm6703_vm11 = vweird.f32 %v10451_v7 }
 0xe62   :  { %6489 = vperm.xlu0 %7464, %v6081_v32   ;;  %7465 = vset.pattern.permute.xlu1 %v11054_v6  ;;  %v7918_v6 = vpop.eup %7917  ;;  %7927 = vrcp.f32 %v10451_v7  ;;  %v4249_v36 = vperm.slane %v4121_v29, 0 }
 0xe63   :  { %6086 = vperm.xlu2 %7460, %v6081_v32   ;;  %v4361_v24 = vmul.f32 %v7918_v6, %v4359_v40  ;;  %v4120_v32 = vrot.slane %v10401_v1, 5  ;;  %7929 = vpow2.f32 %v4093_v4  ;;  %v4099_v6 = vmul.f32 1.442695, %v4038_v45 }
 0xe64   :  { %v7920_v13 = vpop.eup %7919  ;;  %7931 = vpow2.f32 %v4095_v46  ;;  %v4040_v4 = vmul.f32 %v10230_v50, %v3992_v2  ;;  %v4227_v46 = vpop.permute.xlu2 %4226  ;;  %v4122_v45 = vrot.slane %v10401_v1, 7  ;;  %v6709_v1 = vand.u32 2147483648, %v10451_v7 }
 0xe65   :  { %v4366_v35 = vadd.f32 %v4363_v57, %v4361_v24  ;;  %v7922_v20 = vpop.eup %7921  ;;  %v4367_v42 = vmul.f32 %v7920_v13, %v4365_v9  ;;  %v4248_v40 = vperm.slane %v4120_v32, 0  ;;  %v4039_v24 = vmul.f32 %v10389_v53, %v3992_v2 }
 0xe66   :  { %v7924_v23 = vpop.eup %7923  ;;  %v5827_v52 = vadd.f32 1.0, %v7922_v20  ;;  %v4103_v32 = vmul.f32 1.442695, %v4040_v4  ;;  %v4281_v53 = vmul.f32 %v4249_v36, %v4227_v46  ;;  %v4250_v29 = vperm.slane %v4122_v45, 0 }
 0xe67   :  { %v10467_v56 = vpop.eup %7925  ;;  %v4368_v43 = vmul.f32 %v7924_v23, %v4366_v35  ;;  %v4372_v54 = vadd.f32 %v4370_v30, %v4367_v42  ;;  %v4280_v38 = vmul.f32 %v4248_v40, %v4220_v62 }
 0xe68   :  { %v10470_v41 = vpop.eup %7927  ;;  %v6714_v60 = vmul.f32 %v10467_v56, %v10448_v51  ;;  %7933 = vlog2.f32 %v5827_v52  ;;  %v4384_v2 = vrot.slane %v4281_v53, 1  ;;  %vm6719_vm8 = vweird.f32 %v10467_v56 }
 0xe69   :  { %v4373_v47 = vadd.f32 %v4370_v30, %v4368_v43  ;;  %v6699_v34 = vmul.f32 %v10470_v41, %v10451_v7  ;;  %v7930_v57 = vpop.eup %7929  ;;  %7935 = vpow2.f32 %v4097_v17  ;;  %v4377_v13 = vrot.slane %v4280_v38, 1  ;;  %vm10500_vm12 = vmor %vm6718_vm9, %vm6719_vm8 }
 0xe6a   :  { %6507 = vperm.xlu0 %7464, %v6102_v55   ;;  %6107 = vperm.xlu1 %7465, %v6102_v55   ;;  %v7932_v55 = vpop.eup %7931  ;;  %v4374_v27 = vmul.f32 %v7930_v57, %v4372_v54  ;;  %v6715_v9 = vsub.f32 1.0, %v6714_v60  ;;  %7937 = vpow2.f32 %v4099_v6  ;;  %v4234_v54 = vpop.permute.xlu0 %4233  ;;  %vm6704_vm10 = vweird.f32 %v10470_v41 }
 0xe6b   :  { %7463 = vset.pattern.permute.xlu2 %v11053_v61  ;;  %v6700_v35 = vsub.f32 1.0, %v6699_v34  ;;  %7939 = vpow2.f32 %v5825_v33  ;;  %v6722_v17 = vand.u32 2147483647, %v10448_v51  ;;  %v6707_v38 = vand.u32 2147483647, %v10451_v7  ;;  %vm10510_vm13 = vmor %vm6703_vm11, %vm6704_vm10 }
 0xe6c   :  { %v4379_v20 = vadd.f32 %v4377_v13, %v4374_v27  ;;  %v6716_v23 = vmul.f32 %v10467_v56, %v6715_v9  ;;  %v10506_v57 = vpop.permute.xlu2 %6002  ;;  %v6710_v9 = vor.u32 1.1754944e-38, %v6709_v1 }
 0xe6d   :  { %v6701_v50 = vmul.f32 %v10470_v41, %v6700_v35  ;;  %vm6723_vm14 = vcmp.eq.f32.partialorder %v6722_v17, 8.507059e+37  ;;  %vm6708_vm15 = vcmp.eq.f32.partialorder %v6707_v38, 8.507059e+37 }
 0xe6e   :  { %v7934_v30 = vpop.eup %7933  ;;  %v6717_v40 = vadd.f32 %v10467_v56, %v6716_v23 }
 0xe6f   :  { %v7936_v16 = vpop.eup %7935  ;;  %v5830_v43 = vmul.f32 0.6931472, %v7934_v30  ;;  %v6702_v8 = vadd.f32 %v10470_v41, %v6701_v50 }
 0xe70   :  { %v7938_v42 = vpop.eup %7937  ;;  %v4381_v62 = vmul.f32 %v7936_v16, %v4379_v20  ;;  %v6721_v7 = vsel %vm10500_vm12, %v10467_v56, %v6717_v40  ;;  %v2482_v56 = vld [vmem:[%s10987_s7 + $0x18] sm:$0xff]  ;;  %s8062_s7 = smov [#allocation2]  }
 0xe71   :  { %v6706_v4 = vsel %vm10510_vm13, %v10470_v41, %v6702_v8  ;;  %v4401_v53 = vrot.slane %v2482_v56, 1  ;;  %s6951_s30 = sshll.u32 %s8062_s7, 4  ;;  %s6952_s30 = int_to_ptr.vmem [resolvable:$true] %s6951_s30 }
 0xe72   :  { %7466 = vset.pattern.permute.xlu1 %v11053_v61  ;;  %v4375_v61 = vmul.f32 %v7932_v55, %v4373_v47  ;;  %v5817_v47 = vmax.f32 %v10428_v10, 0.0  ;;  %v4386_v60 = vadd.f32 %v4384_v2, %v4381_v62  ;;  %v6711_v35 = vsel %vm6708_vm15, %v6710_v9, %v6706_v4 }
 0xe73   :  { %6471 = vperm.xlu2 %7463, %v6060_v14   ;;  %v4101_v14 = vmul.f32 1.442695, %v4039_v24 }
 0xe74   :  { %v4380_v37 = vadd.f32 %v4377_v13, %v4375_v61  ;;  %v10504_v34 = vadd.f32 %v5830_v43, %v5817_v47  ;;  %v4282_v61 = vmul.f32 %v4250_v29, %v4234_v54  ;;  %v10547_v43 = vpop.permute.xlu2 %6023 }
 0xe75   :  { %7941 = vpow2.f32 %v4101_v14 }
 0xe76   :  { %7943 = vpow2.f32 %v4103_v32  ;;  %v4382_v52 = vmul.f32 %v7938_v42, %v4380_v37  ;;  %v5837_v21 = vrot.slane %v10504_v34, 1  ;;  %v4391_v14 = vrot.slane %v4282_v61, 1 }
 0xe77   :  { %v4396_v32 = vrot.slane %v2481_v26, 1  ;;  %v6728_v37 = vmul.f32 %v6711_v35, %v10316_v39  ;;  %v5838_v50 = vrot.slane %v10504_v34, 2  ;;  %v10555_v39 = vmul.f32 %v10504_v34, %v10348_v22 }
 0xe78   :  { %v4387_v24 = vadd.f32 %v4384_v2, %v4382_v52  ;;  %v5852_v62 = vperm.slane %v5837_v21, 0  ;;  %v5839_v54 = vrot.slane %v10504_v34, 3  ;;  %v5841_v38 = vrot.slane %v10504_v34, 5 }
 0xe79   :  { %v10551_v2 = vadd.f32 %v4396_v32, %v10304_v5  ;;  %v10558_v52 = vadd.f32 %v4396_v32, %v10306_v44  ;;  %v5818_v5 = vmax.f32 %v10459_v48, 0.0  ;;  %v6109_v44 = vperm.slane %v10555_v39, 0 }
 0xe7a   :  { %6495 = vperm.xlu1 %7466, %v6088_v28   ;;  %v7940_v28 = vpop.eup %7939  ;;  %v5885_v1 = vmul.f32 %v10311_v11, %v5852_v62  ;;  %v5985_v6 = vrot.slane %v10555_v39, 3  ;;  %v5854_v48 = vperm.slane %v5839_v54, 0  ;;  %v5983_v4 = vrot.slane %v10555_v39, 1 }
 0xe7b   :  { %6483 = vperm.xlu2 %7463, %v6074_v63   ;;  %v6724_v63 = vand.u32 2147483648, %v10448_v51  ;;  %v7942_v10 = vpop.eup %7941  ;;  %v5828_v55 = vadd.f32 1.0, %v7940_v28  ;;  %11099 = vst [vmem:[#allocation12_spill] sm:$0xff] %v10551_v2  ;;  %v5853_v28 = vperm.slane %v5838_v50, 0  ;;  %v5987_v9 = vrot.slane %v10555_v39, 5 }
 0xe7c   :  { %v7944_v27 = vpop.eup %7943  ;;  %v4388_v46 = vmul.f32 %v7942_v10, %v4386_v60  ;;  %v10537_v36 = vpop.permute.xlu0 %6009  ;;  %11100 = vst [vmem:[#allocation13_spill] sm:$0xff] %v10558_v52  ;;  %v5840_v60 = vrot.slane %v10504_v34, 4  ;;  %v5988_v10 = vrot.slane %v10555_v39, 6  ;;  %v6141_v26 = vmul.f32 %v6109_v44, %v10506_v57 }
 0xe7d   :  { %v6725_v33 = vor.u32 1.1754944e-38, %v6724_v63  ;;  %v4389_v41 = vmul.f32 %v7944_v27, %v4387_v24  ;;  %7945 = vlog2.f32 %v5828_v55  ;;  %v10540_v30 = vpop.permute.xlu1 %6016  ;;  %v5984_v24 = vrot.slane %v10555_v39, 2  ;;  %v10590_v21 = vpop.permute.xlu2 %6044 }
 0xe7e   :  { %v4393_v16 = vadd.f32 %v4391_v14, %v4388_v46  ;;  %v5887_v51 = vmul.f32 %v10311_v11, %v5853_v28  ;;  %v5919_v27 = vmul.f32 1.442695, %v5885_v1  ;;  %v5855_v46 = vperm.slane %v5840_v60, 0 }
 0xe7f   :  { %v6726_v13 = vsel %vm6723_vm14, %v6725_v33, %v6721_v7  ;;  %v4394_v42 = vadd.f32 %v4391_v14, %v4389_v41  ;;  %v5856_v41 = vperm.slane %v5841_v38, 0  ;;  %v10588_v35 = vperm.slane %v5988_v10, 0 }
 0xe80   :  { %v6729_v20 = vmul.f32 %v6726_v13, %v10323_v31  ;;  %v10561_v8 = vadd.f32 %v4401_v53, %v4393_v16  ;;  %v5842_v13 = vrot.slane %v10504_v34, 6  ;;  %v10592_v14 = vperm.slane %v5984_v24, 0 }
 0xe81   :  { %v10563_v63 = vadd.f32 %v4401_v53, %v4394_v42  ;;  %v5889_v32 = vmul.f32 %v10311_v11, %v5854_v48  ;;  %v10596_v57 = vperm.slane %v5987_v9, 0  ;;  %v5891_v16 = vmul.f32 %v10311_v11, %v5855_v46 }
 0xe82   :  { %6259 = vperm.xlu1 %7466, %v6046_v0   ;;  %v5851_v0 = vperm.slane %v10504_v34, 0  ;;  %11101 = vst [vmem:[#allocation14_spill] sm:$0xff] %v10561_v8  ;;  %v5986_v1 = vrot.slane %v10555_v39, 4 }
 0xe83   :  { %6501 = vperm.xlu2 %7463, %v6095_v19   ;;  %v10535_v19 = vld [vmem:[%s10983_s3 + $0x58] sm:$0x7f]  ;;  %v7946_v31 = vpop.eup %7945  ;;  %11102 = vst [vmem:[#allocation15_spill] sm:$0xff] %v10563_v63 }
 0xe84   :  { %v5883_v23 = vmul.f32 %v10311_v11, %v5851_v0  ;;  %v5884_v45 = vmul.f32 %v10535_v19, %v5851_v0  ;;  %v5832_v17 = vmul.f32 0.6931472, %v7946_v31  ;;  %v5886_v29 = vmul.f32 %v10535_v19, %v5852_v62  ;;  %v10575_v7 = vpop.permute.xlu0 %6030 }
 0xe85   :  { %v5888_v55 = vmul.f32 %v10535_v19, %v5853_v28  ;;  %v10579_v33 = vpop.permute.xlu1 %6037  ;;  %v10586_v0 = vperm.slane %v5985_v6, 0  ;;  %v5892_v42 = vmul.f32 %v10535_v19, %v5855_v46  ;;  %v6160_v31 = vrot.slane %v6141_v26, 1  ;;  %v10619_v46 = vpop.permute.xlu2 %6223 }
 0xe86   :  { %v5915_v40 = vmul.f32 1.442695, %v5883_v23  ;;  %v5917_v47 = vmul.f32 1.442695, %v5884_v45  ;;  %v10581_v61 = vadd.f32 %v5832_v17, %v5818_v5  ;;  %v5921_v56 = vmul.f32 1.442695, %v5886_v29 }
 0xe87   :  { %v5925_v53 = vmul.f32 1.442695, %v5888_v55  ;;  %v5890_v23 = vmul.f32 %v10535_v19, %v5854_v48  ;;  %v5843_v45 = vrot.slane %v10504_v34, 7  ;;  %v5857_v28 = vperm.slane %v5842_v13, 0 }
 0xe88   :  { %7947 = vpow2.f32 %v5915_v40  ;;  %v5893_v40 = vmul.f32 %v10311_v11, %v5856_v41  ;;  %v5894_v54 = vmul.f32 %v10535_v19, %v5856_v41  ;;  %v5931_v6 = vmul.f32 1.442695, %v5891_v16 }
 0xe89   :  { %7949 = vpow2.f32 %v5917_v47  ;;  %v5927_v47 = vmul.f32 1.442695, %v5889_v32  ;;  %v5929_v34 = vmul.f32 1.442695, %v5890_v23  ;;  %v5933_v10 = vmul.f32 1.442695, %v5892_v42 }
 0xe8a   :  { %6734 = vrot.lane.b32.xlu1 %v6729_v20, %s8060_s11  ;;  %v5923_v20 = vmul.f32 1.442695, %v5887_v51  ;;  %7951 = vpow2.f32 %v5919_v27  ;;  %v5858_v29 = vperm.slane %v5843_v45, 0  ;;  %v5935_v48 = vmul.f32 1.442695, %v5893_v40 }
 0xe8b   :  { %6732 = vrot.lane.b32.xlu2 %v6728_v37, %s8060_s11  ;;  %v6110_v37 = vperm.slane %v5983_v4, 0  ;;  %7953 = vpow2.f32 %v5921_v56  ;;  %v5895_v55 = vmul.f32 %v10311_v11, %v5857_v28  ;;  %v5859_v27 = vperm.slane %v10581_v61, 0 }
 0xe8c   :  { %7955 = vpow2.f32 %v5923_v20  ;;  %v10617_v9 = vperm.slane %v5986_v1, 0  ;;  %v5896_v56 = vmul.f32 %v10535_v19, %v5857_v28  ;;  %v5844_v41 = vrot.slane %v10581_v61, 1 }
 0xe8d   :  { %7957 = vpow2.f32 %v5925_v53  ;;  %v6142_v60 = vmul.f32 %v6110_v37, %v10537_v36  ;;  %v5937_v36 = vmul.f32 1.442695, %v5894_v54  ;;  %v5897_v32 = vmul.f32 %v10311_v11, %v5858_v29 }
 0xe8e   :  { %v7948_v50 = vpop.eup %7947  ;;  %7959 = vpow2.f32 %v5927_v47  ;;  %v5989_v53 = vrot.slane %v10555_v39, 7  ;;  %v10627_v37 = vmul.f32 %v10581_v61, %v10350_v12  ;;  %v5898_v16 = vmul.f32 %v10535_v19, %v5858_v29 }
 0xe8f   :  { %v7950_v62 = vpop.eup %7949  ;;  %v6157_v17 = vmul.f32 %v7948_v50, %v10551_v2  ;;  %v6167_v26 = vrot.slane %v6142_v60, 1  ;;  %7961 = vpow2.f32 %v5929_v34  ;;  %v5939_v42 = vmul.f32 1.442695, %v5895_v55 }
 0xe90   :  { %v6158_v44 = vmul.f32 %v7950_v62, %v10558_v52  ;;  %v7952_v24 = vpop.eup %7951  ;;  %7963 = vpow2.f32 %v5931_v6  ;;  %v5899_v45 = vmul.f32 %v10311_v11, %v5859_v27  ;;  %v5845_v40 = vrot.slane %v10581_v61, 2 }
 0xe91   :  { %v10611_v51 = vadd.f32 %v6160_v31, %v6157_v17  ;;  %v7954_v13 = vpop.eup %7953  ;;  %7965 = vpow2.f32 %v5933_v10  ;;  %v5941_v28 = vmul.f32 1.442695, %v5896_v56  ;;  %v5860_v54 = vperm.slane %v5844_v41, 0 }
 0xe92   :  { %v10615_v4 = vadd.f32 %v6160_v31, %v6158_v44  ;;  %v7956_v20 = vpop.eup %7955  ;;  %v5900_v31 = vmul.f32 %v10535_v19, %v5859_v27  ;;  %7967 = vpow2.f32 %v5935_v48  ;;  %v5943_v17 = vmul.f32 1.442695, %v5897_v32 }
 0xe93   :  { %v7958_v23 = vpop.eup %7957  ;;  %v6164_v50 = vmul.f32 %v7952_v24, %v10611_v51  ;;  %7969 = vpow2.f32 %v5937_v36  ;;  %v10635_v60 = vperm.slane %v5989_v53, 0  ;;  %v6143_v44 = vmul.f32 %v10592_v14, %v10540_v30  ;;  %v10653_v30 = vld [vmem:[%s10983_s3 + $0x50] sm:$0xff]  ;;  %s8063_s3 = smov 128  }
 0xe94   :  { %v10604_v5 = vpop.permute.xlu0 %6217  ;;  %v10608_v38 = vpop.permute.xlu1 %6229  ;;  %v6165_v62 = vmul.f32 %v7954_v13, %v10615_v4  ;;  %7971 = vpow2.f32 %v5939_v42  ;;  %v5945_v6 = vmul.f32 1.442695, %v5898_v16  ;;  %v5947_v29 = vmul.f32 1.442695, %v5899_v45 }
 0xe95   :  { %v6169_v39 = vadd.f32 %v6167_v26, %v6164_v50  ;;  %v7960_v47 = vpop.eup %7959  ;;  %v10645_v48 = vpop.permute.xlu2 %6051  ;;  %v5949_v55 = vmul.f32 1.442695, %v5900_v31  ;;  %v6117_v27 = vperm.slane %v10627_v37, 0  ;;  %v5991_v36 = vrot.slane %v10627_v37, 2 }
 0xe96   :  { %v6170_v1 = vadd.f32 %v6167_v26, %v6165_v62  ;;  %v7962_v11 = vpop.eup %7961  ;;  %v5861_v13 = vperm.slane %v5845_v40, 0  ;;  %7973 = vpow2.f32 %v5941_v28  ;;  %v5992_v56 = vrot.slane %v10627_v37, 3 }
 0xe97   :  { %v10643_v24 = vpop.eup %7963  ;;  %v6171_v26 = vmul.f32 %v7956_v20, %v6169_v39  ;;  %v5901_v14 = vmul.f32 %v10653_v30, %v5860_v54  ;;  %v6270_v53 = vrot.slane %v10619_v46, 1  ;;  %7975 = vpow2.f32 %v5943_v17 }
 0xe98   :  { %v10656_v41 = vpop.eup %7965  ;;  %v6172_v32 = vmul.f32 %v7958_v23, %v6170_v1  ;;  %v5846_v50 = vrot.slane %v10581_v61, 3  ;;  %v6174_v20 = vrot.slane %v6143_v44, 1  ;;  %7977 = vpow2.f32 %v5947_v29 }
 0xe99   :  { %v10660_v16 = vpop.eup %7967  ;;  %v5902_v42 = vmul.f32 %v10535_v19, %v5860_v54  ;;  %v5990_v45 = vrot.slane %v10627_v37, 1  ;;  %7979 = vpow2.f32 %v5949_v55  ;;  %v10666_v31 = vperm.slane %v5991_v36, 0 }
 0xe9a   :  { %v10664_v62 = vpop.eup %7969  ;;  %v5903_v23 = vmul.f32 %v10653_v30, %v5861_v13  ;;  %v5994_v46 = vrot.slane %v10627_v37, 5  ;;  %v10672_v28 = vadd.f32 %v6174_v20, %v6171_v26  ;;  %7981 = vpow2.f32 %v5945_v6 }
 0xe9b   :  { %v10670_v40 = vpop.eup %7971  ;;  %v5951_v17 = vmul.f32 1.442695, %v5901_v14  ;;  %v5847_v44 = vrot.slane %v10581_v61, 4  ;;  %v10675_v54 = vadd.f32 %v6174_v20, %v6172_v32  ;;  %v6287_v29 = vmul.f32 %v6270_v53, %v6169_v39 }
 0xe9c   :  { %v10637_v34 = vpop.permute.xlu0 %6235  ;;  %v10641_v10 = vpop.permute.xlu1 %6241  ;;  %v6288_v3 = vmul.f32 %v6270_v53, %v6170_v1  ;;  %v5862_v49 = vperm.slane %v5846_v50, 0  ;;  %v6144_v36 = vmul.f32 %v10586_v0, %v10547_v43  ;;  %v10681_v2 = vperm.slane %v5992_v56, 0 }
 0xe9d   :  { %v10677_v55 = vpop.eup %7973  ;;  %v5953_v18 = vmul.f32 1.442695, %v5902_v42  ;;  %v6118_v26 = vperm.slane %v5990_v45, 0  ;;  %v5904_v39 = vmul.f32 %v10535_v19, %v5861_v13  ;;  %v5955_v1 = vmul.f32 1.442695, %v5903_v23 }
 0xe9e   :  { %v10683_v15 = vpop.eup %7975  ;;  %v5848_v53 = vrot.slane %v10581_v61, 5  ;;  %v6178_v43 = vmul.f32 %v7960_v47, %v10672_v28  ;;  %7983 = vpow2.f32 %v5951_v17  ;;  %v10692_v0 = vperm.slane %v5994_v46, 0 }
 0xe9f   :  { %v7978_v50 = vpop.eup %7977  ;;  %v5863_v56 = vperm.slane %v5847_v44, 0  ;;  %v6179_v42 = vmul.f32 %v7962_v11, %v10675_v54  ;;  %v6320_v45 = vrot.slane %v6287_v29, 7  ;;  %v6321_v58 = vrot.slane %v6288_v3, 7 }
 0xea0   :  { %v7980_v20 = vpop.eup %7979  ;;  %v5905_v59 = vmul.f32 %v10653_v30, %v5862_v49  ;;  %7985 = vpow2.f32 %v5953_v18  ;;  %v5957_v47 = vmul.f32 1.442695, %v5904_v39  ;;  %v5864_v17 = vperm.slane %v5848_v53, 0 }
 0xea1   :  { %7987 = vpow2.f32 %v5955_v1  ;;  %v5906_v46 = vmul.f32 %v10535_v19, %v5862_v49  ;;  %v6405_v11 = vmul.f32 %v7978_v50, %v10561_v8  ;;  %v6406_v3 = vmul.f32 %v7980_v20, %v10563_v63 }
 0xea2   :  { %v5907_v29 = vmul.f32 %v10653_v30, %v5863_v56  ;;  %v6322_v18 = vsel %vm783_vm3, %v6320_v45, %v6321_v58  ;;  %v5959_v1 = vmul.f32 1.442695, %v5905_v59  ;;  %v5849_v50 = vrot.slane %v10581_v61, 6 }
 0xea3   :  { %7989 = vpow2.f32 %v5957_v47  ;;  %v5908_v63 = vmul.f32 %v10535_v19, %v5863_v56  ;;  %v6356_v59 = vsel %vm262_vm5, %v6322_v18, 0.0 }
 0xea4   :  { %v10685_v6 = vpop.permute.xlu0 %6253  ;;  %7991 = vpow2.f32 %v5959_v1 }
 0xea5   :  { %v10687_v14 = vpop.permute.xlu2 %6247  ;;  %v5965_v18 = vmul.f32 1.442695, %v5908_v63  ;;  %v6269_v63 = vrot.slane %v10604_v5, 1 }
 0xeac   :  { %v6059_v52 = vpop.permute.xlu1 %6058 }
 0xead   :  { %v6149_v32 = vmul.f32 %v6117_v27, %v6059_v52  ;;  %v10696_v52 = vpop.eup %7981  ;;  %v6181_v27 = vrot.slane %v6144_v36, 1  ;;  %v6145_v36 = vmul.f32 %v10617_v9, %v10575_v7  ;;  %v5909_v7 = vmul.f32 %v10653_v30, %v5864_v17 }
 0xeae   :  { %v7984_v39 = vpop.eup %7983  ;;  %v5961_v9 = vmul.f32 1.442695, %v5906_v46 }
 0xeaf   :  { %v6408_v13 = vrot.slane %v6149_v32, 1  ;;  %v10700_v44 = vadd.f32 %v6181_v27, %v6178_v43  ;;  %v10707_v32 = vadd.f32 %v6181_v27, %v6179_v42  ;;  %v7986_v42 = vpop.eup %7985  ;;  %v5910_v27 = vmul.f32 %v10535_v19, %v5864_v17 }
 0xeb0   :  { %v6188_v47 = vrot.slane %v6145_v36, 1  ;;  %7993 = vpow2.f32 %v5961_v9 }
 0xeb1   :  { %v10710_v53 = vadd.f32 %v6408_v13, %v6405_v11  ;;  %v10712_v49 = vadd.f32 %v6408_v13, %v6406_v3  ;;  %v6185_v58 = vmul.f32 %v10643_v24, %v10700_v44  ;;  %v7988_v13 = vpop.eup %7987  ;;  %v6186_v11 = vmul.f32 %v10656_v41, %v10707_v32 }
 0xeb2   :  { %v5963_v3 = vmul.f32 1.442695, %v5907_v29  ;;  %v6357_v24 = vrot.slane %v6356_v59, 4  ;;  %v5850_v29 = vrot.slane %v10581_v61, 7  ;;  %v7990_v36 = vpop.eup %7989 }
 0xeb3   :  { %v6412_v46 = vmul.f32 %v7984_v39, %v10710_v53  ;;  %v6413_v43 = vmul.f32 %v7986_v42, %v10712_v49  ;;  %v10736_v1 = vadd.f32 %v6188_v47, %v6186_v11  ;;  %v6271_v39 = vrot.slane %v10608_v38, 1 }
 0xeb4   :  { %v6073_v20 = vpop.permute.xlu0 %6072  ;;  %v6080_v17 = vpop.permute.xlu1 %6079  ;;  %7995 = vpow2.f32 %v5963_v3 }
 0xeb5   :  { %v6066_v23 = vpop.permute.xlu2 %6065  ;;  %v6151_v56 = vmul.f32 %v10666_v31, %v6073_v20  ;;  %v6146_v31 = vmul.f32 %v10596_v57, %v10579_v33  ;;  %v5969_v20 = vmul.f32 1.442695, %v5910_v27  ;;  %v6152_v61 = vmul.f32 %v10681_v2, %v6080_v17 }
 0xeb6   :  { %v6150_v45 = vmul.f32 %v6118_v26, %v6066_v23  ;;  %v5967_v26 = vmul.f32 1.442695, %v5909_v7  ;;  %v10727_v23 = vadd.f32 %v6188_v47, %v6185_v58  ;;  %v5865_v58 = vperm.slane %v5849_v50, 0 }
 0xeb7   :  { %v6422_v7 = vrot.slane %v6151_v56, 1  ;;  %v6195_v27 = vrot.slane %v6146_v31, 1  ;;  %v6289_v11 = vmul.f32 %v6271_v39, %v10672_v28  ;;  %v6285_v2 = vmul.f32 %v6269_v63, %v10611_v51 }
 0xeb8   :  { %v6415_v8 = vrot.slane %v6150_v45, 1  ;;  %v6192_v33 = vmul.f32 %v10660_v16, %v10727_v23  ;;  %v5866_v45 = vperm.slane %v5850_v29, 0  ;;  %v6286_v50 = vmul.f32 %v6269_v63, %v10615_v4 }
 0xeb9   :  { %v6429_v56 = vrot.slane %v6152_v61, 1  ;;  %7997 = vpow2.f32 %v5965_v18  ;;  %v6147_v29 = vmul.f32 %v10588_v35, %v10590_v21  ;;  %v6323_v31 = vrot.slane %v6289_v11, 7 }
 0xeba   :  { %v10729_v25 = vadd.f32 %v6415_v8, %v6412_v46  ;;  %v10731_v41 = vadd.f32 %v6415_v8, %v6413_v43  ;;  %v7992_v8 = vpop.eup %7991  ;;  %v6358_v43 = vadd.f32 %v6357_v24, %v6356_v59  ;;  %v6290_v59 = vmul.f32 %v6271_v39, %v10675_v54 }
 0xebb   :  { %v7994_v5 = vpop.eup %7993  ;;  %v5911_v46 = vmul.f32 %v10653_v30, %v5865_v58  ;;  %v10758_v24 = vadd.f32 %v6195_v27, %v6192_v33  ;;  %v5912_v54 = vmul.f32 %v10535_v19, %v5865_v58  ;;  %v5913_v51 = vmul.f32 %v10653_v30, %v5866_v45 }
 0xebc   :  { %v6419_v9 = vmul.f32 %v7988_v13, %v10729_v25  ;;  %v6420_v42 = vmul.f32 %v7990_v36, %v10731_v41  ;;  %v6193_v13 = vmul.f32 %v10664_v62, %v10736_v1  ;;  %v6359_v3 = vrot.slane %v6358_v43, 2  ;;  %v7996_v4 = vpop.eup %7995 }
 0xebd   :  { %v11103_v62 = vrot.slane %v10627_v37, 4  ;;  %v6087_v17 = vpop.permute.xlu2 %6086  ;;  %v6324_v39 = vrot.slane %v6290_v59, 7  ;;  %v6317_v63 = vrot.slane %v6285_v2, 7  ;;  %v5914_v33 = vmul.f32 %v10535_v19, %v5866_v45 }
 0xebe   :  { %v10745_v57 = vadd.f32 %v6422_v7, %v6419_v9  ;;  %v10747_v38 = vadd.f32 %v6422_v7, %v6420_v42  ;;  %v10766_v36 = vadd.f32 %v6195_v27, %v6193_v13  ;;  %v6318_v7 = vrot.slane %v6286_v50, 7  ;;  %v6094_v9 = vpop.permute.xlu0 %6093  ;;  %v10770_v42 = vpop.permute.xlu1 %6100 }
 0xebf   :  { %v6121_v28 = vperm.slane %v11103_v62, 0  ;;  %v6360_v61 = vadd.f32 %v6359_v3, %v6358_v43  ;;  %v6199_v35 = vmul.f32 %v10670_v40, %v10758_v24  ;;  %7999 = vpow2.f32 %v5967_v26  ;;  %v7998_v13 = vpop.eup %7997 }
 0xec0   :  { %v6426_v16 = vmul.f32 %v7992_v8, %v10745_v57  ;;  %v6427_v47 = vmul.f32 %v7994_v5, %v10747_v38  ;;  %v5971_v5 = vmul.f32 1.442695, %v5911_v46  ;;  %v5973_v21 = vmul.f32 1.442695, %v5912_v54 }
 0xec1   :  { %v6153_v58 = vmul.f32 %v6121_v28, %v6087_v17  ;;  %v5996_v27 = vrot.slane %v10627_v37, 7  ;;  %v6202_v11 = vrot.slane %v6147_v29, 1  ;;  %8001 = vpow2.f32 %v5969_v20 }
 0xec2   :  { %v10768_v18 = vadd.f32 %v6429_v56, %v6426_v16  ;;  %v10772_v8 = vadd.f32 %v6429_v56, %v6427_v47  ;;  %v5975_v2 = vmul.f32 1.442695, %v5913_v51  ;;  %v6325_v50 = vsel %vm783_vm3, %v6323_v31, %v6324_v39 }
 0xec3   :  { %v6319_v43 = vsel %vm783_vm3, %v6317_v63, %v6318_v7  ;;  %v6200_v19 = vmul.f32 %v10677_v55, %v10766_v36  ;;  %v6361_v40 = vrot.slane %v6360_v61, 1  ;;  %v6436_v26 = vrot.slane %v6153_v58, 1 }
 0xec4   :  { %v6433_v59 = vmul.f32 %v7996_v4, %v10768_v18  ;;  %v6434_v45 = vmul.f32 %v7998_v13, %v10772_v8  ;;  %8003 = vpow2.f32 %v5971_v5  ;;  %v5977_v16 = vmul.f32 1.442695, %v5914_v33 }
 0xec5   :  { %v10784_v47 = vadd.f32 %v6202_v11, %v6199_v35  ;;  %v11104_v20 = vrot.slane %v10627_v37, 6  ;;  %8005 = vpow2.f32 %v5973_v21  ;;  %v10788_v56 = vperm.slane %v5996_v27, 0  ;;  %v8000_v17 = vpop.eup %7999 }
 0xec6   :  { %v6363_v46 = vsel %vm262_vm5, %v6325_v50, 0.0  ;;  %v6349_v62 = vsel %vm262_vm5, %v6319_v43, 0.0  ;;  %v6272_v55 = vrot.slane %v10637_v34, 1  ;;  %v10793_v28 = vadd.f32 %v6436_v26, %v6433_v59 }
 0xec7   :  { %v6123_v3 = vperm.slane %v11104_v20, 0  ;;  %v10795_v54 = vadd.f32 %v6202_v11, %v6200_v19  ;;  %v6154_v51 = vmul.f32 %v10692_v0, %v6094_v9  ;;  %v10798_v4 = vadd.f32 %v6436_v26, %v6434_v45  ;;  %v8002_v31 = vpop.eup %8001 }
 0xec8   :  { %8007 = vpow2.f32 %v5975_v2  ;;  %v10800_v39 = vadd.f32 %v6361_v40, %v6360_v61  ;;  %v10804_v63 = vmul.f32 %v10635_v60, %v10645_v48  ;;  %v6364_v58 = vrot.slane %v6363_v46, 4 }
 0xec9   :  { %8009 = vpow2.f32 %v5977_v16  ;;  %v6350_v33 = vrot.slane %v6349_v62, 4  ;;  %v6273_v5 = vrot.slane %v10641_v10, 1  ;;  %v10809_v35 = vmul.f32 %v10683_v15, %v10784_v47 }
 0xeca   :  { %v8004_v9 = vpop.eup %8003  ;;  %v6291_v61 = vmul.f32 %v6272_v55, %v10700_v44  ;;  %v6292_v21 = vmul.f32 %v6272_v55, %v10707_v32  ;;  %v6440_v60 = vmul.f32 %v8000_v17, %v10793_v28  ;;  %v10816_v27 = vmul.f32 %v10696_v52, %v10795_v54 }
 0xecb   :  { %v8006_v48 = vpop.eup %8005  ;;  %v6443_v13 = vrot.slane %v6154_v51, 1  ;;  %v6441_v10 = vmul.f32 %v8002_v31, %v10798_v4  ;;  %v10823_v50 = vadd.f32 %v6364_v58, %v6363_v46  ;;  %v10825_v43 = vadd.f32 %v6350_v33, %v6349_v62 }
 0xecc   :  { %v6478_v37 = vpop.permute.xlu0 %6477  ;;  %v6466_v29 = vpop.permute.xlu1 %6465  ;;  %v6293_v52 = vmul.f32 %v6273_v5, %v10727_v23  ;;  %v6294_v19 = vmul.f32 %v6273_v5, %v10736_v1  ;;  %v6326_v40 = vrot.slane %v6291_v61, 7  ;;  %v6327_v26 = vrot.slane %v6292_v21, 7 }
 0xecd   :  { %v6517_v34 = vrot.slane %v6466_v29, 1  ;;  %v6472_v7 = vpop.permute.xlu2 %6471  ;;  %v6519_v11 = vrot.slane %v6478_v37, 1  ;;  %v10830_v16 = vadd.f32 %v6443_v13, %v6440_v60 }
 0xece   :  { %v6518_v0 = vrot.slane %v6472_v7, 1  ;;  %v8008_v32 = vpop.eup %8007  ;;  %v6329_v51 = vrot.slane %v6293_v52, 7  ;;  %v6330_v37 = vrot.slane %v6294_v19, 7  ;;  %v6328_v31 = vsel %vm783_vm3, %v6326_v40, %v6327_v26 }
 0xecf   :  { %v6533_v59 = vmul.f32 %v6517_v34, %v10710_v53  ;;  %v6534_v15 = vmul.f32 %v6517_v34, %v10712_v49  ;;  %v8010_v45 = vpop.eup %8009  ;;  %v6275_v53 = vrot.slane %v10685_v6, 1  ;;  %v10833_v49 = vadd.f32 %v6443_v13, %v6441_v10 }
 0xed0   :  { %v6535_v2 = vmul.f32 %v6518_v0, %v10729_v25  ;;  %v6536_v44 = vmul.f32 %v6518_v0, %v10731_v41  ;;  %v6155_v25 = vmul.f32 %v6123_v3, %v10770_v42  ;;  %v6537_v41 = vmul.f32 %v6519_v11, %v10745_v57 }
 0xed1   :  { %v6538_v20 = vmul.f32 %v6519_v11, %v10747_v38  ;;  %v6565_v62 = vrot.slane %v6533_v59, 7  ;;  %v6566_v23 = vrot.slane %v6534_v15, 7  ;;  %v10839_v42 = vmul.f32 %v6275_v53, %v10784_v47 }
 0xed2   :  { %v6568_v55 = vrot.slane %v6535_v2, 7  ;;  %v6569_v1 = vrot.slane %v6536_v44, 7  ;;  %v6274_v3 = vrot.slane %v10687_v14, 1  ;;  %v6447_v57 = vmul.f32 %v8004_v9, %v10830_v16 }
 0xed3   :  { %v6450_v38 = vrot.slane %v6155_v25, 1  ;;  %v6448_v58 = vmul.f32 %v8006_v48, %v10833_v49  ;;  %v6571_v33 = vrot.slane %v6537_v41, 7  ;;  %v6572_v5 = vrot.slane %v6538_v20, 7 }
 0xed4   :  { %v6490_v46 = vpop.permute.xlu0 %6489  ;;  %v6567_v0 = vsel %vm783_vm3, %v6565_v62, %v6566_v23  ;;  %v6570_v61 = vsel %vm783_vm3, %v6568_v55, %v6569_v1  ;;  %v6352_v9 = vrot.slane %v10825_v43, 2  ;;  %v6331_v48 = vsel %vm783_vm3, %v6329_v51, %v6330_v37 }
 0xed5   :  { %v6484_v17 = vpop.permute.xlu2 %6483  ;;  %v6521_v29 = vrot.slane %v6490_v46, 1  ;;  %v6452_v13 = vadd.f32 %v6450_v38, %v6447_v57  ;;  %v6370_v10 = vsel %vm262_vm5, %v6328_v31, 0.0  ;;  %v6298_v11 = vmul.f32 %v6275_v53, %v10795_v54 }
 0xed6   :  { %v6520_v6 = vrot.slane %v6484_v17, 1  ;;  %v6453_v15 = vadd.f32 %v6450_v38, %v6448_v58  ;;  %v6597_v2 = vsel %vm262_vm5, %v6567_v0, 0.0  ;;  %v6604_v44 = vsel %vm262_vm5, %v6570_v61, 0.0 }
 0xed7   :  { %v6541_v47 = vmul.f32 %v6521_v29, %v10793_v28  ;;  %v6542_v21 = vmul.f32 %v6521_v29, %v10798_v4  ;;  %v6335_v28 = vrot.slane %v10839_v42, 7  ;;  %v6573_v4 = vsel %vm783_vm3, %v6571_v33, %v6572_v5 }
 0xed8   :  { %v6539_v34 = vmul.f32 %v6520_v6, %v10768_v18  ;;  %v6540_v7 = vmul.f32 %v6520_v6, %v10772_v8  ;;  %v6295_v18 = vmul.f32 %v6274_v3, %v10758_v24  ;;  %v6296_v8 = vmul.f32 %v6274_v3, %v10766_v36 }
 0xed9   :  { %v6577_v52 = vrot.slane %v6541_v47, 7  ;;  %v6578_v36 = vrot.slane %v6542_v21, 7  ;;  %v6454_v53 = vmul.f32 %v8008_v32, %v6452_v13  ;;  %v6611_v20 = vsel %vm262_vm5, %v6573_v4, 0.0 }
 0xeda   :  { %v6574_v14 = vrot.slane %v6539_v34, 7  ;;  %v6575_v60 = vrot.slane %v6540_v7, 7  ;;  %v6332_v26 = vrot.slane %v6295_v18, 7  ;;  %v6333_v25 = vrot.slane %v6296_v8, 7 }
 0xedb   :  { %v6598_v46 = vrot.slane %v6597_v2, 4  ;;  %v6455_v62 = vmul.f32 %v8010_v45, %v6453_v15  ;;  %v6605_v55 = vrot.slane %v6604_v44, 4  ;;  %v6579_v37 = vsel %vm783_vm3, %v6577_v52, %v6578_v36 }
 0xedc   :  { %v6108_v59 = vpop.permute.xlu1 %6107  ;;  %v6576_v19 = vsel %vm783_vm3, %v6574_v14, %v6575_v60  ;;  %v6508_v54 = vpop.permute.xlu0 %6507  ;;  %v6336_v31 = vrot.slane %v6298_v11, 7  ;;  %v6612_v42 = vrot.slane %v6611_v20, 4  ;;  %v6334_v57 = vsel %vm783_vm3, %v6332_v26, %v6333_v25 }
 0xedd   :  { %v6502_v24 = vpop.permute.xlu2 %6501  ;;  %v6156_v40 = vmul.f32 %v10788_v56, %v6108_v59  ;;  %v6618_v1 = vsel %vm262_vm5, %v6576_v19, 0.0  ;;  %v6524_v29 = vrot.slane %v6508_v54, 1  ;;  %v6209_v7 = vrot.slane %v10804_v63, 1 }
 0xede   :  { %v6523_v41 = vrot.slane %v6502_v24, 1  ;;  %v6619_v38 = vrot.slane %v6618_v1, 4  ;;  %v6599_v58 = vadd.f32 %v6598_v46, %v6597_v2  ;;  %v6606_v33 = vadd.f32 %v6605_v55, %v6604_v44 }
 0xedf   :  { %v6457_v23 = vrot.slane %v6156_v40, 1  ;;  %v6625_v5 = vsel %vm262_vm5, %v6579_v37, 0.0  ;;  %v6371_v0 = vrot.slane %v6370_v10, 4  ;;  %v6366_v14 = vrot.slane %v10823_v50, 2 }
 0xee0   :  { %v6545_v17 = vmul.f32 %v6523_v41, %v6452_v13  ;;  %v6546_v51 = vmul.f32 %v6523_v41, %v6453_v15  ;;  %v6377_v60 = vsel %vm262_vm5, %v6331_v48, 0.0  ;;  %v6384_v18 = vsel %vm262_vm5, %v6334_v57, 0.0 }
 0xee1   :  { %v6459_v6 = vadd.f32 %v6457_v23, %v6454_v53  ;;  %v6460_v56 = vadd.f32 %v6457_v23, %v6455_v62  ;;  %v6613_v8 = vadd.f32 %v6612_v42, %v6611_v20  ;;  %v6353_v13 = vadd.f32 %v6352_v9, %v10825_v43 }
 0xee2   :  { %v6583_v3 = vrot.slane %v6545_v17, 7  ;;  %v6584_v32 = vrot.slane %v6546_v51, 7  ;;  %v6337_v63 = vsel %vm783_vm3, %v6335_v28, %v6336_v31  ;;  %v6626_v11 = vrot.slane %v6625_v5, 4  ;;  %v7381_v31 = vld [vmem:[%s10985_s5 + $0xb0] sm:$0xff] }
 0xee3   :  { %v6547_v34 = vmul.f32 %v6524_v29, %v6459_v6  ;;  %v6548_v45 = vmul.f32 %v6524_v29, %v6460_v56  ;;  %v6620_v59 = vadd.f32 %v6619_v38, %v6618_v1  ;;  %v6600_v15 = vrot.slane %v6599_v58, 2 }
 0xee4   :  { %v6585_v21 = vsel %vm783_vm3, %v6583_v3, %v6584_v32  ;;  %v6607_v4 = vrot.slane %v6606_v33, 2  ;;  %v6211_v24 = vadd.f32 %v6209_v7, %v10809_v35  ;;  %v6378_v52 = vrot.slane %v6377_v60, 4 }
 0xee5   :  { %v6586_v61 = vrot.slane %v6547_v34, 7  ;;  %v6587_v47 = vrot.slane %v6548_v45, 7  ;;  %v6639_v44 = vsel %vm262_vm5, %v6585_v21, 0.0  ;;  %v6372_v36 = vadd.f32 %v6371_v0, %v6370_v10 }
 0xee6   :  { %v6385_v48 = vrot.slane %v6384_v18, 4  ;;  %v10878_v19 = vadd.f32 %v6366_v14, %v10823_v50  ;;  %v6212_v43 = vadd.f32 %v6209_v7, %v10816_v27  ;;  %v6391_v9 = vsel %vm262_vm5, %v6337_v63, 0.0  ;;  %v7382_v27 = vld [vmem:[%s10985_s5 + $0xb8] sm:$0xff]  ;;  %v7380_v14 = vld [vmem:[%s10985_s5 + $0xa8] sm:$0xff] }
 0xee7   :  { %v6588_v2 = vsel %vm783_vm3, %v6586_v61, %v6587_v47  ;;  %v6614_v28 = vrot.slane %v6613_v8, 2  ;;  %v6627_v40 = vadd.f32 %v6626_v11, %v6625_v5  ;;  %v6621_v26 = vrot.slane %v6620_v59, 2  ;;  %6781 = vmatpush.bf16.msra.mxu0 %v7382_v27 }
 0xee8   :  { %v6646_v25 = vsel %vm262_vm5, %v6588_v2, 0.0  ;;  %v6640_v54 = vrot.slane %v6639_v44, 4  ;;  %v6354_v41 = vrot.slane %v6353_v13, 1  ;;  %v6601_v20 = vadd.f32 %v6600_v15, %v6599_v58 }
 0xee9   :  { %v6608_v35 = vadd.f32 %v6607_v4, %v6606_v33  ;;  %v6379_v10 = vadd.f32 %v6378_v52, %v6377_v60  ;;  %v6373_v62 = vrot.slane %v6372_v36, 2  ;;  %v6392_v23 = vrot.slane %v6391_v9, 4 }
 0xeea   :  { %v6386_v50 = vadd.f32 %v6385_v48, %v6384_v18  ;;  %v6615_v55 = vadd.f32 %v6614_v28, %v6613_v8  ;;  %v6647_v1 = vrot.slane %v6646_v25, 4  ;;  %v6368_v37 = vrot.slane %v10878_v19, 1 }
 0xeeb   :  { %v6628_v29 = vrot.slane %v6627_v40, 2  ;;  %v6622_v6 = vadd.f32 %v6621_v26, %v6620_v59  ;;  %v6641_v56 = vadd.f32 %v6640_v54, %v6639_v44  ;;  %v6602_v42 = vrot.slane %v6601_v20, 1  ;;  %6782 = vmatpush.bf16.msra.mxu0 %v7381_v31 }
 0xeec   :  { %v6496_v53 = vpop.permute.xlu1 %6495  ;;  %v6609_v3 = vrot.slane %v6608_v35, 1  ;;  %v6380_v38 = vrot.slane %v6379_v10, 2  ;;  %v6374_v34 = vadd.f32 %v6373_v62, %v6372_v36  ;;  %v6393_v45 = vadd.f32 %v6392_v23, %v6391_v9 }
 0xeed   :  { %v6522_v46 = vrot.slane %v6496_v53, 1  ;;  %v6355_v7 = vadd.f32 %v6354_v41, %v6353_v13  ;;  %v6648_v33 = vadd.f32 %v6647_v1, %v6646_v25  ;;  %v6629_v5 = vadd.f32 %v6628_v29, %v6627_v40  ;;  %v7379_v40 = vld [vmem:[%s10985_s5 + $0xa0] sm:$0xff] }
 0xeee   :  { %v6623_v0 = vrot.slane %v6622_v6, 1  ;;  %v6642_v61 = vrot.slane %v6641_v56, 2  ;;  %v6603_v60 = vadd.f32 %v6602_v42, %v6601_v20  ;;  %v6610_v18 = vadd.f32 %v6609_v3, %v6608_v35 }
 0xeef   :  { %v6543_v17 = vmul.f32 %v6522_v46, %v10830_v16  ;;  %v6544_v51 = vmul.f32 %v6522_v46, %v10833_v49  ;;  %v6387_v16 = vrot.slane %v6386_v50, 2  ;;  %v6616_v49 = vrot.slane %v6615_v55, 1  ;;  %6783 = vmatpush.bf16.msra.mxu0 %v7380_v14 }
 0xef0   :  { %v6381_v13 = vadd.f32 %v6380_v38, %v6379_v10  ;;  %v6375_v11 = vrot.slane %v6374_v34, 1  ;;  %v6394_v59 = vrot.slane %v6393_v45, 2  ;;  %v6649_v52 = vrot.slane %v6648_v33, 2 }
 0xef1   :  { %v6580_v32 = vrot.slane %v6543_v17, 7  ;;  %v6581_v57 = vrot.slane %v6544_v51, 7  ;;  %v6388_v15 = vadd.f32 %v6387_v16, %v6386_v50  ;;  %v6617_v36 = vadd.f32 %v6616_v49, %v6615_v55 }
 0xef2   :  { %v6630_v48 = vrot.slane %v6629_v5, 1  ;;  %v6624_v9 = vadd.f32 %v6623_v0, %v6622_v6  ;;  %v6643_v28 = vadd.f32 %v6642_v61, %v6641_v56  ;;  %v6677_v53 = vsel %vm1128_vm4, %v6610_v18, %v6603_v60 }
 0xef3   :  { %v6582_v58 = vsel %vm783_vm3, %v6580_v32, %v6581_v57  ;;  %v6369_v41 = vadd.f32 %v6368_v37, %v10878_v19  ;;  %v6376_v20 = vadd.f32 %v6375_v11, %v6374_v34  ;;  %v6395_v35 = vadd.f32 %v6394_v59, %v6393_v45  ;;  %6784 = vmatpush.bf16.msra.mxu0 %v7379_v40 }
 0xef4   :  { %v6632_v47 = vsel %vm262_vm5, %v6582_v58, 0.0  ;;  %v6260_v21 = vpop.permute.xlu1 %6259  ;;  %v6650_v62 = vadd.f32 %v6649_v52, %v6648_v33  ;;  %v6631_v23 = vadd.f32 %v6630_v48, %v6629_v5  ;;  %v6644_v27 = vrot.slane %v6643_v28, 1  ;;  %v11114_v48 = vld [vmem:[#allocation11_spill] sm:$0xff] }
 0xef5   :  { %v6633_v8 = vrot.slane %v6632_v47, 4  ;;  %v6276_v63 = vrot.slane %v6260_v21, 1  ;;  %v6678_v55 = vsel %vm1130_vm6, %v6617_v36, %v6677_v53  ;;  %v6389_v1 = vrot.slane %v6388_v15, 1  ;;  %v11117_v53 = vld [vmem:[#allocation15_spill] sm:$0xff] }
 0xef6   :  { %v6679_v51 = vsel %vm1132_vm7, %v6624_v9, %v6678_v55  ;;  %v6651_v6 = vrot.slane %v6650_v62, 1  ;;  %v6396_v56 = vrot.slane %v6395_v35, 1  ;;  %v6645_v31 = vadd.f32 %v6644_v27, %v6643_v28 }
 0xef7   :  { %v6634_v4 = vadd.f32 %v6633_v8, %v6632_v47  ;;  %v6299_v2 = vmul.f32 %v6276_v63, %v6211_v24  ;;  %v6300_v44 = vmul.f32 %v6276_v63, %v6212_v43  ;;  %v6661_v24 = vsel %vm1128_vm4, %v10800_v39, %v6355_v7 }
 0xef8   :  { %v6382_v43 = vrot.slane %v6381_v13, 1  ;;  %v6662_v42 = vsel %vm1130_vm6, %v6369_v41, %v6661_v24  ;;  %v6390_v32 = vadd.f32 %v6389_v1, %v6388_v15  ;;  %vm11106_vm4 = vcmask 1045509   ;;  %v11118_v24 = vld [vmem:[#allocation5_spill] sm:$0xff] }
 0xef9   :  { %v6635_v26 = vrot.slane %v6634_v4, 2  ;;  %v6338_v25 = vrot.slane %v6299_v2, 7  ;;  %v6339_v54 = vrot.slane %v6300_v44, 7  ;;  %v6663_v38 = vsel %vm1132_vm7, %v6376_v20, %v6662_v42  ;;  %vm11109_vm8 = vmmov %vm11106_vm4  ;;  %v11113_v2 = vld [vmem:[#allocation6_spill] sm:$0xff]  ;;  %v7384_v20 = vld [vmem:[%s10986_s6 + $0x8] sm:$0xff] }
 0xefa   :  { %v6383_v39 = vadd.f32 %v6382_v43, %v6381_v13  ;;  %v6652_v7 = vadd.f32 %v6651_v6, %v6650_v62  ;;  %v6397_v49 = vadd.f32 %v6396_v56, %v6395_v35  ;;  %v6685_v58 = vperm.slane %v10653_v30, 6  ;;  %vm11111_vm7 = vmmov %vm11107_vm1  ;;  %v6733_v13 = vpop.permute.xlu2 %6732  ;;  %6853 = vmatpush.bf16.msra.mxu3 %v7384_v20 }
 0xefb   :  { %v6636_v46 = vadd.f32 %v6635_v26, %v6634_v4  ;;  %v6340_v10 = vsel %vm783_vm3, %v6338_v25, %v6339_v54  ;;  %vm11105_vm3 = vcmask 1044484   ;;  %vm11110_vm6 = vcmask 1047559   ;;  %v10929_v26 = vld [vmem:[%s10980_s0] sm:$0xff]  ;;  %v11115_v25 = vld [vmem:[#allocation8_spill] sm:$0xff]  ;;  %v11116_v54 = vld [vmem:[#allocation14_spill] sm:$0xff] }
 0xefc   :  { %v6398_v50 = vsel %vm262_vm5, %v6340_v10, 0.0  ;;  %v6680_v3 = vsel %vm11105_vm3, %v6631_v23, %v6679_v51  ;;  %vm11108_vm2 = vmmov %vm11105_vm3  ;;  %v6687_v47 = vmul.f32 %v6685_v58, %v10350_v12  ;;  %v6686_v14 = vmul.f32 %v6685_v58, %v10348_v22  ;;  %v6735_v30 = vpop.permute.xlu1 %6734 }
 0xefd   :  { %v6637_v17 = vrot.slane %v6636_v46, 1  ;;  %v6399_v19 = vrot.slane %v6398_v50, 4  ;;  %v6664_v33 = vsel %vm11108_vm2, %v6383_v39, %v6663_v38  ;;  %vm11112_vm10 = vmmov %vm11110_vm6  ;;  %v8061_v4 = vmov 0  }
 0xefe   :  { %v6665_v0 = vsel %vm11109_vm8, %v6390_v32, %v6664_v33  ;;  %7467 = vset.pattern.permute.xlu0 %v8061_v4  ;;  %7468 = vset.pattern.permute.xlu1 %v8061_v4  ;;  %v11119_v32 = vld [vmem:[#allocation7_spill] sm:$0xff]  ;;  %vm6932_vm2 = vcmask 7168  }
 0xeff   :  { %v6400_v37 = vadd.f32 %v6399_v19, %v6398_v50  ;;  %v6638_v29 = vadd.f32 %v6637_v17, %v6636_v46  ;;  %v6666_v60 = vsel %vm11111_vm7, %v6397_v49, %v6665_v0  ;;  %v7383_v46 = vld [vmem:[%s10986_s6] sm:$0xff]  ;;  %v11120_v49 = vld [vmem:[#allocation12_spill] sm:$0xff] }
 0xf00   :  { %6854 = vmatpush.bf16.msra.mxu3 %v7383_v46 }
 0xf01   :  { %v6401_v57 = vrot.slane %v6400_v37, 2  ;;  %v6681_v34 = vsel %vm11106_vm4, %v6638_v29, %v6680_v3  ;;  %vm6926_vm4 = vcmp.ge.s32.totalorder %v10929_v26, 0 }
 0xf02   :  { %v6682_v45 = vsel %vm11107_vm1, %v6645_v31, %v6681_v34 }
 0xf03   :  { %v6402_v16 = vadd.f32 %v6401_v57, %v6400_v37  ;;  %v6683_v61 = vsel %vm11110_vm6, %v6652_v7, %v6682_v45 }
 0xf04   :  { %v6689_v18 = vadd.f32 %v6687_v47, %v6683_v61 }
 0xf05   :  { %v6403_v5 = vrot.slane %v6402_v16, 1 }
 0xf06   :  { %v6739_v59 = vmul.f32 %v6735_v30, %v6689_v18 }
 0xf07   :  { %v6404_v21 = vadd.f32 %v6403_v5, %v6402_v16  ;;  %v11121_v5 = vld [vmem:[#allocation13_spill] sm:$0xff] }
 0xf09   :  { %v6667_v8 = vsel %vm11112_vm10, %v6404_v21, %v6666_v60  ;;  %v6909_v21 = vld [vmem:[%s10980_s0 + $0x8] sm:$0xff] }
 0xf0a   :  { %v6688_v63 = vadd.f32 %v6686_v14, %v6667_v8  ;;  %vm6927_vm1 = vcmp.ge.s32.totalorder %v6909_v21, 0 }
 0xf0c   :  { %v6738_v11 = vmul.f32 %v6733_v13, %v6688_v63 }
 0xf0e   :  { %v6740_v15 = vpack.c.bf16 %v6739_v59, %v6738_v11  ;;  %v11122_v59 = vlaneseq }
 0xf10   :  { %7315 = vmatmul.msk.bf16.vlgmr.msra.gmra.mxu0 %vm262_vm5, %v6740_v15  ;;  %v6911_v15 = vand.u32 127, %v11122_v59 }
 0xf8d   :  { %v6786_v12 = vpop.f32.mrf.mxu0 }
 0xf8e   :  { %v6791_v44 = vadd.f32 %v6786_v12, %v11113_v2 }
 0xf90   :  { %v6793_v22 = vmul.f32 %v6791_v44, %v6791_v44 }
 0xf92   :  { %v6795_v52 = vsel %vm38_vm0, %v6793_v22, 0.0 }
 0xf93   :  { %6796 = vadd.xlane.f32.xlu0 %v6795_v52 }
 0xf95   :  { %v6788_v36 = vpop.f32.mrf.mxu0 }
 0xf96   :  { %v6792_v9 = vadd.f32 %v6788_v36, %v11114_v48 }
 0xf98   :  { %v6794_v28 = vmul.f32 %v6792_v9, %v6792_v9 }
 0xf9a   :  { %v6798_v40 = vsel %vm38_vm0, %v6794_v28, 0.0 }
 0xf9b   :  { %6799 = vadd.xlane.f32.xlu2 %v6798_v40 }
 0xfa7   :  { %6913 = vperm.xlu0 %7467, %v10929_v26  }
 0xfaf   :  { %6867 = vrot.lane.b32.xlu0 %v11115_v25, %s8060_s11 }
 0xfb7   :  { %6877 = vrot.lane.b32.xlu0 %v11116_v54, %s8060_s11 }
 0xfbf   :  { %6879 = vrot.lane.b32.xlu0 %v11117_v53, %s8060_s11 }
0x1006   :  { %v6797_v41 = vpop.xlane.xlu0 %6796 }
0x1007   :  { %v6801_v43 = vmul.f32 %v6797_v41, %v11118_v24 }
0x1009   :  { %v6803_v35 = vadd.f32 1e-05, %v6801_v43 }
0x100b   :  { %8011 = vrsqrt.f32 %v6803_v35  ;;  %vm6811_vm11 = vweird.f32 %v6803_v35 }
0x100e   :  { %v6800_v10 = vpop.xlane.xlu2 %6799 }
0x100f   :  { %v6802_v62 = vmul.f32 %v6800_v10, %v11118_v24  ;;  %v11123_v10 = vld [vmem:[#allocation9_spill] sm:$0xff] }
0x1011   :  { %v8012_v23 = vpop.eup %8011  ;;  %v6804_v50 = vadd.f32 1e-05, %v6802_v62 }
0x1012   :  { %v6806_v27 = vmul.f32 %v8012_v23, %v6803_v35  ;;  %vm6812_vm9 = vweird.f32 %v8012_v23 }
0x1013   :  { %8013 = vrsqrt.f32 %v6804_v50  ;;  %vm6813_vm13 = vmor %vm6811_vm11, %vm6812_vm9  ;;  %vm6821_vm14 = vweird.f32 %v6804_v50 }
0x1014   :  { %v6807_v55 = vmul.f32 %v8012_v23, %v6806_v27 }
0x1016   :  { %v6808_v1 = vmul.f32 0.5, %v6807_v55 }
0x1018   :  { %v6809_v51 = vsub.f32 1.5, %v6808_v1  ;;  %v11124_v1 = vld [vmem:[#allocation10_spill] sm:$0xff] }
0x1019   :  { %v8014_v17 = vpop.eup %8013  ;;  %v6914_v19 = vpop.permute.xlu0 %6913 }
0x101a   :  { %v6816_v39 = vmul.f32 %v8014_v17, %v6804_v50  ;;  %v6810_v29 = vmul.f32 %v8012_v23, %v6809_v51  ;;  %vm6822_vm12 = vweird.f32 %v8014_v17 }
0x101b   :  { %vm6823_vm15 = vmor %vm6821_vm14, %vm6822_vm12 }
0x101c   :  { %v6817_v37 = vmul.f32 %v8014_v17, %v6816_v39  ;;  %v6814_v42 = vsel %vm6813_vm13, %v8012_v23, %v6810_v29 }
0x101d   :  { %v6825_v34 = vmul.f32 %v6814_v42, %v6791_v44 }
0x101e   :  { %v6818_v6 = vmul.f32 0.5, %v6817_v37 }
0x1020   :  { %v6819_v56 = vsub.f32 1.5, %v6818_v6 }
0x1021   :  { %v6868_v31 = vpop.permute.xlu0 %6867 }
0x1022   :  { %v6820_v3 = vmul.f32 %v8014_v17, %v6819_v56  ;;  %v6872_v57 = vsel %vm262_vm5, %v11119_v32, %v6868_v31 }
0x1023   :  { %6874 = vst [vmem:[%s10989_s9 + $0x1] sm:$0x7f] %v6872_v57 }
0x1024   :  { %v6824_v38 = vsel %vm6823_vm15, %v8014_v17, %v6820_v3 }
0x1025   :  { %v6826_v45 = vmul.f32 %v6824_v38, %v6792_v9 }
0x1027   :  { %v6827_v16 = vpack.c.bf16 %v6826_v45, %v6825_v34 }
0x1029   :  { %v6878_v7 = vpop.permute.xlu0 %6877  ;;  %7324 = vmatmul.msk.bf16.vlgmr.msra.gmra.mxu3 %vm38_vm0, %v6827_v16  ;;  %vm6918_vm0 = vcmp.eq.s32.totalorder %v6911_v15, %v6914_v19 }
0x102a   :  { %v6883_v58 = vsel %vm262_vm5, %v11120_v49, %v6878_v7 }
0x102b   :  { %7325 = vst [vmem:[%s10989_s9 + $0x1] sm:$0x80] %v6883_v58 }
0x1031   :  { %v6880_v33 = vpop.permute.xlu0 %6879 }
0x1032   :  { %v6884_v0 = vsel %vm262_vm5, %v11121_v5, %v6880_v33 }
0x1033   :  { %7326 = vst [vmem:[%s10989_s9 + $0x9] sm:$0x7f] %v6884_v0 }
0x10ac   :  { %v6856_v61 = vpop.f32.mrf.mxu3 }
0x10ad   :  { %6861 = vst [vmem:[#allocation2] sm:$0xff] %v6856_v61  ;;  %6888 = vmax.xlane.f32.xlu1 %v6856_v61  ;;  %v6920_v2 = vsel %vm6918_vm0, %v6856_v61, 0.0 }
0x10b4   :  { %v6858_v47 = vpop.f32.mrf.mxu3 }
0x10b5   :  { %6862 = vst [vmem:[#allocation2 + $0x8] sm:$0xff] %v6858_v47  ;;  %6890 = vmax.xlane.f32.xlu2 %v6858_v47 }
0x10b6   :  { %6959 = dma.vmem_to_hbm [thread:$0]  %s6952_s30, 256, %s6954_s29, [#allocation3], %s8063_s3, %s8063_s3, %s8064_s12  }
0x10c6   :  { %6916 = vperm.xlu1 %7468, %v6909_v21  }
0x1120   :  { %v6889_v14 = vpop.xlane.xlu1 %6888 }
0x1121   :  { %v6892_v60 = vsub.f32 %v6856_v61, %v6889_v14 }
0x1123   :  { %v6894_v18 = vmul.f32 1.442695, %v6892_v60 }
0x1125   :  { %8015 = vpow2.f32 %v6894_v18 }
0x1128   :  { %v6891_v8 = vpop.xlane.xlu2 %6890 }
0x1129   :  { %v6893_v63 = vsub.f32 %v6858_v47, %v6891_v8 }
0x112b   :  { %v8016_v13 = vpop.eup %8015  ;;  %v6896_v30 = vmul.f32 1.442695, %v6893_v63 }
0x112c   :  { %6898 = vadd.xlane.f32.xlu2 %v8016_v13 }
0x112d   :  { %8017 = vpow2.f32 %v6896_v30 }
0x1133   :  { %v8018_v11 = vpop.eup %8017 }
0x1134   :  { %6900 = vadd.xlane.f32.xlu2 %v8018_v11 }
0x1138   :  { %v6917_v4 = vpop.permute.xlu1 %6916 }
0x1139   :  { %vm6919_vm3 = vcmp.eq.s32.totalorder %v6911_v15, %v6917_v4 }
0x113a   :  { %v6921_v12 = vsel %vm6919_vm3, %v6858_v47, 0.0 }
0x113b   :  { %6924 = vadd.xlane.f32.xlu1 %v6921_v12 }
0x113c   :  { %6922 = vadd.xlane.f32.xlu2 %v6920_v2 }
0x119f   :  { %v6899_v44 = vpop.xlane.xlu2 %6898 }
0x11a0   :  { %8019 = vlog2.f32 %v6899_v44 }
0x11a6   :  { %v8020_v22 = vpop.eup %8019 }
0x11a7   :  { %v6901_v52 = vpop.xlane.xlu2 %6900  ;;  %v6903_v36 = vmul.f32 0.6931472, %v8020_v22 }
0x11a8   :  { %8021 = vlog2.f32 %v6901_v52 }
0x11a9   :  { %v6906_v9 = vadd.f32 %v6903_v36, %v6889_v14 }
0x11ae   :  { %v8022_v48 = vpop.eup %8021  ;;  %v6925_v53 = vpop.xlane.xlu1 %6924 }
0x11af   :  { %v6905_v28 = vmul.f32 0.6931472, %v8022_v48  ;;  %v6923_v40 = vpop.xlane.xlu2 %6922 }
0x11b0   :  { %v6928_v25 = vsub.f32 %v6906_v9, %v6923_v40 }
0x11b1   :  { %v6907_v54 = vadd.f32 %v6905_v28, %v6891_v8 }
0x11b2   :  { %v6930_v24 = vsel %vm6926_vm4, %v6928_v25, 0.0 }
0x11b3   :  { %v6929_v41 = vsub.f32 %v6907_v54, %v6925_v53  ;;  %v6933_v35 = vsel %vm6932_vm2, %v6930_v24, 0.0 }
0x11b5   :  { %v6931_v43 = vsel %vm6927_vm1, %v6929_v41, 0.0 }
0x11b6   :  { %v6934_v20 = vsel %vm6932_vm2, %v6931_v43, 0.0 }
0x11b7   :  { %v6935_v46 = vadd.f32 %v6934_v20, %v6933_v35 }
0x11b9   :  { %6936 = vadd.xlane.f32.xlu2 %v6935_v46 }
0x11d1   :  { %6865 = vrot.lane.b32.xlu2 %v11123_v10, %s8060_s11 }
0x122c   :  { %v6937_v26 = vpop.xlane.xlu2 %6936 }
0x122d   :  { %v6938_v62 = vrot.slane %v6937_v26, 4 }
0x122f   :  { %v6939_v23 = vadd.f32 %v6938_v62, %v6937_v26 }
0x1231   :  { %v6940_v50 = vrot.slane %v6939_v23, 2 }
0x1233   :  { %v6941_v27 = vadd.f32 %v6940_v50, %v6939_v23 }
0x1234   :  { %v6866_v55 = vpop.permute.xlu2 %6865 }
0x1235   :  { %v6871_v17 = vsel %vm262_vm5, %v11124_v1, %v6866_v55  ;;  %v6942_v19 = vrot.slane %v6941_v27, 1 }
0x1236   :  { %6873 = vst [vmem:[%s10989_s9 - $0x7] sm:$0x80] %v6871_v17 }
0x1237   :  { %v6943_v51 = vadd.f32 %v6942_v19, %v6941_v27 }
0x1239   :  { %7385 = vpush %v6943_v51 }
0x126a   :  { %s7386_s8 = spop %7385 }
0x126b   :  { %v6945_v39 = vstv %s7386_s8 }
0x126c   :  { %6946 = vst [vmem:[%s10990_s10] sm:$0x1] %v6945_v39 }
0x126d   :  { %8057 = dma.done.wait [#allocation3], 256  }
0x126e   :  { %8058 = vsyncadd [#allocation3], 4294967040 }
0x126f   :  { %6972 = vsyncpa [#allocation3], 1 }

</bundles_post_ra>
